<compile_context>
chip_gen: v5e
topology: v5e:2x2
jax: 0.10.0
libtpu: 0.0.40
codegen_flags: <defaults>
</compile_context>

<pallas_src>
import jax
import jax.numpy as jnp
from jax.experimental import pallas as pl
from jax.experimental.pallas import tpu as pltpu


def _mul_conv1x1_kernel(s_ref, x_ref, w_ref, o_ref):
    # s_ref: (tk, 1)  f32  per-channel scale
    # x_ref: (tk, HW) f32  input tile (channels x spatial)
    # w_ref: (tn, tk) bf16 weight tile
    # o_ref: (tn, HW) f32  output block, resident across the K grid axis
    k = pl.program_id(1)

    # Fused elementwise scale (broadcast (tk,1) over (tk,HW)), cast to bf16 so
    # both MXU operands are bf16; accumulate in f32.
    xs = (x_ref[...] * s_ref[...]).astype(w_ref.dtype)
    part = jnp.dot(w_ref[...], xs, preferred_element_type=jnp.float32)

    @pl.when(k == 0)
    def _():
        o_ref[...] = part

    @pl.when(k > 0)
    def _():
        o_ref[...] += part


def _device_kind():
    try:
        return jax.devices()[0].device_kind.lower()
    except Exception:
        return ""


def mul_conv1x1(x_nchw, scale_nc11, weight_oi11, *, tk=None, tn=None):
    """x_nchw: (1, Cin, H, W); scale_nc11: (1, Cin, 1, 1);
    weight_oi11: (Cout, Cin, 1, 1) (any float dtype; bf16 preferred / pre-cast).
    Returns (1, Cout, H, W) float32."""
    N, Cin, H, W = x_nchw.shape
    Cout = weight_oi11.shape[0]
    HW = H * W
    assert N == 1
    assert scale_nc11.shape == (N, Cin, 1, 1)
    assert weight_oi11.shape == (Cout, Cin, 1, 1)

    kind = _device_kind()
    is_v7 = ("v7" in kind) or ("7x" in kind)
    is_v5 = "v5" in kind

    if tn is None:
        # v7x has 2 TensorCores: split Cout so each TC streams half the weight.
        if is_v7 and Cout % 2 == 0 and (Cout // 2) % 16 == 0:
            tn = Cout // 2
        else:
            tn = Cout
    assert Cout % tn == 0

    if tk is None:
        # v5e: more (smaller) K steps hide the DMA prologue behind slower HBM.
        prefer = 1280 if is_v5 else 1920
        tk = Cin
        for cand in (prefer, 1920, 1280, 768, 640, 512, 384, 256, 128):
            if cand <= Cin and Cin % cand == 0 and cand % 128 == 0:
                tk = cand
                break
    assert Cin % tk == 0

    # Pure reshapes -- no transposes, no padding.
    x_mat = x_nchw.reshape(Cin, HW)            # (Cin, HW)
    s_col = scale_nc11.reshape(Cin, 1)         # (Cin, 1)
    w_mat = weight_oi11.reshape(Cout, Cin)     # (Cout, Cin)
    if w_mat.dtype != jnp.bfloat16:
        # In a real network pre-cast/cache the bf16 weight once outside the
        # hot path; this path only triggers if the caller passes f32 weights.
        w_mat = w_mat.astype(jnp.bfloat16)

    ng = Cout // tn
    kg = Cin // tk

    x_itemsize = jnp.dtype(x_nchw.dtype).itemsize
    cost = pl.CostEstimate(
        flops=2 * HW * Cin * Cout,
        transcendentals=0,
        bytes_accessed=(Cout * Cin * 2                      # bf16 weight
                        + (Cin * HW + Cin) * x_itemsize     # x + scale
                        + Cout * HW * 4),                   # f32 output
    )

    out_mat = pl.pallas_call(
        _mul_conv1x1_kernel,
        out_shape=jax.ShapeDtypeStruct((Cout, HW), jnp.float32),
        grid_spec=pltpu.PrefetchScalarGridSpec(
            num_scalar_prefetch=0,
            grid=(ng, kg),
            in_specs=[
                pl.BlockSpec((tk, 1), lambda n, k: (k, 0)),    # scale
                pl.BlockSpec((tk, HW), lambda n, k: (k, 0)),   # x
                pl.BlockSpec((tn, tk), lambda n, k: (n, k)),   # weight (bf16)
            ],
            out_specs=pl.BlockSpec((tn, HW), lambda n, k: (n, 0)),
        ),
        compiler_params=pltpu.CompilerParams(
            dimension_semantics=("parallel", "arbitrary"),
            # bf16 weight double-buffered (~5 MB) + lane-padded x/out tiles
            # stay well under 32 MiB on every generation (v5e scoped default
            # is only 16 MiB, v7x physical VMEM is 64 MiB).
            vmem_limit_bytes=32 * 1024 * 1024,
        ),
        cost_estimate=cost,
    )(s_col, x_mat, w_mat)

    # (Cout, HW) -> (1, Cout, H, W): pure reshape, no transpose.
    return out_mat.reshape(N, Cout, H, W)


if __name__ == "__main__":
    key = jax.random.PRNGKey(0)
    k1, k2, k3 = jax.random.split(key, 3)

    # Shapes implied by the module: Conv2d(3840, 640, 1) on a 1x3840x7x7 input.
    N, Cin, Cout, H, W = 1, 3840, 640, 7, 7
    x804 = jax.random.normal(k1, (N, Cin, H, W), dtype=jnp.float32)
    x809 = jax.random.normal(k2, (N, Cin, 1, 1), dtype=jnp.float32)
    weight = jax.random.normal(k3, (Cout, Cin, 1, 1), dtype=jnp.float32) * 0.02

    # Pre-cast the weight to bf16 once, outside the per-call hot path.
    weight_bf16 = weight.astype(jnp.bfloat16)

    out = mul_conv1x1(x804, x809, weight_bf16)
    out = jax.block_until_ready(out)
    assert out.shape == (N, Cout, H, W)

    # Pure-JAX reference using the same bf16-rounded operands (f32 accumulate).
    xs_ref = (x804 * x809).astype(jnp.bfloat16).astype(jnp.float32)
    w_ref = weight_bf16.reshape(Cout, Cin).astype(jnp.float32)
    ref = jnp.einsum("nchw,oc->nohw", xs_ref, w_ref)
    assert jnp.allclose(out, ref, atol=3e-2, rtol=3e-2)

    print("KERNEL_OK")
</pallas_src>

<mosaic_0001>
module attributes {stable_mosaic.version = 11 : i64} {
  func.func @_mul_conv1x1_kernel(%arg0: i32, %arg1: i32, %arg2: memref<1920x1xf32, #tpu.memory_space<vmem>>, %arg3: memref<1920x49xf32, #tpu.memory_space<vmem>>, %arg4: memref<640x1920xbf16, #tpu.memory_space<vmem>>, %arg5: memref<640x49xf32, #tpu.memory_space<vmem>>) attributes {dimension_semantics = [#tpu.dimension_semantics<parallel>, #tpu.dimension_semantics<arbitrary>], iteration_bounds = array<i64: 1, 2>, scalar_prefetch = 0 : i64, scratch_operands = 0 : i64, tpu.core_type = #tpu.core_type<tc>, window_params = [{transform_indices = @transform_0, window_bounds = array<i64: 1920, 1>}, {transform_indices = @transform_1, window_bounds = array<i64: 1920, 49>}, {transform_indices = @transform_2, window_bounds = array<i64: 640, 1920>}, {transform_indices = @transform_3, window_bounds = array<i64: 640, 49>}]} {
    %c0 = arith.constant 0 : index
    %c0_0 = arith.constant 0 : index
    %0 = vector.load %arg3[%c0, %c0_0] : memref<1920x49xf32, #tpu.memory_space<vmem>>, vector<1920x49xf32>
    %c0_1 = arith.constant 0 : index
    %c0_2 = arith.constant 0 : index
    %1 = vector.load %arg2[%c0_1, %c0_2] : memref<1920x1xf32, #tpu.memory_space<vmem>>, vector<1920x1xf32>
    %2 = vector.broadcast %1 : vector<1920x1xf32> to vector<1920x49xf32>
    %3 = arith.mulf %0, %2 : vector<1920x49xf32>
    %4 = arith.truncf %3 : vector<1920x49xf32> to vector<1920x49xbf16>
    %c0_3 = arith.constant 0 : index
    %c0_4 = arith.constant 0 : index
    %5 = vector.load %arg4[%c0_3, %c0_4] : memref<640x1920xbf16, #tpu.memory_space<vmem>>, vector<640x1920xbf16>
    %cst = arith.constant dense<0.000000e+00> : vector<640x49xf32>
    %6 = tpu.matmul %5, %4, %cst {dimension_numbers = #tpu.dot_dimension_numbers<[1], [0], [0], [1], [0, 0, 1, 1], [], []>} : vector<640x1920xbf16>, vector<1920x49xbf16>, vector<640x49xf32> -> vector<640x49xf32>
    %c0_i32 = arith.constant 0 : i32
    %7 = arith.cmpi eq, %arg1, %c0_i32 : i32
    %8 = arith.extui %7 : i1 to i32
    %c0_i32_5 = arith.constant 0 : i32
    %9 = arith.cmpi ne, %8, %c0_i32_5 : i32
    scf.if %9 {
      %c0_8 = arith.constant 0 : index
      %c0_9 = arith.constant 0 : index
      %13 = vector.load %arg5[%c0_8, %c0_9] : memref<640x49xf32, #tpu.memory_space<vmem>>, vector<640x49xf32>
      tpu.vector_store %arg5[%c0_8, %c0_9], %6 {strides = array<i32>} : memref<640x49xf32, #tpu.memory_space<vmem>>, vector<640x49xf32>,
    } else {
    }
    %c0_i32_6 = arith.constant 0 : i32
    %10 = arith.cmpi sgt, %arg1, %c0_i32_6 : i32
    %11 = arith.extui %10 : i1 to i32
    %c0_i32_7 = arith.constant 0 : i32
    %12 = arith.cmpi ne, %11, %c0_i32_7 : i32
    scf.if %12 {
      %c0_8 = arith.constant 0 : index
      %c0_9 = arith.constant 0 : index
      %13 = vector.load %arg5[%c0_8, %c0_9] : memref<640x49xf32, #tpu.memory_space<vmem>>, vector<640x49xf32>
      %14 = arith.addf %13, %6 : vector<640x49xf32>
      %c0_10 = arith.constant 0 : index
      %c0_11 = arith.constant 0 : index
      %15 = vector.load %arg5[%c0_10, %c0_11] : memref<640x49xf32, #tpu.memory_space<vmem>>, vector<640x49xf32>
      tpu.vector_store %arg5[%c0_10, %c0_11], %14 {strides = array<i32>} : memref<640x49xf32, #tpu.memory_space<vmem>>, vector<640x49xf32>,
    } else {
    }
    return
  }
  func.func @transform_0(%arg0: i32, %arg1: i32) -> (i32, i32) {
    %c0_i32 = arith.constant 0 : i32
    %c0_i32_0 = arith.constant 0 : i32
    return %arg1, %c0_i32 : i32, i32
  }
  func.func @transform_1(%arg0: i32, %arg1: i32) -> (i32, i32) {
    %c0_i32 = arith.constant 0 : i32
    %c0_i32_0 = arith.constant 0 : i32
    return %arg1, %c0_i32 : i32, i32
  }
  func.func @transform_2(%arg0: i32, %arg1: i32) -> (i32, i32) {
    %c0_i32 = arith.constant 0 : i32
    return %arg0, %arg1 : i32, i32
  }
  func.func @transform_3(%arg0: i32, %arg1: i32) -> (i32, i32) {
    %c0_i32 = arith.constant 0 : i32
    %c0_i32_0 = arith.constant 0 : i32
    return %arg0, %c0_i32 : i32, i32
  }
}

</mosaic_0001>

<bundles_post_ra>
// kernel: tpu_custom_call.1
= control target key start
LH: loop header
LB: loop body
LE: loop exit
PB: predicated region body
PF: predicated region fallthrough
CT: control target
= control target key end

     0   :  { %8 = vsyncpa [#allocation3], 0  ;;  %s17242_s0 = inlined_call_operand.vmem [shape: f32[3840,1], index: 0, kind: input, shape index: {}]   ;;  %s17243_s1 = inlined_call_operand.vmem [shape: f32[3840,49], index: 1, kind: input, shape index: {}]   ;;  %s17244_s2 = inlined_call_operand.hbm [shape: bf16[640,3840], index: 2, kind: input, shape index: {}]   ;;  %s17245_s3 = inlined_call_operand.vmem [shape: f32[640,49], index: 3, kind: output, shape index: {}]  }
   0x1   :  { %10 = vsyncpa [#allocation3 + $0x1], 0  ;;  %s12750_s12 = smov 0   ;;  %s12752_s13 = smov 0  }
   0x2   :  { %s12754_s14 = smov 0   ;;  %s12756_s15 = smov 0  }
   0x3   :  { %s12758_s16 = smov 0   ;;  %s12760_s17 = smov 0  }
   0x4 LB: > { %s9542_s18 = sadd.s32 4294967295, %s12724_s17   ;;  %s25_s19 = sadd.s32 1, %s12720_s16  ;;  %s12724_s17 = sphi %s12760_s17, %s16_s17   ;;  %s12720_s16 = sphi %s12758_s16, %s17696_s16   ;;  %s12716_s15 = sphi %s12756_s15, %s17695_s15   ;;  %s12712_s14 = sphi %s12754_s14, %s17694_s14   ;;  %s12708_s13 = sphi %s12752_s13, %s17693_s13   ;;  %s12704_s12 = sphi %s12750_s12, %s17692_s12  }
   0x5   : > { %p26_p0 = scmp.ge.s32.totalorder %s25_s19, 2  ;;  %s89_s20 = sadd.s32 1, %s12712_s14 }
   0x6   : > { %p96_p1 = scmp.ne.s32.totalorder %s12712_s14, %s12708_s13  ;;  %p97_p2 = scmp.eq.s32.totalorder %s12724_s17, 0 }
   0x7   : > { %s17698_s19 = smov (%p26_p0, %s25_s19), 0  ;;  %p102_p4 = scmp.ne.s32.totalorder %s12708_s13, %s12704_s12 }
   0x8   : > { %p98_p3 = por %p97_p2, %p96_p1  ;;  %s85_s21 = ssub.s32 %s12720_s16, %s17698_s19 }
   0x9   : > { %p103_p5 = scmp.eq.s32.totalorder %s9542_s18, 0  ;;  %p87_p6 = scmp.eq.s32.totalorder %s85_s21, 0 }
   0xa   : > { %p12588_p8 = scmp.lt.s32.totalorder %s12724_s17, 2  ;;  %s170_s24 = sand.u32 1, %s12712_s14  }
   0xb   : > { %p12789_p7 = por %p103_p5, %p102_p4  ;;  %s11955_s25 = smul.u32 60, %s12720_s16 }
   0xc   : > { %s12795_s23 = scalar_select %p87_p6, %s12712_s14, %s89_s20  }
   0xd   : > { %s12580_s26 = smul.u32 4800, %s170_s24  ;;  %s182_s29 = scalar_lea.hbm %s17244_s2, %s11955_s25 }
   0xe   : > { %p12585_p9 = pnand %p12588_p8, %p98_p3  ;;  %s183_s30 = sshll.u32 %s182_s29, 4  ;;  %s184_s30 = int_to_ptr.hbm [resolvable:$true] %s183_s30 }
   0xf   : > { %s174_s4 = scalar_lea.vmem [#allocation2], %s12580_s26  ;;  %p9546_p10 = scmp.ge.s32.totalorder %s12724_s17, 1 }
  0x10   : > { %s185_s5 = sshll.u32 %s174_s4, 4  ;;  %s171_s6 = scalar_lea.sflag [#allocation3], %s170_s24  ;;  %s186_s5 = int_to_ptr.vmem [resolvable:$true] %s185_s5 }
  0x11   : > { %s12726_s7 = smov 1920   ;;  %s12727_s8 = smov 960  }
  0x12   : > { %s12728_s9 = smov 60   ;;  %p193_p11 = scmp.lt.s32.totalorder %s12724_s17, 3 }
  0x13   : > { %12587 = dma.hbm_to_vmem [thread:$0]  (!%p12585_p9), %s184_s30, 76800, %s186_s5, %s171_s6, %s12726_s7, %s12727_s8, %s12728_s9  }
  0x14   : > { %p194_p12 = pnand %p9546_p10, %p193_p11 }
  0x16   : > { %197 = sbr.rel (%p194_p12) target bundleno = 2982 (0xba6), region = 32 }
  0x1b   : > { %s199_s10 = sand.u32 1, %s12708_s13  }
  0x1c   : > { %s12581_s11 = smul.u32 4800, %s199_s10  ;;  %s200_s12 = scalar_lea.sflag [#allocation3], %s199_s10 }
  0x1e   : > { %s12805_s18 = scalar_lea.vmem [#allocation2], %s12581_s11 }
  0x1f   : > { %12699 = dma.done.wait (%p12789_p7), %s200_s12, 76800  }
  0x20   : > { %12701 = vsyncadd (%p12789_p7), %s200_s12, 4294890496  ;;  %s237_s20 = smul.u32 240, %s12716_s15  ;;  %v12729_v0 = vmov 0   ;;  %p11949_p0 = scmp.ne.s32.totalorder %s12716_s15, 0 }
  0x21   : > { %12643 = vset.pattern.permute.xlu2 %v12729_v0  ;;  %12642 = vset.pattern.permute.xlu1 %v12729_v0 }
  0x22   : > { %12641 = vset.pattern.permute.xlu0 %v12729_v0  ;;  %p238_p13 = scmp.lt.s32.totalorder %s237_s20, 479 }
  0x24   : > { %s17700_s20 = smov (!%p238_p13, %s237_s20), 479 }
  0x25   : > { %s9547_s21 = sshll.u32 %s17700_s20, 3 }
  0x26   : > { %s12820_s26 = scalar_lea.vmem %s17242_s0, %s9547_s21  ;;  %s12863_s28 = scalar_lea.vmem %s17243_s1, %s9547_s21 }
  0x27   : > { %v543_v1 = vld [vmem:[%s12820_s26 + $0x170] sm:$0xff]  ;;  %v509_v3 = vld [vmem:[%s12820_s26 + $0x60] sm:$0xff]  ;;  %v544_v4 = vld [vmem:[%s12820_s26 + $0x178] sm:$0xff] }
  0x28   : > { %v511_v2 = vld [vmem:[%s12820_s26 + $0x70] sm:$0xff]  ;;  %969 = vperm.xlu2 %12643, %v543_v1   ;;  %799 = vperm.xlu1 %12642, %v509_v3   ;;  %v512_v5 = vld [vmem:[%s12820_s26 + $0x78] sm:$0xff]  ;;  %v510_v6 = vld [vmem:[%s12820_s26 + $0x68] sm:$0xff] }
  0x29   : > { %809 = vperm.xlu0 %12641, %v511_v2   ;;  %v527_v7 = vld [vmem:[%s12820_s26 + $0xf0] sm:$0xff]  ;;  %v508_v9 = vld [vmem:[%s12820_s26 + $0x58] sm:$0xff]  ;;  %v542_v10 = vld [vmem:[%s12820_s26 + $0x168] sm:$0xff] }
  0x2a   : > { %v507_v8 = vld [vmem:[%s12820_s26 + $0x50] sm:$0xff]  ;;  %v528_v11 = vld [vmem:[%s12820_s26 + $0xf8] sm:$0xff]  ;;  %v541_v12 = vld [vmem:[%s12820_s26 + $0x160] sm:$0xff] }
  0x2b   : > { %v525_v13 = vld [vmem:[%s12820_s26 + $0xe0] sm:$0xff]  ;;  %v506_v15 = vld [vmem:[%s12820_s26 + $0x48] sm:$0xff]  ;;  %v540_v16 = vld [vmem:[%s12820_s26 + $0x158] sm:$0xff] }
  0x2c   : > { %v505_v14 = vld [vmem:[%s12820_s26 + $0x40] sm:$0xff]  ;;  %v526_v17 = vld [vmem:[%s12820_s26 + $0xe8] sm:$0xff]  ;;  %v539_v18 = vld [vmem:[%s12820_s26 + $0x150] sm:$0xff] }
  0x2d   : > { %v523_v19 = vld [vmem:[%s12820_s26 + $0xd0] sm:$0xff]  ;;  %v504_v21 = vld [vmem:[%s12820_s26 + $0x38] sm:$0xff]  ;;  %v538_v22 = vld [vmem:[%s12820_s26 + $0x148] sm:$0xff] }
  0x2e   : > { %v503_v20 = vld [vmem:[%s12820_s26 + $0x30] sm:$0xff]  ;;  %v524_v23 = vld [vmem:[%s12820_s26 + $0xd8] sm:$0xff]  ;;  %v537_v24 = vld [vmem:[%s12820_s26 + $0x140] sm:$0xff] }
  0x2f   : > { %v521_v25 = vld [vmem:[%s12820_s26 + $0xc0] sm:$0xff]  ;;  %v502_v27 = vld [vmem:[%s12820_s26 + $0x28] sm:$0xff]  ;;  %v536_v28 = vld [vmem:[%s12820_s26 + $0x138] sm:$0xff] }
  0x30   : > { %974 = vperm.xlu2 %12643, %v544_v4   ;;  %804 = vperm.xlu1 %12642, %v510_v6   ;;  %v501_v26 = vld [vmem:[%s12820_s26 + $0x20] sm:$0xff]  ;;  %v522_v29 = vld [vmem:[%s12820_s26 + $0xc8] sm:$0xff]  ;;  %v535_v30 = vld [vmem:[%s12820_s26 + $0x130] sm:$0xff] }
  0x31   : > { %814 = vperm.xlu0 %12641, %v512_v5   ;;  %v519_v31 = vld [vmem:[%s12820_s26 + $0xb0] sm:$0xff]  ;;  %v500_v33 = vld [vmem:[%s12820_s26 + $0x18] sm:$0xff]  ;;  %v534_v34 = vld [vmem:[%s12820_s26 + $0x128] sm:$0xff] }
  0x32   : > { %v499_v32 = vld [vmem:[%s12820_s26 + $0x10] sm:$0xff]  ;;  %v520_v35 = vld [vmem:[%s12820_s26 + $0xb8] sm:$0xff]  ;;  %v533_v36 = vld [vmem:[%s12820_s26 + $0x120] sm:$0xff] }
  0x33   : > { %v517_v38 = vld [vmem:[%s12820_s26 + $0xa0] sm:$0xff]  ;;  %v303_v40 = vld [vmem:[%s12863_s28 + $0x170] sm:$0xff]  ;;  %v498_v41 = vld [vmem:[%s12820_s26 + $0x8] sm:$0xff] }
  0x34   : > { %v497_v39 = vld [vmem:[%s12820_s26] sm:$0xff]  ;;  %v304_v42 = vld [vmem:[%s12863_s28 + $0x178] sm:$0xff]  ;;  %v518_v47 = vld [vmem:[%s12820_s26 + $0xa8] sm:$0xff] }
  0x35   : > { %v532_v46 = vld [vmem:[%s12820_s26 + $0x118] sm:$0xff]  ;;  %v531_v49 = vld [vmem:[%s12820_s26 + $0x110] sm:$0xff]  ;;  %v529_v51 = vld [vmem:[%s12820_s26 + $0x100] sm:$0xff] }
  0x36   : > { %v515_v52 = vld [vmem:[%s12820_s26 + $0x90] sm:$0xff]  ;;  %v516_v53 = vld [vmem:[%s12820_s26 + $0x98] sm:$0xff]  ;;  %v514_v57 = vld [vmem:[%s12820_s26 + $0x88] sm:$0xff] }
  0x37   : > { %v530_v58 = vld [vmem:[%s12820_s26 + $0x108] sm:$0xff]  ;;  %v513_v59 = vld [vmem:[%s12820_s26 + $0x80] sm:$0xff]  ;;  %v271_v60 = vld [vmem:[%s12863_s28 + $0x70] sm:$0xff] }
  0x38   : > { %889 = vperm.xlu2 %12643, %v527_v7   ;;  %794 = vperm.xlu1 %12642, %v508_v9   ;;  %v272_v61 = vld [vmem:[%s12863_s28 + $0x78] sm:$0xff]  ;;  %v270_v0 = vld [vmem:[%s12863_s28 + $0x68] sm:$0xff]  ;;  %v269_v4 = vld [vmem:[%s12863_s28 + $0x60] sm:$0xff] }
  0x39   : > { %789 = vperm.xlu0 %12641, %v507_v8   ;;  %v557_v7 = vld [vmem:[%s12820_s26 + $0x1e0] sm:$0xff]  ;;  %v559_v8 = vld [vmem:[%s12820_s26 + $0x1f0] sm:$0xff]  ;;  %v560_v9 = vld [vmem:[%s12820_s26 + $0x1f8] sm:$0xff] }
  0x40   : > { %964 = vperm.xlu2 %12643, %v542_v10   ;;  %959 = vperm.xlu1 %12642, %v541_v12   ;;  %v268_v12 = vld [vmem:[%s12863_s28 + $0x58] sm:$0xff] }
  0x41   : > { %894 = vperm.xlu0 %12641, %v528_v11   ;;  %v267_v11 = vld [vmem:[%s12863_s28 + $0x50] sm:$0xff] }
  0x48   : > { %879 = vperm.xlu2 %12643, %v525_v13   ;;  %784 = vperm.xlu1 %12642, %v506_v15  }
  0x49   : > { %779 = vperm.xlu0 %12641, %v505_v14  }
  0x50   : > { %954 = vperm.xlu2 %12643, %v540_v16   ;;  %949 = vperm.xlu1 %12642, %v539_v18  }
  0x51   : > { %884 = vperm.xlu0 %12641, %v526_v17  }
  0x58   : > { %869 = vperm.xlu2 %12643, %v523_v19   ;;  %774 = vperm.xlu1 %12642, %v504_v21   ;;  %v607_v21 = vld [vmem:[%s12820_s26 + $0x370] sm:$0xff] }
  0x59   : > { %769 = vperm.xlu0 %12641, %v503_v20   ;;  %v608_v20 = vld [vmem:[%s12820_s26 + $0x378] sm:$0xff] }
  0x60   : > { %944 = vperm.xlu2 %12643, %v538_v22   ;;  %939 = vperm.xlu1 %12642, %v537_v24   ;;  %v558_v22 = vld [vmem:[%s12820_s26 + $0x1e8] sm:$0xff]  ;;  %v288_v24 = vld [vmem:[%s12863_s28 + $0xf8] sm:$0xff] }
  0x61   : > { %874 = vperm.xlu0 %12641, %v524_v23   ;;  %v287_v23 = vld [vmem:[%s12863_s28 + $0xf0] sm:$0xff] }
  0x68   : > { %859 = vperm.xlu2 %12643, %v521_v25   ;;  %764 = vperm.xlu1 %12642, %v502_v27   ;;  %v302_v25 = vld [vmem:[%s12863_s28 + $0x168] sm:$0xff] }
  0x69   : > { %759 = vperm.xlu0 %12641, %v501_v26   ;;  %v301_v26 = vld [vmem:[%s12863_s28 + $0x160] sm:$0xff] }
  0x70   : > { %934 = vperm.xlu2 %12643, %v536_v28   ;;  %929 = vperm.xlu1 %12642, %v535_v30  }
  0x71   : > { %864 = vperm.xlu0 %12641, %v522_v29  }
  0x78   : > { %849 = vperm.xlu2 %12643, %v519_v31   ;;  %754 = vperm.xlu1 %12642, %v500_v33  }
  0x79   : > { %749 = vperm.xlu0 %12641, %v499_v32  }
  0x80   : > { %924 = vperm.xlu2 %12643, %v534_v34   ;;  %919 = vperm.xlu1 %12642, %v533_v36   ;;  %v575_v36 = vld [vmem:[%s12820_s26 + $0x270] sm:$0xff] }
  0x81   : > { %854 = vperm.xlu0 %12641, %v520_v35  }
  0x82   : > { %v970_v37 = vpop.permute.xlu2 %969 }
  0x83   : > { %v1983_v43 = vmul.f32 %v970_v37, %v303_v40  ;;  %v556_v37 = vld [vmem:[%s12820_s26 + $0x1d8] sm:$0xff]  ;;  %v266_v40 = vld [vmem:[%s12863_s28 + $0x48] sm:$0xff] }
  0x88   : > { %839 = vperm.xlu2 %12643, %v517_v38   ;;  %744 = vperm.xlu1 %12642, %v498_v41   ;;  %v555_v38 = vld [vmem:[%s12820_s26 + $0x1d0] sm:$0xff] }
  0x89   : > { %739 = vperm.xlu0 %12641, %v497_v39   ;;  %v265_v39 = vld [vmem:[%s12863_s28 + $0x40] sm:$0xff] }
  0x8a   : > { %v975_v44 = vpop.permute.xlu2 %974 }
  0x8b   : > { %v1984_v45 = vmul.f32 %v975_v44, %v304_v42 }
  0x8d   : > { %v12872_v48 = vpack.c.bf16 %v1984_v45, %v1983_v43 }
  0x8f   : > { %6395 = vmatpush.bf16.msra.mxu2 %v12872_v48 }
  0x90   : > { %914 = vperm.xlu2 %12643, %v532_v46   ;;  %909 = vperm.xlu1 %12642, %v531_v49   ;;  %v591_v49 = vld [vmem:[%s12820_s26 + $0x2f0] sm:$0xff] }
  0x91   : > { %844 = vperm.xlu0 %12641, %v518_v47   ;;  %v592_v47 = vld [vmem:[%s12820_s26 + $0x2f8] sm:$0xff] }
  0x92   : > { %v890_v50 = vpop.permute.xlu2 %889 }
  0x93   : > { %v1967_v29 = vmul.f32 %v890_v50, %v287_v23  ;;  %v576_v50 = vld [vmem:[%s12820_s26 + $0x278] sm:$0xff] }
  0x98   : > { %899 = vperm.xlu2 %12643, %v529_v51   ;;  %834 = vperm.xlu1 %12642, %v516_v53   ;;  %v285_v51 = vld [vmem:[%s12863_s28 + $0xe0] sm:$0xff]  ;;  %v300_v53 = vld [vmem:[%s12863_s28 + $0x158] sm:$0xff] }
  0x99   : > { %829 = vperm.xlu0 %12641, %v515_v52   ;;  %v286_v52 = vld [vmem:[%s12863_s28 + $0xe8] sm:$0xff] }
  0x9a   : > { %v965_v54 = vpop.permute.xlu2 %964  ;;  %v800_v56 = vpop.permute.xlu1 %799 }
  0x9b   : > { %v810_v55 = vpop.permute.xlu0 %809  ;;  %v1949_v10 = vmul.f32 %v800_v56, %v269_v4  ;;  %v1982_v32 = vmul.f32 %v965_v54, %v302_v25  ;;  %v299_v54 = vld [vmem:[%s12863_s28 + $0x150] sm:$0xff]  ;;  %v264_v4 = vld [vmem:[%s12863_s28 + $0x38] sm:$0xff] }
  0x9c   : > { %v1951_v1 = vmul.f32 %v810_v55, %v271_v60 }
  0xa0   : > { %824 = vperm.xlu2 %12643, %v514_v57   ;;  %819 = vperm.xlu1 %12642, %v513_v59  }
  0xa1   : > { %904 = vperm.xlu0 %12641, %v530_v58  }
  0xa2   : > { %v12884_v62 = vpop.permute.xlu2 %879  ;;  %v805_v3 = vpop.permute.xlu1 %804 }
  0xa3   : > { %v815_v63 = vpop.permute.xlu0 %814  ;;  %v1950_v5 = vmul.f32 %v805_v3, %v270_v0  ;;  %v1965_v57 = vmul.f32 %v12884_v62, %v285_v51  ;;  %v605_v3 = vld [vmem:[%s12820_s26 + $0x360] sm:$0xff]  ;;  %v263_v62 = vld [vmem:[%s12863_s28 + $0x30] sm:$0xff] }
  0xa4   : > { %v1952_v2 = vmul.f32 %v815_v63, %v272_v61 }
  0xa5   : > { %v2183_v13 = vpack.c.bf16 %v1950_v5, %v1949_v10 }
  0xa6   : > { %v2184_v6 = vpack.c.bf16 %v1952_v2, %v1951_v1  ;;  %v553_v1 = vld [vmem:[%s12820_s26 + $0x1c0] sm:$0xff]  ;;  %v606_v2 = vld [vmem:[%s12820_s26 + $0x368] sm:$0xff] }
  0xa8   : > { %5977 = vmatpush.bf16.msra.mxu0 %v2184_v6  ;;  %12556 = vmatpush.bf16.msra.mxu3 %v2184_v6 }
  0xa9   : > { %1039 = vperm.xlu2 %12643, %v557_v7   ;;  %1049 = vperm.xlu0 %12641, %v559_v8  }
  0xaa   : > { %1054 = vperm.xlu1 %12642, %v560_v9   ;;  %v955_v14 = vpop.permute.xlu2 %954  ;;  %v795_v16 = vpop.permute.xlu1 %794 }
  0xab   : > { %v790_v15 = vpop.permute.xlu0 %789  ;;  %v1948_v18 = vmul.f32 %v795_v16, %v268_v12  ;;  %v1980_v60 = vmul.f32 %v955_v14, %v300_v53  ;;  %v573_v12 = vld [vmem:[%s12820_s26 + $0x260] sm:$0xff]  ;;  %v283_v14 = vld [vmem:[%s12863_s28 + $0xd0] sm:$0xff]  ;;  %v298_v16 = vld [vmem:[%s12863_s28 + $0x148] sm:$0xff] }
  0xac   : > { %v1947_v17 = vmul.f32 %v790_v15, %v267_v11  ;;  %5978 = vmatpush.bf16.msra.mxu0 %v2183_v13  ;;  %12557 = vmatpush.bf16.msra.mxu3 %v2183_v13  ;;  %v574_v11 = vld [vmem:[%s12820_s26 + $0x268] sm:$0xff]  ;;  %v284_v15 = vld [vmem:[%s12863_s28 + $0xd8] sm:$0xff] }
  0xad   : > { %v554_v13 = vld [vmem:[%s12820_s26 + $0x1c8] sm:$0xff] }
  0xae   : > { %v2182_v19 = vpack.c.bf16 %v1948_v18, %v1947_v17  ;;  %v297_v17 = vld [vmem:[%s12863_s28 + $0x140] sm:$0xff] }
  0xb0   : > { %5979 = vmatpush.bf16.msra.mxu0 %v2182_v19  ;;  %12558 = vmatpush.bf16.msra.mxu3 %v2182_v19 }
  0xb1   : > { %1294 = vperm.xlu2 %12643, %v608_v20   ;;  %1044 = vperm.xlu0 %12641, %v558_v22  }
  0xb2   : > { %1289 = vperm.xlu1 %12642, %v607_v21   ;;  %v12900_v27 = vpop.permute.xlu2 %869  ;;  %v960_v30 = vpop.permute.xlu1 %959 }
  0xb3   : > { %v895_v28 = vpop.permute.xlu0 %894  ;;  %v1981_v33 = vmul.f32 %v960_v30, %v301_v26  ;;  %v1963_v20 = vmul.f32 %v12900_v27, %v283_v14  ;;  %v589_v30 = vld [vmem:[%s12820_s26 + $0x2e0] sm:$0xff] }
  0xb4   : > { %v1968_v31 = vmul.f32 %v895_v28, %v288_v24  ;;  %v603_v28 = vld [vmem:[%s12820_s26 + $0x350] sm:$0xff]  ;;  %v261_v27 = vld [vmem:[%s12863_s28 + $0x20] sm:$0xff] }
  0xb5   : > { %v12904_v35 = vpack.c.bf16 %v1982_v32, %v1981_v33 }
  0xb6   : > { %v12902_v34 = vpack.c.bf16 %v1968_v31, %v1967_v29  ;;  %v590_v29 = vld [vmem:[%s12820_s26 + $0x2e8] sm:$0xff] }
  0xb7   : > { %6396 = vmatpush.bf16.msra.mxu2 %v12904_v35  ;;  %v262_v31 = vld [vmem:[%s12863_s28 + $0x28] sm:$0xff] }
  0xb8   : > { %6186 = vmatpush.bf16.msra.mxu1 %v12902_v34 }
  0xb9   : > { %1129 = vperm.xlu2 %12643, %v575_v36   ;;  %1029 = vperm.xlu0 %12641, %v555_v38  }
  0xba   : > { %1034 = vperm.xlu1 %12642, %v556_v37   ;;  %v945_v41 = vpop.permute.xlu2 %944  ;;  %v785_v43 = vpop.permute.xlu1 %784 }
  0xbb   : > { %v780_v42 = vpop.permute.xlu0 %779  ;;  %v1946_v45 = vmul.f32 %v785_v43, %v266_v40  ;;  %v1978_v23 = vmul.f32 %v945_v41, %v298_v16  ;;  %v552_v40 = vld [vmem:[%s12820_s26 + $0x1b8] sm:$0xff]  ;;  %v551_v41 = vld [vmem:[%s12820_s26 + $0x1b0] sm:$0xff]  ;;  %v281_v43 = vld [vmem:[%s12863_s28 + $0xc0] sm:$0xff] }
  0xbc   : > { %v1945_v44 = vmul.f32 %v780_v42, %v265_v39  ;;  %v604_v42 = vld [vmem:[%s12820_s26 + $0x358] sm:$0xff] }
  0xbe   : > { %v2181_v46 = vpack.c.bf16 %v1946_v45, %v1945_v44  ;;  %v282_v44 = vld [vmem:[%s12863_s28 + $0xc8] sm:$0xff]  ;;  %v296_v45 = vld [vmem:[%s12863_s28 + $0x138] sm:$0xff] }
  0xc0   : > { %5980 = vmatpush.bf16.msra.mxu0 %v2181_v46  ;;  %12559 = vmatpush.bf16.msra.mxu3 %v2181_v46  ;;  %v295_v46 = vld [vmem:[%s12863_s28 + $0x130] sm:$0xff] }
  0xc1   : > { %1214 = vperm.xlu2 %12643, %v592_v47   ;;  %1134 = vperm.xlu0 %12641, %v576_v50  }
  0xc2   : > { %1209 = vperm.xlu1 %12642, %v591_v49   ;;  %v12920_v55 = vpop.permute.xlu2 %859  ;;  %v950_v58 = vpop.permute.xlu1 %949 }
  0xc3   : > { %v885_v56 = vpop.permute.xlu0 %884  ;;  %v1979_v61 = vmul.f32 %v950_v58, %v299_v54  ;;  %v1961_v50 = vmul.f32 %v12920_v55, %v281_v43  ;;  %v587_v58 = vld [vmem:[%s12820_s26 + $0x2d0] sm:$0xff]  ;;  %v570_v43 = vld [vmem:[%s12820_s26 + $0x248] sm:$0xff] }
  0xc4   : > { %v1966_v59 = vmul.f32 %v885_v56, %v286_v52  ;;  %v259_v55 = vld [vmem:[%s12863_s28 + $0x10] sm:$0xff] }
  0xc5   : > { %v12925_v0 = vpack.c.bf16 %v1980_v60, %v1979_v61  ;;  %v571_v60 = vld [vmem:[%s12820_s26 + $0x250] sm:$0xff]  ;;  %v260_v61 = vld [vmem:[%s12863_s28 + $0x18] sm:$0xff] }
  0xc6   : > { %v12923_v63 = vpack.c.bf16 %v1966_v59, %v1965_v57  ;;  %v572_v59 = vld [vmem:[%s12820_s26 + $0x258] sm:$0xff] }
  0xc7   : > { %6397 = vmatpush.bf16.msra.mxu2 %v12925_v0 }
  0xc8   : > { %6187 = vmatpush.bf16.msra.mxu1 %v12923_v63 }
  0xc9   : > { %1019 = vperm.xlu2 %12643, %v553_v1   ;;  %1279 = vperm.xlu0 %12641, %v605_v3  }
  0xca   : > { %1284 = vperm.xlu1 %12642, %v606_v2   ;;  %v935_v5 = vpop.permute.xlu2 %934  ;;  %v775_v7 = vpop.permute.xlu1 %774 }
  0xcb   : > { %v770_v6 = vpop.permute.xlu0 %769  ;;  %v1944_v9 = vmul.f32 %v775_v7, %v264_v4  ;;  %v1976_v53 = vmul.f32 %v935_v5, %v296_v45  ;;  %v601_v7 = vld [vmem:[%s12820_s26 + $0x340] sm:$0xff] }
  0xcc   : > { %v1943_v8 = vmul.f32 %v770_v6, %v263_v62  ;;  %v602_v6 = vld [vmem:[%s12820_s26 + $0x348] sm:$0xff] }
  0xce   : > { %v2180_v10 = vpack.c.bf16 %v1944_v9, %v1943_v8  ;;  %v588_v8 = vld [vmem:[%s12820_s26 + $0x2d8] sm:$0xff]  ;;  %v279_v9 = vld [vmem:[%s12863_s28 + $0xb0] sm:$0xff] }
  0xd0   : > { %5981 = vmatpush.bf16.msra.mxu0 %v2180_v10  ;;  %12560 = vmatpush.bf16.msra.mxu3 %v2180_v10  ;;  %v280_v10 = vld [vmem:[%s12863_s28 + $0xb8] sm:$0xff] }
  0xd1   : > { %1124 = vperm.xlu2 %12643, %v574_v11   ;;  %1024 = vperm.xlu0 %12641, %v554_v13   ;;  %v294_v11 = vld [vmem:[%s12863_s28 + $0x128] sm:$0xff] }
  0xd2   : > { %1119 = vperm.xlu1 %12642, %v573_v12   ;;  %v12941_v18 = vpop.permute.xlu2 %849  ;;  %v940_v21 = vpop.permute.xlu1 %939  ;;  %v293_v12 = vld [vmem:[%s12863_s28 + $0x120] sm:$0xff] }
  0xd3   : > { %v875_v19 = vpop.permute.xlu0 %874  ;;  %v1977_v24 = vmul.f32 %v940_v21, %v297_v17 }
  0xd4   : > { %v1964_v22 = vmul.f32 %v875_v19, %v284_v15  ;;  %v1959_v15 = vmul.f32 %v12941_v18, %v279_v9  ;;  %v257_v18 = vld [vmem:[%s12863_s28] sm:$0xff]  ;;  %v11978_v9 = vld [vmem:[%s12805_s18 + $0xb0] sm:$0xf0] }
  0xd5   : > { %v12946_v26 = vpack.c.bf16 %v1978_v23, %v1977_v24  ;;  %v569_v23 = vld [vmem:[%s12820_s26 + $0x240] sm:$0xff]  ;;  %v550_v24 = vld [vmem:[%s12820_s26 + $0x1a8] sm:$0xff] }
  0xd6   : > { %v12944_v25 = vpack.c.bf16 %v1964_v22, %v1963_v20 }
  0xd7   : > { %6398 = vmatpush.bf16.msra.mxu2 %v12946_v26 }
  0xd8   : > { %6188 = vmatpush.bf16.msra.mxu1 %v12944_v25 }
  0xd9   : > { %1269 = vperm.xlu2 %12643, %v603_v28   ;;  %1199 = vperm.xlu0 %12641, %v589_v30   ;;  %v549_v28 = vld [vmem:[%s12820_s26 + $0x1a0] sm:$0xff] }
  0xda   : > { %1204 = vperm.xlu1 %12642, %v590_v29   ;;  %v925_v32 = vpop.permute.xlu2 %924  ;;  %v765_v36 = vpop.permute.xlu1 %764  ;;  %v258_v29 = vld [vmem:[%s12863_s28 + $0x8] sm:$0xff] }
  0xdb   : > { %v760_v33 = vpop.permute.xlu0 %759  ;;  %v1942_v38 = vmul.f32 %v765_v36, %v262_v31  ;;  %v1974_v19 = vmul.f32 %v925_v32, %v294_v11  ;;  %v12428_v11 = vld [vmem:[%s12805_s18 + $0xec0] sm:$0xf0] }
  0xdc   : > { %v1941_v37 = vmul.f32 %v760_v33, %v261_v27  ;;  %v9551_v33 = vld [vmem:[%s12805_s18] sm:$0xf] }
  0xde   : > { %v2179_v39 = vpack.c.bf16 %v1942_v38, %v1941_v37  ;;  %v11963_v37 = vld [vmem:[%s12805_s18 + $0x38] sm:$0xf0]  ;;  %v11351_v38 = vld [vmem:[%s12805_s18 + $0xe10] sm:$0xf] }
  0xe0   : > { %5982 = vmatpush.bf16.msra.mxu0 %v2179_v39  ;;  %12561 = vmatpush.bf16.msra.mxu3 %v2179_v39  ;;  %v12413_v39 = vld [vmem:[%s12805_s18 + $0xe48] sm:$0xf0] }
  0xe1   : > { %1014 = vperm.xlu2 %12643, %v552_v40   ;;  %1274 = vperm.xlu0 %12641, %v604_v42   ;;  %v585_v42 = vld [vmem:[%s12820_s26 + $0x2c0] sm:$0xff]  ;;  %v11352_v45 = vor.u32 %v12413_v39, %v11351_v38 }
  0xe2   : > { %1009 = vperm.xlu1 %12642, %v551_v41   ;;  %v12962_v47 = vpop.permute.xlu2 %839  ;;  %v930_v51 = vpop.permute.xlu1 %929  ;;  %v586_v41 = vld [vmem:[%s12820_s26 + $0x2c8] sm:$0xff]  ;;  %v11964_v38 = vld [vmem:[%s12805_s18 + $0x40] sm:$0xf0] }
  0xe3   : > { %v865_v49 = vpop.permute.xlu0 %864  ;;  %v1975_v54 = vmul.f32 %v930_v51, %v295_v46  ;;  %v277_v46 = vld [vmem:[%s12863_s28 + $0xa0] sm:$0xff]  ;;  %v291_v51 = vld [vmem:[%s12863_s28 + $0x110] sm:$0xff] }
  0xe4   : > { %v1962_v52 = vmul.f32 %v865_v49, %v282_v44  ;;  %v9552_v44 = vor.u32 %v11963_v37, %v9551_v33  ;;  %v278_v49 = vld [vmem:[%s12863_s28 + $0xa8] sm:$0xff] }
  0xe5   : > { %v12967_v57 = vpack.c.bf16 %v1976_v53, %v1975_v54  ;;  %v1957_v54 = vmul.f32 %v12962_v47, %v277_v46  ;;  %v599_v47 = vld [vmem:[%s12820_s26 + $0x330] sm:$0xff]  ;;  %v9559_v37 = vld [vmem:[%s12805_s18 + $0x8] sm:$0xf] }
  0xe6   : > { %v12965_v56 = vpack.c.bf16 %v1962_v52, %v1961_v50  ;;  %v292_v50 = vld [vmem:[%s12863_s28 + $0x118] sm:$0xff]  ;;  %v9671_v46 = vld [vmem:[%s12805_s18 + $0xf0] sm:$0xf] }
  0xe7   : > { %6399 = vmatpush.bf16.msra.mxu2 %v12967_v57 }
  0xe8   : > { %6189 = vmatpush.bf16.msra.mxu1 %v12965_v56 }
  0xe9   : > { %1189 = vperm.xlu2 %12643, %v587_v58   ;;  %1109 = vperm.xlu0 %12641, %v571_v60  }
  0xea   : > { %1114 = vperm.xlu1 %12642, %v572_v59   ;;  %v12976_v1 = vpop.permute.xlu2 %914  ;;  %v755_v3 = vpop.permute.xlu1 %754 }
  0xeb   : > { %v750_v2 = vpop.permute.xlu0 %749  ;;  %v1940_v4 = vmul.f32 %v755_v3, %v260_v61  ;;  %v1972_v60 = vmul.f32 %v12976_v1, %v292_v50  ;;  %v600_v3 = vld [vmem:[%s12820_s26 + $0x338] sm:$0xff]  ;;  %v11471_v50 = vld [vmem:[%s12805_s18 + $0xf00] sm:$0xf] }
  0xec   : > { %v1939_v62 = vmul.f32 %v750_v2, %v259_v55  ;;  %v276_v1 = vld [vmem:[%s12863_s28 + $0x98] sm:$0xff] }
  0xee   : > { %v2178_v5 = vpack.c.bf16 %v1940_v4, %v1939_v62  ;;  %v275_v62 = vld [vmem:[%s12863_s28 + $0x90] sm:$0xff] }
  0xf0   : > { %5983 = vmatpush.bf16.msra.mxu0 %v2178_v5  ;;  %12562 = vmatpush.bf16.msra.mxu3 %v2178_v5 }
  0xf1   : > { %1264 = vperm.xlu2 %12643, %v602_v6   ;;  %1194 = vperm.xlu0 %12641, %v588_v8  }
  0xf2   : > { %1259 = vperm.xlu1 %12642, %v601_v7   ;;  %v12985_v13 = vpop.permute.xlu2 %899  ;;  %v920_v16 = vpop.permute.xlu1 %919  ;;  %v9611_v7 = vld [vmem:[%s12805_s18 + $0x78] sm:$0xf] }
  0xf3   : > { %v855_v14 = vpop.permute.xlu0 %854  ;;  %v1973_v20 = vmul.f32 %v920_v16, %v293_v12  ;;  %v9612_v16 = vor.u32 %v11978_v9, %v9611_v7  ;;  %v566_v9 = vld [vmem:[%s12820_s26 + $0x228] sm:$0xff] }
  0xf4   : > { %v1960_v17 = vmul.f32 %v855_v14, %v280_v10  ;;  %v11411_v10 = vld [vmem:[%s12805_s18 + $0xe88] sm:$0xf]  ;;  %v568_v14 = vld [vmem:[%s12820_s26 + $0x238] sm:$0xff] }
  0xf5   : > { %v12990_v22 = vpack.c.bf16 %v1974_v19, %v1973_v20  ;;  %v289_v19 = vld [vmem:[%s12863_s28 + $0x100] sm:$0xff]  ;;  %v290_v20 = vld [vmem:[%s12863_s28 + $0x108] sm:$0xff] }
  0xf6   : > { %v12988_v21 = vpack.c.bf16 %v1960_v17, %v1959_v15  ;;  %v567_v15 = vld [vmem:[%s12820_s26 + $0x230] sm:$0xff]  ;;  %v11412_v17 = vor.u32 %v12428_v11, %v11411_v10 }
  0xf7   : > { %6400 = vmatpush.bf16.msra.mxu2 %v12990_v22 }
  0xf8   : > { %6190 = vmatpush.bf16.msra.mxu1 %v12988_v21 }
  0xf9   : > { %1099 = vperm.xlu2 %12643, %v569_v23   ;;  %999 = vperm.xlu0 %12641, %v549_v28   ;;  %v274_v23 = vld [vmem:[%s12863_s28 + $0x88] sm:$0xff]  ;;  %v1969_v28 = vmul.f32 %v12985_v13, %v289_v19  ;;  %v597_v13 = vld [vmem:[%s12820_s26 + $0x320] sm:$0xff]  ;;  %v595_v19 = vld [vmem:[%s12820_s26 + $0x310] sm:$0xff] }
  0xfa   : > { %1004 = vperm.xlu1 %12642, %v550_v24   ;;  %v12999_v30 = vpop.permute.xlu2 %824  ;;  %v745_v31 = vpop.permute.xlu1 %744  ;;  %v273_v24 = vld [vmem:[%s12863_s28 + $0x80] sm:$0xff] }
  0xfb   : > { %v740_v27 = vpop.permute.xlu0 %739  ;;  %v1938_v36 = vmul.f32 %v745_v31, %v258_v29  ;;  %v11956_v31 = vld [vmem:[%s12805_s18 + $0x4] sm:$0xf] }
  0xfc   : > { %v1937_v32 = vmul.f32 %v740_v27, %v257_v18 }
  0xfe   : > { %v2177_v40 = vpack.c.bf16 %v1938_v36, %v1937_v32  ;;  %v1954_v32 = vmul.f32 %v12999_v30, %v274_v23  ;;  %v9553_v36 = vld [vmem:[%s12805_s18 + $0x3c] sm:$0xf0] }
 0x100   : > { %5984 = vmatpush.bf16.msra.mxu0 %v2177_v40  ;;  %12563 = vmatpush.bf16.msra.mxu3 %v2177_v40  ;;  %v584_v40 = vld [vmem:[%s12820_s26 + $0x2b8] sm:$0xff] }
 0x101   : > { %1184 = vperm.xlu2 %12643, %v586_v41   ;;  %1104 = vperm.xlu0 %12641, %v570_v43   ;;  %v583_v41 = vld [vmem:[%s12820_s26 + $0x2b0] sm:$0xff]  ;;  %v9560_v43 = vor.u32 %v11964_v38, %v9559_v37 }
 0x102   : > { %1179 = vperm.xlu1 %12642, %v585_v42   ;;  %v910_v58 = vpop.permute.xlu1 %909  ;;  %v9556_v42 = vor.u32 %v11956_v31, %v9553_v36  ;;  %v11986_v36 = vld [vmem:[%s12805_s18 + $0xf4] sm:$0xf]  ;;  %v9673_v37 = vld [vmem:[%s12805_s18 + $0x12c] sm:$0xf0] }
 0x103   : > { %v13013_v52 = vpop.permute.xlu2 %1039  ;;  %v845_v53 = vpop.permute.xlu0 %844  ;;  %5985 = vmatmul.bf16.vlgmr.msra.gmra.mxu0 %v9552_v44  ;;  %6135 = vmatmul.bf16.vlgmr.msra.gmra.mxu3 %v11352_v45  ;;  %v1971_v55 = vmul.f32 %v910_v58, %v291_v51  ;;  %v12443_v51 = vld [vmem:[%s12805_s18 + $0xf38] sm:$0xf0]  ;;  %v598_v58 = vld [vmem:[%s12820_s26 + $0x328] sm:$0xff] }
 0x104   : > { %12564 = vmatpush.bf16.msrb.mxu3 %v12902_v34  ;;  %v1958_v59 = vmul.f32 %v845_v53, %v278_v49  ;;  %v547_v34 = vld [vmem:[%s12820_s26 + $0x190] sm:$0xff]  ;;  %v11993_v49 = vld [vmem:[%s12805_s18 + $0x128] sm:$0xf0] }
 0x105   : > { %v13018_v2 = vpack.c.bf16 %v1972_v60, %v1971_v55  ;;  %v546_v53 = vld [vmem:[%s12820_s26 + $0x188] sm:$0xff]  ;;  %v11472_v60 = vor.u32 %v12443_v51, %v11471_v50  ;;  %v368_v55 = vld [vmem:[%s12863_s28 + $0x378] sm:$0xff]  ;;  %v365_v50 = vld [vmem:[%s12863_s28 + $0x360] sm:$0xff] }
 0x106   : > { %v2187_v61 = vpack.c.bf16 %v1958_v59, %v1957_v54  ;;  %v545_v54 = vld [vmem:[%s12820_s26 + $0x180] sm:$0xff]  ;;  %v9672_v59 = vor.u32 %v11993_v49, %v9671_v46  ;;  %v563_v46 = vld [vmem:[%s12820_s26 + $0x210] sm:$0xff] }
 0x107   : > { %6401 = vmatpush.bf16.msra.mxu2 %v13018_v2 }
 0x108   : > { %12565 = vmatpush.bf16.msrb.mxu3 %v12923_v63  ;;  %6191 = vmatpush.bf16.msra.mxu1 %v2187_v61 }
 0x109   : > { %989 = vperm.xlu2 %12643, %v547_v34   ;;  %1249 = vperm.xlu0 %12641, %v599_v47  }
 0x10a   : > { %1254 = vperm.xlu1 %12642, %v600_v3   ;;  %v835_v5 = vpop.permute.xlu1 %834 }
 0x10b   : > { %v830_v63 = vpop.permute.xlu0 %829  ;;  %v13027_v4 = vpop.permute.xlu2 %1294  ;;  %v1956_v8 = vmul.f32 %v835_v5, %v276_v1  ;;  %v11971_v1 = vld [vmem:[%s12805_s18 + $0x7c] sm:$0xf]  ;;  %v9619_v5 = vld [vmem:[%s12805_s18 + $0x80] sm:$0xf] }
 0x10c   : > { %12566 = vmatpush.bf16.msrb.mxu3 %v12944_v25  ;;  %v1955_v6 = vmul.f32 %v830_v63, %v275_v62  ;;  %v548_v25 = vld [vmem:[%s12820_s26 + $0x198] sm:$0xff]  ;;  %v2048_v3 = vmul.f32 %v13027_v4, %v368_v55  ;;  %v11591_v55 = vld [vmem:[%s12805_s18 + $0xff0] sm:$0xf] }
 0x10d   : > { %v9613_v63 = vld [vmem:[%s12805_s18 + $0xb4] sm:$0xf0] }
 0x10e   : > { %v2186_v12 = vpack.c.bf16 %v1956_v8, %v1955_v6  ;;  %v11979_v6 = vld [vmem:[%s12805_s18 + $0xb8] sm:$0xf0]  ;;  %v581_v8 = vld [vmem:[%s12820_s26 + $0x2a0] sm:$0xff]  ;;  %v9616_v10 = vor.u32 %v11971_v1, %v9613_v63 }
 0x10f   : > { %v9620_v4 = vor.u32 %v11979_v6, %v9619_v5  ;;  %v580_v1 = vld [vmem:[%s12820_s26 + $0x298] sm:$0xff]  ;;  %v334_v5 = vld [vmem:[%s12863_s28 + $0x268] sm:$0xff]  ;;  %v333_v6 = vld [vmem:[%s12863_s28 + $0x260] sm:$0xff] }
 0x110   : > { %12567 = vmatpush.bf16.msrb.mxu3 %v12965_v56  ;;  %6192 = vmatpush.bf16.msra.mxu1 %v2186_v12 }
 0x111   : > { %1094 = vperm.xlu2 %12643, %v568_v14   ;;  %994 = vperm.xlu0 %12641, %v548_v25   ;;  %v9731_v14 = vld [vmem:[%s12805_s18 + $0x168] sm:$0xf]  ;;  %v11531_v25 = vld [vmem:[%s12805_s18 + $0xf78] sm:$0xf] }
 0x112   : > { %1089 = vperm.xlu1 %12642, %v567_v15   ;;  %v820_v29 = vpop.permute.xlu1 %819  ;;  %v12008_v15 = vld [vmem:[%s12805_s18 + $0x1a0] sm:$0xf0] }
 0x113   : > { %v905_v56 = vpop.permute.xlu0 %904  ;;  %v13043_v18 = vpop.permute.xlu2 %1129  ;;  %5990 = vmatmul.bf16.gmra.mxu0 %v9612_v16  ;;  %6140 = vmatmul.bf16.gmra.mxu3 %v11412_v17  ;;  %v1953_v33 = vmul.f32 %v820_v29, %v273_v24  ;;  %v12458_v16 = vld [vmem:[%s12805_s18 + $0xfb0] sm:$0xf0]  ;;  %v596_v17 = vld [vmem:[%s12820_s26 + $0x318] sm:$0xff] }
 0x114   : > { %12568 = vmatpush.bf16.msrb.mxu3 %v12988_v21  ;;  %v1970_v27 = vmul.f32 %v905_v56, %v290_v20  ;;  %v9732_v20 = vor.u32 %v12008_v15, %v9731_v14  ;;  %v11532_v23 = vor.u32 %v12458_v16, %v11531_v25  ;;  %v352_v24 = vld [vmem:[%s12863_s28 + $0x2f8] sm:$0xff]  ;;  %v351_v56 = vld [vmem:[%s12863_s28 + $0x2f0] sm:$0xff]  ;;  %v9733_v14 = vld [vmem:[%s12805_s18 + $0x1a4] sm:$0xf0] }
 0x115   : > { %v2185_v39 = vpack.c.bf16 %v1954_v32, %v1953_v33  ;;  %v336_v29 = vld [vmem:[%s12863_s28 + $0x278] sm:$0xff]  ;;  %v9739_v15 = vld [vmem:[%s12805_s18 + $0x170] sm:$0xf]  ;;  %v12009_v25 = vld [vmem:[%s12805_s18 + $0x1a8] sm:$0xf0] }
 0x116   : > { %v13050_v21 = vpack.c.bf16 %v1970_v27, %v1969_v28  ;;  %v335_v28 = vld [vmem:[%s12863_s28 + $0x270] sm:$0xff] }
 0x117   : > { %6193 = vmatpush.bf16.msra.mxu1 %v2185_v39  ;;  %v2015_v38 = vmul.f32 %v13043_v18, %v335_v28  ;;  %v366_v18 = vld [vmem:[%s12863_s28 + $0x368] sm:$0xff] }
 0x118   : > { %12569 = vmatpush.bf16.msrb.mxu3 %v2187_v61  ;;  %6402 = vmatpush.bf16.msra.mxu2 %v13050_v21  ;;  %v367_v61 = vld [vmem:[%s12863_s28 + $0x370] sm:$0xff] }
 0x119   : > { %1239 = vperm.xlu2 %12643, %v597_v13   ;;  %1169 = vperm.xlu0 %12641, %v583_v41   ;;  %v9679_v13 = vld [vmem:[%s12805_s18 + $0xf8] sm:$0xf]  ;;  %v579_v41 = vld [vmem:[%s12820_s26 + $0x290] sm:$0xff] }
 0x11a   : > { %1174 = vperm.xlu1 %12642, %v584_v40   ;;  %6194 = vmatmul.bf16.vlgmr.msra.gmra.mxu1 %v9556_v42 }
 0x11b   : > { %v13056_v30 = vpop.permute.xlu0 %1049  ;;  %v13058_v44 = vpop.permute.xlu2 %1214  ;;  %6403 = vmatmul.bf16.vlgmr.msra.gmra.mxu2 %v9560_v43  ;;  %v564_v43 = vld [vmem:[%s12820_s26 + $0x218] sm:$0xff] }
 0x11c   : > { %12570 = vmatpush.bf16.msrb.mxu3 %v2186_v12  ;;  %v13060_v45 = vpop.permute.xlu1 %1054  ;;  %v2032_v31 = vmul.f32 %v13058_v44, %v352_v24  ;;  %v9676_v44 = vor.u32 %v11986_v36, %v9673_v37  ;;  %v349_v24 = vld [vmem:[%s12863_s28 + $0x2e0] sm:$0xff]  ;;  %v11651_v36 = vld [vmem:[%s12805_s18 + $0x1068] sm:$0xf] }
 0x11d   : > { %v12488_v37 = vld [vmem:[%s12805_s18 + $0x10a0] sm:$0xf0] }
 0x120   : > { %12571 = vmatpush.bf16.msrb.mxu3 %v2185_v39 }
 0x121   : > { %984 = vperm.xlu2 %12643, %v546_v53   ;;  %1244 = vperm.xlu0 %12641, %v598_v58   ;;  %v9791_v58 = vld [vmem:[%s12805_s18 + $0x1e0] sm:$0xf] }
 0x122   : > { %979 = vperm.xlu1 %12642, %v545_v54  }
 0x123   : > { %v13073_v34 = vpop.permute.xlu2 %1019  ;;  %5995 = vmatmul.bf16.gmra.mxu0 %v9672_v59  ;;  %v13076_v62 = vpop.permute.xlu0 %1044  ;;  %6145 = vmatmul.bf16.gmra.mxu3 %v11472_v60  ;;  %v12023_v59 = vld [vmem:[%s12805_s18 + $0x218] sm:$0xf0] }
 0x124   : > { %12572 = vmatpush.bf16.msra.mxu3 %v12872_v48  ;;  %v1290_v48 = vpop.permute.xlu1 %1289 }
 0x125   : > { %v2047_v47 = vmul.f32 %v1290_v48, %v367_v61  ;;  %v12473_v61 = vld [vmem:[%s12805_s18 + $0x1028] sm:$0xf0] }
 0x126   : > { %v594_v48 = vld [vmem:[%s12820_s26 + $0x308] sm:$0xff]  ;;  %v11592_v63 = vor.u32 %v12473_v61, %v11591_v55  ;;  %v621_v61 = vld [vmem:[%s12820_s26 + $0x3e0] sm:$0xff] }
 0x127   : > { %v2232_v7 = vpack.c.bf16 %v2048_v3, %v2047_v47  ;;  %v593_v47 = vld [vmem:[%s12820_s26 + $0x300] sm:$0xff]  ;;  %v622_v55 = vld [vmem:[%s12820_s26 + $0x3e8] sm:$0xff] }
 0x128   : > { %12573 = vmatpush.bf16.msra.mxu3 %v12904_v35  ;;  %v565_v35 = vld [vmem:[%s12820_s26 + $0x220] sm:$0xff] }
 0x129   : > { %7231 = vmatpush.bf16.msrb.mxu2 %v2232_v7  ;;  %1159 = vperm.xlu2 %12643, %v581_v8  }
 0x12a   : > { %1084 = vperm.xlu1 %12642, %v566_v9   ;;  %1079 = vperm.xlu0 %12641, %v565_v35  }
 0x12b   : > { %v13087_v11 = vpop.permute.xlu2 %1124  ;;  %6199 = vmatmul.bf16.gmra.mxu1 %v9616_v10  ;;  %6408 = vmatmul.bf16.gmra.mxu2 %v9620_v4  ;;  %v12001_v4 = vld [vmem:[%s12805_s18 + $0x16c] sm:$0xf] }
 0x12c   : > { %12574 = vmatpush.bf16.msra.mxu3 %v12925_v0  ;;  %v13089_v12 = vpop.permute.xlu1 %1034  ;;  %v13091_v0 = vpop.permute.xlu0 %1029  ;;  %v2014_v9 = vmul.f32 %v13087_v11, %v334_v5  ;;  %v9740_v11 = vor.u32 %v12009_v25, %v9739_v15  ;;  %v619_v25 = vld [vmem:[%s12820_s26 + $0x3d0] sm:$0xff] }
 0x130   : > { %12575 = vmatpush.bf16.msra.mxu3 %v12946_v26  ;;  %v582_v26 = vld [vmem:[%s12820_s26 + $0x2a8] sm:$0xff] }
 0x131   : > { %1234 = vperm.xlu2 %12643, %v596_v17   ;;  %v577_v17 = vld [vmem:[%s12820_s26 + $0x280] sm:$0xff] }
 0x132   : > { %1229 = vperm.xlu1 %12642, %v595_v19   ;;  %1164 = vperm.xlu0 %12641, %v582_v26   ;;  %v562_v19 = vld [vmem:[%s12820_s26 + $0x208] sm:$0xff]  ;;  %v561_v26 = vld [vmem:[%s12820_s26 + $0x200] sm:$0xff] }
 0x133   : > { %v13106_v27 = vpop.permute.xlu2 %1269  ;;  %6000 = vmatmul.bf16.gmra.mxu0 %v9732_v20  ;;  %6150 = vmatmul.bf16.gmra.mxu3 %v11532_v23  ;;  %v9736_v20 = vor.u32 %v12001_v4, %v9733_v14  ;;  %v350_v23 = vld [vmem:[%s12863_s28 + $0x2e8] sm:$0xff]  ;;  %v12503_v4 = vld [vmem:[%s12805_s18 + $0x1118] sm:$0xf0] }
 0x134   : > { %12576 = vmatpush.bf16.msra.mxu3 %v12967_v57  ;;  %v1210_v57 = vpop.permute.xlu1 %1209  ;;  %v1135_v33 = vpop.permute.xlu0 %1134  ;;  %v620_v14 = vld [vmem:[%s12820_s26 + $0x3d8] sm:$0xff] }
 0x135   : > { %v2031_v32 = vmul.f32 %v1210_v57, %v351_v56  ;;  %v2016_v39 = vmul.f32 %v1135_v33, %v336_v29 }
 0x137   : > { %v2224_v40 = vpack.c.bf16 %v2032_v31, %v2031_v32  ;;  %v2216_v42 = vpack.c.bf16 %v2016_v39, %v2015_v38  ;;  %v9851_v31 = vld [vmem:[%s12805_s18 + $0x258] sm:$0xf]  ;;  %v12038_v32 = vld [vmem:[%s12805_s18 + $0x290] sm:$0xf0] }
 0x138   : > { %12577 = vmatpush.bf16.msra.mxu3 %v12990_v22  ;;  %v11994_v22 = vld [vmem:[%s12805_s18 + $0x130] sm:$0xf0]  ;;  %v624_v38 = vld [vmem:[%s12820_s26 + $0x3f8] sm:$0xff] }
 0x139   : > { %7022 = vmatpush.bf16.msrb.mxu1 %v2224_v40  ;;  %v9680_v49 = vor.u32 %v11994_v22, %v9679_v13  ;;  %6813 = vmatpush.bf16.msrb.mxu0 %v2216_v42  ;;  %v623_v13 = vld [vmem:[%s12820_s26 + $0x3f0] sm:$0xff]  ;;  %v578_v22 = vld [vmem:[%s12820_s26 + $0x288] sm:$0xff]  ;;  %v9852_v40 = vor.u32 %v12038_v32, %v9851_v31  ;;  %v12031_v32 = vld [vmem:[%s12805_s18 + $0x25c] sm:$0xf] }
 0x13a   : > { %1149 = vperm.xlu2 %12643, %v579_v41   ;;  %1074 = vperm.xlu1 %12642, %v564_v43   ;;  %v11652_v41 = vor.u32 %v12488_v37, %v11651_v36  ;;  %v363_v42 = vld [vmem:[%s12863_s28 + $0x350] sm:$0xff]  ;;  %v364_v43 = vld [vmem:[%s12863_s28 + $0x358] sm:$0xff] }
 0x13b   : > { %1069 = vperm.xlu0 %12641, %v563_v46   ;;  %6204 = vmatmul.bf16.gmra.mxu1 %v9676_v44 }
 0x13c   : > { %12578 = vmatpush.bf16.msra.mxu3 %v13018_v2  ;;  %v13121_v2 = vpop.permute.xlu2 %1014  ;;  %v1285_v51 = vpop.permute.xlu1 %1284  ;;  %6413 = vmatmul.bf16.gmra.mxu2 %v9680_v49 }
 0x13d   : > { %v2046_v53 = vmul.f32 %v1285_v51, %v366_v18  ;;  %v1280_v54 = vpop.permute.xlu0 %1279  ;;  %v12016_v18 = vld [vmem:[%s12805_s18 + $0x1e4] sm:$0xf]  ;;  %v2043_v51 = vmul.f32 %v13106_v27, %v363_v42  ;;  %v331_v27 = vld [vmem:[%s12863_s28 + $0x250] sm:$0xff] }
 0x13e   : > { %v2045_v60 = vmul.f32 %v1280_v54, %v365_v50  ;;  %v9793_v50 = vld [vmem:[%s12805_s18 + $0x21c] sm:$0xf0]  ;;  %v9799_v54 = vld [vmem:[%s12805_s18 + $0x1e8] sm:$0xf]  ;;  %v639_v42 = vld [vmem:[%s12820_s26 + $0x470] sm:$0xff] }
 0x140   : > { %12579 = vmatpush.bf16.msra.mxu3 %v13050_v21  ;;  %v2231_v3 = vpack.c.bf16 %v2046_v53, %v2045_v60  ;;  %v9792_v21 = vor.u32 %v12023_v59, %v9791_v58  ;;  %v12024_v58 = vld [vmem:[%s12805_s18 + $0x220] sm:$0xf0]  ;;  %v671_v59 = vld [vmem:[%s12820_s26 + $0x570] sm:$0xff] }
 0x142   : > { %7232 = vmatpush.bf16.msrb.mxu2 %v2231_v3  ;;  %1224 = vperm.xlu2 %12643, %v594_v48   ;;  %v9796_v48 = vor.u32 %v12016_v18, %v9793_v50  ;;  %v9800_v3 = vor.u32 %v12024_v58, %v9799_v54  ;;  %v9971_v50 = vld [vmem:[%s12805_s18 + $0x348] sm:$0xf]  ;;  %v12518_v54 = vld [vmem:[%s12805_s18 + $0x1190] sm:$0xf0] }
 0x143   : > { %1219 = vperm.xlu1 %12642, %v593_v47   ;;  %1154 = vperm.xlu0 %12641, %v580_v1   ;;  %v332_v47 = vld [vmem:[%s12863_s28 + $0x258] sm:$0xff]  ;;  %v670_v58 = vld [vmem:[%s12820_s26 + $0x568] sm:$0xff] }
 0x144   : > { %v13132_v7 = vpop.permute.xlu2 %1189  ;;  %v1120_v8 = vpop.permute.xlu1 %1119  ;;  %6005 = vmatmul.bf16.gmra.mxu0 %v9792_v21  ;;  %6155 = vmatmul.bf16.gmra.mxu3 %v11592_v63 }
 0x145   : > { %v2013_v35 = vmul.f32 %v1120_v8, %v333_v6  ;;  %v13135_v10 = vpop.permute.xlu0 %1024  ;;  %v9911_v6 = vld [vmem:[%s12805_s18 + $0x2d0] sm:$0xf]  ;;  %v12053_v8 = vld [vmem:[%s12805_s18 + $0x308] sm:$0xf0] }
 0x147   : > { %v2215_v16 = vpack.c.bf16 %v2014_v9, %v2013_v35  ;;  %v11711_v35 = vld [vmem:[%s12805_s18 + $0x10e0] sm:$0xf] }
 0x149   : > { %6814 = vmatpush.bf16.msrb.mxu0 %v2215_v16  ;;  %v672_v16 = vld [vmem:[%s12820_s26 + $0x578] sm:$0xff] }
 0x14a   : > { %1139 = vperm.xlu2 %12643, %v577_v17   ;;  %v9912_v17 = vor.u32 %v12053_v8, %v9911_v6 }
 0x14b   : > { %1064 = vperm.xlu1 %12642, %v562_v19   ;;  %1059 = vperm.xlu0 %12641, %v561_v26   ;;  %v11712_v19 = vor.u32 %v12503_v4, %v11711_v35  ;;  %v362_v26 = vld [vmem:[%s12863_s28 + $0x348] sm:$0xff]  ;;  %v9913_v35 = vld [vmem:[%s12805_s18 + $0x30c] sm:$0xf0] }
 0x14c   : > { %v13146_v56 = vpop.permute.xlu2 %1264  ;;  %v1205_v28 = vpop.permute.xlu1 %1204  ;;  %6209 = vmatmul.bf16.gmra.mxu1 %v9736_v20  ;;  %6418 = vmatmul.bf16.gmra.mxu2 %v9740_v11  ;;  %v361_v20 = vld [vmem:[%s12863_s28 + $0x340] sm:$0xff]  ;;  %v347_v11 = vld [vmem:[%s12863_s28 + $0x2d0] sm:$0xff] }
 0x14d   : > { %v2030_v29 = vmul.f32 %v1205_v28, %v350_v23  ;;  %v1200_v57 = vpop.permute.xlu0 %1199  ;;  %v348_v23 = vld [vmem:[%s12863_s28 + $0x2d8] sm:$0xff]  ;;  %v2027_v36 = vmul.f32 %v13132_v7, %v347_v11 }
 0x14e   : > { %v2029_v33 = vmul.f32 %v1200_v57, %v349_v24 }
 0x150   : > { %v2223_v39 = vpack.c.bf16 %v2030_v29, %v2029_v33  ;;  %v2042_v29 = vmul.f32 %v13146_v56, %v362_v26  ;;  %v9853_v33 = vld [vmem:[%s12805_s18 + $0x294] sm:$0xf0]  ;;  %v618_v26 = vld [vmem:[%s12820_s26 + $0x3c8] sm:$0xff] }
 0x151   : > { %v9856_v56 = vor.u32 %v12031_v32, %v9853_v33  ;;  %v10031_v32 = vld [vmem:[%s12805_s18 + $0x3c0] sm:$0xf]  ;;  %v12083_v33 = vld [vmem:[%s12805_s18 + $0x3f8] sm:$0xf0] }
 0x152   : > { %7023 = vmatpush.bf16.msrb.mxu1 %v2223_v39  ;;  %1374 = vperm.xlu2 %12643, %v624_v38   ;;  %v9859_v38 = vld [vmem:[%s12805_s18 + $0x260] sm:$0xf]  ;;  %v12039_v39 = vld [vmem:[%s12805_s18 + $0x298] sm:$0xf0] }
 0x153   : > { %1369 = vperm.xlu1 %12642, %v623_v13   ;;  %1144 = vperm.xlu0 %12641, %v578_v22   ;;  %v655_v22 = vld [vmem:[%s12820_s26 + $0x4f0] sm:$0xff] }
 0x154   : > { %v13157_v46 = vpop.permute.xlu2 %1099  ;;  %v13159_v44 = vpop.permute.xlu1 %1009  ;;  %6010 = vmatmul.bf16.gmra.mxu0 %v9852_v40  ;;  %6160 = vmatmul.bf16.gmra.mxu3 %v11652_v41  ;;  %v640_v41 = vld [vmem:[%s12820_s26 + $0x478] sm:$0xff] }
 0x155   : > { %v1275_v49 = vpop.permute.xlu0 %1274 }
 0x156   : > { %v2044_v53 = vmul.f32 %v1275_v49, %v364_v43  ;;  %v9860_v43 = vor.u32 %v12039_v39, %v9859_v38  ;;  %v12533_v38 = vld [vmem:[%s12805_s18 + $0x1208] sm:$0xf0] }
 0x157   : > { %v654_v39 = vld [vmem:[%s12820_s26 + $0x4e8] sm:$0xff] }
 0x158   : > { %v2230_v60 = vpack.c.bf16 %v2044_v53, %v2043_v51  ;;  %v12068_v51 = vld [vmem:[%s12805_s18 + $0x380] sm:$0xf0]  ;;  %v11771_v53 = vld [vmem:[%s12805_s18 + $0x1158] sm:$0xf] }
 0x15a   : > { %7233 = vmatpush.bf16.msrb.mxu2 %v2230_v60  ;;  %1609 = vperm.xlu2 %12643, %v671_v59   ;;  %v669_v59 = vld [vmem:[%s12820_s26 + $0x560] sm:$0xff]  ;;  %v656_v60 = vld [vmem:[%s12820_s26 + $0x4f8] sm:$0xff] }
 0x15b   : > { %1364 = vperm.xlu1 %12642, %v622_v55   ;;  %1359 = vperm.xlu0 %12641, %v621_v61   ;;  %v9972_v55 = vor.u32 %v12068_v51, %v9971_v50  ;;  %v11772_v61 = vor.u32 %v12518_v54, %v11771_v53  ;;  %v327_v50 = vld [vmem:[%s12863_s28 + $0x230] sm:$0xff] }
 0x15c   : > { %v13171_v1 = vpop.permute.xlu2 %1184  ;;  %v1115_v21 = vpop.permute.xlu1 %1114  ;;  %6214 = vmatmul.bf16.gmra.mxu1 %v9796_v48  ;;  %6423 = vmatmul.bf16.gmra.mxu2 %v9800_v3  ;;  %v346_v48 = vld [vmem:[%s12863_s28 + $0x2c8] sm:$0xff]  ;;  %v345_v3 = vld [vmem:[%s12863_s28 + $0x2c0] sm:$0xff] }
 0x15d   : > { %v2012_v63 = vmul.f32 %v1115_v21, %v332_v47  ;;  %v1110_v5 = vpop.permute.xlu0 %1109  ;;  %v329_v47 = vld [vmem:[%s12863_s28 + $0x240] sm:$0xff] }
 0x15e   : > { %v2011_v9 = vmul.f32 %v1110_v5, %v331_v27  ;;  %v330_v27 = vld [vmem:[%s12863_s28 + $0x248] sm:$0xff]  ;;  %v2026_v5 = vmul.f32 %v13171_v1, %v346_v48  ;;  %v2009_v4 = vmul.f32 %v13157_v46, %v329_v47  ;;  %v360_v46 = vld [vmem:[%s12863_s28 + $0x338] sm:$0xff] }
 0x15f   : > { %v12069_v48 = vld [vmem:[%s12805_s18 + $0x388] sm:$0xf0] }
 0x160   : > { %v2214_v15 = vpack.c.bf16 %v2012_v63, %v2011_v9  ;;  %v12046_v9 = vld [vmem:[%s12805_s18 + $0x2d4] sm:$0xf] }
 0x161   : > { %v9916_v11 = vor.u32 %v12046_v9, %v9913_v35  ;;  %v344_v9 = vld [vmem:[%s12863_s28 + $0x2b8] sm:$0xff]  ;;  %v343_v35 = vld [vmem:[%s12863_s28 + $0x2b0] sm:$0xff] }
 0x162   : > { %6815 = vmatpush.bf16.msrb.mxu0 %v2214_v15  ;;  %1354 = vperm.xlu2 %12643, %v620_v14   ;;  %v9919_v15 = vld [vmem:[%s12805_s18 + $0x2d8] sm:$0xf] }
 0x163   : > { %1349 = vperm.xlu1 %12642, %v619_v25   ;;  %1614 = vperm.xlu0 %12641, %v672_v16   ;;  %v12054_v25 = vld [vmem:[%s12805_s18 + $0x310] sm:$0xf0] }
 0x164   : > { %v13184_v24 = vpop.permute.xlu2 %989  ;;  %v1260_v28 = vpop.permute.xlu1 %1259  ;;  %6015 = vmatmul.bf16.gmra.mxu0 %v9912_v17  ;;  %6165 = vmatmul.bf16.gmra.mxu3 %v11712_v19  ;;  %v637_v17 = vld [vmem:[%s12820_s26 + $0x460] sm:$0xff]  ;;  %v9920_v1 = vor.u32 %v12054_v25, %v9919_v15 }
 0x165   : > { %v2041_v57 = vmul.f32 %v1260_v28, %v361_v20  ;;  %v1195_v31 = vpop.permute.xlu0 %1194  ;;  %v617_v20 = vld [vmem:[%s12820_s26 + $0x3c0] sm:$0xff] }
 0x166   : > { %v2028_v37 = vmul.f32 %v1195_v31, %v348_v23  ;;  %v359_v23 = vld [vmem:[%s12863_s28 + $0x330] sm:$0xff] }
 0x167   : > { %v2229_v13 = vpack.c.bf16 %v2042_v29, %v2041_v57 }
 0x168   : > { %v2222_v40 = vpack.c.bf16 %v2028_v37, %v2027_v36  ;;  %v11831_v37 = vld [vmem:[%s12805_s18 + $0x11d0] sm:$0xf] }
 0x169   : > { %7234 = vmatpush.bf16.msrb.mxu2 %v2229_v13 }
 0x16a   : > { %7024 = vmatpush.bf16.msrb.mxu1 %v2222_v40  ;;  %1529 = vperm.xlu2 %12643, %v655_v22   ;;  %v653_v22 = vld [vmem:[%s12820_s26 + $0x4e0] sm:$0xff]  ;;  %v638_v40 = vld [vmem:[%s12820_s26 + $0x468] sm:$0xff] }
 0x16b   : > { %1454 = vperm.xlu1 %12642, %v640_v41   ;;  %1449 = vperm.xlu0 %12641, %v639_v42   ;;  %v10032_v41 = vor.u32 %v12083_v33, %v10031_v32  ;;  %v11832_v42 = vor.u32 %v12533_v38, %v11831_v37  ;;  %v357_v33 = vld [vmem:[%s12863_s28 + $0x320] sm:$0xff] }
 0x16c   : > { %v13195_v7 = vpop.permute.xlu2 %1094  ;;  %v13197_v49 = vpop.permute.xlu1 %1004  ;;  %6219 = vmatmul.bf16.gmra.mxu1 %v9856_v56  ;;  %6428 = vmatmul.bf16.gmra.mxu2 %v9860_v43  ;;  %v328_v43 = vld [vmem:[%s12863_s28 + $0x238] sm:$0xff] }
 0x16d   : > { %v13199_v18 = vpop.permute.xlu0 %999  ;;  %v2008_v54 = vmul.f32 %v13195_v7, %v328_v43  ;;  %v12084_v43 = vld [vmem:[%s12805_s18 + $0x400] sm:$0xf0] }
 0x172   : > { %1604 = vperm.xlu2 %12643, %v670_v58  }
 0x173   : > { %1599 = vperm.xlu1 %12642, %v669_v59   ;;  %1534 = vperm.xlu0 %12641, %v656_v60   ;;  %v12061_v60 = vld [vmem:[%s12805_s18 + $0x34c] sm:$0xf] }
 0x174   : > { %v13212_v21 = vpop.permute.xlu2 %1239  ;;  %v1180_v63 = vpop.permute.xlu1 %1179  ;;  %6020 = vmatmul.bf16.gmra.mxu0 %v9972_v55  ;;  %6170 = vmatmul.bf16.gmra.mxu3 %v11772_v61  ;;  %v9973_v55 = vld [vmem:[%s12805_s18 + $0x384] sm:$0xf0]  ;;  %v9979_v61 = vld [vmem:[%s12805_s18 + $0x350] sm:$0xf] }
 0x175   : > { %v2025_v6 = vmul.f32 %v1180_v63, %v345_v3  ;;  %v1105_v8 = vpop.permute.xlu0 %1104  ;;  %v668_v63 = vld [vmem:[%s12820_s26 + $0x558] sm:$0xff]  ;;  %v9980_v7 = vor.u32 %v12069_v48, %v9979_v61 }
 0x176   : > { %v2010_v14 = vmul.f32 %v1105_v8, %v330_v27  ;;  %v615_v27 = vld [vmem:[%s12820_s26 + $0x3b0] sm:$0xff] }
 0x177   : > { %v2221_v16 = vpack.c.bf16 %v2026_v5, %v2025_v6  ;;  %v667_v5 = vld [vmem:[%s12820_s26 + $0x550] sm:$0xff]  ;;  %v9976_v6 = vor.u32 %v12061_v60, %v9973_v55 }
 0x178   : > { %v2213_v19 = vpack.c.bf16 %v2010_v14, %v2009_v4  ;;  %v651_v60 = vld [vmem:[%s12820_s26 + $0x4d0] sm:$0xff] }
 0x179   : > { %7025 = vmatpush.bf16.msrb.mxu1 %v2221_v16  ;;  %v10091_v16 = vld [vmem:[%s12805_s18 + $0x438] sm:$0xf] }
 0x17a   : > { %6816 = vmatpush.bf16.msrb.mxu0 %v2213_v19  ;;  %1439 = vperm.xlu2 %12643, %v637_v17   ;;  %v12098_v17 = vld [vmem:[%s12805_s18 + $0x470] sm:$0xf0] }
 0x17b   : > { %1344 = vperm.xlu1 %12642, %v618_v26   ;;  %1339 = vperm.xlu0 %12641, %v617_v20   ;;  %v11891_v26 = vld [vmem:[%s12805_s18 + $0x1248] sm:$0xf]  ;;  %v12548_v20 = vld [vmem:[%s12805_s18 + $0x1280] sm:$0xf0] }
 0x17c   : > { %v13225_v28 = vpop.permute.xlu2 %984  ;;  %v1255_v29 = vpop.permute.xlu1 %1254  ;;  %6224 = vmatmul.bf16.gmra.mxu1 %v9916_v11  ;;  %6433 = vmatmul.bf16.gmra.mxu2 %v9920_v1  ;;  %v636_v1 = vld [vmem:[%s12820_s26 + $0x458] sm:$0xff] }
 0x17d   : > { %v2040_v57 = vmul.f32 %v1255_v29, %v360_v46  ;;  %v1250_v31 = vpop.permute.xlu0 %1249  ;;  %v616_v29 = vld [vmem:[%s12820_s26 + $0x3b8] sm:$0xff] }
 0x17e   : > { %v2039_v36 = vmul.f32 %v1250_v31, %v359_v23  ;;  %v635_v23 = vld [vmem:[%s12820_s26 + $0x450] sm:$0xff]  ;;  %v11892_v31 = vor.u32 %v12548_v20, %v11891_v26 }
 0x180   : > { %v2228_v13 = vpack.c.bf16 %v2040_v57, %v2039_v36  ;;  %v13234_v56 = vpop.f32.mrf.mxu0  ;;  %v10092_v57 = vor.u32 %v12098_v17, %v10091_v16  ;;  %v358_v36 = vld [vmem:[%s12863_s28 + $0x328] sm:$0xff]  ;;  %v12406_v16 = vld [vmem:[%s12805_s18 + $0xe14] sm:$0xf]  ;;  %v11353_v17 = vld [vmem:[%s12805_s18 + $0xe4c] sm:$0xf0] }
 0x182   : > { %7235 = vmatpush.bf16.msrb.mxu2 %v2228_v13  ;;  %1524 = vperm.xlu2 %12643, %v654_v39   ;;  %v12076_v13 = vld [vmem:[%s12805_s18 + $0x3c4] sm:$0xf] }
 0x183   : > { %1519 = vperm.xlu1 %12642, %v653_v22   ;;  %1444 = vperm.xlu0 %12641, %v638_v40   ;;  %v10033_v22 = vld [vmem:[%s12805_s18 + $0x3fc] sm:$0xf0]  ;;  %v2037_v40 = vmul.f32 %v13212_v21, %v357_v33  ;;  %v666_v33 = vld [vmem:[%s12820_s26 + $0x548] sm:$0xff] }
 0x184   : > { %v13238_v51 = vpop.permute.xlu2 %1159  ;;  %v1090_v53 = vpop.permute.xlu1 %1089  ;;  %6025 = vmatmul.bf16.gmra.mxu0 %v10032_v41  ;;  %6175 = vmatmul.bf16.gmra.mxu3 %v11832_v42  ;;  %v10039_v42 = vld [vmem:[%s12805_s18 + $0x3c8] sm:$0xf]  ;;  %v10036_v55 = vor.u32 %v12076_v13, %v10033_v22  ;;  %v11356_v13 = vor.u32 %v12406_v16, %v11353_v17  ;;  %v317_v22 = vld [vmem:[%s12863_s28 + $0x1e0] sm:$0xff] }
 0x185   : > { %v2007_v58 = vmul.f32 %v1090_v53, %v327_v50  ;;  %v13241_v59 = vpop.permute.xlu0 %994  ;;  %v665_v53 = vld [vmem:[%s12820_s26 + $0x540] sm:$0xff]  ;;  %v10040_v48 = vor.u32 %v12084_v43, %v10039_v42 }
 0x186   : > { %v13247_v3 = vpop.f32.mrf.mxu3  ;;  %v341_v43 = vld [vmem:[%s12863_s28 + $0x2a0] sm:$0xff] }
 0x187   : > { %v2212_v47 = vpack.c.bf16 %v2008_v54, %v2007_v58  ;;  %v652_v58 = vld [vmem:[%s12820_s26 + $0x4d8] sm:$0xff] }
 0x188   : > { %v13252_v8 = vpop.f32.mrf.mxu0 }
 0x189   : > { %6817 = vmatpush.bf16.msrb.mxu0 %v2212_v47 }
 0x18a   : > { %1329 = vperm.xlu2 %12643, %v615_v27   ;;  %v326_v27 = vld [vmem:[%s12863_s28 + $0x228] sm:$0xff] }
 0x18b   : > { %1594 = vperm.xlu1 %12642, %v668_v63   ;;  %1589 = vperm.xlu0 %12641, %v667_v5   ;;  %v325_v63 = vld [vmem:[%s12863_s28 + $0x220] sm:$0xff]  ;;  %v319_v5 = vld [vmem:[%s12863_s28 + $0x1f0] sm:$0xff] }
 0x18c   : > { %v13256_v4 = vpop.permute.xlu2 %1234  ;;  %v1175_v14 = vpop.permute.xlu1 %1174  ;;  %6229 = vmatmul.bf16.gmra.mxu1 %v9976_v6  ;;  %6438 = vmatmul.bf16.gmra.mxu2 %v9980_v7 }
 0x18d   : > { %v2024_v15 = vmul.f32 %v1175_v14, %v344_v9  ;;  %v1170_v25 = vpop.permute.xlu0 %1169  ;;  %v320_v9 = vld [vmem:[%s12863_s28 + $0x1f8] sm:$0xff]  ;;  %v10151_v14 = vld [vmem:[%s12805_s18 + $0x4b0] sm:$0xf] }
 0x18e   : > { %v2023_v19 = vmul.f32 %v1170_v25, %v343_v35  ;;  %v13262_v11 = vpop.f32.mrf.mxu3 }
 0x190   : > { %v2220_v46 = vpack.c.bf16 %v2024_v15, %v2023_v19  ;;  %v13267_v32 = vpop.f32.mrf.mxu0  ;;  %v12113_v15 = vld [vmem:[%s12805_s18 + $0x4e8] sm:$0xf0]  ;;  %v1999_v19 = vmul.f32 %v13056_v30, %v319_v5  ;;  %v2021_v5 = vmul.f32 %v13238_v51, %v341_v43  ;;  %v649_v51 = vld [vmem:[%s12820_s26 + $0x4c0] sm:$0xff] }
 0x192   : > { %7026 = vmatpush.bf16.msrb.mxu1 %v2220_v46  ;;  %1434 = vperm.xlu2 %12643, %v636_v1   ;;  %v614_v1 = vld [vmem:[%s12820_s26 + $0x3a8] sm:$0xff]  ;;  %v2000_v46 = vmul.f32 %v13060_v45, %v320_v9  ;;  %v355_v45 = vld [vmem:[%s12863_s28 + $0x310] sm:$0xff]  ;;  %v10099_v9 = vld [vmem:[%s12805_s18 + $0x440] sm:$0xf] }
 0x193   : > { %1429 = vperm.xlu1 %12642, %v635_v23   ;;  %1334 = vperm.xlu0 %12641, %v616_v29   ;;  %v318_v23 = vld [vmem:[%s12863_s28 + $0x1e8] sm:$0xff] }
 0x194   : > { %v13271_v37 = vpop.permute.xlu2 %1149  ;;  %v13273_v38 = vpop.permute.xlu1 %979  ;;  %6030 = vmatmul.bf16.gmra.mxu0 %v10092_v57  ;;  %6180 = vmatmul.bf16.gmra.mxu3 %v11892_v31  ;;  %v613_v31 = vld [vmem:[%s12820_s26 + $0x3a0] sm:$0xff]  ;;  %v1998_v42 = vmul.f32 %v13076_v62, %v318_v23 }
 0x195   : > { %v1245_v39 = vpop.permute.xlu0 %1244  ;;  %v633_v23 = vld [vmem:[%s12820_s26 + $0x440] sm:$0xff] }
 0x196   : > { %v2038_v41 = vmul.f32 %v1245_v39, %v358_v36  ;;  %v13280_v50 = vpop.f32.mrf.mxu3  ;;  %v10152_v36 = vor.u32 %v12113_v15, %v10151_v14 }
 0x197   : > { %v6195_v61 = vpop.f32.mrf.mxu1 }
 0x198   : > { %v2227_v54 = vpack.c.bf16 %v2038_v41, %v2037_v40  ;;  %v13285_v47 = vpop.f32.mrf.mxu0  ;;  %v6196_v21 = vadd.f32 %v6195_v61, %v13234_v56  ;;  %v356_v40 = vld [vmem:[%s12863_s28 + $0x318] sm:$0xff]  ;;  %v315_v61 = vld [vmem:[%s12863_s28 + $0x1d0] sm:$0xff] }
 0x199   : > { %v1995_v15 = vmul.f32 %v13091_v0, %v315_v61 }
 0x19a   : > { %7236 = vmatpush.bf16.msrb.mxu2 %v2227_v54  ;;  %1579 = vperm.xlu2 %12643, %v665_v53   ;;  %v342_v53 = vld [vmem:[%s12863_s28 + $0x2a8] sm:$0xff]  ;;  %v2208_v54 = vpack.c.bf16 %v2000_v46, %v1999_v19 }
 0x19b   : > { %1514 = vperm.xlu1 %12642, %v652_v58   ;;  %1509 = vperm.xlu0 %12641, %v651_v60   ;;  %v316_v58 = vld [vmem:[%s12863_s28 + $0x1d8] sm:$0xff]  ;;  %v634_v19 = vld [vmem:[%s12820_s26 + $0x448] sm:$0xff] }
 0x19c   : > { %v13291_v6 = vpop.permute.xlu2 %1224  ;;  %v1085_v7 = vpop.permute.xlu1 %1084  ;;  %6234 = vmatmul.bf16.gmra.mxu1 %v10036_v55  ;;  %6443 = vmatmul.bf16.gmra.mxu2 %v10040_v48  ;;  %v2036_v48 = vmul.f32 %v13256_v4, %v356_v40  ;;  %v311_v40 = vld [vmem:[%s12863_s28 + $0x1b0] sm:$0xff] }
 0x19d   : > { %v2006_v35 = vmul.f32 %v1085_v7, %v326_v27  ;;  %v1080_v56 = vpop.permute.xlu0 %1079  ;;  %v12091_v27 = vld [vmem:[%s12805_s18 + $0x43c] sm:$0xf]  ;;  %v1991_v61 = vmul.f32 %v13159_v44, %v311_v40  ;;  %v307_v40 = vld [vmem:[%s12863_s28 + $0x190] sm:$0xff] }
 0x19e   : > { %v2005_v25 = vmul.f32 %v1080_v56, %v325_v63  ;;  %v13299_v26 = vpop.f32.mrf.mxu3  ;;  %v6404_v20 = vpop.f32.mrf.mxu2  ;;  %v10093_v63 = vld [vmem:[%s12805_s18 + $0x474] sm:$0xf0] }
 0x19f   : > { %v13304_v29 = vadd.f32 %v6404_v20, %v6196_v21  ;;  %v6197_v39 = vpop.f32.mrf.mxu1  ;;  %v10096_v20 = vor.u32 %v12091_v27, %v10093_v63  ;;  %v664_v27 = vld [vmem:[%s12820_s26 + $0x538] sm:$0xff]  ;;  %v663_v63 = vld [vmem:[%s12820_s26 + $0x530] sm:$0xff] }
 0x1a0   : > { %v2211_v57 = vpack.c.bf16 %v2006_v35, %v2005_v25  ;;  %v13308_v30 = vpop.f32.mrf.mxu0  ;;  %v6198_v41 = vadd.f32 %v6197_v39, %v13252_v8  ;;  %v1997_v8 = vmul.f32 %v13013_v52, %v317_v22  ;;  %v12099_v35 = vld [vmem:[%s12805_s18 + $0x478] sm:$0xf0]  ;;  %v1996_v52 = vmul.f32 %v13089_v12, %v316_v58  ;;  %v11413_v58 = vld [vmem:[%s12805_s18 + $0xec4] sm:$0xf0] }
 0x1a1   : > { %17255 = vst [vmem:[#allocation5_spill] sm:$0xff] %v13304_v29  ;;  %v10100_v12 = vor.u32 %v12099_v35, %v10099_v9 }
 0x1a2   : > { %6818 = vmatpush.bf16.msrb.mxu0 %v2211_v57  ;;  %1324 = vperm.xlu2 %12643, %v614_v1   ;;  %v2207_v56 = vpack.c.bf16 %v1998_v42, %v1997_v8  ;;  %v314_v1 = vld [vmem:[%s12863_s28 + $0x1c8] sm:$0xff]  ;;  %v2206_v39 = vpack.c.bf16 %v1996_v52, %v1995_v15  ;;  %v12128_v42 = vld [vmem:[%s12805_s18 + $0x560] sm:$0xf0] }
 0x1a3   : > { %1319 = vperm.xlu1 %12642, %v613_v31   ;;  %1584 = vperm.xlu0 %12641, %v666_v33   ;;  %v313_v31 = vld [vmem:[%s12863_s28 + $0x1c0] sm:$0xff]  ;;  %v324_v33 = vld [vmem:[%s12863_s28 + $0x218] sm:$0xff] }
 0x1a4   : > { %v13318_v60 = vpop.permute.xlu2 %1139  ;;  %v1230_v55 = vpop.permute.xlu1 %1229  ;;  %6035 = vmatmul.bf16.gmra.mxu0 %v10152_v36  ;;  %6344 = vmatmul.bf16.vlgmr.msrb.gmra.mxu3 %v11356_v13  ;;  %v323_v36 = vld [vmem:[%s12863_s28 + $0x210] sm:$0xff]  ;;  %v1994_v13 = vmul.f32 %v13135_v10, %v314_v1  ;;  %v1993_v43 = vmul.f32 %v13073_v34, %v313_v31  ;;  %v12421_v10 = vld [vmem:[%s12805_s18 + $0xe8c] sm:$0xf] }
 0x1a5   : > { %v2035_v62 = vmul.f32 %v1230_v55, %v355_v45  ;;  %v1165_v21 = vpop.permute.xlu0 %1164  ;;  %6604 = vmatpush.bf16.msrb.mxu3 %v2208_v54  ;;  %v10211_v45 = vld [vmem:[%s12805_s18 + $0x528] sm:$0xf]  ;;  %v312_v55 = vld [vmem:[%s12863_s28 + $0x1b8] sm:$0xff]  ;;  %v11416_v52 = vor.u32 %v12421_v10, %v11413_v58 }
 0x1a6   : > { %v2022_v7 = vmul.f32 %v1165_v21, %v342_v53  ;;  %v6406_v14 = vpop.f32.mrf.mxu2  ;;  %v13330_v25 = vpop.f32.mrf.mxu3  ;;  %v2205_v8 = vpack.c.bf16 %v1994_v13, %v1993_v43  ;;  %v10212_v34 = vor.u32 %v12128_v42, %v10211_v45  ;;  %v1992_v44 = vmul.f32 %v13121_v2, %v312_v55  ;;  %v12114_v13 = vld [vmem:[%s12805_s18 + $0x4f0] sm:$0xf0]  ;;  %v612_v58 = vld [vmem:[%s12820_s26 + $0x398] sm:$0xff] }
 0x1a7   : > { %v2226_v4 = vpack.c.bf16 %v2036_v48, %v2035_v62  ;;  %v13332_v16 = vadd.f32 %v6406_v14, %v6198_v41  ;;  %v611_v55 = vld [vmem:[%s12820_s26 + $0x390] sm:$0xff] }
 0x1a8   : > { %v2219_v17 = vpack.c.bf16 %v2022_v7, %v2021_v5  ;;  %v6200_v46 = vpop.f32.mrf.mxu1  ;;  %v13338_v57 = vpop.f32.mrf.mxu0  ;;  %v310_v5 = vld [vmem:[%s12863_s28 + $0x1a8] sm:$0xff]  ;;  %v309_v7 = vld [vmem:[%s12863_s28 + $0x1a0] sm:$0xff] }
 0x1a9   : > { %17256 = vst [vmem:[#allocation6_spill] sm:$0xff] %v13332_v16  ;;  %7237 = vmatpush.bf16.msrb.mxu2 %v2226_v4  ;;  %6605 = vmatpush.bf16.msrb.mxu3 %v2207_v56  ;;  %v6201_v0 = vadd.f32 %v6200_v46, %v13267_v32  ;;  %v650_v56 = vld [vmem:[%s12820_s26 + $0x4c8] sm:$0xff]  ;;  %v339_v4 = vld [vmem:[%s12863_s28 + $0x290] sm:$0xff]  ;;  %v1990_v1 = vmul.f32 %v13197_v49, %v310_v5 }
 0x1aa   : > { %7027 = vmatpush.bf16.msrb.mxu1 %v2219_v17  ;;  %1499 = vperm.xlu2 %12643, %v649_v51   ;;  %v354_v17 = vld [vmem:[%s12863_s28 + $0x308] sm:$0xff]  ;;  %v353_v51 = vld [vmem:[%s12863_s28 + $0x300] sm:$0xff]  ;;  %v1989_v46 = vmul.f32 %v13199_v18, %v309_v7  ;;  %v2019_v31 = vmul.f32 %v13271_v37, %v339_v4  ;;  %v10153_v18 = vld [vmem:[%s12805_s18 + $0x4ec] sm:$0xf0] }
 0x1ab   : > { %1424 = vperm.xlu1 %12642, %v634_v19   ;;  %1419 = vperm.xlu0 %12641, %v633_v23   ;;  %v340_v19 = vld [vmem:[%s12863_s28 + $0x298] sm:$0xff]  ;;  %v2034_v49 = vmul.f32 %v13291_v6, %v354_v17  ;;  %v305_v6 = vld [vmem:[%s12863_s28 + $0x180] sm:$0xff] }
 0x1ac   : > { %v13345_v22 = vpop.permute.xlu2 %1374  ;;  %6239 = vmatmul.bf16.gmra.mxu1 %v10096_v20  ;;  %v1075_v32 = vpop.permute.xlu1 %1074  ;;  %6448 = vmatmul.bf16.gmra.mxu2 %v10100_v12  ;;  %v2204_v20 = vpack.c.bf16 %v1992_v44, %v1991_v61  ;;  %v1985_v7 = vmul.f32 %v13273_v38, %v305_v6  ;;  %v12436_v38 = vld [vmem:[%s12805_s18 + $0xf04] sm:$0xf]  ;;  %v11473_v17 = vld [vmem:[%s12805_s18 + $0xf3c] sm:$0xf0]  ;;  %v10213_v6 = vld [vmem:[%s12805_s18 + $0x564] sm:$0xf0] }
 0x1ad   : > { %v1070_v41 = vpop.permute.xlu0 %1069  ;;  %v2004_v53 = vmul.f32 %v1075_v32, %v324_v33  ;;  %6606 = vmatpush.bf16.msrb.mxu3 %v2206_v39  ;;  %v10159_v39 = vld [vmem:[%s12805_s18 + $0x4b8] sm:$0xf]  ;;  %v2203_v32 = vpack.c.bf16 %v1990_v1, %v1989_v46 }
 0x1ae   : > { %v2003_v54 = vmul.f32 %v1070_v41, %v323_v36  ;;  %v13355_v48 = vpop.f32.mrf.mxu3  ;;  %v6409_v62 = vpop.f32.mrf.mxu2  ;;  %v10160_v61 = vor.u32 %v12114_v13, %v10159_v39  ;;  %v648_v46 = vld [vmem:[%s12820_s26 + $0x4b8] sm:$0xff]  ;;  %v383_v39 = vld [vmem:[%s12863_s28 + $0x3f0] sm:$0xff]  ;;  %v338_v13 = vld [vmem:[%s12863_s28 + $0x288] sm:$0xff] }
 0x1af   : > { %v13361_v9 = vadd.f32 %v6409_v62, %v6201_v0  ;;  %v12106_v0 = vld [vmem:[%s12805_s18 + $0x4b4] sm:$0xf] }
 0x1b0   : > { %v2210_v21 = vpack.c.bf16 %v2004_v53, %v2003_v54  ;;  %v6202_v35 = vpop.f32.mrf.mxu1  ;;  %v13364_v14 = vpop.f32.mrf.mxu0  ;;  %v631_v53 = vld [vmem:[%s12820_s26 + $0x430] sm:$0xff] }
 0x1b1   : > { %17257 = vst [vmem:[#allocation7_spill] sm:$0xff] %v13361_v9  ;;  %6607 = vmatpush.bf16.msrb.mxu3 %v2205_v8  ;;  %v6203_v15 = vadd.f32 %v6202_v35, %v13285_v47  ;;  %v308_v47 = vld [vmem:[%s12863_s28 + $0x198] sm:$0xff]  ;;  %v10156_v8 = vor.u32 %v12106_v0, %v10153_v18 }
 0x1b2   : > { %6819 = vmatpush.bf16.msrb.mxu0 %v2210_v21  ;;  %1574 = vperm.xlu2 %12643, %v664_v27   ;;  %v1988_v41 = vmul.f32 %v13241_v59, %v308_v47  ;;  %v1987_v59 = vmul.f32 %v13184_v24, %v307_v40  ;;  %v306_v27 = vld [vmem:[%s12863_s28 + $0x188] sm:$0xff]  ;;  %v384_v18 = vld [vmem:[%s12863_s28 + $0x3f8] sm:$0xff] }
 0x1b3   : > { %1569 = vperm.xlu1 %12642, %v663_v63   ;;  %1504 = vperm.xlu0 %12641, %v650_v56   ;;  %v322_v63 = vld [vmem:[%s12863_s28 + $0x208] sm:$0xff]  ;;  %v10271_v56 = vld [vmem:[%s12805_s18 + $0x5a0] sm:$0xf] }
 0x1b4   : > { %v13374_v2 = vpop.permute.xlu2 %1609  ;;  %6040 = vmatmul.bf16.gmra.mxu0 %v10212_v34  ;;  %6349 = vmatmul.bf16.gmra.mxu3 %v11416_v52  ;;  %v321_v34 = vld [vmem:[%s12863_s28 + $0x200] sm:$0xff]  ;;  %v2202_v5 = vpack.c.bf16 %v1988_v41, %v1987_v59  ;;  %v1986_v52 = vmul.f32 %v13225_v28, %v306_v27  ;;  %v647_v28 = vld [vmem:[%s12820_s26 + $0x4b0] sm:$0xff]  ;;  %v662_v27 = vld [vmem:[%s12820_s26 + $0x528] sm:$0xff] }
 0x1b5   : > { %v1220_v23 = vpop.permute.xlu1 %1219  ;;  %v1155_v12 = vpop.permute.xlu0 %1154  ;;  %6608 = vmatpush.bf16.msrb.mxu3 %v2204_v20 }
 0x1b6   : > { %v2033_v33 = vmul.f32 %v1220_v23, %v353_v51  ;;  %v2020_v36 = vmul.f32 %v1155_v12, %v340_v19  ;;  %v13385_v45 = vpop.f32.mrf.mxu3  ;;  %v6411_v42 = vpop.f32.mrf.mxu2  ;;  %v2201_v51 = vpack.c.bf16 %v1986_v52, %v1985_v7  ;;  %v632_v12 = vld [vmem:[%s12820_s26 + $0x438] sm:$0xff] }
 0x1b7   : > { %v13389_v54 = vadd.f32 %v6411_v42, %v6203_v15  ;;  %v12143_v15 = vld [vmem:[%s12805_s18 + $0x5d8] sm:$0xf0]  ;;  %v12121_v42 = vld [vmem:[%s12805_s18 + $0x52c] sm:$0xf] }
 0x1b8   : > { %v2218_v37 = vpack.c.bf16 %v2020_v36, %v2019_v31  ;;  %v2225_v43 = vpack.c.bf16 %v2034_v49, %v2033_v33  ;;  %v6205_v10 = vpop.f32.mrf.mxu1  ;;  %v13393_v62 = vpop.f32.mrf.mxu0  ;;  %v10272_v0 = vor.u32 %v12143_v15, %v10271_v56  ;;  %v11476_v31 = vor.u32 %v12436_v38, %v11473_v17  ;;  %v337_v33 = vld [vmem:[%s12863_s28 + $0x280] sm:$0xff]  ;;  %v10331_v15 = vld [vmem:[%s12805_s18 + $0x618] sm:$0xf]  ;;  %v12158_v17 = vld [vmem:[%s12805_s18 + $0x650] sm:$0xf0] }
 0x1b9   : > { %17258 = vst [vmem:[#allocation8_spill] sm:$0xff] %v13389_v54  ;;  %6609 = vmatpush.bf16.msrb.mxu3 %v2203_v32  ;;  %v6206_v21 = vadd.f32 %v6205_v10, %v13308_v30  ;;  %v10219_v10 = vld [vmem:[%s12805_s18 + $0x530] sm:$0xf]  ;;  %v381_v56 = vld [vmem:[%s12863_s28 + $0x3e0] sm:$0xff] }
 0x1ba   : > { %7028 = vmatpush.bf16.msrb.mxu1 %v2218_v37  ;;  %7238 = vmatpush.bf16.msrb.mxu2 %v2225_v43  ;;  %v13427_v37 = vmul.f32 %v13345_v22, %v384_v18  ;;  %v717_v54 = vld [vmem:[%s12820_s26 + $0x6e0] sm:$0xff] }
 0x1bb   : > { %1409 = vperm.xlu2 %12643, %v631_v53   ;;  %1314 = vperm.xlu1 %12642, %v612_v58   ;;  %v12129_v58 = vld [vmem:[%s12805_s18 + $0x568] sm:$0xf0] }
 0x1bc   : > { %1309 = vperm.xlu0 %12641, %v611_v55   ;;  %v13401_v35 = vpop.permute.xlu2 %1354  ;;  %6244 = vmatmul.bf16.gmra.mxu1 %v10156_v8  ;;  %v642_v55 = vld [vmem:[%s12820_s26 + $0x488] sm:$0xff] }
 0x1bd   : > { %v1065_v24 = vpop.permute.xlu1 %1064  ;;  %v1060_v30 = vpop.permute.xlu0 %1059  ;;  %6453 = vmatmul.bf16.gmra.mxu2 %v10160_v61  ;;  %6610 = vmatpush.bf16.msrb.mxu3 %v2202_v5  ;;  %v10220_v5 = vor.u32 %v12129_v58, %v10219_v10  ;;  %v12136_v58 = vld [vmem:[%s12805_s18 + $0x5a4] sm:$0xf] }
 0x1be   : > { %v2002_v44 = vmul.f32 %v1065_v24, %v322_v63  ;;  %v2001_v4 = vmul.f32 %v1060_v30, %v321_v34  ;;  %v13408_v19 = vpop.f32.mrf.mxu3  ;;  %v661_v63 = vld [vmem:[%s12820_s26 + $0x520] sm:$0xff]  ;;  %v10216_v34 = vor.u32 %v12121_v42, %v10213_v6  ;;  %v382_v30 = vld [vmem:[%s12863_s28 + $0x3e8] sm:$0xff]  ;;  %v379_v42 = vld [vmem:[%s12863_s28 + $0x3d0] sm:$0xff] }
 0x1bf   : > { %v6414_v20 = vpop.f32.mrf.mxu2 }
 0x1c0   : > { %v2209_v1 = vpack.c.bf16 %v2002_v44, %v2001_v4  ;;  %v13411_v47 = vadd.f32 %v6414_v20, %v6206_v21  ;;  %v6207_v23 = vpop.f32.mrf.mxu1  ;;  %v609_v21 = vld [vmem:[%s12820_s26 + $0x380] sm:$0xff]  ;;  %v11533_v20 = vld [vmem:[%s12805_s18 + $0xfb4] sm:$0xf0] }
 0x1c1   : > { %v13415_v49 = vpop.f32.mrf.mxu0  ;;  %6611 = vmatpush.bf16.msrb.mxu3 %v2201_v51  ;;  %v6208_v36 = vadd.f32 %v6207_v23, %v13338_v57  ;;  %v2017_v57 = vmul.f32 %v13318_v60, %v337_v33  ;;  %v12451_v51 = vld [vmem:[%s12805_s18 + $0xf7c] sm:$0xf]  ;;  %v610_v33 = vld [vmem:[%s12820_s26 + $0x388] sm:$0xff] }
 0x1c2   : > { %17259 = vst [vmem:[#allocation9_spill] sm:$0xff] %v13411_v47  ;;  %6820 = vmatpush.bf16.msrb.mxu0 %v2209_v1  ;;  %v11536_v18 = vor.u32 %v12451_v51, %v11533_v20 }
 0x1c3   : > { %1494 = vperm.xlu2 %12643, %v648_v46   ;;  %1489 = vperm.xlu1 %12642, %v647_v28   ;;  %v630_v28 = vld [vmem:[%s12820_s26 + $0x428] sm:$0xff] }
 0x1c4   : > { %1414 = vperm.xlu0 %12641, %v632_v12   ;;  %v13422_v40 = vpop.permute.xlu2 %1529  ;;  %6045 = vmatmul.bf16.gmra.mxu0 %v10272_v0 }
 0x1c5   : > { %v1370_v32 = vpop.permute.xlu1 %1369  ;;  %v1145_v41 = vpop.permute.xlu0 %1144  ;;  %6354 = vmatmul.bf16.gmra.mxu3 %v11476_v31  ;;  %v629_v31 = vld [vmem:[%s12820_s26 + $0x420] sm:$0xff] }
 0x1c6   : > { %v13429_v43 = vmul.f32 %v1370_v32, %v383_v39  ;;  %v2018_v53 = vmul.f32 %v1145_v41, %v338_v13  ;;  %v431_v13 = vld [vmem:[%s12863_s28 + $0x570] sm:$0xff]  ;;  %v380_v41 = vld [vmem:[%s12863_s28 + $0x3d8] sm:$0xff] }
 0x1c7   : > { %v13436_v8 = vpop.f32.mrf.mxu3  ;;  %v6416_v61 = vpop.f32.mrf.mxu2 }
 0x1c8   : > { %17260 = vst [vmem:[#allocation10_spill] sm:$0xff] %v13436_v8  ;;  %v2217_v59 = vpack.c.bf16 %v2018_v53, %v2017_v57  ;;  %v13439_v60 = vadd.f32 %v6416_v61, %v6208_v36  ;;  %v10332_v36 = vor.u32 %v12158_v17, %v10331_v15  ;;  %v432_v57 = vld [vmem:[%s12863_s28 + $0x578] sm:$0xff]  ;;  %v13479_v61 = vmul.f32 %v13401_v35, %v380_v41  ;;  %v11593_v41 = vld [vmem:[%s12805_s18 + $0x102c] sm:$0xf0]  ;;  %v489_v8 = vld [vmem:[%s12863_s28 + $0x740] sm:$0xff] }
 0x1c9   : > { %v6210_v22 = vpop.f32.mrf.mxu1  ;;  %v13443_v7 = vpop.f32.mrf.mxu0 }
 0x1ca   : > { %17261 = vst [vmem:[#allocation11_spill] sm:$0xff] %v13439_v60  ;;  %v6211_v24 = vadd.f32 %v6210_v22, %v13364_v14  ;;  %7029 = vmatpush.bf16.msrb.mxu1 %v2217_v59  ;;  %v10273_v22 = vld [vmem:[%s12805_s18 + $0x5dc] sm:$0xf0] }
 0x1cb   : > { %1299 = vperm.xlu2 %12643, %v609_v21   ;;  %1564 = vperm.xlu1 %12642, %v662_v27   ;;  %v10279_v27 = vld [vmem:[%s12805_s18 + $0x5a8] sm:$0xf]  ;;  %v10276_v15 = vor.u32 %v12136_v58, %v10273_v22  ;;  %v660_v22 = vld [vmem:[%s12820_s26 + $0x518] sm:$0xff] }
 0x1cc   : > { %1559 = vperm.xlu0 %12641, %v661_v63   ;;  %v13448_v52 = vpop.permute.xlu2 %1604  ;;  %6249 = vmatmul.bf16.gmra.mxu1 %v10216_v34  ;;  %v12144_v63 = vld [vmem:[%s12805_s18 + $0x5e0] sm:$0xf0] }
 0x1cd   : > { %v1365_v44 = vpop.permute.xlu1 %1364  ;;  %v1360_v4 = vpop.permute.xlu0 %1359  ;;  %6458 = vmatmul.bf16.gmra.mxu2 %v10220_v5  ;;  %v10280_v17 = vor.u32 %v12144_v63, %v10279_v27 }
 0x1ce   : > { %v13451_v38 = vmul.f32 %v1365_v44, %v382_v30  ;;  %v13453_v14 = vmul.f32 %v1360_v4, %v381_v56  ;;  %v659_v56 = vld [vmem:[%s12820_s26 + $0x510] sm:$0xff]  ;;  %v646_v44 = vld [vmem:[%s12820_s26 + $0x4a8] sm:$0xff]  ;;  %v645_v4 = vld [vmem:[%s12820_s26 + $0x4a0] sm:$0xff] }
 0x1cf   : > { %v13460_v46 = vpop.f32.mrf.mxu3  ;;  %v6419_v23 = vpop.f32.mrf.mxu2 }
 0x1d0   : > { %17262 = vst [vmem:[#allocation12_spill] sm:$0xff] %v13460_v46  ;;  %v13463_v12 = vadd.f32 %v6419_v23, %v6211_v24  ;;  %v400_v23 = vld [vmem:[%s12863_s28 + $0x478] sm:$0xff] }
 0x1d1   : > { %v6212_v0 = vpop.f32.mrf.mxu1  ;;  %v13467_v39 = vpop.f32.mrf.mxu0 }
 0x1d2   : > { %17263 = vst [vmem:[#allocation13_spill] sm:$0xff] %v13463_v12  ;;  %v6213_v32 = vadd.f32 %v6212_v0, %v13393_v62  ;;  %v2111_v62 = vmul.f32 %v13374_v2, %v431_v13  ;;  %v12173_v13 = vld [vmem:[%s12805_s18 + $0x6c8] sm:$0xf0] }
 0x1d3   : > { %1404 = vperm.xlu2 %12643, %v630_v28   ;;  %1399 = vperm.xlu1 %12642, %v629_v31   ;;  %v399_v28 = vld [vmem:[%s12863_s28 + $0x470] sm:$0xff] }
 0x1d4   : > { %1304 = vperm.xlu0 %12641, %v610_v33   ;;  %v13474_v53 = vpop.permute.xlu2 %1439  ;;  %6050 = vmatmul.bf16.gmra.mxu0 %v10332_v36  ;;  %v10391_v36 = vld [vmem:[%s12805_s18 + $0x690] sm:$0xf] }
 0x1d5   : > { %v1350_v6 = vpop.permute.xlu1 %1349  ;;  %v1615_v10 = vpop.permute.xlu0 %1614  ;;  %6359 = vmatmul.bf16.gmra.mxu3 %v11536_v18  ;;  %v10392_v27 = vor.u32 %v12173_v13, %v10391_v36  ;;  %v10333_v36 = vld [vmem:[%s12805_s18 + $0x654] sm:$0xf0] }
 0x1d6   : > { %v13481_v59 = vmul.f32 %v1350_v6, %v379_v42  ;;  %v2112_v21 = vmul.f32 %v1615_v10, %v432_v57  ;;  %v628_v10 = vld [vmem:[%s12820_s26 + $0x418] sm:$0xff] }
 0x1d7   : > { %v13488_v24 = vpop.f32.mrf.mxu3  ;;  %v6421_v30 = vpop.f32.mrf.mxu2 }
 0x1d8   : > { %v2264_v5 = vpack.c.bf16 %v2112_v21, %v2111_v62  ;;  %17264 = vst [vmem:[#allocation14_spill] sm:$0xff] %v13488_v24  ;;  %v13491_v2 = vadd.f32 %v6421_v30, %v6213_v32  ;;  %v12466_v32 = vld [vmem:[%s12805_s18 + $0xff4] sm:$0xf] }
 0x1d9   : > { %v6215_v35 = vpop.f32.mrf.mxu1  ;;  %v13495_v51 = vpop.f32.mrf.mxu0  ;;  %v627_v21 = vld [vmem:[%s12820_s26 + $0x410] sm:$0xff]  ;;  %v11596_v63 = vor.u32 %v12466_v32, %v11593_v41 }
 0x1da   : > { %17265 = vst [vmem:[#allocation15_spill] sm:$0xff] %v13491_v2  ;;  %v6216_v20 = vadd.f32 %v6215_v35, %v13415_v49  ;;  %8067 = vmatpush.bf16.msra.mxu2 %v2264_v5  ;;  %v415_v30 = vld [vmem:[%s12863_s28 + $0x4f0] sm:$0xff]  ;;  %v430_v35 = vld [vmem:[%s12863_s28 + $0x568] sm:$0xff] }
 0x1db   : > { %1549 = vperm.xlu2 %12643, %v659_v56   ;;  %1484 = vperm.xlu1 %12642, %v646_v44   ;;  %v429_v44 = vld [vmem:[%s12863_s28 + $0x560] sm:$0xff]  ;;  %v439_v24 = vld [vmem:[%s12863_s28 + $0x5b0] sm:$0xff] }
 0x1dc   : > { %1479 = vperm.xlu0 %12641, %v645_v4   ;;  %v13500_v0 = vpop.permute.xlu2 %1524  ;;  %6254 = vmatmul.bf16.gmra.mxu1 %v10276_v15  ;;  %v416_v4 = vld [vmem:[%s12863_s28 + $0x4f8] sm:$0xff] }
 0x1dd   : > { %v1455_v31 = vpop.permute.xlu1 %1454  ;;  %v1450_v33 = vpop.permute.xlu0 %1449  ;;  %6463 = vmatmul.bf16.gmra.mxu2 %v10280_v17 }
 0x1de   : > { %v2080_v18 = vmul.f32 %v1455_v31, %v400_v23  ;;  %v2079_v49 = vmul.f32 %v1450_v33, %v399_v28  ;;  %v12151_v23 = vld [vmem:[%s12805_s18 + $0x61c] sm:$0xf]  ;;  %v2110_v28 = vmul.f32 %v13448_v52, %v430_v35  ;;  %v377_v35 = vld [vmem:[%s12863_s28 + $0x3c0] sm:$0xff] }
 0x1df   : > { %v13506_v57 = vpop.f32.mrf.mxu3  ;;  %v6424_v6 = vpop.f32.mrf.mxu2 }
 0x1e0   : > { %v2248_v42 = vpack.c.bf16 %v2080_v18, %v2079_v49  ;;  %17266 = vst [vmem:[#allocation16_spill] sm:$0xff] %v13506_v57  ;;  %v13509_v58 = vadd.f32 %v6424_v6, %v6216_v20  ;;  %v10339_v18 = vld [vmem:[%s12805_s18 + $0x620] sm:$0xf]  ;;  %v12159_v49 = vld [vmem:[%s12805_s18 + $0x658] sm:$0xf0] }
 0x1e1   : > { %v6217_v62 = vpop.f32.mrf.mxu1  ;;  %v13513_v5 = vpop.f32.mrf.mxu0  ;;  %v657_v6 = vld [vmem:[%s12820_s26 + $0x500] sm:$0xff]  ;;  %v10340_v52 = vor.u32 %v12159_v49, %v10339_v18  ;;  %v626_v18 = vld [vmem:[%s12820_s26 + $0x408] sm:$0xff] }
 0x1e2   : > { %17267 = vst [vmem:[#allocation17_spill] sm:$0xff] %v13509_v58  ;;  %v6218_v56 = vadd.f32 %v6217_v62, %v13443_v7  ;;  %7649 = vmatpush.bf16.msra.mxu0 %v2248_v42  ;;  %v2095_v7 = vmul.f32 %v13422_v40, %v415_v30  ;;  %v643_v40 = vld [vmem:[%s12820_s26 + $0x490] sm:$0xff]  ;;  %v378_v30 = vld [vmem:[%s12863_s28 + $0x3c8] sm:$0xff] }
 0x1e3   : > { %1394 = vperm.xlu2 %12643, %v628_v10   ;;  %1389 = vperm.xlu1 %12642, %v627_v21   ;;  %v644_v21 = vld [vmem:[%s12820_s26 + $0x498] sm:$0xff]  ;;  %v719_v58 = vld [vmem:[%s12820_s26 + $0x6f0] sm:$0xff] }
 0x1e4   : > { %1554 = vperm.xlu0 %12641, %v660_v22   ;;  %v13520_v15 = vpop.permute.xlu2 %1329  ;;  %6055 = vmatmul.bf16.gmra.mxu0 %v10392_v27  ;;  %v10336_v22 = vor.u32 %v12151_v23, %v10333_v36  ;;  %v12188_v23 = vld [vmem:[%s12805_s18 + $0x740] sm:$0xf0] }
 0x1e5   : > { %v1600_v17 = vpop.permute.xlu1 %1599  ;;  %v1535_v20 = vpop.permute.xlu0 %1534  ;;  %6364 = vmatmul.bf16.gmra.mxu3 %v11596_v63 }
 0x1e6   : > { %v2109_v31 = vmul.f32 %v1600_v17, %v429_v44  ;;  %v2096_v33 = vmul.f32 %v1535_v20, %v416_v4 }
 0x1e7   : > { %v13528_v41 = vpop.f32.mrf.mxu3  ;;  %v6426_v42 = vpop.f32.mrf.mxu2 }
 0x1e8   : > { %v2263_v13 = vpack.c.bf16 %v2110_v28, %v2109_v31  ;;  %v2256_v32 = vpack.c.bf16 %v2096_v33, %v2095_v7  ;;  %17268 = vst [vmem:[#allocation18_spill] sm:$0xff] %v13528_v41  ;;  %v13531_v10 = vadd.f32 %v6426_v42, %v6218_v56  ;;  %v12481_v7 = vld [vmem:[%s12805_s18 + $0x106c] sm:$0xf]  ;;  %v11653_v28 = vld [vmem:[%s12805_s18 + $0x10a4] sm:$0xf0] }
 0x1e9   : > { %v6220_v62 = vpop.f32.mrf.mxu1  ;;  %v13535_v27 = vpop.f32.mrf.mxu0  ;;  %v658_v42 = vld [vmem:[%s12820_s26 + $0x508] sm:$0xff] }
 0x1ea   : > { %17269 = vst [vmem:[#allocation19_spill] sm:$0xff] %v13531_v10  ;;  %v6221_v63 = vadd.f32 %v6220_v62, %v13467_v39  ;;  %7858 = vmatpush.bf16.msra.mxu1 %v2256_v32  ;;  %8068 = vmatpush.bf16.msra.mxu2 %v2263_v13  ;;  %v10451_v39 = vld [vmem:[%s12805_s18 + $0x708] sm:$0xf]  ;;  %v625_v32 = vld [vmem:[%s12820_s26 + $0x400] sm:$0xff]  ;;  %v11656_v62 = vor.u32 %v12481_v7, %v11653_v28 }
 0x1eb   : > { %1539 = vperm.xlu2 %12643, %v657_v6   ;;  %1474 = vperm.xlu1 %12642, %v644_v21   ;;  %v10452_v6 = vor.u32 %v12188_v23, %v10451_v39  ;;  %v12166_v39 = vld [vmem:[%s12805_s18 + $0x694] sm:$0xf]  ;;  %v690_v41 = vld [vmem:[%s12820_s26 + $0x608] sm:$0xff] }
 0x1ec   : > { %1469 = vperm.xlu0 %12641, %v643_v40   ;;  %v13540_v56 = vpop.permute.xlu2 %1434  ;;  %6259 = vmatmul.bf16.gmra.mxu1 %v10336_v22  ;;  %v397_v40 = vld [vmem:[%s12863_s28 + $0x460] sm:$0xff] }
 0x1ed   : > { %v1345_v44 = vpop.permute.xlu1 %1344  ;;  %v1340_v4 = vpop.permute.xlu0 %1339  ;;  %6468 = vmatmul.bf16.gmra.mxu2 %v10340_v52  ;;  %v414_v52 = vld [vmem:[%s12863_s28 + $0x4e8] sm:$0xff] }
 0x1ee   : > { %v13543_v17 = vmul.f32 %v1345_v44, %v378_v30  ;;  %v13545_v20 = vmul.f32 %v1340_v4, %v377_v35  ;;  %v413_v30 = vld [vmem:[%s12863_s28 + $0x4e0] sm:$0xff]  ;;  %v398_v35 = vld [vmem:[%s12863_s28 + $0x468] sm:$0xff]  ;;  %v2094_v23 = vmul.f32 %v13500_v0, %v414_v52 }
 0x1ef   : > { %v13552_v33 = vpop.f32.mrf.mxu3  ;;  %v6429_v36 = vpop.f32.mrf.mxu2 }
 0x1f0   : > { %17270 = vst [vmem:[#allocation20_spill] sm:$0xff] %v13552_v33  ;;  %v13555_v49 = vadd.f32 %v6429_v36, %v6221_v63  ;;  %v10393_v36 = vld [vmem:[%s12805_s18 + $0x6cc] sm:$0xf0] }
 0x1f1   : > { %v6222_v13 = vpop.f32.mrf.mxu1  ;;  %v13559_v21 = vpop.f32.mrf.mxu0 }
 0x1f2   : > { %17271 = vst [vmem:[#allocation21_spill] sm:$0xff] %v13555_v49  ;;  %v6223_v22 = vadd.f32 %v6222_v13, %v13495_v51  ;;  %v2077_v51 = vmul.f32 %v13474_v53, %v397_v40  ;;  %v12174_v13 = vld [vmem:[%s12805_s18 + $0x6d0] sm:$0xf0]  ;;  %v641_v53 = vld [vmem:[%s12820_s26 + $0x480] sm:$0xff]  ;;  %v10396_v40 = vor.u32 %v12166_v39, %v10393_v36 }
 0x1f3   : > { %1384 = vperm.xlu2 %12643, %v626_v18   ;;  %1379 = vperm.xlu1 %12642, %v625_v32   ;;  %v10399_v18 = vld [vmem:[%s12805_s18 + $0x698] sm:$0xf] }
 0x1f4   : > { %1544 = vperm.xlu0 %12641, %v658_v42   ;;  %v13566_v63 = vpop.permute.xlu2 %1579  ;;  %6060 = vmatmul.bf16.gmra.mxu0 %v10452_v6  ;;  %v10400_v0 = vor.u32 %v12174_v13, %v10399_v18  ;;  %v686_v13 = vld [vmem:[%s12820_s26 + $0x5e8] sm:$0xff] }
 0x1f5   : > { %v1520_v44 = vpop.permute.xlu1 %1519  ;;  %v1445_v4 = vpop.permute.xlu0 %1444  ;;  %6369 = vmatmul.bf16.gmra.mxu3 %v11656_v62  ;;  %v687_v62 = vld [vmem:[%s12820_s26 + $0x5f0] sm:$0xff] }
 0x1f6   : > { %v2093_v7 = vmul.f32 %v1520_v44, %v413_v30  ;;  %v2078_v28 = vmul.f32 %v1445_v4, %v398_v35  ;;  %v428_v35 = vld [vmem:[%s12863_s28 + $0x558] sm:$0xff]  ;;  %v427_v44 = vld [vmem:[%s12863_s28 + $0x550] sm:$0xff] }
 0x1f7   : > { %v13574_v31 = vpop.f32.mrf.mxu3  ;;  %v6431_v6 = vpop.f32.mrf.mxu2 }
 0x1f8   : > { %v2255_v32 = vpack.c.bf16 %v2094_v23, %v2093_v7  ;;  %v2247_v42 = vpack.c.bf16 %v2078_v28, %v2077_v51  ;;  %17272 = vst [vmem:[#allocation22_spill] sm:$0xff] %v13574_v31  ;;  %v13577_v34 = vadd.f32 %v6431_v6, %v6223_v22  ;;  %v12203_v23 = vld [vmem:[%s12805_s18 + $0x7b8] sm:$0xf0]  ;;  %v12496_v7 = vld [vmem:[%s12805_s18 + $0x10e4] sm:$0xf]  ;;  %v442_v31 = vld [vmem:[%s12863_s28 + $0x5c8] sm:$0xff] }
 0x1f9   : > { %v6225_v1 = vpop.f32.mrf.mxu1  ;;  %v13581_v52 = vpop.f32.mrf.mxu0  ;;  %v11713_v28 = vld [vmem:[%s12805_s18 + $0x111c] sm:$0xf0] }
 0x1fa   : > { %17273 = vst [vmem:[#allocation23_spill] sm:$0xff] %v13577_v34  ;;  %v6226_v30 = vadd.f32 %v6225_v1, %v13513_v5  ;;  %7650 = vmatpush.bf16.msra.mxu0 %v2247_v42  ;;  %7859 = vmatpush.bf16.msra.mxu1 %v2255_v32  ;;  %v10511_v1 = vld [vmem:[%s12805_s18 + $0x780] sm:$0xf]  ;;  %v684_v34 = vld [vmem:[%s12820_s26 + $0x5d8] sm:$0xff] }
 0x1fb   : > { %1689 = vperm.xlu2 %12643, %v687_v62   ;;  %1464 = vperm.xlu1 %12642, %v642_v55   ;;  %v685_v6 = vld [vmem:[%s12820_s26 + $0x5e0] sm:$0xff]  ;;  %v688_v62 = vld [vmem:[%s12820_s26 + $0x5f8] sm:$0xff] }
 0x1fc   : > { %1459 = vperm.xlu0 %12641, %v641_v53   ;;  %v13586_v22 = vpop.permute.xlu2 %1324  ;;  %6264 = vmatmul.bf16.gmra.mxu1 %v10396_v40  ;;  %v10512_v53 = vor.u32 %v12203_v23, %v10511_v1  ;;  %v11716_v40 = vor.u32 %v12496_v7, %v11713_v28  ;;  %v10453_v28 = vld [vmem:[%s12805_s18 + $0x744] sm:$0xf0] }
 0x1fd   : > { %v1595_v4 = vpop.permute.xlu1 %1594  ;;  %v1590_v39 = vpop.permute.xlu0 %1589  ;;  %6473 = vmatmul.bf16.gmra.mxu2 %v10400_v0 }
 0x1fe   : > { %v2108_v5 = vmul.f32 %v1595_v4, %v428_v35  ;;  %v2107_v51 = vmul.f32 %v1590_v39, %v427_v44  ;;  %v396_v44 = vld [vmem:[%s12863_s28 + $0x458] sm:$0xff]  ;;  %v395_v4 = vld [vmem:[%s12863_s28 + $0x450] sm:$0xff] }
 0x1ff   : > { %v13592_v55 = vpop.f32.mrf.mxu3  ;;  %v6434_v18 = vpop.f32.mrf.mxu2  ;;  %v375_v39 = vld [vmem:[%s12863_s28 + $0x3b0] sm:$0xff] }
 0x200   : > { %v2262_v36 = vpack.c.bf16 %v2108_v5, %v2107_v51  ;;  %17274 = vst [vmem:[#allocation24_spill] sm:$0xff] %v13592_v55  ;;  %v13595_v32 = vadd.f32 %v6434_v18, %v6226_v30  ;;  %v376_v30 = vld [vmem:[%s12863_s28 + $0x3b8] sm:$0xff]  ;;  %v12181_v51 = vld [vmem:[%s12805_s18 + $0x70c] sm:$0xf] }
 0x201   : > { %v6227_v42 = vpop.f32.mrf.mxu1  ;;  %v13599_v0 = vpop.f32.mrf.mxu0  ;;  %v12189_v18 = vld [vmem:[%s12805_s18 + $0x748] sm:$0xf0] }
 0x202   : > { %17275 = vst [vmem:[#allocation25_spill] sm:$0xff] %v13595_v32  ;;  %v6228_v35 = vadd.f32 %v6227_v42, %v13535_v27  ;;  %8069 = vmatpush.bf16.msra.mxu2 %v2262_v36  ;;  %v2076_v27 = vmul.f32 %v13540_v56, %v396_v44  ;;  %v10459_v36 = vld [vmem:[%s12805_s18 + $0x710] sm:$0xf] }
 0x203   : > { %1684 = vperm.xlu2 %12643, %v686_v13   ;;  %1679 = vperm.xlu1 %12642, %v685_v6   ;;  %v13614_v13 = vmul.f32 %v13520_v15, %v375_v39  ;;  %v735_v32 = vld [vmem:[%s12820_s26 + $0x770] sm:$0xff]  ;;  %v10456_v15 = vor.u32 %v12181_v51, %v10453_v28  ;;  %v10460_v39 = vor.u32 %v12189_v18, %v10459_v36  ;;  %v10571_v51 = vld [vmem:[%s12805_s18 + $0x7f8] sm:$0xf] }
 0x204   : > { %1694 = vperm.xlu0 %12641, %v688_v62   ;;  %v13606_v5 = vpop.permute.xlu2 %1499  ;;  %6065 = vmatmul.bf16.gmra.mxu0 %v10512_v53  ;;  %v12218_v18 = vld [vmem:[%s12805_s18 + $0x830] sm:$0xf0] }
 0x205   : > { %v1430_v1 = vpop.permute.xlu1 %1429  ;;  %6374 = vmatmul.bf16.gmra.mxu3 %v11716_v40  ;;  %v1335_v7 = vpop.permute.xlu0 %1334  ;;  %v683_v40 = vld [vmem:[%s12820_s26 + $0x5d0] sm:$0xff] }
 0x206   : > { %v2075_v23 = vmul.f32 %v1430_v1, %v395_v4  ;;  %v13616_v42 = vmul.f32 %v1335_v7, %v376_v30  ;;  %v736_v1 = vld [vmem:[%s12820_s26 + $0x778] sm:$0xff] }
 0x207   : > { %v13618_v62 = vpop.f32.mrf.mxu3  ;;  %v6436_v53 = vpop.f32.mrf.mxu2 }
 0x208   : > { %v2246_v6 = vpack.c.bf16 %v2076_v27, %v2075_v23  ;;  %17276 = vst [vmem:[#allocation26_spill] sm:$0xff] %v13618_v62  ;;  %v13623_v44 = vadd.f32 %v6436_v53, %v6228_v35  ;;  %v412_v23 = vld [vmem:[%s12863_s28 + $0x4d8] sm:$0xff]  ;;  %v411_v35 = vld [vmem:[%s12863_s28 + $0x4d0] sm:$0xff] }
 0x209   : > { %v6230_v4 = vpop.f32.mrf.mxu1  ;;  %v13627_v30 = vpop.f32.mrf.mxu0 }
 0x20a   : > { %17277 = vst [vmem:[#allocation27_spill] sm:$0xff] %v13623_v44  ;;  %v6231_v27 = vadd.f32 %v6230_v4, %v13559_v21  ;;  %7651 = vmatpush.bf16.msra.mxu0 %v2246_v6  ;;  %v12511_v21 = vld [vmem:[%s12805_s18 + $0x115c] sm:$0xf]  ;;  %v11773_v6 = vld [vmem:[%s12805_s18 + $0x1194] sm:$0xf0] }
 0x20b   : > { %1669 = vperm.xlu2 %12643, %v683_v40   ;;  %1934 = vperm.xlu1 %12642, %v736_v1   ;;  %v704_v1 = vld [vmem:[%s12820_s26 + $0x678] sm:$0xff] }
 0x20c   : > { %1929 = vperm.xlu0 %12641, %v735_v32   ;;  %v13632_v7 = vpop.permute.xlu2 %1574  ;;  %6269 = vmatmul.bf16.gmra.mxu1 %v10456_v15 }
 0x20d   : > { %v1515_v53 = vpop.permute.xlu1 %1514  ;;  %6478 = vmatmul.bf16.gmra.mxu2 %v10460_v39  ;;  %v1510_v36 = vpop.permute.xlu0 %1509  ;;  %v703_v39 = vld [vmem:[%s12820_s26 + $0x670] sm:$0xff] }
 0x20e   : > { %v2092_v28 = vmul.f32 %v1515_v53, %v412_v23  ;;  %v2091_v40 = vmul.f32 %v1510_v36, %v411_v35  ;;  %v10572_v23 = vor.u32 %v12218_v18, %v10571_v51  ;;  %v11776_v53 = vor.u32 %v12511_v21, %v11773_v6  ;;  %v374_v36 = vld [vmem:[%s12863_s28 + $0x3a8] sm:$0xff]  ;;  %v12196_v18 = vld [vmem:[%s12805_s18 + $0x784] sm:$0xf]  ;;  %v10513_v6 = vld [vmem:[%s12805_s18 + $0x7bc] sm:$0xf0] }
 0x20f   : > { %v13638_v4 = vpop.f32.mrf.mxu3  ;;  %v6439_v32 = vpop.f32.mrf.mxu2  ;;  %v10516_v2 = vor.u32 %v12196_v18, %v10513_v6  ;;  %v10631_v18 = vld [vmem:[%s12805_s18 + $0x870] sm:$0xf] }
 0x210   : > { %17278 = vst [vmem:[#allocation28_spill] sm:$0xff] %v13638_v4  ;;  %v2254_v56 = vpack.c.bf16 %v2092_v28, %v2091_v40  ;;  %v13641_v44 = vadd.f32 %v6439_v32, %v6231_v27  ;;  %v373_v28 = vld [vmem:[%s12863_s28 + $0x3a0] sm:$0xff]  ;;  %v426_v27 = vld [vmem:[%s12863_s28 + $0x548] sm:$0xff] }
 0x211   : > { %v6232_v15 = vpop.f32.mrf.mxu1  ;;  %v13645_v49 = vpop.f32.mrf.mxu0  ;;  %v425_v40 = vld [vmem:[%s12863_s28 + $0x540] sm:$0xff] }
 0x212   : > { %17279 = vst [vmem:[#allocation29_spill] sm:$0xff] %v13641_v44  ;;  %v6233_v35 = vadd.f32 %v6232_v15, %v13581_v52  ;;  %7860 = vmatpush.bf16.msra.mxu1 %v2254_v56  ;;  %v13656_v52 = vmul.f32 %v13586_v22, %v374_v36  ;;  %v12204_v15 = vld [vmem:[%s12805_s18 + $0x7c0] sm:$0xf0] }
 0x213   : > { %1774 = vperm.xlu2 %12643, %v704_v1   ;;  %1769 = vperm.xlu1 %12642, %v703_v39   ;;  %v10519_v1 = vld [vmem:[%s12805_s18 + $0x788] sm:$0xf]  ;;  %v733_v22 = vld [vmem:[%s12820_s26 + $0x760] sm:$0xff] }
 0x214   : > { %1674 = vperm.xlu0 %12641, %v684_v34   ;;  %6070 = vmatmul.bf16.gmra.mxu0 %v10572_v23  ;;  %v2105_v34 = vmul.f32 %v13566_v63, %v425_v40  ;;  %v10520_v12 = vor.u32 %v12204_v15, %v10519_v1  ;;  %v12233_v15 = vld [vmem:[%s12805_s18 + $0x8a8] sm:$0xf0] }
 0x215   : > { %v13652_v32 = vpop.permute.xlu2 %1409  ;;  %v1320_v51 = vpop.permute.xlu1 %1319  ;;  %6379 = vmatmul.bf16.gmra.mxu3 %v11776_v53  ;;  %v734_v23 = vld [vmem:[%s12820_s26 + $0x768] sm:$0xff] }
 0x216   : > { %v13658_v56 = vmul.f32 %v1320_v51, %v373_v28  ;;  %v1585_v21 = vpop.permute.xlu0 %1584  ;;  %v720_v51 = vld [vmem:[%s12820_s26 + $0x6f8] sm:$0xff] }
 0x217   : > { %v2106_v39 = vmul.f32 %v1585_v21, %v426_v27  ;;  %v13666_v53 = vpop.f32.mrf.mxu3  ;;  %v6441_v44 = vpop.f32.mrf.mxu2  ;;  %v394_v27 = vld [vmem:[%s12863_s28 + $0x448] sm:$0xff] }
 0x218   : > { %17280 = vst [vmem:[#allocation30_spill] sm:$0xff] %v13666_v53  ;;  %v13669_v10 = vadd.f32 %v6441_v44, %v6233_v35  ;;  %v393_v44 = vld [vmem:[%s12863_s28 + $0x440] sm:$0xff]  ;;  %v680_v53 = vld [vmem:[%s12820_s26 + $0x5b8] sm:$0xff] }
 0x219   : > { %v2261_v36 = vpack.c.bf16 %v2106_v39, %v2105_v34  ;;  %v6235_v28 = vpop.f32.mrf.mxu1  ;;  %v13673_v63 = vpop.f32.mrf.mxu0  ;;  %v11833_v34 = vld [vmem:[%s12805_s18 + $0x120c] sm:$0xf0] }
 0x21a   : > { %17281 = vst [vmem:[#allocation31_spill] sm:$0xff] %v13669_v10  ;;  %v6236_v40 = vadd.f32 %v6235_v28, %v13599_v0  ;;  %v12526_v0 = vld [vmem:[%s12805_s18 + $0x11d4] sm:$0xf] }
 0x21b   : > { %8070 = vmatpush.bf16.msra.mxu2 %v2261_v36  ;;  %1919 = vperm.xlu2 %12643, %v733_v22   ;;  %v682_v36 = vld [vmem:[%s12820_s26 + $0x5c8] sm:$0xff] }
 0x21c   : > { %1854 = vperm.xlu1 %12642, %v720_v51   ;;  %1849 = vperm.xlu0 %12641, %v719_v58  }
 0x21d   : > { %v13678_v35 = vpop.permute.xlu2 %1494  ;;  %v1425_v21 = vpop.permute.xlu1 %1424  ;;  %6274 = vmatmul.bf16.gmra.mxu1 %v10516_v2  ;;  %6483 = vmatmul.bf16.gmra.mxu2 %v10520_v12  ;;  %v681_v12 = vld [vmem:[%s12820_s26 + $0x5c0] sm:$0xff] }
 0x21e   : > { %v2074_v6 = vmul.f32 %v1425_v21, %v394_v27  ;;  %v1420_v1 = vpop.permute.xlu0 %1419  ;;  %v10632_v27 = vor.u32 %v12233_v15, %v10631_v18  ;;  %v11836_v21 = vor.u32 %v12526_v0, %v11833_v34  ;;  %v12211_v15 = vld [vmem:[%s12805_s18 + $0x7fc] sm:$0xf] }
 0x21f   : > { %v2073_v39 = vmul.f32 %v1420_v1, %v393_v44  ;;  %v13684_v22 = vpop.f32.mrf.mxu3  ;;  %v6444_v58 = vpop.f32.mrf.mxu2  ;;  %v424_v1 = vld [vmem:[%s12863_s28 + $0x538] sm:$0xff] }
 0x220   : > { %17282 = vst [vmem:[#allocation32_spill] sm:$0xff] %v13684_v22  ;;  %v13687_v51 = vadd.f32 %v6444_v58, %v6236_v40  ;;  %v410_v40 = vld [vmem:[%s12863_s28 + $0x4c8] sm:$0xff]  ;;  %v699_v22 = vld [vmem:[%s12820_s26 + $0x650] sm:$0xff] }
 0x221   : > { %v2245_v28 = vpack.c.bf16 %v2074_v6, %v2073_v39  ;;  %v6237_v2 = vpop.f32.mrf.mxu1  ;;  %v13691_v10 = vpop.f32.mrf.mxu0  ;;  %v423_v6 = vld [vmem:[%s12863_s28 + $0x530] sm:$0xff]  ;;  %v409_v39 = vld [vmem:[%s12863_s28 + $0x4c0] sm:$0xff] }
 0x222   : > { %17283 = vst [vmem:[#allocation33_spill] sm:$0xff] %v13687_v51  ;;  %v6238_v44 = vadd.f32 %v6237_v2, %v13627_v30  ;;  %v2104_v30 = vmul.f32 %v13632_v7, %v424_v1  ;;  %v12219_v2 = vld [vmem:[%s12805_s18 + $0x838] sm:$0xf0]  ;;  %v702_v7 = vld [vmem:[%s12820_s26 + $0x668] sm:$0xff]  ;;  %v701_v1 = vld [vmem:[%s12820_s26 + $0x660] sm:$0xff] }
 0x223   : > { %7652 = vmatpush.bf16.msra.mxu0 %v2245_v28  ;;  %1664 = vperm.xlu2 %12643, %v682_v36   ;;  %v10573_v36 = vld [vmem:[%s12805_s18 + $0x834] sm:$0xf0]  ;;  %v10579_v28 = vld [vmem:[%s12805_s18 + $0x800] sm:$0xf] }
 0x224   : > { %1659 = vperm.xlu1 %12642, %v681_v12   ;;  %1924 = vperm.xlu0 %12641, %v734_v23   ;;  %v2089_v12 = vmul.f32 %v13606_v5, %v409_v39 }
 0x225   : > { %v13698_v58 = vpop.permute.xlu2 %1299  ;;  %v1570_v18 = vpop.permute.xlu1 %1569  ;;  %6075 = vmatmul.bf16.gmra.mxu0 %v10632_v27  ;;  %6384 = vmatmul.bf16.gmra.mxu3 %v11836_v21 }
 0x226   : > { %v2103_v0 = vmul.f32 %v1570_v18, %v423_v6  ;;  %v1505_v34 = vpop.permute.xlu0 %1504  ;;  %v10576_v6 = vor.u32 %v12211_v15, %v10573_v36  ;;  %v10580_v18 = vor.u32 %v12219_v2, %v10579_v28  ;;  %v12248_v15 = vld [vmem:[%s12805_s18 + $0x920] sm:$0xf0]  ;;  %v731_v36 = vld [vmem:[%s12820_s26 + $0x750] sm:$0xff]  ;;  %v718_v28 = vld [vmem:[%s12820_s26 + $0x6e8] sm:$0xff] }
 0x227   : > { %v2090_v23 = vmul.f32 %v1505_v34, %v410_v40  ;;  %v13706_v60 = vpop.f32.mrf.mxu3  ;;  %v6446_v47 = vpop.f32.mrf.mxu2 }
 0x228   : > { %v2260_v51 = vpack.c.bf16 %v2104_v30, %v2103_v0  ;;  %v13709_v21 = vadd.f32 %v6446_v47, %v6238_v44  ;;  %v10691_v44 = vld [vmem:[%s12805_s18 + $0x8e8] sm:$0xf]  ;;  %v732_v30 = vld [vmem:[%s12820_s26 + $0x758] sm:$0xff] }
 0x229   : > { %v2253_v27 = vpack.c.bf16 %v2090_v23, %v2089_v12  ;;  %v6240_v9 = vpop.f32.mrf.mxu1  ;;  %v13713_v16 = vpop.f32.mrf.mxu0  ;;  %v10692_v2 = vor.u32 %v12248_v15, %v10691_v44 }
 0x22a   : > { %17284 = vst [vmem:[#allocation34_spill] sm:$0xff] %v13709_v21  ;;  %v6241_v5 = vadd.f32 %v6240_v9, %v13645_v49  ;;  %8071 = vmatpush.bf16.msra.mxu2 %v2260_v51  ;;  %v12541_v9 = vld [vmem:[%s12805_s18 + $0x124c] sm:$0xf]  ;;  %v11893_v49 = vld [vmem:[%s12805_s18 + $0x1284] sm:$0xf0] }
 0x22b   : > { %7861 = vmatpush.bf16.msra.mxu1 %v2253_v27  ;;  %1839 = vperm.xlu2 %12643, %v717_v54   ;;  %v11896_v12 = vor.u32 %v12541_v9, %v11893_v49  ;;  %v12226_v9 = vld [vmem:[%s12805_s18 + $0x874] sm:$0xf]  ;;  %v10633_v49 = vld [vmem:[%s12805_s18 + $0x8ac] sm:$0xf0] }
 0x22c   : > { %1764 = vperm.xlu1 %12642, %v702_v7   ;;  %1759 = vperm.xlu0 %12641, %v701_v1   ;;  %v391_v7 = vld [vmem:[%s12863_s28 + $0x430] sm:$0xff]  ;;  %v408_v1 = vld [vmem:[%s12863_s28 + $0x4b8] sm:$0xff]  ;;  %v10636_v4 = vor.u32 %v12226_v9, %v10633_v49  ;;  %v10751_v9 = vld [vmem:[%s12805_s18 + $0x960] sm:$0xf] }
 0x22d   : > { %v13716_v47 = vpop.permute.xlu2 %1404  ;;  %6279 = vmatmul.bf16.gmra.mxu1 %v10576_v6  ;;  %6488 = vmatmul.bf16.gmra.mxu2 %v10580_v18  ;;  %v13719_v39 = vpop.permute.xlu1 %1314  ;;  %v407_v6 = vld [vmem:[%s12863_s28 + $0x4b0] sm:$0xff]  ;;  %v392_v18 = vld [vmem:[%s12863_s28 + $0x438] sm:$0xff] }
 0x22e   : > { %v13721_v40 = vpop.permute.xlu0 %1309 }
 0x22f   : > { %v13726_v51 = vpop.f32.mrf.mxu3  ;;  %v6449_v54 = vpop.f32.mrf.mxu2 }
 0x230   : > { %v13729_v0 = vadd.f32 %v6449_v54, %v6241_v5  ;;  %v2088_v54 = vmul.f32 %v13678_v35, %v408_v1  ;;  %v679_v35 = vld [vmem:[%s12820_s26 + $0x5b0] sm:$0xff] }
 0x231   : > { %v6242_v34 = vpop.f32.mrf.mxu1  ;;  %v13733_v23 = vpop.f32.mrf.mxu0 }
 0x232   : > { %17285 = vst [vmem:[#allocation35_spill] sm:$0xff] %v13729_v0  ;;  %v6243_v27 = vadd.f32 %v6242_v34, %v13673_v63  ;;  %v2071_v63 = vmul.f32 %v13652_v32, %v391_v7 }
 0x233   : > { %1914 = vperm.xlu2 %12643, %v732_v30  }
 0x234   : > { %1909 = vperm.xlu1 %12642, %v731_v36   ;;  %1844 = vperm.xlu0 %12641, %v718_v28   ;;  %v10639_v36 = vld [vmem:[%s12805_s18 + $0x878] sm:$0xf]  ;;  %v12234_v28 = vld [vmem:[%s12805_s18 + $0x8b0] sm:$0xf0] }
 0x235   : > { %v13740_v5 = vpop.permute.xlu2 %1549  ;;  %6080 = vmatmul.bf16.gmra.mxu0 %v10692_v2  ;;  %6389 = vmatmul.bf16.gmra.mxu3 %v11896_v12  ;;  %v1490_v44 = vpop.permute.xlu1 %1489  ;;  %v10640_v1 = vor.u32 %v12234_v28, %v10639_v36  ;;  %v716_v28 = vld [vmem:[%s12820_s26 + $0x6d8] sm:$0xff] }
 0x236   : > { %v1415_v15 = vpop.permute.xlu0 %1414  ;;  %v2087_v30 = vmul.f32 %v1490_v44, %v407_v6 }
 0x237   : > { %v2072_v34 = vmul.f32 %v1415_v15, %v392_v18  ;;  %v13748_v0 = vpop.f32.mrf.mxu3  ;;  %v6451_v21 = vpop.f32.mrf.mxu2 }
 0x238   : > { %v2252_v2 = vpack.c.bf16 %v2088_v54, %v2087_v30  ;;  %v13750_v29 = vadd.f32 %v6451_v21, %v6243_v27  ;;  %v422_v21 = vld [vmem:[%s12863_s28 + $0x528] sm:$0xff]  ;;  %v421_v27 = vld [vmem:[%s12863_s28 + $0x520] sm:$0xff]  ;;  %v11359_v54 = vld [vmem:[%s12805_s18 + $0xe18] sm:$0xf] }
 0x239   : > { %v2244_v12 = vpack.c.bf16 %v2072_v34, %v2071_v63  ;;  %v13754_v32 = vpop.f32.mrf.mxu0  ;;  %v6245_v7 = vpop.f32.mrf.mxu1 }
 0x23a   : > { %17286 = vst [vmem:[#allocation36_spill] sm:$0xff] %v13750_v29  ;;  %v6246_v6 = vadd.f32 %v6245_v7, %v13691_v10  ;;  %7862 = vmatpush.bf16.msra.mxu1 %v2252_v2  ;;  %v12263_v10 = vld [vmem:[%s12805_s18 + $0x998] sm:$0xf0]  ;;  %v479_v29 = vld [vmem:[%s12863_s28 + $0x6f0] sm:$0xff] }
 0x23b   : > { %7653 = vmatpush.bf16.msra.mxu0 %v2244_v12  ;;  %1749 = vperm.xlu2 %12643, %v699_v22   ;;  %v12414_v22 = vld [vmem:[%s12805_s18 + $0xe50] sm:$0xf0]  ;;  %v10752_v2 = vor.u32 %v12263_v10, %v10751_v9  ;;  %v700_v7 = vld [vmem:[%s12820_s26 + $0x658] sm:$0xff]  ;;  %v12241_v10 = vld [vmem:[%s12805_s18 + $0x8ec] sm:$0xf] }
 0x23c   : > { %1654 = vperm.xlu1 %12642, %v680_v53   ;;  %1649 = vperm.xlu0 %12641, %v679_v35   ;;  %v11360_v35 = vor.u32 %v12414_v22, %v11359_v54  ;;  %v17288_v54 = vpack.c.bf16 %v13427_v37, %v13429_v43  ;;  %v10699_v22 = vld [vmem:[%s12805_s18 + $0x8f0] sm:$0xf]  ;;  %v17290_v43 = vpack.c.bf16 %v13451_v38, %v13453_v14  ;;  %v10811_v38 = vld [vmem:[%s12805_s18 + $0x9d8] sm:$0xf]  ;;  %v12278_v14 = vld [vmem:[%s12805_s18 + $0xa10] sm:$0xf0] }
 0x23d   : > { %v13760_v18 = vpop.permute.xlu2 %1394  ;;  %6284 = vmatmul.bf16.gmra.mxu1 %v10636_v4  ;;  %v1565_v44 = vpop.permute.xlu1 %1564  ;;  %6493 = vmatmul.bf16.gmra.mxu2 %v10640_v1  ;;  %v715_v4 = vld [vmem:[%s12820_s26 + $0x6d0] sm:$0xff] }
 0x23e   : > { %v1560_v15 = vpop.permute.xlu0 %1559  ;;  %v2102_v49 = vmul.f32 %v1565_v44, %v422_v21 }
 0x23f   : > { %v2101_v63 = vmul.f32 %v1560_v15, %v421_v27  ;;  %v13766_v53 = vpop.f32.mrf.mxu3  ;;  %v390_v27 = vld [vmem:[%s12863_s28 + $0x428] sm:$0xff] }
 0x240   : > { %v6454_v30 = vpop.f32.mrf.mxu2 }
 0x241   : > { %v2259_v34 = vpack.c.bf16 %v2102_v49, %v2101_v63  ;;  %v13768_v36 = vadd.f32 %v6454_v30, %v6246_v6  ;;  %v6247_v12 = vpop.f32.mrf.mxu1  ;;  %v13773_v1 = vpop.f32.mrf.mxu0  ;;  %v389_v6 = vld [vmem:[%s12863_s28 + $0x420] sm:$0xff]  ;;  %v2070_v49 = vmul.f32 %v13716_v47, %v390_v27  ;;  %v12249_v30 = vld [vmem:[%s12805_s18 + $0x928] sm:$0xf0] }
 0x242   : > { %v6248_v21 = vadd.f32 %v6247_v12, %v13713_v16  ;;  %v10693_v16 = vld [vmem:[%s12805_s18 + $0x924] sm:$0xf0]  ;;  %v677_v12 = vld [vmem:[%s12820_s26 + $0x5a0] sm:$0xff]  ;;  %v10700_v27 = vor.u32 %v12249_v30, %v10699_v22  ;;  %v12429_v22 = vld [vmem:[%s12805_s18 + $0xec8] sm:$0xf0] }
 0x243   : > { %17287 = vst [vmem:[#allocation37_spill] sm:$0xff] %v13768_v36  ;;  %8072 = vmatpush.bf16.msra.mxu2 %v2259_v34  ;;  %1834 = vperm.xlu2 %12643, %v716_v28   ;;  %v729_v47 = vld [vmem:[%s12820_s26 + $0x740] sm:$0xff] }
 0x244   : > { %1829 = vperm.xlu1 %12642, %v715_v4   ;;  %1754 = vperm.xlu0 %12641, %v700_v7   ;;  %v730_v7 = vld [vmem:[%s12820_s26 + $0x748] sm:$0xff] }
 0x245   : > { %v13778_v44 = vpop.permute.xlu2 %1539  ;;  %6085 = vmatmul.bf16.gmra.mxu0 %v10752_v2  ;;  %v1400_v15 = vpop.permute.xlu1 %1399  ;;  %6553 = vmatmul.bf16.vlgmr.msra.gmra.mxu3 %v11360_v35  ;;  %v10696_v35 = vor.u32 %v12241_v10, %v10693_v16 }
 0x246   : > { %v13780_v9 = vpop.permute.xlu0 %1304  ;;  %v2069_v63 = vmul.f32 %v1400_v15, %v389_v6  ;;  %7440 = vmatpush.bf16.msra.mxu3 %v17288_v54  ;;  %v405_v15 = vld [vmem:[%s12863_s28 + $0x4a0] sm:$0xff]  ;;  %v11419_v54 = vld [vmem:[%s12805_s18 + $0xe90] sm:$0xf] }
 0x248   : > { %v13790_v34 = vpop.f32.mrf.mxu3  ;;  %v6456_v28 = vpop.f32.mrf.mxu2  ;;  %v2243_v4 = vpack.c.bf16 %v2070_v49, %v2069_v63  ;;  %v17291_v63 = vpack.c.bf16 %v13479_v61, %v13481_v59  ;;  %v11420_v61 = vor.u32 %v12429_v22, %v11419_v54 }
 0x249   : > { %v13792_v2 = vadd.f32 %v6456_v28, %v6248_v21  ;;  %v6250_v36 = vpop.f32.mrf.mxu1  ;;  %v13797_v37 = vpop.f32.mrf.mxu0  ;;  %v406_v21 = vld [vmem:[%s12863_s28 + $0x4a8] sm:$0xff] }
 0x24a   : > { %7441 = vmatpush.bf16.msra.mxu3 %v17290_v43  ;;  %v6251_v6 = vadd.f32 %v6250_v36, %v13733_v23  ;;  %7654 = vmatpush.bf16.msra.mxu0 %v2243_v4  ;;  %v678_v43 = vld [vmem:[%s12820_s26 + $0x5a8] sm:$0xff] }
 0x24b   : > { %17289 = vst [vmem:[#allocation38_spill] sm:$0xff] %v13792_v2  ;;  %1639 = vperm.xlu2 %12643, %v677_v12  }
 0x24c   : > { %1904 = vperm.xlu1 %12642, %v730_v7   ;;  %1899 = vperm.xlu0 %12641, %v729_v47   ;;  %v698_v7 = vld [vmem:[%s12820_s26 + $0x648] sm:$0xff]  ;;  %v10812_v47 = vor.u32 %v12278_v14, %v10811_v38  ;;  %v420_v38 = vld [vmem:[%s12863_s28 + $0x518] sm:$0xff] }
 0x24d   : > { %v13805_v10 = vpop.permute.xlu2 %1384  ;;  %6289 = vmatmul.bf16.gmra.mxu1 %v10696_v35  ;;  %v1485_v16 = vpop.permute.xlu1 %1484  ;;  %6498 = vmatmul.bf16.gmra.mxu2 %v10700_v27  ;;  %v697_v35 = vld [vmem:[%s12820_s26 + $0x640] sm:$0xff]  ;;  %v372_v14 = vld [vmem:[%s12863_s28 + $0x398] sm:$0xff] }
 0x24e   : > { %v1480_v49 = vpop.permute.xlu0 %1479  ;;  %v2086_v23 = vmul.f32 %v1485_v16, %v406_v21  ;;  %7442 = vmatpush.bf16.msra.mxu3 %v17291_v63  ;;  %v419_v21 = vld [vmem:[%s12863_s28 + $0x510] sm:$0xff]  ;;  %v388_v16 = vld [vmem:[%s12863_s28 + $0x418] sm:$0xff]  ;;  %v12256_v63 = vld [vmem:[%s12805_s18 + $0x964] sm:$0xf] }
 0x24f   : > { %v2085_v36 = vmul.f32 %v1480_v49, %v405_v15  ;;  %v17293_v15 = vpack.c.bf16 %v13543_v17, %v13545_v20  ;;  %v387_v49 = vld [vmem:[%s12863_s28 + $0x410] sm:$0xff]  ;;  %v2068_v54 = vmul.f32 %v13760_v18, %v388_v16 }
 0x250   : > { %v13814_v30 = vpop.f32.mrf.mxu3  ;;  %v6459_v28 = vpop.f32.mrf.mxu2 }
 0x251   : > { %v2251_v4 = vpack.c.bf16 %v2086_v23, %v2085_v36  ;;  %v13816_v12 = vadd.f32 %v6459_v28, %v6251_v6  ;;  %v6252_v27 = vpop.f32.mrf.mxu1  ;;  %v13821_v59 = vpop.f32.mrf.mxu0  ;;  %v371_v36 = vld [vmem:[%s12863_s28 + $0x390] sm:$0xff] }
 0x252   : > { %7443 = vmatpush.bf16.msra.mxu3 %v17293_v15  ;;  %v6253_v6 = vadd.f32 %v6252_v27, %v13754_v32  ;;  %v2099_v32 = vmul.f32 %v13740_v5, %v419_v21  ;;  %v2052_v27 = vmul.f32 %v13719_v39, %v372_v14  ;;  %v2051_v5 = vmul.f32 %v13721_v40, %v371_v36  ;;  %v404_v36 = vld [vmem:[%s12863_s28 + $0x498] sm:$0xff] }
 0x253   : > { %17292 = vst [vmem:[#allocation39_spill] sm:$0xff] %v13816_v12  ;;  %7863 = vmatpush.bf16.msra.mxu1 %v2251_v4  ;;  %1744 = vperm.xlu2 %12643, %v698_v7   ;;  %v17294_v4 = vpack.c.bf16 %v13616_v42, %v13614_v13  ;;  %v10753_v7 = vld [vmem:[%s12805_s18 + $0x99c] sm:$0xf0]  ;;  %v727_v13 = vld [vmem:[%s12820_s26 + $0x730] sm:$0xff]  ;;  %v370_v42 = vld [vmem:[%s12863_s28 + $0x388] sm:$0xff]  ;;  %v17296_v14 = vpack.c.bf16 %v13656_v52, %v13658_v56 }
 0x254   : > { %1739 = vperm.xlu1 %12642, %v697_v35   ;;  %1644 = vperm.xlu0 %12641, %v678_v43   ;;  %v10759_v35 = vld [vmem:[%s12805_s18 + $0x968] sm:$0xf] }
 0x255   : > { %v13832_v23 = vpop.permute.xlu2 %1689  ;;  %6090 = vmatmul.bf16.gmra.mxu0 %v10812_v47  ;;  %v1390_v17 = vpop.permute.xlu1 %1389  ;;  %6558 = vmatmul.bf16.gmra.mxu3 %v11420_v61  ;;  %v12264_v47 = vld [vmem:[%s12805_s18 + $0x9a0] sm:$0xf0] }
 0x256   : > { %v1555_v20 = vpop.permute.xlu0 %1554  ;;  %v2067_v22 = vmul.f32 %v1390_v17, %v387_v49  ;;  %7444 = vmatpush.bf16.msra.mxu3 %v17294_v4  ;;  %v714_v49 = vld [vmem:[%s12820_s26 + $0x6c8] sm:$0xff]  ;;  %v10756_v17 = vor.u32 %v12256_v63, %v10753_v7  ;;  %v2050_v63 = vmul.f32 %v13780_v9, %v370_v42 }
 0x257   : > { %v2100_v28 = vmul.f32 %v1555_v20, %v420_v38  ;;  %v713_v38 = vld [vmem:[%s12820_s26 + $0x6c0] sm:$0xff]  ;;  %v10760_v20 = vor.u32 %v12264_v47, %v10759_v35  ;;  %v12293_v35 = vld [vmem:[%s12805_s18 + $0xa88] sm:$0xf0]  ;;  %v11479_v9 = vld [vmem:[%s12805_s18 + $0xf08] sm:$0xf] }
 0x258   : > { %v13845_v43 = vpop.f32.mrf.mxu3  ;;  %v6461_v61 = vpop.f32.mrf.mxu2  ;;  %v2242_v18 = vpack.c.bf16 %v2068_v54, %v2067_v22  ;;  %v2234_v54 = vpack.c.bf16 %v2052_v27, %v2051_v5  ;;  %v12444_v47 = vld [vmem:[%s12805_s18 + $0xf40] sm:$0xf0] }
 0x259   : > { %v2258_v21 = vpack.c.bf16 %v2100_v28, %v2099_v32  ;;  %v13848_v15 = vadd.f32 %v6461_v61, %v6253_v6  ;;  %v6255_v16 = vpop.f32.mrf.mxu1  ;;  %v13854_v39 = vpop.f32.mrf.mxu0  ;;  %v369_v6 = vld [vmem:[%s12863_s28 + $0x380] sm:$0xff]  ;;  %v403_v32 = vld [vmem:[%s12863_s28 + $0x490] sm:$0xff] }
 0x25a   : > { %7445 = vmatpush.bf16.msra.mxu3 %v17296_v14  ;;  %v6256_v40 = vadd.f32 %v6255_v16, %v13773_v1  ;;  %7655 = vmatpush.bf16.msra.mxu0 %v2242_v18  ;;  %v10871_v1 = vld [vmem:[%s12805_s18 + $0xa50] sm:$0xf]  ;;  %v2049_v28 = vmul.f32 %v13698_v58, %v369_v6  ;;  %v728_v16 = vld [vmem:[%s12820_s26 + $0x738] sm:$0xff]  ;;  %v386_v6 = vld [vmem:[%s12863_s28 + $0x408] sm:$0xff] }
 0x25b   : > { %17295 = vst [vmem:[#allocation40_spill] sm:$0xff] %v13848_v15  ;;  %8073 = vmatpush.bf16.msra.mxu2 %v2258_v21  ;;  %1889 = vperm.xlu2 %12643, %v727_v13   ;;  %v676_v13 = vld [vmem:[%s12820_s26 + $0x598] sm:$0xff]  ;;  %v675_v58 = vld [vmem:[%s12820_s26 + $0x590] sm:$0xff] }
 0x25c   : > { %1824 = vperm.xlu1 %12642, %v714_v49   ;;  %1819 = vperm.xlu0 %12641, %v713_v38   ;;  %v2233_v5 = vpack.c.bf16 %v2050_v63, %v2049_v28  ;;  %v10872_v49 = vor.u32 %v12293_v35, %v10871_v1  ;;  %v11480_v38 = vor.u32 %v12444_v47, %v11479_v9  ;;  %v12279_v35 = vld [vmem:[%s12805_s18 + $0xa18] sm:$0xf0]  ;;  %v463_v15 = vld [vmem:[%s12863_s28 + $0x670] sm:$0xff] }
 0x25d   : > { %v13864_v22 = vpop.permute.xlu2 %1684  ;;  %v1475_v52 = vpop.permute.xlu1 %1474  ;;  %6294 = vmatmul.bf16.gmra.mxu1 %v10756_v17  ;;  %6503 = vmatmul.bf16.gmra.mxu2 %v10760_v20  ;;  %v417_v20 = vld [vmem:[%s12863_s28 + $0x500] sm:$0xff] }
 0x25e   : > { %v1470_v56 = vpop.permute.xlu0 %1469  ;;  %v2084_v4 = vmul.f32 %v1475_v52, %v404_v36  ;;  %7446 = vmatpush.bf16.msra.mxu3 %v2234_v54  ;;  %v418_v36 = vld [vmem:[%s12863_s28 + $0x508] sm:$0xff]  ;;  %v12271_v52 = vld [vmem:[%s12805_s18 + $0x9dc] sm:$0xf] }
 0x25f   : > { %v2083_v7 = vmul.f32 %v1470_v56, %v403_v32  ;;  %v2066_v56 = vmul.f32 %v13805_v10, %v386_v6 }
 0x260   : > { %v13871_v27 = vpop.f32.mrf.mxu3  ;;  %v6464_v61 = vpop.f32.mrf.mxu2 }
 0x261   : > { %v2250_v18 = vpack.c.bf16 %v2084_v4, %v2083_v7  ;;  %v13873_v21 = vadd.f32 %v6464_v61, %v6256_v40  ;;  %v6257_v42 = vpop.f32.mrf.mxu1  ;;  %v13878_v17 = vpop.f32.mrf.mxu0  ;;  %v385_v40 = vld [vmem:[%s12863_s28 + $0x400] sm:$0xff]  ;;  %v10813_v4 = vld [vmem:[%s12805_s18 + $0xa14] sm:$0xf0] }
 0x262   : > { %7447 = vmatpush.bf16.msra.mxu3 %v2233_v5  ;;  %v6258_v14 = vadd.f32 %v6257_v42, %v13797_v37  ;;  %v2097_v37 = vmul.f32 %v13778_v44, %v417_v20  ;;  %v10819_v7 = vld [vmem:[%s12805_s18 + $0x9e0] sm:$0xf]  ;;  %v695_v44 = vld [vmem:[%s12820_s26 + $0x630] sm:$0xff]  ;;  %v402_v20 = vld [vmem:[%s12863_s28 + $0x488] sm:$0xff] }
 0x263   : > { %17297 = vst [vmem:[#allocation41_spill] sm:$0xff] %v13873_v21  ;;  %7864 = vmatpush.bf16.msra.mxu1 %v2250_v18  ;;  %1634 = vperm.xlu2 %12643, %v676_v13   ;;  %v711_v13 = vld [vmem:[%s12820_s26 + $0x6b0] sm:$0xff]  ;;  %v10820_v10 = vor.u32 %v12279_v35, %v10819_v7  ;;  %v726_v35 = vld [vmem:[%s12820_s26 + $0x728] sm:$0xff]  ;;  %v464_v21 = vld [vmem:[%s12863_s28 + $0x678] sm:$0xff] }
 0x264   : > { %1629 = vperm.xlu1 %12642, %v675_v58   ;;  %1894 = vperm.xlu0 %12641, %v728_v16   ;;  %v696_v58 = vld [vmem:[%s12820_s26 + $0x638] sm:$0xff]  ;;  %v10816_v16 = vor.u32 %v12271_v52, %v10813_v4  ;;  %v12308_v52 = vld [vmem:[%s12805_s18 + $0xb00] sm:$0xf0] }
 0x265   : > { %v13885_v32 = vpop.permute.xlu2 %1669  ;;  %v1380_v54 = vpop.permute.xlu1 %1379  ;;  %6095 = vmatmul.bf16.gmra.mxu0 %v10872_v49  ;;  %6563 = vmatmul.bf16.gmra.mxu3 %v11480_v38 }
 0x266   : > { %v1545_v63 = vpop.permute.xlu0 %1544  ;;  %v2065_v1 = vmul.f32 %v1380_v54, %v385_v40 }
 0x267   : > { %v2098_v28 = vmul.f32 %v1545_v63, %v418_v36 }
 0x268   : > { %v13893_v9 = vpop.f32.mrf.mxu3  ;;  %v6466_v47 = vpop.f32.mrf.mxu2  ;;  %v2241_v61 = vpack.c.bf16 %v2066_v56, %v2065_v1  ;;  %v12459_v56 = vld [vmem:[%s12805_s18 + $0xfb8] sm:$0xf0] }
 0x269   : > { %17298 = vst [vmem:[#allocation42_spill] sm:$0xff] %v13893_v9  ;;  %v2257_v5 = vpack.c.bf16 %v2098_v28, %v2097_v37  ;;  %v13895_v18 = vadd.f32 %v6466_v47, %v6258_v14  ;;  %v6260_v42 = vpop.f32.mrf.mxu1  ;;  %v13900_v49 = vpop.f32.mrf.mxu0  ;;  %v401_v14 = vld [vmem:[%s12863_s28 + $0x480] sm:$0xff]  ;;  %v490_v9 = vld [vmem:[%s12863_s28 + $0x748] sm:$0xff] }
 0x26a   : > { %v6261_v38 = vadd.f32 %v6260_v42, %v13821_v59  ;;  %7656 = vmatpush.bf16.msra.mxu0 %v2241_v61  ;;  %v10931_v59 = vld [vmem:[%s12805_s18 + $0xac8] sm:$0xf]  ;;  %v11539_v37 = vld [vmem:[%s12805_s18 + $0xf80] sm:$0xf] }
 0x26b   : > { %17299 = vst [vmem:[#allocation43_spill] sm:$0xff] %v13895_v18  ;;  %8074 = vmatpush.bf16.msra.mxu2 %v2257_v5  ;;  %1809 = vperm.xlu2 %12643, %v711_v13   ;;  %v725_v61 = vld [vmem:[%s12820_s26 + $0x720] sm:$0xff]  ;;  %v712_v5 = vld [vmem:[%s12820_s26 + $0x6b8] sm:$0xff]  ;;  %v10932_v13 = vor.u32 %v12308_v52, %v10931_v59  ;;  %v11540_v42 = vor.u32 %v12459_v56, %v11539_v37  ;;  %v12286_v59 = vld [vmem:[%s12805_s18 + $0xa54] sm:$0xf] }
 0x26c   : > { %1734 = vperm.xlu1 %12642, %v696_v58   ;;  %1729 = vperm.xlu0 %12641, %v695_v44   ;;  %v447_v44 = vld [vmem:[%s12863_s28 + $0x5f0] sm:$0xff]  ;;  %v10879_v56 = vld [vmem:[%s12805_s18 + $0xa58] sm:$0xf] }
 0x26d   : > { %v13905_v6 = vpop.permute.xlu2 %1774  ;;  %v1465_v40 = vpop.permute.xlu1 %1464  ;;  %6299 = vmatmul.bf16.gmra.mxu1 %v10816_v16  ;;  %6508 = vmatmul.bf16.gmra.mxu2 %v10820_v10  ;;  %v446_v10 = vld [vmem:[%s12863_s28 + $0x5e8] sm:$0xff]  ;;  %v10873_v37 = vld [vmem:[%s12805_s18 + $0xa8c] sm:$0xf0] }
 0x26e   : > { %v1460_v36 = vpop.permute.xlu0 %1459  ;;  %v2082_v54 = vmul.f32 %v1465_v40, %v402_v20  ;;  %v445_v20 = vld [vmem:[%s12863_s28 + $0x5e0] sm:$0xff] }
 0x26f   : > { %v2081_v63 = vmul.f32 %v1460_v36, %v401_v14 }
 0x270   : > { %v13911_v1 = vpop.f32.mrf.mxu3  ;;  %v6469_v28 = vpop.f32.mrf.mxu2 }
 0x271   : > { %17300 = vst [vmem:[#allocation44_spill] sm:$0xff] %v13911_v1  ;;  %v2249_v4 = vpack.c.bf16 %v2082_v54, %v2081_v63  ;;  %v13913_v7 = vadd.f32 %v6469_v28, %v6261_v38  ;;  %v6262_v47 = vpop.f32.mrf.mxu1  ;;  %v13918_v58 = vpop.f32.mrf.mxu0  ;;  %v448_v38 = vld [vmem:[%s12863_s28 + $0x5f8] sm:$0xff]  ;;  %v13932_v54 = vmul.f32 %v13864_v22, %v446_v10  ;;  %v12294_v28 = vld [vmem:[%s12805_s18 + $0xa90] sm:$0xf0] }
 0x272   : > { %v6263_v16 = vadd.f32 %v6262_v47, %v13854_v39  ;;  %v13929_v39 = vmul.f32 %v13832_v23, %v447_v44  ;;  %v10876_v44 = vor.u32 %v12286_v59, %v10873_v37  ;;  %v10880_v10 = vor.u32 %v12294_v28, %v10879_v56  ;;  %v10991_v59 = vld [vmem:[%s12805_s18 + $0xb40] sm:$0xf]  ;;  %v12323_v56 = vld [vmem:[%s12805_s18 + $0xb78] sm:$0xf0]  ;;  %v11599_v28 = vld [vmem:[%s12805_s18 + $0xff8] sm:$0xf] }
 0x273   : > { %17301 = vst [vmem:[#allocation45_spill] sm:$0xff] %v13913_v7  ;;  %7865 = vmatpush.bf16.msra.mxu1 %v2249_v4  ;;  %1884 = vperm.xlu2 %12643, %v726_v35   ;;  %v694_v23 = vld [vmem:[%s12820_s26 + $0x628] sm:$0xff]  ;;  %v443_v7 = vld [vmem:[%s12863_s28 + $0x5d0] sm:$0xff] }
 0x274   : > { %1879 = vperm.xlu1 %12642, %v725_v61   ;;  %1814 = vperm.xlu0 %12641, %v712_v5   ;;  %v693_v61 = vld [vmem:[%s12820_s26 + $0x620] sm:$0xff] }
 0x275   : > { %v13925_v14 = vpop.permute.xlu2 %1919  ;;  %v1680_v40 = vpop.permute.xlu1 %1679  ;;  %6100 = vmatmul.bf16.gmra.mxu0 %v10932_v13  ;;  %6568 = vmatmul.bf16.gmra.mxu3 %v11540_v42  ;;  %v674_v13 = vld [vmem:[%s12820_s26 + $0x588] sm:$0xff]  ;;  %v673_v42 = vld [vmem:[%s12820_s26 + $0x580] sm:$0xff] }
 0x276   : > { %v1695_v36 = vpop.permute.xlu0 %1694  ;;  %v13934_v63 = vmul.f32 %v1680_v40, %v445_v20  ;;  %v496_v40 = vld [vmem:[%s12863_s28 + $0x778] sm:$0xff] }
 0x277   : > { %v13936_v52 = vmul.f32 %v1695_v36, %v448_v38  ;;  %v495_v36 = vld [vmem:[%s12863_s28 + $0x770] sm:$0xff] }
 0x278   : > { %v13941_v4 = vpop.f32.mrf.mxu3  ;;  %v6471_v35 = vpop.f32.mrf.mxu2 }
 0x279   : > { %17302 = vst [vmem:[#allocation46_spill] sm:$0xff] %v13941_v4  ;;  %v13947_v22 = vadd.f32 %v6471_v35, %v6263_v16  ;;  %v6265_v5 = vpop.f32.mrf.mxu1  ;;  %v13952_v20 = vpop.f32.mrf.mxu0 }
 0x27a   : > { %v6266_v38 = vadd.f32 %v6265_v5, %v13878_v17 }
 0x27b   : > { %17303 = vst [vmem:[#allocation47_spill] sm:$0xff] %v13947_v22  ;;  %1719 = vperm.xlu2 %12643, %v693_v61   ;;  %v12474_v61 = vld [vmem:[%s12805_s18 + $0x1030] sm:$0xf0] }
 0x27c   : > { %1624 = vperm.xlu1 %12642, %v674_v13   ;;  %1619 = vperm.xlu0 %12641, %v673_v42  }
 0x27d   : > { %v13957_v16 = vpop.permute.xlu2 %1664  ;;  %v1935_v35 = vpop.permute.xlu1 %1934  ;;  %6304 = vmatmul.bf16.gmra.mxu1 %v10876_v44  ;;  %6513 = vmatmul.bf16.gmra.mxu2 %v10880_v10  ;;  %v710_v10 = vld [vmem:[%s12820_s26 + $0x6a8] sm:$0xff] }
 0x27e   : > { %v1930_v47 = vpop.permute.xlu0 %1929  ;;  %v13960_v37 = vmul.f32 %v1935_v35, %v496_v40  ;;  %v709_v35 = vld [vmem:[%s12820_s26 + $0x6a0] sm:$0xff] }
 0x27f   : > { %v13962_v17 = vmul.f32 %v1930_v47, %v495_v36  ;;  %v10992_v47 = vor.u32 %v12323_v56, %v10991_v59  ;;  %v11600_v36 = vor.u32 %v12474_v61, %v11599_v28  ;;  %v12301_v56 = vld [vmem:[%s12805_s18 + $0xacc] sm:$0xf]  ;;  %v13990_v28 = vmul.f32 %v13905_v6, %v464_v21 }
 0x280   : > { %v13967_v5 = vpop.f32.mrf.mxu3  ;;  %v6474_v13 = vpop.f32.mrf.mxu2 }
 0x281   : > { %17304 = vst [vmem:[#allocation48_spill] sm:$0xff] %v13967_v5  ;;  %v13971_v44 = vadd.f32 %v6474_v13, %v6266_v38  ;;  %v6267_v40 = vpop.f32.mrf.mxu1  ;;  %v13976_v22 = vpop.f32.mrf.mxu0  ;;  %v444_v38 = vld [vmem:[%s12863_s28 + $0x5d8] sm:$0xff] }
 0x282   : > { %v6268_v18 = vadd.f32 %v6267_v40, %v13900_v49  ;;  %v13987_v49 = vmul.f32 %v13885_v32, %v443_v7  ;;  %v10939_v40 = vld [vmem:[%s12805_s18 + $0xad0] sm:$0xf]  ;;  %v724_v7 = vld [vmem:[%s12820_s26 + $0x718] sm:$0xff] }
 0x283   : > { %17305 = vst [vmem:[#allocation49_spill] sm:$0xff] %v13971_v44  ;;  %1804 = vperm.xlu2 %12643, %v710_v10   ;;  %v480_v44 = vld [vmem:[%s12863_s28 + $0x6f8] sm:$0xff] }
 0x284   : > { %1799 = vperm.xlu1 %12642, %v709_v35   ;;  %1724 = vperm.xlu0 %12641, %v694_v23   ;;  %v10933_v23 = vld [vmem:[%s12805_s18 + $0xb04] sm:$0xf0]  ;;  %v12309_v35 = vld [vmem:[%s12805_s18 + $0xb08] sm:$0xf0] }
 0x285   : > { %v13983_v13 = vpop.permute.xlu2 %1839  ;;  %v1770_v42 = vpop.permute.xlu1 %1769  ;;  %6105 = vmatmul.bf16.gmra.mxu0 %v10992_v47  ;;  %6573 = vmatmul.bf16.gmra.mxu3 %v11600_v36 }
 0x286   : > { %v1675_v59 = vpop.permute.xlu0 %1674  ;;  %v13992_v61 = vmul.f32 %v1770_v42, %v463_v15  ;;  %v691_v15 = vld [vmem:[%s12820_s26 + $0x610] sm:$0xff] }
 0x287   : > { %v13994_v10 = vmul.f32 %v1675_v59, %v444_v38  ;;  %v723_v42 = vld [vmem:[%s12820_s26 + $0x710] sm:$0xff]  ;;  %v10936_v38 = vor.u32 %v12301_v56, %v10933_v23  ;;  %v10940_v59 = vor.u32 %v12309_v35, %v10939_v40  ;;  %v11051_v56 = vld [vmem:[%s12805_s18 + $0xbb8] sm:$0xf] }
 0x288   : > { %v13999_v47 = vpop.f32.mrf.mxu3  ;;  %v6476_v36 = vpop.f32.mrf.mxu2  ;;  %v11659_v35 = vld [vmem:[%s12805_s18 + $0x1070] sm:$0xf] }
 0x289   : > { %17306 = vst [vmem:[#allocation50_spill] sm:$0xff] %v13999_v47  ;;  %v14005_v21 = vadd.f32 %v6476_v36, %v6268_v18  ;;  %v6270_v6 = vpop.f32.mrf.mxu1  ;;  %v14010_v12 = vpop.f32.mrf.mxu0 }
 0x28a   : > { %v6271_v2 = vadd.f32 %v6270_v6, %v13918_v58  ;;  %v12338_v58 = vld [vmem:[%s12805_s18 + $0xbf0] sm:$0xf0] }
 0x28b   : > { %17307 = vst [vmem:[#allocation51_spill] sm:$0xff] %v14005_v21  ;;  %1709 = vperm.xlu2 %12643, %v691_v15   ;;  %v12489_v15 = vld [vmem:[%s12805_s18 + $0x10a8] sm:$0xf0] }
 0x28c   : > { %1874 = vperm.xlu1 %12642, %v724_v7   ;;  %1869 = vperm.xlu0 %12641, %v723_v42   ;;  %v11660_v21 = vor.u32 %v12489_v15, %v11659_v35  ;;  %v441_v42 = vld [vmem:[%s12863_s28 + $0x5c0] sm:$0xff] }
 0x28d   : > { %v14015_v18 = vpop.permute.xlu2 %1914  ;;  %6309 = vmatmul.bf16.gmra.mxu1 %v10936_v38  ;;  %6518 = vmatmul.bf16.gmra.mxu2 %v10940_v59  ;;  %v708_v59 = vld [vmem:[%s12820_s26 + $0x698] sm:$0xff]  ;;  %v10993_v15 = vld [vmem:[%s12805_s18 + $0xb7c] sm:$0xf0] }
 0x28e   : > { %v1855_v36 = vpop.permute.xlu1 %1854  ;;  %v1850_v32 = vpop.permute.xlu0 %1849 }
 0x28f   : > { %v14018_v23 = vmul.f32 %v1855_v36, %v480_v44  ;;  %v14020_v40 = vmul.f32 %v1850_v32, %v479_v29  ;;  %v707_v36 = vld [vmem:[%s12820_s26 + $0x690] sm:$0xff]  ;;  %v692_v29 = vld [vmem:[%s12820_s26 + $0x618] sm:$0xff]  ;;  %v11052_v32 = vor.u32 %v12338_v58, %v11051_v56  ;;  %v12316_v56 = vld [vmem:[%s12805_s18 + $0xb44] sm:$0xf] }
 0x290   : > { %v14025_v6 = vpop.f32.mrf.mxu3  ;;  %v6479_v7 = vpop.f32.mrf.mxu2  ;;  %v10996_v47 = vor.u32 %v12316_v56, %v10993_v15  ;;  %v11111_v56 = vld [vmem:[%s12805_s18 + $0xc30] sm:$0xf] }
 0x291   : > { %17308 = vst [vmem:[#allocation52_spill] sm:$0xff] %v14025_v6  ;;  %v14029_v38 = vadd.f32 %v6479_v7, %v6271_v2  ;;  %v6272_v44 = vpop.f32.mrf.mxu1  ;;  %v14034_v62 = vpop.f32.mrf.mxu0  ;;  %v493_v6 = vld [vmem:[%s12863_s28 + $0x760] sm:$0xff]  ;;  %v494_v2 = vld [vmem:[%s12863_s28 + $0x768] sm:$0xff] }
 0x292   : > { %v6273_v55 = vadd.f32 %v6272_v44, %v13952_v20  ;;  %v14045_v20 = vmul.f32 %v13957_v16, %v442_v31  ;;  %v12324_v44 = vld [vmem:[%s12805_s18 + $0xb80] sm:$0xf0] }
 0x293   : > { %17309 = vst [vmem:[#allocation53_spill] sm:$0xff] %v14029_v38  ;;  %1794 = vperm.xlu2 %12643, %v708_v59   ;;  %v10999_v59 = vld [vmem:[%s12805_s18 + $0xb48] sm:$0xf] }
 0x294   : > { %1789 = vperm.xlu1 %12642, %v707_v36   ;;  %1714 = vperm.xlu0 %12641, %v692_v29   ;;  %v14053_v36 = vmul.f32 %v13925_v14, %v493_v6  ;;  %v722_v14 = vld [vmem:[%s12820_s26 + $0x708] sm:$0xff]  ;;  %v721_v6 = vld [vmem:[%s12820_s26 + $0x700] sm:$0xff] }
 0x295   : > { %v14041_v7 = vpop.permute.xlu2 %1749  ;;  %6110 = vmatmul.bf16.gmra.mxu0 %v11052_v32  ;;  %6578 = vmatmul.bf16.gmra.mxu3 %v11660_v21 }
 0x296   : > { %v1660_v38 = vpop.permute.xlu1 %1659  ;;  %v1925_v35 = vpop.permute.xlu0 %1924  ;;  %17310 = vst [vmem:[#allocation54_spill] sm:$0xff] %v14053_v36 }
 0x297   : > { %v14047_v58 = vmul.f32 %v1660_v38, %v441_v42  ;;  %v14055_v29 = vmul.f32 %v1925_v35, %v494_v2  ;;  %v689_v42 = vld [vmem:[%s12820_s26 + $0x600] sm:$0xff]  ;;  %v11000_v2 = vor.u32 %v12324_v44, %v10999_v59  ;;  %v12353_v44 = vld [vmem:[%s12805_s18 + $0xc68] sm:$0xf0] }
 0x298   : > { %v14057_v32 = vpop.f32.mrf.mxu3  ;;  %v6481_v21 = vpop.f32.mrf.mxu2  ;;  %v11112_v5 = vor.u32 %v12353_v44, %v11111_v56  ;;  %v12331_v56 = vld [vmem:[%s12805_s18 + $0xbbc] sm:$0xf] }
 0x299   : > { %17311 = vst [vmem:[#allocation55_spill] sm:$0xff] %v14055_v29  ;;  %v14061_v16 = vadd.f32 %v6481_v21, %v6273_v55  ;;  %v14068_v35 = vpop.f32.mrf.mxu0  ;;  %v462_v55 = vld [vmem:[%s12863_s28 + $0x668] sm:$0xff]  ;;  %v461_v21 = vld [vmem:[%s12863_s28 + $0x660] sm:$0xff] }
 0x29a   : > { %17312 = vst [vmem:[#allocation56_spill] sm:$0xff] %v14057_v32  ;;  %v6275_v33 = vpop.f32.mrf.mxu1 }
 0x29b   : > { %17313 = vst [vmem:[#allocation57_spill] sm:$0xff] %v14061_v16  ;;  %v6276_v32 = vadd.f32 %v6275_v33, %v13976_v22  ;;  %1699 = vperm.xlu2 %12643, %v689_v42   ;;  %v11719_v33 = vld [vmem:[%s12805_s18 + $0x10e8] sm:$0xf]  ;;  %v12504_v22 = vld [vmem:[%s12805_s18 + $0x1120] sm:$0xf0] }
 0x29c   : > { %1864 = vperm.xlu1 %12642, %v722_v14   ;;  %1859 = vperm.xlu0 %12641, %v721_v6   ;;  %v11720_v57 = vor.u32 %v12504_v22, %v11719_v33  ;;  %v11053_v22 = vld [vmem:[%s12805_s18 + $0xbf4] sm:$0xf0] }
 0x29d   : > { %v14073_v38 = vpop.permute.xlu2 %1834  ;;  %6314 = vmatmul.bf16.gmra.mxu1 %v10996_v47  ;;  %6523 = vmatmul.bf16.gmra.mxu2 %v11000_v2  ;;  %v706_v47 = vld [vmem:[%s12820_s26 + $0x688] sm:$0xff] }
 0x29e   : > { %v1765_v31 = vpop.permute.xlu1 %1764  ;;  %v1760_v59 = vpop.permute.xlu0 %1759 }
 0x29f   : > { %v14076_v15 = vmul.f32 %v1765_v31, %v462_v55  ;;  %v14081_v42 = vmul.f32 %v1760_v59, %v461_v21  ;;  %v705_v55 = vld [vmem:[%s12820_s26 + $0x680] sm:$0xff]  ;;  %v492_v59 = vld [vmem:[%s12863_s28 + $0x758] sm:$0xff]  ;;  %v478_v31 = vld [vmem:[%s12863_s28 + $0x6e8] sm:$0xff] }
 0x2a0   : > { %v14083_v14 = vpop.f32.mrf.mxu3  ;;  %v6484_v6 = vpop.f32.mrf.mxu2  ;;  %v14103_v44 = vmul.f32 %v14015_v18, %v492_v59 }
 0x2a1   : > { %17314 = vst [vmem:[#allocation58_spill] sm:$0xff] %v14083_v14  ;;  %v14085_v16 = vadd.f32 %v6484_v6, %v6276_v32  ;;  %v491_v32 = vld [vmem:[%s12863_s28 + $0x750] sm:$0xff]  ;;  %v477_v6 = vld [vmem:[%s12863_s28 + $0x6e0] sm:$0xff] }
 0x2a2   : > { %v6277_v2 = vpop.f32.mrf.mxu1  ;;  %v14092_v4 = vpop.f32.mrf.mxu0  ;;  %17316 = vst [vmem:[#allocation60_spill] sm:$0xff] %v14103_v44 }
 0x2a3   : > { %17315 = vst [vmem:[#allocation59_spill] sm:$0xff] %v14085_v16  ;;  %v6278_v21 = vadd.f32 %v6277_v2, %v14010_v12  ;;  %1784 = vperm.xlu2 %12643, %v706_v47   ;;  %v11059_v47 = vld [vmem:[%s12805_s18 + $0xbc0] sm:$0xf]  ;;  %v12339_v2 = vld [vmem:[%s12805_s18 + $0xbf8] sm:$0xf0] }
 0x2a4   : > { %1779 = vperm.xlu1 %12642, %v705_v55   ;;  %1704 = vperm.xlu0 %12641, %v690_v41   ;;  %v14111_v41 = vmul.f32 %v13983_v13, %v477_v6  ;;  %v11056_v13 = vor.u32 %v12331_v56, %v11053_v22  ;;  %v11060_v6 = vor.u32 %v12339_v2, %v11059_v47  ;;  %v11779_v56 = vld [vmem:[%s12805_s18 + $0x1160] sm:$0xf]  ;;  %v12519_v22 = vld [vmem:[%s12805_s18 + $0x1198] sm:$0xf0] }
 0x2a5   : > { %v14099_v16 = vpop.permute.xlu2 %1639  ;;  %6115 = vmatmul.bf16.gmra.mxu0 %v11112_v5  ;;  %6583 = vmatmul.bf16.gmra.mxu3 %v11720_v57 }
 0x2a6   : > { %v1910_v14 = vpop.permute.xlu1 %1909  ;;  %v1845_v33 = vpop.permute.xlu0 %1844 }
 0x2a7   : > { %v14105_v12 = vmul.f32 %v1910_v14, %v491_v32  ;;  %v14113_v55 = vmul.f32 %v1845_v33, %v478_v31 }
 0x2a8   : > { %v14115_v5 = vpop.f32.mrf.mxu3  ;;  %v6486_v57 = vpop.f32.mrf.mxu2 }
 0x2a9   : > { %17317 = vst [vmem:[#allocation61_spill] sm:$0xff] %v14105_v12  ;;  %v14119_v14 = vadd.f32 %v6486_v57, %v6278_v21  ;;  %v11171_v21 = vld [vmem:[%s12805_s18 + $0xca8] sm:$0xf] }
 0x2aa   : > { %17318 = vst [vmem:[#allocation62_spill] sm:$0xff] %v14115_v5  ;;  %v6280_v32 = vpop.f32.mrf.mxu1  ;;  %v14123_v31 = vpop.f32.mrf.mxu0  ;;  %v440_v5 = vld [vmem:[%s12863_s28 + $0x5b8] sm:$0xff] }
 0x2ab   : > { %17319 = vst [vmem:[#allocation63_spill] sm:$0xff] %v14119_v14  ;;  %v6281_v33 = vadd.f32 %v6280_v32, %v14034_v62  ;;  %v12368_v14 = vld [vmem:[%s12805_s18 + $0xce0] sm:$0xf0] }
 0x2ad   : > { %6319 = vmatmul.bf16.gmra.mxu1 %v11056_v13  ;;  %6528 = vmatmul.bf16.gmra.mxu2 %v11060_v6  ;;  %v14129_v57 = vpop.permute.xlu2 %1744  ;;  %v11780_v6 = vor.u32 %v12519_v22, %v11779_v56  ;;  %v12354_v56 = vld [vmem:[%s12805_s18 + $0xc70] sm:$0xf0] }
 0x2ae   : > { %v1655_v1 = vpop.permute.xlu1 %1654  ;;  %v1650_v59 = vpop.permute.xlu0 %1649 }
 0x2af   : > { %v14131_v18 = vmul.f32 %v1655_v1, %v440_v5  ;;  %v14136_v47 = vmul.f32 %v1650_v59, %v439_v24  ;;  %v11172_v5 = vor.u32 %v12368_v14, %v11171_v21  ;;  %v476_v24 = vld [vmem:[%s12863_s28 + $0x6d8] sm:$0xff]  ;;  %v475_v59 = vld [vmem:[%s12863_s28 + $0x6d0] sm:$0xff] }
 0x2b0   : > { %v14138_v62 = vpop.f32.mrf.mxu3  ;;  %v6489_v2 = vpop.f32.mrf.mxu2  ;;  %v11113_v14 = vld [vmem:[%s12805_s18 + $0xc6c] sm:$0xf0]  ;;  %v11119_v21 = vld [vmem:[%s12805_s18 + $0xc38] sm:$0xf] }
 0x2b1   : > { %17320 = vst [vmem:[#allocation64_spill] sm:$0xff] %v14138_v62  ;;  %v14140_v32 = vadd.f32 %v6489_v2, %v6281_v33  ;;  %v12346_v33 = vld [vmem:[%s12805_s18 + $0xc34] sm:$0xf]  ;;  %v14151_v2 = vmul.f32 %v14073_v38, %v476_v24  ;;  %v11120_v24 = vor.u32 %v12354_v56, %v11119_v21  ;;  %v12383_v38 = vld [vmem:[%s12805_s18 + $0xd58] sm:$0xf0] }
 0x2b2   : > { %v6282_v1 = vpop.f32.mrf.mxu1  ;;  %v14144_v46 = vpop.f32.mrf.mxu0 }
 0x2b3   : > { %17321 = vst [vmem:[#allocation65_spill] sm:$0xff] %v14140_v32  ;;  %v6283_v12 = vadd.f32 %v6282_v1, %v14068_v35 }
 0x2b4   : > { %17322 = vst [vmem:[#allocation66_spill] sm:$0xff] %v14151_v2  ;;  %v11239_v2 = vld [vmem:[%s12805_s18 + $0xd28] sm:$0xf] }
 0x2b5   : > { %6120 = vmatmul.bf16.gmra.mxu0 %v11172_v5  ;;  %6588 = vmatmul.bf16.gmra.mxu3 %v11780_v6  ;;  %v14162_v1 = vpop.permute.xlu2 %1889  ;;  %v11116_v6 = vor.u32 %v12346_v33, %v11113_v14  ;;  %v11179_v14 = vld [vmem:[%s12805_s18 + $0xcb0] sm:$0xf] }
 0x2b6   : > { %v1830_v44 = vpop.permute.xlu1 %1829  ;;  %v14155_v32 = vpop.permute.xlu0 %1754  ;;  %17325 = vst [vmem:[#allocation69_spill] sm:$0xff] %v14162_v1  ;;  %v11231_v1 = vld [vmem:[%s12805_s18 + $0xd20] sm:$0xf] }
 0x2b7   : > { %v14153_v13 = vmul.f32 %v1830_v44, %v475_v59  ;;  %v11232_v56 = vor.u32 %v12383_v38, %v11231_v1  ;;  %v6346_v1 = vadd.f32 %v13706_v60, %v13247_v3  ;;  %v11291_v3 = vld [vmem:[%s12805_s18 + $0xd98] sm:$0xf] }
 0x2b8   : > { %v14160_v35 = vpop.f32.mrf.mxu3  ;;  %v6491_v22 = vpop.f32.mrf.mxu2 }
 0x2b9   : > { %17323 = vst [vmem:[#allocation67_spill] sm:$0xff] %v14153_v13  ;;  %v14166_v5 = vadd.f32 %v6491_v22, %v6283_v12  ;;  %v11839_v13 = vld [vmem:[%s12805_s18 + $0x11d8] sm:$0xf]  ;;  %v12534_v12 = vld [vmem:[%s12805_s18 + $0x1210] sm:$0xf0] }
 0x2ba   : > { %17324 = vst [vmem:[#allocation68_spill] sm:$0xff] %v14160_v35  ;;  %v6285_v44 = vpop.f32.mrf.mxu1  ;;  %v6083_v59 = vpop.f32.mrf.mxu0 }
 0x2bb   : > { %17326 = vst [vmem:[#allocation70_spill] sm:$0xff] %v14166_v5  ;;  %v6286_v62 = vadd.f32 %v6285_v44, %v14092_v4 }
 0x2bd   : > { %6324 = vmatmul.bf16.gmra.mxu1 %v11116_v6  ;;  %6533 = vmatmul.bf16.gmra.mxu2 %v11120_v24  ;;  %v14186_v24 = vpop.permute.xlu2 %1634 }
 0x2be   : > { %v1905_v35 = vpop.permute.xlu1 %1904  ;;  %v1900_v29 = vpop.permute.xlu0 %1899 }
 0x2bf   : > { %v14172_v36 = vmul.f32 %v1905_v35, %v490_v9  ;;  %v14177_v22 = vmul.f32 %v1900_v29, %v489_v8  ;;  %v11840_v35 = vor.u32 %v12534_v12, %v11839_v13  ;;  %v12361_v29 = vld [vmem:[%s12805_s18 + $0xcac] sm:$0xf] }
 0x2c0   : > { %v14179_v33 = vpop.f32.mrf.mxu3  ;;  %v6494_v4 = vpop.f32.mrf.mxu2 }
 0x2c1   : > { %17327 = vst [vmem:[#allocation71_spill] sm:$0xff] %v14172_v36  ;;  %v14183_v21 = vadd.f32 %v6494_v4, %v6286_v62  ;;  %v12369_v62 = vld [vmem:[%s12805_s18 + $0xce8] sm:$0xf0] }
 0x2c2   : > { %17328 = vst [vmem:[#allocation72_spill] sm:$0xff] %v14177_v22  ;;  %v6287_v9 = vpop.f32.mrf.mxu1  ;;  %v6086_v44 = vpop.f32.mrf.mxu0 }
 0x2c3   : > { %17329 = vst [vmem:[#allocation73_spill] sm:$0xff] %v14179_v33  ;;  %v6288_v6 = vadd.f32 %v6287_v9, %v14123_v31  ;;  %v11173_v33 = vld [vmem:[%s12805_s18 + $0xce4] sm:$0xf0] }
 0x2c4   : > { %17330 = vst [vmem:[#allocation74_spill] sm:$0xff] %v14183_v21  ;;  %v11176_v9 = vor.u32 %v12361_v29, %v11173_v33  ;;  %v6348_v33 = vadd.f32 %v13726_v51, %v13262_v11  ;;  %v11233_v51 = vld [vmem:[%s12805_s18 + $0xd5c] sm:$0xf0] }
 0x2c5   : > { %6125 = vmatmul.bf16.gmra.mxu0 %v11232_v56  ;;  %6593 = vmatmul.bf16.gmra.mxu3 %v11840_v35  ;;  %v11180_v56 = vor.u32 %v12369_v62, %v11179_v14  ;;  %v14203_v22 = vpop.permute.xlu2 %1809 }
 0x2c6   : > { %v14188_v8 = vpop.permute.xlu1 %1739  ;;  %v14191_v5 = vpop.permute.xlu0 %1644  ;;  %17333 = vst [vmem:[#allocation77_spill] sm:$0xff] %v14203_v22 }
 0x2c8   : > { %v6496_v13 = vpop.f32.mrf.mxu2  ;;  %v6554_v31 = vpop.f32.mrf.mxu3 }
 0x2c9   : > { %v14198_v38 = vadd.f32 %v6496_v13, %v6288_v6  ;;  %v14200_v12 = vadd.f32 %v6554_v31, %v6346_v1  ;;  %v12398_v6 = vld [vmem:[%s12805_s18 + $0xdd0] sm:$0xf0]  ;;  %v11899_v13 = vld [vmem:[%s12805_s18 + $0x1250] sm:$0xf]  ;;  %v12549_v1 = vld [vmem:[%s12805_s18 + $0x1288] sm:$0xf0] }
 0x2ca   : > { %v6290_v4 = vpop.f32.mrf.mxu1  ;;  %v6088_v35 = vpop.f32.mrf.mxu0 }
 0x2cb   : > { %17331 = vst [vmem:[#allocation75_spill] sm:$0xff] %v14198_v38  ;;  %v6291_v21 = vadd.f32 %v6290_v4, %v14144_v46  ;;  %v11292_v4 = vor.u32 %v12398_v6, %v11291_v3  ;;  %v12376_v38 = vld [vmem:[%s12805_s18 + $0xd24] sm:$0xf] }
 0x2cc   : > { %17332 = vst [vmem:[#allocation76_spill] sm:$0xff] %v14200_v12 }
 0x2cd   : > { %6329 = vmatmul.bf16.gmra.mxu1 %v11176_v9  ;;  %6538 = vmatmul.bf16.gmra.mxu2 %v11180_v56  ;;  %v11900_v9 = vor.u32 %v12549_v1, %v11899_v13  ;;  %v14231_v3 = vpop.permute.xlu2 %1884 }
 0x2ce   : > { %v14206_v60 = vpop.permute.xlu1 %1824  ;;  %v14208_v36 = vpop.permute.xlu0 %1819  ;;  %17337 = vst [vmem:[#allocation81_spill] sm:$0xff] %v14231_v3  ;;  %v9567_v3 = vld [vmem:[%s12805_s18 + $0x10] sm:$0xf] }
 0x2d0   : > { %v6499_v14 = vpop.f32.mrf.mxu2  ;;  %v6556_v46 = vpop.f32.mrf.mxu3 }
 0x2d1   : > { %v14215_v29 = vadd.f32 %v6499_v14, %v6291_v21  ;;  %v14217_v62 = vadd.f32 %v6556_v46, %v6348_v33  ;;  %v12384_v21 = vld [vmem:[%s12805_s18 + $0xd60] sm:$0xf0]  ;;  %v6351_v33 = vadd.f32 %v13748_v0, %v13280_v50  ;;  %v11236_v14 = vor.u32 %v12376_v38, %v11233_v51  ;;  %v11957_v50 = vld [vmem:[%s12805_s18 + $0xc] sm:$0xf] }
 0x2d2   : > { %v6292_v31 = vpop.f32.mrf.mxu1  ;;  %v14219_v56 = vpop.f32.mrf.mxu0  ;;  %v11240_v46 = vor.u32 %v12384_v21, %v11239_v2 }
 0x2d3   : > { %17334 = vst [vmem:[#allocation78_spill] sm:$0xff] %v14215_v29  ;;  %v6293_v12 = vadd.f32 %v6292_v31, %v6083_v59  ;;  %v9561_v29 = vld [vmem:[%s12805_s18 + $0x44] sm:$0xf0] }
 0x2d4   : > { %17335 = vst [vmem:[#allocation79_spill] sm:$0xff] %v14217_v62  ;;  %v9564_v21 = vor.u32 %v11957_v50, %v9561_v29  ;;  %v17339_v29 = vpack.c.bf16 %v13990_v28, %v13992_v61  ;;  %v6356_v50 = vadd.f32 %v13790_v34, %v13330_v25  ;;  %v17340_v25 = vpack.c.bf16 %v13932_v54, %v13934_v63  ;;  %v456_v54 = vld [vmem:[%s12863_s28 + $0x638] sm:$0xff]  ;;  %v455_v63 = vld [vmem:[%s12863_s28 + $0x630] sm:$0xff] }
 0x2d5   : > { %6130 = vmatmul.bf16.gmra.mxu0 %v11292_v4  ;;  %6598 = vmatmul.bf16.gmra.mxu3 %v11900_v9  ;;  %v14245_v2 = vpop.permute.xlu2 %1719  ;;  %v17341_v34 = vpack.c.bf16 %v14076_v15, %v14081_v42  ;;  %v11972_v15 = vld [vmem:[%s12805_s18 + $0x84] sm:$0xf] }
 0x2d6   : > { %v14222_v22 = vpop.permute.xlu1 %1629  ;;  %v14224_v11 = vpop.permute.xlu0 %1894 }
 0x2d7   : > { %17336 = vst [vmem:[#allocation80_spill] sm:$0xff] %v14224_v11  ;;  %v11965_v11 = vld [vmem:[%s12805_s18 + $0x48] sm:$0xf0] }
 0x2d8   : > { %v6501_v6 = vpop.f32.mrf.mxu2  ;;  %v6559_v59 = vpop.f32.mrf.mxu3 }
 0x2d9   : > { %v14233_v13 = vadd.f32 %v6501_v6, %v6293_v12  ;;  %v14235_v1 = vadd.f32 %v6559_v59, %v6351_v33  ;;  %v6353_v12 = vadd.f32 %v13766_v53, %v13299_v26  ;;  %v9568_v6 = vor.u32 %v11965_v11, %v9567_v3  ;;  %v12391_v26 = vld [vmem:[%s12805_s18 + $0xd9c] sm:$0xf]  ;;  %v11293_v11 = vld [vmem:[%s12805_s18 + $0xdd4] sm:$0xf0]  ;;  %v11299_v3 = vld [vmem:[%s12805_s18 + $0xda0] sm:$0xf] }
 0x2da   : > { %v14237_v31 = vpop.f32.mrf.mxu0  ;;  %v6295_v4 = vpop.f32.mrf.mxu1  ;;  %v11296_v28 = vor.u32 %v12391_v26, %v11293_v11 }
 0x2db   : > { %v6296_v9 = vadd.f32 %v6295_v4, %v6086_v44  ;;  %v460_v4 = vld [vmem:[%s12863_s28 + $0x658] sm:$0xff] }
 0x2dd   : > { %6334 = vmatmul.bf16.gmra.mxu1 %v11236_v14  ;;  %6543 = vmatmul.bf16.gmra.mxu2 %v11240_v46 }
 0x2de   : > { %v1735_v0 = vpop.permute.xlu1 %1734  ;;  %v1730_v62 = vpop.permute.xlu0 %1729 }
 0x2e0   : > { %v6504_v33 = vpop.f32.mrf.mxu2  ;;  %v6561_v38 = vpop.f32.mrf.mxu3 }
 0x2e1   : > { %v14247_v51 = vadd.f32 %v6504_v33, %v6296_v9  ;;  %v14249_v44 = vadd.f32 %v6561_v38, %v6353_v12  ;;  %v17338_v12 = vpack.c.bf16 %v13936_v52, %v13929_v39  ;;  %v459_v33 = vld [vmem:[%s12863_s28 + $0x650] sm:$0xff]  ;;  %v2140_v38 = vmul.f32 %v14155_v32, %v460_v4 }
 0x2e2   : > { %v6297_v59 = vpop.f32.mrf.mxu1  ;;  %v14251_v14 = vpop.f32.mrf.mxu0 }
 0x2e3   : > { %v6298_v46 = vadd.f32 %v6297_v59, %v6088_v35  ;;  %v12399_v35 = vld [vmem:[%s12805_s18 + $0xdd8] sm:$0xf0]  ;;  %v457_v59 = vld [vmem:[%s12863_s28 + $0x640] sm:$0xff] }
 0x2e4   : > { %v11300_v61 = vor.u32 %v12399_v35, %v11299_v3  ;;  %v2137_v11 = vmul.f32 %v14188_v8, %v457_v59  ;;  %v11980_v8 = vld [vmem:[%s12805_s18 + $0xc0] sm:$0xf0] }
 0x2e5   : > { %6612 = vmatmul.bf16.vlgmr.msrb.gmra.mxu3 %v9564_v21  ;;  %6821 = vmatmul.bf16.vlgmr.msrb.gmra.mxu0 %v9568_v6 }
 0x2e6   : > { %v14255_v53 = vpop.permute.xlu1 %1879  ;;  %v14257_v9 = vpop.permute.xlu0 %1814  ;;  %8276 = vmatpush.bf16.msrb.mxu3 %v17338_v12  ;;  %8485 = vmatpush.bf16.msrb.mxu0 %v17339_v29  ;;  %v2139_v12 = vmul.f32 %v14041_v7, %v459_v33  ;;  %v9627_v33 = vld [vmem:[%s12805_s18 + $0x88] sm:$0xf] }
 0x2e7   : > { %v14287_v29 = vpop.permute.xlu2 %1804 }
 0x2e8   : > { %v6506_v21 = vpop.f32.mrf.mxu2  ;;  %v6564_v6 = vpop.f32.mrf.mxu3  ;;  %v2278_v7 = vpack.c.bf16 %v2140_v38, %v2139_v12  ;;  %v6358_v38 = vadd.f32 %v13814_v30, %v13355_v48 }
 0x2e9   : > { %v14273_v39 = vadd.f32 %v6506_v21, %v6298_v46  ;;  %v14275_v52 = vadd.f32 %v6564_v6, %v6356_v50  ;;  %v458_v46 = vld [vmem:[%s12863_s28 + $0x648] sm:$0xff]  ;;  %v17342_v50 = vpack.c.bf16 %v13994_v10, %v13987_v49  ;;  %v2136_v6 = vmul.f32 %v1735_v0, %v456_v54 }
 0x2ea   : > { %8277 = vmatpush.bf16.msrb.mxu3 %v17340_v25  ;;  %8486 = vmatpush.bf16.msrb.mxu0 %v17341_v34  ;;  %v6300_v32 = vpop.f32.mrf.mxu1  ;;  %v14284_v4 = vpop.f32.mrf.mxu0  ;;  %v2138_v42 = vmul.f32 %v14129_v57, %v458_v46  ;;  %v2135_v57 = vmul.f32 %v1730_v62, %v455_v63  ;;  %v9628_v25 = vor.u32 %v11980_v8, %v9627_v33  ;;  %v437_v62 = vld [vmem:[%s12863_s28 + $0x5a0] sm:$0xff]  ;;  %v436_v33 = vld [vmem:[%s12863_s28 + $0x598] sm:$0xff] }
 0x2eb   : > { %v6301_v26 = vadd.f32 %v6300_v32, %v14219_v56  ;;  %v9621_v56 = vld [vmem:[%s12805_s18 + $0xbc] sm:$0xf0]  ;;  %v17343_v34 = vpack.c.bf16 %v14045_v20, %v14047_v58  ;;  %v11958_v20 = vld [vmem:[%s12805_s18 + $0x14] sm:$0xf]  ;;  %v9569_v58 = vld [vmem:[%s12805_s18 + $0x4c] sm:$0xf0]  ;;  %v2117_v63 = vmul.f32 %v14099_v16, %v437_v62 }
 0x2ec   : > { %v2277_v21 = vpack.c.bf16 %v2138_v42, %v2137_v11  ;;  %v9624_v10 = vor.u32 %v11972_v15, %v9621_v56  ;;  %v453_v46 = vld [vmem:[%s12863_s28 + $0x620] sm:$0xff]  ;;  %v435_v11 = vld [vmem:[%s12863_s28 + $0x590] sm:$0xff]  ;;  %v9575_v42 = vld [vmem:[%s12805_s18 + $0x18] sm:$0xf]  ;;  %v6361_v56 = vadd.f32 %v13845_v43, %v13385_v45  ;;  %v2116_v45 = vmul.f32 %v14186_v24, %v436_v33 }
 0x2ed   : > { %6339 = vmatmul.bf16.gmra.mxu1 %v11296_v28  ;;  %6548 = vmatmul.bf16.gmra.mxu2 %v11300_v61  ;;  %v438_v61 = vld [vmem:[%s12863_s28 + $0x5a8] sm:$0xff]  ;;  %v2133_v8 = vmul.f32 %v14245_v2, %v453_v46  ;;  %v11987_v24 = vld [vmem:[%s12805_s18 + $0xfc] sm:$0xf]  ;;  %v17345_v46 = vpack.c.bf16 %v14018_v23, %v14020_v40  ;;  %v473_v23 = vld [vmem:[%s12863_s28 + $0x6c0] sm:$0xff] }
 0x2ee   : > { %v14295_v3 = vpop.permute.xlu1 %1624  ;;  %v14297_v35 = vpop.permute.xlu0 %1619  ;;  %8278 = vmatpush.bf16.msrb.mxu3 %v17342_v50  ;;  %8487 = vmatpush.bf16.msrb.mxu0 %v2278_v7  ;;  %v2118_v32 = vmul.f32 %v14191_v5, %v438_v61  ;;  %v454_v7 = vld [vmem:[%s12863_s28 + $0x628] sm:$0xff]  ;;  %v17344_v5 = vpack.c.bf16 %v14131_v18, %v14136_v47  ;;  %v11966_v50 = vld [vmem:[%s12805_s18 + $0x50] sm:$0xf0]  ;;  %v433_v61 = vld [vmem:[%s12863_s28 + $0x580] sm:$0xff] }
 0x2ef   : > { %v14323_v54 = vpop.permute.xlu2 %1709  ;;  %v2113_v62 = vmul.f32 %v14297_v35, %v433_v61 }
 0x2f0   : > { %v6509_v59 = vpop.f32.mrf.mxu2  ;;  %v6566_v28 = vpop.f32.mrf.mxu3  ;;  %v2267_v16 = vpack.c.bf16 %v2118_v32, %v2117_v63 }
 0x2f1   : > { %v14308_v12 = vadd.f32 %v6509_v59, %v6301_v26  ;;  %v14310_v49 = vadd.f32 %v6566_v28, %v6358_v38  ;;  %v2276_v26 = vpack.c.bf16 %v2136_v6, %v2135_v57  ;;  %v9572_v59 = vor.u32 %v11958_v20, %v9569_v58  ;;  %v434_v28 = vld [vmem:[%s12863_s28 + $0x588] sm:$0xff] }
 0x2f2   : > { %8279 = vmatpush.bf16.msrb.mxu3 %v17343_v34  ;;  %8488 = vmatpush.bf16.msrb.mxu0 %v2277_v21  ;;  %v6302_v48 = vpop.f32.mrf.mxu1  ;;  %v14315_v30 = vpop.f32.mrf.mxu0  ;;  %v2115_v21 = vmul.f32 %v14222_v22, %v435_v11  ;;  %v17346_v11 = vpack.c.bf16 %v13960_v37, %v13962_v17  ;;  %v17347_v37 = vpack.c.bf16 %v14113_v55, %v14111_v41  ;;  %v452_v41 = vld [vmem:[%s12863_s28 + $0x618] sm:$0xff] }
 0x2f3   : > { %v6303_v0 = vadd.f32 %v6302_v48, %v14237_v31  ;;  %v2114_v48 = vmul.f32 %v14295_v3, %v434_v28  ;;  %v6363_v3 = vadd.f32 %v13871_v27, %v13408_v19  ;;  %v472_v55 = vld [vmem:[%s12863_s28 + $0x6b8] sm:$0xff] }
 0x2f4   : > { %v2266_v34 = vpack.c.bf16 %v2116_v45, %v2115_v21  ;;  %v488_v21 = vld [vmem:[%s12863_s28 + $0x738] sm:$0xff]  ;;  %v11981_v45 = vld [vmem:[%s12805_s18 + $0xc8] sm:$0xf0] }
 0x2f5   : > { %6617 = vmatmul.bf16.gmra.mxu3 %v9624_v10  ;;  %6826 = vmatmul.bf16.gmra.mxu0 %v9628_v25  ;;  %v9576_v25 = vor.u32 %v11966_v50, %v9575_v42  ;;  %v2265_v20 = vpack.c.bf16 %v2114_v48, %v2113_v62  ;;  %v17348_v50 = vld [vmem:[#allocation55_spill] sm:$0xff] }
 0x2f6   : > { %v14328_v15 = vpop.permute.xlu1 %1799  ;;  %v1725_v31 = vpop.permute.xlu0 %1724  ;;  %8280 = vmatpush.bf16.msrb.mxu3 %v17344_v5  ;;  %8489 = vmatpush.bf16.msrb.mxu0 %v2276_v26  ;;  %v9687_v26 = vld [vmem:[%s12805_s18 + $0x100] sm:$0xf] }
 0x2f7   : > { %v2134_v38 = vmul.f32 %v1725_v31, %v454_v7  ;;  %v11995_v7 = vld [vmem:[%s12805_s18 + $0x138] sm:$0xf0]  ;;  %v14365_v35 = vpop.permute.xlu2 %1794  ;;  %v474_v31 = vld [vmem:[%s12863_s28 + $0x6c8] sm:$0xff] }
 0x2f8   : > { %v6511_v6 = vpop.f32.mrf.mxu2  ;;  %v6569_v57 = vpop.f32.mrf.mxu3  ;;  %v9688_v27 = vor.u32 %v11995_v7, %v9687_v26  ;;  %v487_v26 = vld [vmem:[%s12863_s28 + $0x730] sm:$0xff] }
 0x2f9   : > { %v2275_v18 = vpack.c.bf16 %v2134_v38, %v2133_v8  ;;  %v14342_v47 = vadd.f32 %v6511_v6, %v6303_v0  ;;  %v14344_v10 = vadd.f32 %v6569_v57, %v6361_v56  ;;  %v17349_v56 = vld [vmem:[#allocation54_spill] sm:$0xff]  ;;  %v2154_v38 = vmul.f32 %v14206_v60, %v474_v31  ;;  %v451_v6 = vld [vmem:[%s12863_s28 + $0x610] sm:$0xff] }
 0x2fa   : > { %8281 = vmatpush.bf16.msrb.mxu3 %v2267_v16  ;;  %v6305_v43 = vpop.f32.mrf.mxu1  ;;  %v14347_v22 = vpop.f32.mrf.mxu0  ;;  %v17350_v33 = vpack.c.bf16 %v17348_v50, %v17349_v56  ;;  %v2153_v16 = vmul.f32 %v14208_v36, %v473_v23  ;;  %v11973_v57 = vld [vmem:[%s12805_s18 + $0x8c] sm:$0xf]  ;;  %v9635_v60 = vld [vmem:[%s12805_s18 + $0x90] sm:$0xf]  ;;  %v2131_v48 = vmul.f32 %v14323_v54, %v451_v6  ;;  %v469_v54 = vld [vmem:[%s12863_s28 + $0x6a0] sm:$0xff] }
 0x2fb   : > { %v6306_v2 = vadd.f32 %v6305_v43, %v14251_v14  ;;  %8490 = vmatpush.bf16.msrb.mxu0 %v2275_v18  ;;  %v9681_v14 = vld [vmem:[%s12805_s18 + $0x134] sm:$0xf0]  ;;  %v17351_v18 = vld [vmem:[#allocation66_spill] sm:$0xff]  ;;  %v9636_v50 = vor.u32 %v11981_v45, %v9635_v60  ;;  %v17360_v56 = vld [vmem:[#allocation77_spill] sm:$0xff] }
 0x2fc   : > { %v9684_v19 = vor.u32 %v11987_v24, %v9681_v14  ;;  %v17354_v36 = vld [vmem:[#allocation10_spill] sm:$0xff]  ;;  %v17356_v24 = vld [vmem:[#allocation60_spill] sm:$0xff]  ;;  %v2285_v7 = vpack.c.bf16 %v2154_v38, %v2153_v16  ;;  %v12002_v60 = vld [vmem:[%s12805_s18 + $0x174] sm:$0xf] }
 0x2fd   : > { %7030 = vmatmul.bf16.vlgmr.msrb.gmra.mxu1 %v9572_v59  ;;  %7239 = vmatmul.bf16.vlgmr.msrb.gmra.mxu2 %v9576_v25  ;;  %v9629_v59 = vld [vmem:[%s12805_s18 + $0xc4] sm:$0xf0]  ;;  %v17352_v25 = vld [vmem:[#allocation67_spill] sm:$0xff]  ;;  %v17365_v45 = vld [vmem:[#allocation81_spill] sm:$0xff] }
 0x2fe   : > { %v14353_v0 = vpop.permute.xlu1 %1874  ;;  %v14355_v32 = vpop.permute.xlu0 %1869  ;;  %8282 = vmatpush.bf16.msrb.mxu3 %v2266_v34  ;;  %8694 = vmatpush.bf16.msrb.mxu1 %v17345_v46  ;;  %v17355_v43 = vld [vmem:[#allocation42_spill] sm:$0xff]  ;;  %v471_v34 = vld [vmem:[%s12863_s28 + $0x6b0] sm:$0xff]  ;;  %v17357_v46 = vld [vmem:[#allocation61_spill] sm:$0xff]  ;;  %v9632_v23 = vor.u32 %v11973_v57, %v9629_v59 }
 0x2ff   : > { %8903 = vmatpush.bf16.msrb.mxu2 %v17346_v11  ;;  %v17358_v14 = vpack.c.bf16 %v17356_v24, %v17357_v46  ;;  %v486_v38 = vld [vmem:[%s12863_s28 + $0x728] sm:$0xff]  ;;  %v17363_v57 = vld [vmem:[#allocation72_spill] sm:$0xff]  ;;  %v483_v24 = vld [vmem:[%s12863_s28 + $0x710] sm:$0xff] }
 0x300   : > { %v6514_v58 = vpop.f32.mrf.mxu2  ;;  %v6571_v63 = vpop.f32.mrf.mxu3 }
 0x301   : > { %v14372_v40 = vadd.f32 %v6514_v58, %v6306_v2  ;;  %v14374_v5 = vadd.f32 %v6571_v63, %v6363_v3  ;;  %v6366_v2 = vadd.f32 %v17355_v43, %v17354_v36  ;;  %v17359_v3 = vld [vmem:[#allocation80_spill] sm:$0xff]  ;;  %v2152_v58 = vmul.f32 %v14257_v9, %v472_v55  ;;  %v17362_v55 = vld [vmem:[#allocation71_spill] sm:$0xff] }
 0x302   : > { %8283 = vmatpush.bf16.msrb.mxu3 %v2265_v20  ;;  %8695 = vmatpush.bf16.msrb.mxu1 %v17347_v37  ;;  %v6307_v17 = vpop.f32.mrf.mxu1  ;;  %v14379_v42 = vpop.f32.mrf.mxu0  ;;  %v2168_v11 = vmul.f32 %v17359_v3, %v488_v21  ;;  %v485_v20 = vld [vmem:[%s12863_s28 + $0x720] sm:$0xff]  ;;  %v17364_v59 = vpack.c.bf16 %v17362_v55, %v17363_v57  ;;  %v2166_v36 = vmul.f32 %v17365_v45, %v486_v38  ;;  %v468_v3 = vld [vmem:[%s12863_s28 + $0x698] sm:$0xff]  ;;  %v17369_v45 = vld [vmem:[#allocation46_spill] sm:$0xff] }
 0x303   : > { %8904 = vmatpush.bf16.msrb.mxu2 %v17350_v33  ;;  %v6308_v8 = vadd.f32 %v6307_v17, %v14284_v4  ;;  %v17353_v4 = vpack.c.bf16 %v17351_v18, %v17352_v25  ;;  %v2151_v33 = vmul.f32 %v17360_v56, %v471_v34  ;;  %v17361_v21 = vld [vmem:[#allocation69_spill] sm:$0xff]  ;;  %v2149_v25 = vmul.f32 %v14328_v15, %v469_v54  ;;  %v12010_v34 = vld [vmem:[%s12805_s18 + $0x1b0] sm:$0xf0]  ;;  %v17366_v15 = vld [vmem:[#allocation12_spill] sm:$0xff] }
 0x304   : > { %v2167_v6 = vmul.f32 %v17361_v21, %v487_v26  ;;  %v2163_v54 = vmul.f32 %v14355_v32, %v483_v24  ;;  %v466_v32 = vld [vmem:[%s12863_s28 + $0x688] sm:$0xff]  ;;  %v465_v57 = vld [vmem:[%s12863_s28 + $0x680] sm:$0xff] }
 0x305   : > { %6622 = vmatmul.bf16.gmra.mxu3 %v9684_v19  ;;  %6831 = vmatmul.bf16.gmra.mxu0 %v9688_v27  ;;  %v14409_v19 = vpop.permute.xlu2 %1699  ;;  %v2284_v18 = vpack.c.bf16 %v2152_v58, %v2151_v33 }
 0x306   : > { %v1790_v28 = vpop.permute.xlu1 %1789  ;;  %v1715_v61 = vpop.permute.xlu0 %1714  ;;  %8696 = vmatpush.bf16.msrb.mxu1 %v17353_v4  ;;  %v467_v4 = vld [vmem:[%s12863_s28 + $0x690] sm:$0xff]  ;;  %v2292_v43 = vpack.c.bf16 %v2168_v11, %v2167_v6 }
 0x307   : > { %v2132_v62 = vmul.f32 %v1715_v61, %v452_v41  ;;  %8905 = vmatpush.bf16.msrb.mxu2 %v17358_v14  ;;  %v470_v41 = vld [vmem:[%s12863_s28 + $0x6a8] sm:$0xff]  ;;  %v17367_v14 = vld [vmem:[#allocation44_spill] sm:$0xff] }
 0x308   : > { %v6516_v63 = vpop.f32.mrf.mxu2  ;;  %v6574_v31 = vpop.f32.mrf.mxu3  ;;  %v6368_v26 = vadd.f32 %v17367_v14, %v17366_v15 }
 0x309   : > { %v2274_v27 = vpack.c.bf16 %v2132_v62, %v2131_v48  ;;  %v14412_v37 = vadd.f32 %v6516_v63, %v6308_v8  ;;  %v14414_v17 = vadd.f32 %v6574_v31, %v6366_v2  ;;  %v2165_v8 = vmul.f32 %v14255_v53, %v485_v20  ;;  %v9741_v53 = vld [vmem:[%s12805_s18 + $0x1ac] sm:$0xf0]  ;;  %v9747_v2 = vld [vmem:[%s12805_s18 + $0x178] sm:$0xf] }
 0x30a   : > { %8697 = vmatpush.bf16.msrb.mxu1 %v2285_v7  ;;  %v6310_v9 = vpop.f32.mrf.mxu1  ;;  %v14418_v16 = vpop.f32.mrf.mxu0  ;;  %v2150_v48 = vmul.f32 %v14287_v29, %v470_v41  ;;  %v484_v62 = vld [vmem:[%s12863_s28 + $0x718] sm:$0xff]  ;;  %v2147_v20 = vmul.f32 %v1790_v28, %v467_v4  ;;  %v9744_v29 = vor.u32 %v12002_v60, %v9741_v53  ;;  %v9748_v31 = vor.u32 %v12010_v34, %v9747_v2  ;;  %v11996_v4 = vld [vmem:[%s12805_s18 + $0x140] sm:$0xf0]  ;;  %v17368_v60 = vld [vmem:[#allocation14_spill] sm:$0xff] }
 0x30b   : > { %8906 = vmatpush.bf16.msrb.mxu2 %v17364_v59  ;;  %v6311_v61 = vadd.f32 %v6310_v9, %v14315_v30  ;;  %8491 = vmatpush.bf16.msrb.mxu0 %v2274_v27  ;;  %v2291_v7 = vpack.c.bf16 %v2166_v36, %v2165_v8  ;;  %v482_v27 = vld [vmem:[%s12863_s28 + $0x708] sm:$0xff]  ;;  %v2148_v28 = vmul.f32 %v14365_v35, %v468_v3 }
 0x30c   : > { %v2283_v11 = vpack.c.bf16 %v2150_v48, %v2149_v25  ;;  %v450_v59 = vld [vmem:[%s12863_s28 + $0x608] sm:$0xff]  ;;  %v6371_v36 = vadd.f32 %v17369_v45, %v17368_v60 }
 0x30d   : > { %7035 = vmatmul.bf16.gmra.mxu1 %v9632_v23  ;;  %7244 = vmatmul.bf16.gmra.mxu2 %v9636_v50  ;;  %v2164_v23 = vmul.f32 %v14353_v0, %v484_v62  ;;  %v481_v50 = vld [vmem:[%s12863_s28 + $0x700] sm:$0xff]  ;;  %v1785_v6 = vpop.permute.xlu2 %1784  ;;  %v2282_v41 = vpack.c.bf16 %v2148_v28, %v2147_v20  ;;  %v9695_v25 = vld [vmem:[%s12805_s18 + $0x108] sm:$0xf] }
 0x30e   : > { %v1865_v30 = vpop.permute.xlu1 %1864  ;;  %v1860_v46 = vpop.permute.xlu0 %1859  ;;  %8698 = vmatpush.bf16.msrb.mxu1 %v2284_v18  ;;  %v449_v0 = vld [vmem:[%s12863_s28 + $0x600] sm:$0xff]  ;;  %v2146_v2 = vmul.f32 %v1785_v6, %v466_v32  ;;  %v9696_v15 = vor.u32 %v11996_v4, %v9695_v25 }
 0x30f   : > { %8907 = vmatpush.bf16.msrb.mxu2 %v2292_v43  ;;  %v2162_v8 = vmul.f32 %v1865_v30, %v482_v27  ;;  %v2161_v55 = vmul.f32 %v1860_v46, %v481_v50  ;;  %v2290_v35 = vpack.c.bf16 %v2164_v23, %v2163_v54  ;;  %v9689_v18 = vld [vmem:[%s12805_s18 + $0x13c] sm:$0xf0]  ;;  %v17370_v23 = vld [vmem:[#allocation16_spill] sm:$0xff] }
 0x310   : > { %v6519_v58 = vpop.f32.mrf.mxu2  ;;  %v6576_v63 = vpop.f32.mrf.mxu3  ;;  %v17371_v54 = vld [vmem:[#allocation48_spill] sm:$0xff] }
 0x311   : > { %v14444_v56 = vadd.f32 %v6519_v58, %v6311_v61  ;;  %v14446_v33 = vadd.f32 %v6576_v63, %v6368_v26  ;;  %v11988_v61 = vld [vmem:[%s12805_s18 + $0x104] sm:$0xf]  ;;  %v2289_v62 = vpack.c.bf16 %v2162_v8, %v2161_v55  ;;  %v12017_v58 = vld [vmem:[%s12805_s18 + $0x1ec] sm:$0xf]  ;;  %v9801_v63 = vld [vmem:[%s12805_s18 + $0x224] sm:$0xf0]  ;;  %v6373_v27 = vadd.f32 %v17371_v54, %v17370_v23 }
 0x312   : > { %8699 = vmatpush.bf16.msrb.mxu1 %v2283_v11  ;;  %v6312_v38 = vpop.f32.mrf.mxu1  ;;  %v14449_v9 = vpop.f32.mrf.mxu0  ;;  %v9692_v46 = vor.u32 %v11988_v61, %v9689_v18  ;;  %v12003_v8 = vld [vmem:[%s12805_s18 + $0x17c] sm:$0xf]  ;;  %v9749_v55 = vld [vmem:[%s12805_s18 + $0x1b4] sm:$0xf0]  ;;  %v17372_v61 = vld [vmem:[#allocation18_spill] sm:$0xff] }
 0x313   : > { %8908 = vmatpush.bf16.msrb.mxu2 %v2291_v7  ;;  %v6313_v21 = vadd.f32 %v6312_v38, %v14347_v22  ;;  %v2129_v22 = vmul.f32 %v14409_v19, %v449_v0  ;;  %v9804_v0 = vor.u32 %v12017_v58, %v9801_v63  ;;  %v9809_v23 = vld [vmem:[%s12805_s18 + $0x22c] sm:$0xf0]  ;;  %v9815_v54 = vld [vmem:[%s12805_s18 + $0x1f8] sm:$0xf] }
 0x315   : > { %6627 = vmatmul.bf16.gmra.mxu3 %v9744_v29  ;;  %6836 = vmatmul.bf16.gmra.mxu0 %v9748_v31  ;;  %v9807_v29 = vld [vmem:[%s12805_s18 + $0x1f0] sm:$0xf]  ;;  %v12025_v31 = vld [vmem:[%s12805_s18 + $0x228] sm:$0xf0] }
 0x316   : > { %v1780_v43 = vpop.permute.xlu1 %1779  ;;  %v1705_v53 = vpop.permute.xlu0 %1704  ;;  %8700 = vmatpush.bf16.msrb.mxu1 %v2282_v41  ;;  %v9808_v32 = vor.u32 %v12025_v31, %v9807_v29  ;;  %v12018_v31 = vld [vmem:[%s12805_s18 + $0x1f4] sm:$0xf] }
 0x317   : > { %v2145_v34 = vmul.f32 %v1780_v43, %v465_v57  ;;  %v2130_v48 = vmul.f32 %v1705_v53, %v450_v59  ;;  %8909 = vmatpush.bf16.msrb.mxu2 %v2290_v35  ;;  %v9755_v57 = vld [vmem:[%s12805_s18 + $0x180] sm:$0xf]  ;;  %v12011_v59 = vld [vmem:[%s12805_s18 + $0x1b8] sm:$0xf0]  ;;  %v17373_v35 = vld [vmem:[#allocation50_spill] sm:$0xff] }
 0x318   : > { %v6521_v24 = vpop.f32.mrf.mxu2  ;;  %v6579_v30 = vpop.f32.mrf.mxu3  ;;  %v6376_v18 = vadd.f32 %v17373_v35, %v17372_v61  ;;  %v12047_v35 = vld [vmem:[%s12805_s18 + $0x2dc] sm:$0xf] }
 0x319   : > { %v2281_v14 = vpack.c.bf16 %v2146_v2, %v2145_v34  ;;  %v2273_v26 = vpack.c.bf16 %v2130_v48, %v2129_v22  ;;  %v14463_v7 = vadd.f32 %v6521_v24, %v6313_v21  ;;  %v14465_v3 = vadd.f32 %v6579_v30, %v6371_v36  ;;  %v12032_v2 = vld [vmem:[%s12805_s18 + $0x264] sm:$0xf]  ;;  %v9861_v34 = vld [vmem:[%s12805_s18 + $0x29c] sm:$0xf0]  ;;  %v9867_v48 = vld [vmem:[%s12805_s18 + $0x268] sm:$0xf] }
 0x31a   : > { %v6315_v19 = vpop.f32.mrf.mxu1  ;;  %v6113_v11 = vpop.f32.mrf.mxu0  ;;  %v9756_v36 = vor.u32 %v12011_v59, %v9755_v57  ;;  %v17374_v24 = vld [vmem:[#allocation20_spill] sm:$0xff] }
 0x31b   : > { %8910 = vmatpush.bf16.msrb.mxu2 %v2289_v62  ;;  %v6316_v20 = vadd.f32 %v6315_v19, %v14379_v42  ;;  %8492 = vmatpush.bf16.msrb.mxu0 %v2273_v26  ;;  %v12040_v62 = vld [vmem:[%s12805_s18 + $0x2a0] sm:$0xf0]  ;;  %v17375_v30 = vld [vmem:[#allocation52_spill] sm:$0xff] }
 0x31c   : > { %8701 = vmatpush.bf16.msrb.mxu1 %v2281_v14 }
 0x31d   : > { %7040 = vmatmul.bf16.gmra.mxu1 %v9692_v46  ;;  %7249 = vmatmul.bf16.gmra.mxu2 %v9696_v15  ;;  %v6378_v46 = vadd.f32 %v17375_v30, %v17374_v24 }
 0x320   : > { %v6524_v50 = vpop.f32.mrf.mxu2  ;;  %v6581_v28 = vpop.f32.mrf.mxu3 }
 0x321   : > { %v14474_v38 = vadd.f32 %v6524_v50, %v6316_v20  ;;  %v14476_v42 = vadd.f32 %v6581_v28, %v6373_v27  ;;  %v9868_v20 = vor.u32 %v12040_v62, %v9867_v48  ;;  %v12026_v27 = vld [vmem:[%s12805_s18 + $0x230] sm:$0xf0]  ;;  %v17376_v50 = vld [vmem:[#allocation22_spill] sm:$0xff]  ;;  %v17377_v28 = vld [vmem:[#allocation56_spill] sm:$0xff] }
 0x322   : > { %v6317_v21 = vpop.f32.mrf.mxu1  ;;  %v6116_v6 = vpop.f32.mrf.mxu0 }
 0x323   : > { %v6318_v41 = vadd.f32 %v6317_v21, %v14418_v16  ;;  %v9752_v16 = vor.u32 %v12003_v8, %v9749_v55  ;;  %v9816_v55 = vor.u32 %v12026_v27, %v9815_v54 }
 0x325   : > { %6632 = vmatmul.bf16.gmra.mxu3 %v9804_v0  ;;  %6841 = vmatmul.bf16.gmra.mxu0 %v9808_v32  ;;  %v6381_v0 = vadd.f32 %v17377_v28, %v17376_v50 }
 0x328   : > { %v6526_v25 = vpop.f32.mrf.mxu2  ;;  %v6584_v4 = vpop.f32.mrf.mxu3 }
 0x329   : > { %v14485_v60 = vadd.f32 %v6526_v25, %v6318_v41  ;;  %v14487_v45 = vadd.f32 %v6584_v4, %v6376_v18  ;;  %v9921_v18 = vld [vmem:[%s12805_s18 + $0x314] sm:$0xf0]  ;;  %v9927_v25 = vld [vmem:[%s12805_s18 + $0x2e0] sm:$0xf]  ;;  %v12055_v4 = vld [vmem:[%s12805_s18 + $0x318] sm:$0xf0] }
 0x32a   : > { %v6320_v43 = vpop.f32.mrf.mxu1  ;;  %v6118_v53 = vpop.f32.mrf.mxu0  ;;  %v9928_v62 = vor.u32 %v12055_v4, %v9927_v25 }
 0x32b   : > { %v6321_v22 = vadd.f32 %v6320_v43, %v14449_v9  ;;  %v9864_v9 = vor.u32 %v12032_v2, %v9861_v34 }
 0x32d   : > { %7045 = vmatmul.bf16.gmra.mxu1 %v9752_v16  ;;  %7254 = vmatmul.bf16.gmra.mxu2 %v9756_v36  ;;  %v17378_v16 = vld [vmem:[#allocation24_spill] sm:$0xff]  ;;  %v17379_v36 = vld [vmem:[#allocation58_spill] sm:$0xff] }
 0x32e   : > { %v6383_v43 = vadd.f32 %v17379_v36, %v17378_v16 }
 0x330   : > { %v6529_v15 = vpop.f32.mrf.mxu2  ;;  %v6586_v14 = vpop.f32.mrf.mxu3 }
 0x331   : > { %v14496_v26 = vadd.f32 %v6529_v15, %v6321_v22  ;;  %v14498_v19 = vadd.f32 %v6586_v14, %v6378_v46  ;;  %v12033_v15 = vld [vmem:[%s12805_s18 + $0x26c] sm:$0xf]  ;;  %v9869_v14 = vld [vmem:[%s12805_s18 + $0x2a4] sm:$0xf0] }
 0x332   : > { %v6322_v58 = vpop.f32.mrf.mxu1  ;;  %v6121_v63 = vpop.f32.mrf.mxu0 }
 0x333   : > { %v6323_v29 = vadd.f32 %v6322_v58, %v6113_v11  ;;  %v9812_v11 = vor.u32 %v12018_v31, %v9809_v23  ;;  %v17380_v58 = vld [vmem:[#allocation26_spill] sm:$0xff] }
 0x335   : > { %6637 = vmatmul.bf16.gmra.mxu3 %v9864_v9  ;;  %6846 = vmatmul.bf16.gmra.mxu0 %v9868_v20  ;;  %v9875_v9 = vld [vmem:[%s12805_s18 + $0x270] sm:$0xf]  ;;  %v12041_v20 = vld [vmem:[%s12805_s18 + $0x2a8] sm:$0xf0] }
 0x336   : > { %v9876_v28 = vor.u32 %v12041_v20, %v9875_v9  ;;  %v17384_v9 = vld [vmem:[#allocation30_spill] sm:$0xff]  ;;  %v17385_v20 = vld [vmem:[#allocation68_spill] sm:$0xff] }
 0x338   : > { %v6531_v32 = vpop.f32.mrf.mxu2  ;;  %v6589_v21 = vpop.f32.mrf.mxu3 }
 0x339   : > { %v14506_v41 = vadd.f32 %v6531_v32, %v6323_v29  ;;  %v14508_v8 = vadd.f32 %v6589_v21, %v6381_v0  ;;  %v17381_v29 = vld [vmem:[#allocation62_spill] sm:$0xff] }
 0x33a   : > { %v6325_v57 = vpop.f32.mrf.mxu1  ;;  %v6123_v59 = vpop.f32.mrf.mxu0  ;;  %v6386_v31 = vadd.f32 %v17381_v29, %v17380_v58  ;;  %v6391_v58 = vadd.f32 %v17385_v20, %v17384_v9  ;;  %v9995_v9 = vld [vmem:[%s12805_s18 + $0x360] sm:$0xf]  ;;  %v12071_v20 = vld [vmem:[%s12805_s18 + $0x398] sm:$0xf0] }
 0x33b   : > { %v6326_v61 = vadd.f32 %v6325_v57, %v6116_v6  ;;  %v9924_v6 = vor.u32 %v12047_v35, %v9921_v18  ;;  %v9987_v57 = vld [vmem:[%s12805_s18 + $0x358] sm:$0xf] }
 0x33c   : > { %v17382_v35 = vld [vmem:[#allocation28_spill] sm:$0xff] }
 0x33d   : > { %7050 = vmatmul.bf16.gmra.mxu1 %v9812_v11  ;;  %7259 = vmatmul.bf16.gmra.mxu2 %v9816_v55  ;;  %v12062_v11 = vld [vmem:[%s12805_s18 + $0x354] sm:$0xf]  ;;  %v9981_v55 = vld [vmem:[%s12805_s18 + $0x38c] sm:$0xf0]  ;;  %v17383_v18 = vld [vmem:[#allocation64_spill] sm:$0xff] }
 0x33e   : > { %v6388_v25 = vadd.f32 %v17383_v18, %v17382_v35  ;;  %v17386_v35 = vld [vmem:[#allocation32_spill] sm:$0xff]  ;;  %v17387_v18 = vld [vmem:[#allocation73_spill] sm:$0xff] }
 0x340   : > { %v6534_v22 = vpop.f32.mrf.mxu2  ;;  %v6591_v2 = vpop.f32.mrf.mxu3 }
 0x341   : > { %v14516_v34 = vadd.f32 %v6534_v22, %v6326_v61  ;;  %v14518_v48 = vadd.f32 %v6591_v2, %v6383_v43  ;;  %v12070_v61 = vld [vmem:[%s12805_s18 + $0x390] sm:$0xf0] }
 0x342   : > { %v6327_v24 = vpop.f32.mrf.mxu1  ;;  %v6126_v30 = vpop.f32.mrf.mxu0  ;;  %v9988_v22 = vor.u32 %v12070_v61, %v9987_v57  ;;  %v10047_v57 = vld [vmem:[%s12805_s18 + $0x3d0] sm:$0xf]  ;;  %v12085_v61 = vld [vmem:[%s12805_s18 + $0x408] sm:$0xf0] }
 0x343   : > { %v6328_v46 = vadd.f32 %v6327_v24, %v6118_v53  ;;  %v9872_v53 = vor.u32 %v12033_v15, %v9869_v14  ;;  %v12048_v24 = vld [vmem:[%s12805_s18 + $0x2e4] sm:$0xf]  ;;  %v9935_v15 = vld [vmem:[%s12805_s18 + $0x2e8] sm:$0xf] }
 0x344   : > { %v12056_v14 = vld [vmem:[%s12805_s18 + $0x320] sm:$0xf0] }
 0x345   : > { %6642 = vmatmul.bf16.gmra.mxu3 %v9924_v6  ;;  %6851 = vmatmul.bf16.gmra.mxu0 %v9928_v62 }
 0x348   : > { %v6536_v23 = vpop.f32.mrf.mxu2  ;;  %v6594_v54 = vpop.f32.mrf.mxu3 }
 0x349   : > { %v14526_v27 = vadd.f32 %v6536_v23, %v6328_v46  ;;  %v14528_v50 = vadd.f32 %v6594_v54, %v6386_v31  ;;  %v9929_v46 = vld [vmem:[%s12805_s18 + $0x31c] sm:$0xf0] }
 0x34a   : > { %v6330_v0 = vpop.f32.mrf.mxu1  ;;  %v6128_v32 = vpop.f32.mrf.mxu0 }
 0x34b   : > { %v6331_v21 = vadd.f32 %v6330_v0, %v6121_v63  ;;  %v9984_v63 = vor.u32 %v12062_v11, %v9981_v55  ;;  %v12077_v11 = vld [vmem:[%s12805_s18 + $0x3cc] sm:$0xf]  ;;  %v10041_v55 = vld [vmem:[%s12805_s18 + $0x404] sm:$0xf0] }
 0x34d   : > { %7055 = vmatmul.bf16.gmra.mxu1 %v9872_v53  ;;  %7264 = vmatmul.bf16.gmra.mxu2 %v9876_v28  ;;  %v9936_v53 = vor.u32 %v12056_v14, %v9935_v15  ;;  %v12063_v15 = vld [vmem:[%s12805_s18 + $0x35c] sm:$0xf]  ;;  %v9989_v14 = vld [vmem:[%s12805_s18 + $0x394] sm:$0xf0] }
 0x350   : > { %v6539_v4 = vpop.f32.mrf.mxu2  ;;  %v6596_v16 = vpop.f32.mrf.mxu3 }
 0x351   : > { %v14536_v36 = vadd.f32 %v6539_v4, %v6331_v21  ;;  %v14538_v43 = vadd.f32 %v6596_v16, %v6388_v25  ;;  %v6393_v25 = vadd.f32 %v17387_v18, %v17386_v35  ;;  %v10101_v35 = vld [vmem:[%s12805_s18 + $0x47c] sm:$0xf0]  ;;  %v10107_v18 = vld [vmem:[%s12805_s18 + $0x448] sm:$0xf] }
 0x352   : > { %v6332_v2 = vpop.f32.mrf.mxu1  ;;  %v6131_v6 = vpop.f32.mrf.mxu0 }
 0x353   : > { %v6333_v62 = vadd.f32 %v6332_v2, %v6123_v59  ;;  %v9932_v59 = vor.u32 %v12048_v24, %v9929_v46  ;;  %v10048_v2 = vor.u32 %v12085_v61, %v10047_v57  ;;  %v12092_v61 = vld [vmem:[%s12805_s18 + $0x444] sm:$0xf] }
 0x355   : > { %6647 = vmatmul.bf16.gmra.mxu3 %v9984_v63  ;;  %6856 = vmatmul.bf16.gmra.mxu0 %v9988_v22 }
 0x358   : > { %v6541_v29 = vpop.f32.mrf.mxu2  ;;  %v6599_v31 = vpop.f32.mrf.mxu3 }
 0x359   : > { %v14546_v23 = vadd.f32 %v6541_v29, %v6333_v62  ;;  %v14548_v54 = vadd.f32 %v6599_v31, %v6391_v58 }
 0x35a   : > { %v6335_v28 = vpop.f32.mrf.mxu1  ;;  %v6133_v0 = vpop.f32.mrf.mxu0 }
 0x35b   : > { %v6336_v21 = vadd.f32 %v6335_v28, %v6126_v30  ;;  %v10044_v30 = vor.u32 %v12077_v11, %v10041_v55  ;;  %v9992_v28 = vor.u32 %v12063_v15, %v9989_v14 }
 0x35d   : > { %7060 = vmatmul.bf16.gmra.mxu1 %v9932_v59  ;;  %7269 = vmatmul.bf16.gmra.mxu2 %v9936_v53  ;;  %v17388_v59 = vld [vmem:[#allocation5_spill] sm:$0xff] }
 0x360   : > { %v6544_v4 = vpop.f32.mrf.mxu2  ;;  %v6601_v16 = vpop.f32.mrf.mxu3 }
 0x361   : > { %v14556_v63 = vadd.f32 %v6544_v4, %v6336_v21  ;;  %v14558_v22 = vadd.f32 %v6601_v16, %v6393_v25  ;;  %v9996_v21 = vor.u32 %v12071_v20, %v9995_v9  ;;  %v12100_v25 = vld [vmem:[%s12805_s18 + $0x480] sm:$0xf0]  ;;  %v12078_v20 = vld [vmem:[%s12805_s18 + $0x3d4] sm:$0xf] }
 0x362   : > { %v6337_v62 = vpop.f32.mrf.mxu1  ;;  %v6822_v24 = vpop.f32.mrf.mxu0  ;;  %v10108_v15 = vor.u32 %v12100_v25, %v10107_v18 }
 0x363   : > { %v6338_v46 = vadd.f32 %v6337_v62, %v6128_v32 }
 0x365   : > { %6652 = vmatmul.bf16.gmra.mxu3 %v10044_v30  ;;  %6861 = vmatmul.bf16.gmra.mxu0 %v10048_v2  ;;  %v17389_v2 = vld [vmem:[#allocation6_spill] sm:$0xff] }
 0x368   : > { %v6546_v58 = vpop.f32.mrf.mxu2  ;;  %v6613_v29 = vpop.f32.mrf.mxu3 }
 0x369   : > { %v14564_v31 = vadd.f32 %v6546_v58, %v6338_v46  ;;  %v6614_v53 = vadd.f32 %v6613_v29, %v17388_v59  ;;  %v10104_v46 = vor.u32 %v12092_v61, %v10101_v35  ;;  %v10049_v58 = vld [vmem:[%s12805_s18 + $0x40c] sm:$0xf0]  ;;  %v10055_v29 = vld [vmem:[%s12805_s18 + $0x3d8] sm:$0xf]  ;;  %v12086_v59 = vld [vmem:[%s12805_s18 + $0x410] sm:$0xf0] }
 0x36a   : > { %v6340_v11 = vpop.f32.mrf.mxu1  ;;  %v6824_v32 = vpop.f32.mrf.mxu0  ;;  %v10052_v61 = vor.u32 %v12078_v20, %v10049_v58  ;;  %v10056_v35 = vor.u32 %v12086_v59, %v10055_v29 }
 0x36b   : > { %v6341_v55 = vadd.f32 %v6340_v11, %v6131_v6  ;;  %v6823_v57 = vadd.f32 %v6822_v24, %v6614_v53  ;;  %v17390_v11 = vld [vmem:[#allocation7_spill] sm:$0xff] }
 0x36d   : > { %7065 = vmatmul.bf16.gmra.mxu1 %v9992_v28  ;;  %7274 = vmatmul.bf16.gmra.mxu2 %v9996_v21 }
 0x370   : > { %v6549_v4 = vpop.f32.mrf.mxu2  ;;  %v6615_v16 = vpop.f32.mrf.mxu3 }
 0x371   : > { %v14571_v30 = vadd.f32 %v6549_v4, %v6341_v55  ;;  %v6616_v62 = vadd.f32 %v6615_v16, %v17389_v2  ;;  %v12107_v4 = vld [vmem:[%s12805_s18 + $0x4bc] sm:$0xf]  ;;  %v10161_v16 = vld [vmem:[%s12805_s18 + $0x4f4] sm:$0xf0]  ;;  %v10167_v2 = vld [vmem:[%s12805_s18 + $0x4c0] sm:$0xf] }
 0x372   : > { %v6342_v6 = vpop.f32.mrf.mxu1  ;;  %v6827_v24 = vpop.f32.mrf.mxu0  ;;  %v10164_v58 = vor.u32 %v12107_v4, %v10161_v16 }
 0x373   : > { %v6343_v14 = vadd.f32 %v6342_v6, %v6133_v0  ;;  %v6825_v9 = vadd.f32 %v6824_v32, %v6616_v62  ;;  %v12115_v62 = vld [vmem:[%s12805_s18 + $0x4f8] sm:$0xf0] }
 0x374   : > { %v17391_v6 = vld [vmem:[#allocation8_spill] sm:$0xff]  ;;  %v10168_v29 = vor.u32 %v12115_v62, %v10167_v2 }
 0x375   : > { %6657 = vmatmul.bf16.gmra.mxu3 %v10104_v46  ;;  %6866 = vmatmul.bf16.gmra.mxu0 %v10108_v15 }
 0x378   : > { %v6551_v53 = vpop.f32.mrf.mxu2  ;;  %v6618_v28 = vpop.f32.mrf.mxu3 }
 0x379   : > { %v14578_v21 = vadd.f32 %v6551_v53, %v6343_v14  ;;  %v6619_v55 = vadd.f32 %v6618_v28, %v17390_v11  ;;  %v12093_v28 = vld [vmem:[%s12805_s18 + $0x44c] sm:$0xf]  ;;  %v10109_v11 = vld [vmem:[%s12805_s18 + $0x484] sm:$0xf0] }
 0x37a   : > { %v7031_v0 = vpop.f32.mrf.mxu1  ;;  %v6829_v32 = vpop.f32.mrf.mxu0  ;;  %v10112_v16 = vor.u32 %v12093_v28, %v10109_v11 }
 0x37b   : > { %v6828_v18 = vadd.f32 %v6827_v24, %v6619_v55  ;;  %v7032_v25 = vadd.f32 %v7031_v0, %v6823_v57  ;;  %v10115_v55 = vld [vmem:[%s12805_s18 + $0x450] sm:$0xf] }
 0x37d   : > { %7070 = vmatmul.bf16.gmra.mxu1 %v10052_v61  ;;  %7279 = vmatmul.bf16.gmra.mxu2 %v10056_v35  ;;  %v12101_v61 = vld [vmem:[%s12805_s18 + $0x488] sm:$0xf0] }
 0x37e   : > { %v10116_v2 = vor.u32 %v12101_v61, %v10115_v55 }
 0x380   : > { %v6620_v46 = vpop.f32.mrf.mxu3  ;;  %v7240_v15 = vpop.f32.mrf.mxu2 }
 0x381   : > { %v6621_v14 = vadd.f32 %v6620_v46, %v17391_v6  ;;  %v14586_v20 = vadd.f32 %v7240_v15, %v7032_v25  ;;  %v17392_v25 = vld [vmem:[#allocation9_spill] sm:$0xff]  ;;  %v12122_v6 = vld [vmem:[%s12805_s18 + $0x534] sm:$0xf] }
 0x382   : > { %v7033_v24 = vpop.f32.mrf.mxu1  ;;  %v6832_v57 = vpop.f32.mrf.mxu0 }
 0x383   : > { %v6830_v59 = vadd.f32 %v6829_v32, %v6621_v14  ;;  %v7034_v53 = vadd.f32 %v7033_v24, %v6825_v9  ;;  %v10221_v14 = vld [vmem:[%s12805_s18 + $0x56c] sm:$0xf0] }
 0x384   : > { %v10224_v11 = vor.u32 %v12122_v6, %v10221_v14 }
 0x385   : > { %6662 = vmatmul.bf16.gmra.mxu3 %v10164_v58  ;;  %6871 = vmatmul.bf16.gmra.mxu0 %v10168_v29  ;;  %v10227_v58 = vld [vmem:[%s12805_s18 + $0x538] sm:$0xf]  ;;  %v12130_v29 = vld [vmem:[%s12805_s18 + $0x570] sm:$0xf0] }
 0x386   : > { %v10228_v55 = vor.u32 %v12130_v29, %v10227_v58 }
 0x388   : > { %v6623_v35 = vpop.f32.mrf.mxu3  ;;  %v7242_v0 = vpop.f32.mrf.mxu2 }
 0x389   : > { %v6624_v46 = vadd.f32 %v6623_v35, %v17392_v25  ;;  %v14593_v4 = vadd.f32 %v7242_v0, %v7034_v53  ;;  %v17394_v53 = vld [vmem:[#allocation11_spill] sm:$0xff] }
 0x38a   : > { %v7036_v32 = vpop.f32.mrf.mxu1  ;;  %v6834_v9 = vpop.f32.mrf.mxu0 }
 0x38b   : > { %17393 = vst [vmem:[#allocation55_spill] sm:$0xff] %v14593_v4  ;;  %v6833_v62 = vadd.f32 %v6832_v57, %v6624_v46  ;;  %v7037_v15 = vadd.f32 %v7036_v32, %v6828_v18  ;;  %v12108_v46 = vld [vmem:[%s12805_s18 + $0x4c4] sm:$0xf] }
 0x38c   : > { %v12116_v32 = vld [vmem:[%s12805_s18 + $0x500] sm:$0xf0] }
 0x38d   : > { %7075 = vmatmul.bf16.gmra.mxu1 %v10112_v16  ;;  %7284 = vmatmul.bf16.gmra.mxu2 %v10116_v2  ;;  %v10169_v16 = vld [vmem:[%s12805_s18 + $0x4fc] sm:$0xf0]  ;;  %v10175_v2 = vld [vmem:[%s12805_s18 + $0x4c8] sm:$0xf] }
 0x38e   : > { %v10172_v14 = vor.u32 %v12108_v46, %v10169_v16  ;;  %v10176_v58 = vor.u32 %v12116_v32, %v10175_v2 }
 0x390   : > { %v6625_v24 = vpop.f32.mrf.mxu3  ;;  %v7245_v35 = vpop.f32.mrf.mxu2 }
 0x391   : > { %v6626_v0 = vadd.f32 %v6625_v24, %v17394_v53  ;;  %v14600_v28 = vadd.f32 %v7245_v35, %v7037_v15  ;;  %v17396_v15 = vld [vmem:[#allocation13_spill] sm:$0xff] }
 0x392   : > { %v7038_v57 = vpop.f32.mrf.mxu1  ;;  %v6837_v18 = vpop.f32.mrf.mxu0 }
 0x393   : > { %17395 = vst [vmem:[#allocation54_spill] sm:$0xff] %v14600_v28  ;;  %v6835_v61 = vadd.f32 %v6834_v9, %v6626_v0  ;;  %v7039_v25 = vadd.f32 %v7038_v57, %v6830_v59  ;;  %v12137_v0 = vld [vmem:[%s12805_s18 + $0x5ac] sm:$0xf] }
 0x394   : > { %v12145_v57 = vld [vmem:[%s12805_s18 + $0x5e8] sm:$0xf0] }
 0x395   : > { %6667 = vmatmul.bf16.gmra.mxu3 %v10224_v11  ;;  %6876 = vmatmul.bf16.gmra.mxu0 %v10228_v55  ;;  %v10281_v11 = vld [vmem:[%s12805_s18 + $0x5e4] sm:$0xf0]  ;;  %v10287_v55 = vld [vmem:[%s12805_s18 + $0x5b0] sm:$0xf] }
 0x396   : > { %v10284_v16 = vor.u32 %v12137_v0, %v10281_v11  ;;  %v10288_v2 = vor.u32 %v12145_v57, %v10287_v55 }
 0x398   : > { %v6628_v4 = vpop.f32.mrf.mxu3  ;;  %v7247_v24 = vpop.f32.mrf.mxu2 }
 0x399   : > { %v6629_v35 = vadd.f32 %v6628_v4, %v17396_v15  ;;  %v14607_v6 = vadd.f32 %v7247_v24, %v7039_v25  ;;  %v17398_v25 = vld [vmem:[#allocation15_spill] sm:$0xff] }
 0x39a   : > { %v7041_v9 = vpop.f32.mrf.mxu1  ;;  %v6839_v59 = vpop.f32.mrf.mxu0 }
 0x39b   : > { %17397 = vst [vmem:[#allocation66_spill] sm:$0xff] %v14607_v6  ;;  %v6838_v29 = vadd.f32 %v6837_v18, %v6629_v35  ;;  %v7042_v53 = vadd.f32 %v7041_v9, %v6833_v62  ;;  %v12123_v35 = vld [vmem:[%s12805_s18 + $0x53c] sm:$0xf] }
 0x39c   : > { %v12131_v9 = vld [vmem:[%s12805_s18 + $0x578] sm:$0xf0] }
 0x39d   : > { %7080 = vmatmul.bf16.gmra.mxu1 %v10172_v14  ;;  %7289 = vmatmul.bf16.gmra.mxu2 %v10176_v58  ;;  %v10229_v14 = vld [vmem:[%s12805_s18 + $0x574] sm:$0xf0]  ;;  %v10235_v58 = vld [vmem:[%s12805_s18 + $0x540] sm:$0xf] }
 0x39e   : > { %v10232_v11 = vor.u32 %v12123_v35, %v10229_v14  ;;  %v10236_v55 = vor.u32 %v12131_v9, %v10235_v58 }
 0x3a0   : > { %v6630_v28 = vpop.f32.mrf.mxu3  ;;  %v7250_v4 = vpop.f32.mrf.mxu2 }
 0x3a1   : > { %v6631_v24 = vadd.f32 %v6630_v28, %v17398_v25  ;;  %v14614_v46 = vadd.f32 %v7250_v4, %v7042_v53  ;;  %v17400_v53 = vld [vmem:[#allocation17_spill] sm:$0xff] }
 0x3a2   : > { %v7043_v18 = vpop.f32.mrf.mxu1  ;;  %v6842_v62 = vpop.f32.mrf.mxu0 }
 0x3a3   : > { %17399 = vst [vmem:[#allocation67_spill] sm:$0xff] %v14614_v46  ;;  %v6840_v32 = vadd.f32 %v6839_v59, %v6631_v24  ;;  %v7044_v15 = vadd.f32 %v7043_v18, %v6835_v61  ;;  %v12152_v24 = vld [vmem:[%s12805_s18 + $0x624] sm:$0xf] }
 0x3a4   : > { %v12160_v18 = vld [vmem:[%s12805_s18 + $0x660] sm:$0xf0] }
 0x3a5   : > { %6672 = vmatmul.bf16.gmra.mxu3 %v10284_v16  ;;  %6881 = vmatmul.bf16.gmra.mxu0 %v10288_v2  ;;  %v10341_v16 = vld [vmem:[%s12805_s18 + $0x65c] sm:$0xf0]  ;;  %v10347_v2 = vld [vmem:[%s12805_s18 + $0x628] sm:$0xf] }
 0x3a6   : > { %v10344_v14 = vor.u32 %v12152_v24, %v10341_v16  ;;  %v10348_v58 = vor.u32 %v12160_v18, %v10347_v2 }
 0x3a8   : > { %v6633_v6 = vpop.f32.mrf.mxu3  ;;  %v7252_v28 = vpop.f32.mrf.mxu2 }
 0x3a9   : > { %v6634_v4 = vadd.f32 %v6633_v6, %v17400_v53  ;;  %v14621_v0 = vadd.f32 %v7252_v28, %v7044_v15  ;;  %v17402_v15 = vld [vmem:[#allocation19_spill] sm:$0xff] }
 0x3aa   : > { %v7046_v59 = vpop.f32.mrf.mxu1  ;;  %v6844_v61 = vpop.f32.mrf.mxu0 }
 0x3ab   : > { %17401 = vst [vmem:[#allocation10_spill] sm:$0xff] %v14621_v0  ;;  %v6843_v57 = vadd.f32 %v6842_v62, %v6634_v4  ;;  %v7047_v25 = vadd.f32 %v7046_v59, %v6838_v29  ;;  %v12138_v4 = vld [vmem:[%s12805_s18 + $0x5b4] sm:$0xf] }
 0x3ac   : > { %v12146_v59 = vld [vmem:[%s12805_s18 + $0x5f0] sm:$0xf0] }
 0x3ad   : > { %7085 = vmatmul.bf16.gmra.mxu1 %v10232_v11  ;;  %7294 = vmatmul.bf16.gmra.mxu2 %v10236_v55  ;;  %v10289_v11 = vld [vmem:[%s12805_s18 + $0x5ec] sm:$0xf0]  ;;  %v10295_v55 = vld [vmem:[%s12805_s18 + $0x5b8] sm:$0xf] }
 0x3ae   : > { %v10292_v16 = vor.u32 %v12138_v4, %v10289_v11  ;;  %v10296_v2 = vor.u32 %v12146_v59, %v10295_v55 }
 0x3b0   : > { %v6635_v46 = vpop.f32.mrf.mxu3  ;;  %v7255_v6 = vpop.f32.mrf.mxu2 }
 0x3b1   : > { %v6636_v28 = vadd.f32 %v6635_v46, %v17402_v15  ;;  %v14628_v35 = vadd.f32 %v7255_v6, %v7047_v25  ;;  %v17404_v25 = vld [vmem:[#allocation21_spill] sm:$0xff] }
 0x3b2   : > { %v7048_v62 = vpop.f32.mrf.mxu1  ;;  %v6847_v29 = vpop.f32.mrf.mxu0 }
 0x3b3   : > { %17403 = vst [vmem:[#allocation42_spill] sm:$0xff] %v14628_v35  ;;  %v6845_v9 = vadd.f32 %v6844_v61, %v6636_v28  ;;  %v7049_v53 = vadd.f32 %v7048_v62, %v6840_v32  ;;  %v12167_v28 = vld [vmem:[%s12805_s18 + $0x69c] sm:$0xf] }
 0x3b4   : > { %v12175_v62 = vld [vmem:[%s12805_s18 + $0x6d8] sm:$0xf0] }
 0x3b5   : > { %6677 = vmatmul.bf16.gmra.mxu3 %v10344_v14  ;;  %6886 = vmatmul.bf16.gmra.mxu0 %v10348_v58  ;;  %v10401_v14 = vld [vmem:[%s12805_s18 + $0x6d4] sm:$0xf0]  ;;  %v10407_v58 = vld [vmem:[%s12805_s18 + $0x6a0] sm:$0xf] }
 0x3b6   : > { %v10404_v11 = vor.u32 %v12167_v28, %v10401_v14  ;;  %v10408_v55 = vor.u32 %v12175_v62, %v10407_v58 }
 0x3b8   : > { %v6638_v0 = vpop.f32.mrf.mxu3  ;;  %v7257_v46 = vpop.f32.mrf.mxu2 }
 0x3b9   : > { %v6639_v6 = vadd.f32 %v6638_v0, %v17404_v25  ;;  %v14635_v24 = vadd.f32 %v7257_v46, %v7049_v53  ;;  %v17406_v53 = vld [vmem:[#allocation23_spill] sm:$0xff] }
 0x3ba   : > { %v7051_v61 = vpop.f32.mrf.mxu1  ;;  %v6849_v32 = vpop.f32.mrf.mxu0 }
 0x3bb   : > { %17405 = vst [vmem:[#allocation60_spill] sm:$0xff] %v14635_v24  ;;  %v6848_v18 = vadd.f32 %v6847_v29, %v6639_v6  ;;  %v7052_v15 = vadd.f32 %v7051_v61, %v6843_v57  ;;  %v12153_v6 = vld [vmem:[%s12805_s18 + $0x62c] sm:$0xf] }
 0x3bc   : > { %v12161_v61 = vld [vmem:[%s12805_s18 + $0x668] sm:$0xf0] }
 0x3bd   : > { %7090 = vmatmul.bf16.gmra.mxu1 %v10292_v16  ;;  %7299 = vmatmul.bf16.gmra.mxu2 %v10296_v2  ;;  %v10349_v16 = vld [vmem:[%s12805_s18 + $0x664] sm:$0xf0]  ;;  %v10355_v2 = vld [vmem:[%s12805_s18 + $0x630] sm:$0xf] }
 0x3be   : > { %v10352_v14 = vor.u32 %v12153_v6, %v10349_v16  ;;  %v10356_v58 = vor.u32 %v12161_v61, %v10355_v2 }
 0x3c0   : > { %v6640_v35 = vpop.f32.mrf.mxu3  ;;  %v7260_v0 = vpop.f32.mrf.mxu2 }
 0x3c1   : > { %v6641_v46 = vadd.f32 %v6640_v35, %v17406_v53  ;;  %v14642_v4 = vadd.f32 %v7260_v0, %v7052_v15  ;;  %v17408_v15 = vld [vmem:[#allocation25_spill] sm:$0xff] }
 0x3c2   : > { %v7053_v29 = vpop.f32.mrf.mxu1  ;;  %v6852_v57 = vpop.f32.mrf.mxu0 }
 0x3c3   : > { %17407 = vst [vmem:[#allocation61_spill] sm:$0xff] %v14642_v4  ;;  %v6850_v59 = vadd.f32 %v6849_v32, %v6641_v46  ;;  %v7054_v25 = vadd.f32 %v7053_v29, %v6845_v9  ;;  %v12182_v46 = vld [vmem:[%s12805_s18 + $0x714] sm:$0xf] }
 0x3c4   : > { %v12190_v29 = vld [vmem:[%s12805_s18 + $0x750] sm:$0xf0] }
 0x3c5   : > { %6682 = vmatmul.bf16.gmra.mxu3 %v10404_v11  ;;  %6891 = vmatmul.bf16.gmra.mxu0 %v10408_v55  ;;  %v10461_v11 = vld [vmem:[%s12805_s18 + $0x74c] sm:$0xf0]  ;;  %v10467_v55 = vld [vmem:[%s12805_s18 + $0x718] sm:$0xf] }
 0x3c6   : > { %v10464_v16 = vor.u32 %v12182_v46, %v10461_v11  ;;  %v10468_v2 = vor.u32 %v12190_v29, %v10467_v55 }
 0x3c8   : > { %v6643_v24 = vpop.f32.mrf.mxu3  ;;  %v7262_v35 = vpop.f32.mrf.mxu2 }
 0x3c9   : > { %v6644_v0 = vadd.f32 %v6643_v24, %v17408_v15  ;;  %v14649_v28 = vadd.f32 %v7262_v35, %v7054_v25  ;;  %v17410_v25 = vld [vmem:[#allocation27_spill] sm:$0xff] }
 0x3ca   : > { %v7056_v32 = vpop.f32.mrf.mxu1  ;;  %v6854_v9 = vpop.f32.mrf.mxu0 }
 0x3cb   : > { %17409 = vst [vmem:[#allocation80_spill] sm:$0xff] %v14649_v28  ;;  %v6853_v62 = vadd.f32 %v6852_v57, %v6644_v0  ;;  %v7057_v53 = vadd.f32 %v7056_v32, %v6848_v18  ;;  %v12168_v0 = vld [vmem:[%s12805_s18 + $0x6a4] sm:$0xf] }
 0x3cc   : > { %v12176_v32 = vld [vmem:[%s12805_s18 + $0x6e0] sm:$0xf0] }
 0x3cd   : > { %7095 = vmatmul.bf16.gmra.mxu1 %v10352_v14  ;;  %7304 = vmatmul.bf16.gmra.mxu2 %v10356_v58  ;;  %v10409_v14 = vld [vmem:[%s12805_s18 + $0x6dc] sm:$0xf0]  ;;  %v10415_v58 = vld [vmem:[%s12805_s18 + $0x6a8] sm:$0xf] }
 0x3ce   : > { %v10412_v11 = vor.u32 %v12168_v0, %v10409_v14  ;;  %v10416_v55 = vor.u32 %v12176_v32, %v10415_v58 }
 0x3d0   : > { %v6645_v4 = vpop.f32.mrf.mxu3  ;;  %v7265_v24 = vpop.f32.mrf.mxu2 }
 0x3d1   : > { %v6646_v35 = vadd.f32 %v6645_v4, %v17410_v25  ;;  %v14656_v6 = vadd.f32 %v7265_v24, %v7057_v53  ;;  %v17412_v53 = vld [vmem:[#allocation29_spill] sm:$0xff] }
 0x3d2   : > { %v7058_v57 = vpop.f32.mrf.mxu1  ;;  %v6857_v18 = vpop.f32.mrf.mxu0 }
 0x3d3   : > { %17411 = vst [vmem:[#allocation77_spill] sm:$0xff] %v14656_v6  ;;  %v6855_v61 = vadd.f32 %v6854_v9, %v6646_v35  ;;  %v7059_v15 = vadd.f32 %v7058_v57, %v6850_v59  ;;  %v12197_v35 = vld [vmem:[%s12805_s18 + $0x78c] sm:$0xf] }
 0x3d4   : > { %v12205_v57 = vld [vmem:[%s12805_s18 + $0x7c8] sm:$0xf0] }
 0x3d5   : > { %6687 = vmatmul.bf16.gmra.mxu3 %v10464_v16  ;;  %6896 = vmatmul.bf16.gmra.mxu0 %v10468_v2  ;;  %v10521_v16 = vld [vmem:[%s12805_s18 + $0x7c4] sm:$0xf0]  ;;  %v10527_v2 = vld [vmem:[%s12805_s18 + $0x790] sm:$0xf] }
 0x3d6   : > { %v10524_v14 = vor.u32 %v12197_v35, %v10521_v16  ;;  %v10528_v58 = vor.u32 %v12205_v57, %v10527_v2 }
 0x3d8   : > { %v6648_v28 = vpop.f32.mrf.mxu3  ;;  %v7267_v4 = vpop.f32.mrf.mxu2 }
 0x3d9   : > { %v6649_v24 = vadd.f32 %v6648_v28, %v17412_v53  ;;  %v14663_v46 = vadd.f32 %v7267_v4, %v7059_v15  ;;  %v17414_v15 = vld [vmem:[#allocation31_spill] sm:$0xff] }
 0x3da   : > { %v7061_v9 = vpop.f32.mrf.mxu1  ;;  %v6859_v59 = vpop.f32.mrf.mxu0 }
 0x3db   : > { %17413 = vst [vmem:[#allocation69_spill] sm:$0xff] %v14663_v46  ;;  %v6858_v29 = vadd.f32 %v6857_v18, %v6649_v24  ;;  %v7062_v25 = vadd.f32 %v7061_v9, %v6853_v62  ;;  %v12183_v24 = vld [vmem:[%s12805_s18 + $0x71c] sm:$0xf] }
 0x3dc   : > { %v12191_v9 = vld [vmem:[%s12805_s18 + $0x758] sm:$0xf0] }
 0x3dd   : > { %7100 = vmatmul.bf16.gmra.mxu1 %v10412_v11  ;;  %7309 = vmatmul.bf16.gmra.mxu2 %v10416_v55  ;;  %v10469_v11 = vld [vmem:[%s12805_s18 + $0x754] sm:$0xf0]  ;;  %v10475_v55 = vld [vmem:[%s12805_s18 + $0x720] sm:$0xf] }
 0x3de   : > { %v10472_v16 = vor.u32 %v12183_v24, %v10469_v11  ;;  %v10476_v2 = vor.u32 %v12191_v9, %v10475_v55 }
 0x3e0   : > { %v6650_v6 = vpop.f32.mrf.mxu3  ;;  %v7270_v28 = vpop.f32.mrf.mxu2 }
 0x3e1   : > { %v6651_v4 = vadd.f32 %v6650_v6, %v17414_v15  ;;  %v14670_v0 = vadd.f32 %v7270_v28, %v7062_v25  ;;  %v17416_v25 = vld [vmem:[#allocation33_spill] sm:$0xff] }
 0x3e2   : > { %v7063_v18 = vpop.f32.mrf.mxu1  ;;  %v6862_v62 = vpop.f32.mrf.mxu0 }
 0x3e3   : > { %17415 = vst [vmem:[#allocation71_spill] sm:$0xff] %v14670_v0  ;;  %v6860_v32 = vadd.f32 %v6859_v59, %v6651_v4  ;;  %v7064_v53 = vadd.f32 %v7063_v18, %v6855_v61  ;;  %v12212_v4 = vld [vmem:[%s12805_s18 + $0x804] sm:$0xf] }
 0x3e4   : > { %v12220_v18 = vld [vmem:[%s12805_s18 + $0x840] sm:$0xf0] }
 0x3e5   : > { %6692 = vmatmul.bf16.gmra.mxu3 %v10524_v14  ;;  %6901 = vmatmul.bf16.gmra.mxu0 %v10528_v58  ;;  %v10581_v14 = vld [vmem:[%s12805_s18 + $0x83c] sm:$0xf0]  ;;  %v10587_v58 = vld [vmem:[%s12805_s18 + $0x808] sm:$0xf] }
 0x3e6   : > { %v10584_v11 = vor.u32 %v12212_v4, %v10581_v14  ;;  %v10588_v55 = vor.u32 %v12220_v18, %v10587_v58 }
 0x3e8   : > { %v6653_v46 = vpop.f32.mrf.mxu3  ;;  %v7272_v6 = vpop.f32.mrf.mxu2 }
 0x3e9   : > { %v6654_v28 = vadd.f32 %v6653_v46, %v17416_v25  ;;  %v14677_v35 = vadd.f32 %v7272_v6, %v7064_v53  ;;  %v17418_v53 = vld [vmem:[#allocation34_spill] sm:$0xff] }
 0x3ea   : > { %v7066_v59 = vpop.f32.mrf.mxu1  ;;  %v6864_v61 = vpop.f32.mrf.mxu0 }
 0x3eb   : > { %17417 = vst [vmem:[#allocation72_spill] sm:$0xff] %v14677_v35  ;;  %v6863_v57 = vadd.f32 %v6862_v62, %v6654_v28  ;;  %v7067_v15 = vadd.f32 %v7066_v59, %v6858_v29  ;;  %v12198_v28 = vld [vmem:[%s12805_s18 + $0x794] sm:$0xf] }
 0x3ec   : > { %v12206_v59 = vld [vmem:[%s12805_s18 + $0x7d0] sm:$0xf0] }
 0x3ed   : > { %7105 = vmatmul.bf16.gmra.mxu1 %v10472_v16  ;;  %7314 = vmatmul.bf16.gmra.mxu2 %v10476_v2  ;;  %v10529_v16 = vld [vmem:[%s12805_s18 + $0x7cc] sm:$0xf0]  ;;  %v10535_v2 = vld [vmem:[%s12805_s18 + $0x798] sm:$0xf] }
 0x3ee   : > { %v10532_v14 = vor.u32 %v12198_v28, %v10529_v16  ;;  %v10536_v58 = vor.u32 %v12206_v59, %v10535_v2 }
 0x3f0   : > { %v6655_v0 = vpop.f32.mrf.mxu3  ;;  %v7275_v46 = vpop.f32.mrf.mxu2 }
 0x3f1   : > { %v6656_v6 = vadd.f32 %v6655_v0, %v17418_v53  ;;  %v14684_v24 = vadd.f32 %v7275_v46, %v7067_v15  ;;  %v17420_v15 = vld [vmem:[#allocation35_spill] sm:$0xff] }
 0x3f2   : > { %v7068_v62 = vpop.f32.mrf.mxu1  ;;  %v6867_v29 = vpop.f32.mrf.mxu0 }
 0x3f3   : > { %17419 = vst [vmem:[#allocation81_spill] sm:$0xff] %v14684_v24  ;;  %v6865_v9 = vadd.f32 %v6864_v61, %v6656_v6  ;;  %v7069_v25 = vadd.f32 %v7068_v62, %v6860_v32  ;;  %v12227_v6 = vld [vmem:[%s12805_s18 + $0x87c] sm:$0xf] }
 0x3f4   : > { %v12235_v62 = vld [vmem:[%s12805_s18 + $0x8b8] sm:$0xf0] }
 0x3f5   : > { %6697 = vmatmul.bf16.gmra.mxu3 %v10584_v11  ;;  %6906 = vmatmul.bf16.gmra.mxu0 %v10588_v55  ;;  %v10641_v11 = vld [vmem:[%s12805_s18 + $0x8b4] sm:$0xf0]  ;;  %v10647_v55 = vld [vmem:[%s12805_s18 + $0x880] sm:$0xf] }
 0x3f6   : > { %v10644_v16 = vor.u32 %v12227_v6, %v10641_v11  ;;  %v10648_v2 = vor.u32 %v12235_v62, %v10647_v55 }
 0x3f8   : > { %v6658_v35 = vpop.f32.mrf.mxu3  ;;  %v7277_v0 = vpop.f32.mrf.mxu2 }
 0x3f9   : > { %v6659_v46 = vadd.f32 %v6658_v35, %v17420_v15  ;;  %v14691_v4 = vadd.f32 %v7277_v0, %v7069_v25  ;;  %v17422_v25 = vld [vmem:[#allocation36_spill] sm:$0xff] }
 0x3fa   : > { %v7071_v61 = vpop.f32.mrf.mxu1  ;;  %v6869_v32 = vpop.f32.mrf.mxu0 }
 0x3fb   : > { %17421 = vst [vmem:[#allocation12_spill] sm:$0xff] %v14691_v4  ;;  %v6868_v18 = vadd.f32 %v6867_v29, %v6659_v46  ;;  %v7072_v53 = vadd.f32 %v7071_v61, %v6863_v57  ;;  %v12213_v46 = vld [vmem:[%s12805_s18 + $0x80c] sm:$0xf] }
 0x3fc   : > { %v12221_v61 = vld [vmem:[%s12805_s18 + $0x848] sm:$0xf0] }
 0x3fd   : > { %7110 = vmatmul.bf16.gmra.mxu1 %v10532_v14  ;;  %7319 = vmatmul.bf16.gmra.mxu2 %v10536_v58  ;;  %v10589_v14 = vld [vmem:[%s12805_s18 + $0x844] sm:$0xf0]  ;;  %v10595_v58 = vld [vmem:[%s12805_s18 + $0x810] sm:$0xf] }
 0x3fe   : > { %v10592_v11 = vor.u32 %v12213_v46, %v10589_v14  ;;  %v10596_v55 = vor.u32 %v12221_v61, %v10595_v58 }
 0x400   : > { %v6660_v24 = vpop.f32.mrf.mxu3  ;;  %v7280_v35 = vpop.f32.mrf.mxu2 }
 0x401   : > { %v6661_v0 = vadd.f32 %v6660_v24, %v17422_v25  ;;  %v14698_v28 = vadd.f32 %v7280_v35, %v7072_v53  ;;  %v17424_v53 = vld [vmem:[#allocation37_spill] sm:$0xff] }
 0x402   : > { %v7073_v29 = vpop.f32.mrf.mxu1  ;;  %v6872_v57 = vpop.f32.mrf.mxu0 }
 0x403   : > { %17423 = vst [vmem:[#allocation44_spill] sm:$0xff] %v14698_v28  ;;  %v6870_v59 = vadd.f32 %v6869_v32, %v6661_v0  ;;  %v7074_v15 = vadd.f32 %v7073_v29, %v6865_v9  ;;  %v12242_v0 = vld [vmem:[%s12805_s18 + $0x8f4] sm:$0xf] }
 0x404   : > { %v12250_v29 = vld [vmem:[%s12805_s18 + $0x930] sm:$0xf0] }
 0x405   : > { %6702 = vmatmul.bf16.gmra.mxu3 %v10644_v16  ;;  %6911 = vmatmul.bf16.gmra.mxu0 %v10648_v2  ;;  %v10701_v16 = vld [vmem:[%s12805_s18 + $0x92c] sm:$0xf0]  ;;  %v10707_v2 = vld [vmem:[%s12805_s18 + $0x8f8] sm:$0xf] }
 0x406   : > { %v10704_v14 = vor.u32 %v12242_v0, %v10701_v16  ;;  %v10708_v58 = vor.u32 %v12250_v29, %v10707_v2 }
 0x408   : > { %v6663_v4 = vpop.f32.mrf.mxu3  ;;  %v7282_v24 = vpop.f32.mrf.mxu2 }
 0x409   : > { %v6664_v35 = vadd.f32 %v6663_v4, %v17424_v53  ;;  %v14705_v6 = vadd.f32 %v7282_v24, %v7074_v15  ;;  %v17426_v15 = vld [vmem:[#allocation38_spill] sm:$0xff] }
 0x40a   : > { %v7076_v32 = vpop.f32.mrf.mxu1  ;;  %v6874_v9 = vpop.f32.mrf.mxu0 }
 0x40b   : > { %17425 = vst [vmem:[#allocation14_spill] sm:$0xff] %v14705_v6  ;;  %v6873_v62 = vadd.f32 %v6872_v57, %v6664_v35  ;;  %v7077_v25 = vadd.f32 %v7076_v32, %v6868_v18  ;;  %v12228_v35 = vld [vmem:[%s12805_s18 + $0x884] sm:$0xf] }
 0x40c   : > { %v12236_v32 = vld [vmem:[%s12805_s18 + $0x8c0] sm:$0xf0] }
 0x40d   : > { %7115 = vmatmul.bf16.gmra.mxu1 %v10592_v11  ;;  %7324 = vmatmul.bf16.gmra.mxu2 %v10596_v55  ;;  %v10649_v11 = vld [vmem:[%s12805_s18 + $0x8bc] sm:$0xf0]  ;;  %v10655_v55 = vld [vmem:[%s12805_s18 + $0x888] sm:$0xf] }
 0x40e   : > { %v10652_v16 = vor.u32 %v12228_v35, %v10649_v11  ;;  %v10656_v2 = vor.u32 %v12236_v32, %v10655_v55 }
 0x410   : > { %v6665_v28 = vpop.f32.mrf.mxu3  ;;  %v7285_v4 = vpop.f32.mrf.mxu2 }
 0x411   : > { %v6666_v24 = vadd.f32 %v6665_v28, %v17426_v15  ;;  %v14712_v46 = vadd.f32 %v7285_v4, %v7077_v25  ;;  %v17428_v25 = vld [vmem:[#allocation39_spill] sm:$0xff] }
 0x412   : > { %v7078_v57 = vpop.f32.mrf.mxu1  ;;  %v6877_v18 = vpop.f32.mrf.mxu0 }
 0x413   : > { %17427 = vst [vmem:[#allocation46_spill] sm:$0xff] %v14712_v46  ;;  %v6875_v61 = vadd.f32 %v6874_v9, %v6666_v24  ;;  %v7079_v53 = vadd.f32 %v7078_v57, %v6870_v59  ;;  %v12257_v24 = vld [vmem:[%s12805_s18 + $0x96c] sm:$0xf] }
 0x414   : > { %v12265_v57 = vld [vmem:[%s12805_s18 + $0x9a8] sm:$0xf0] }
 0x415   : > { %6707 = vmatmul.bf16.gmra.mxu3 %v10704_v14  ;;  %6916 = vmatmul.bf16.gmra.mxu0 %v10708_v58  ;;  %v10761_v14 = vld [vmem:[%s12805_s18 + $0x9a4] sm:$0xf0]  ;;  %v10767_v58 = vld [vmem:[%s12805_s18 + $0x970] sm:$0xf] }
 0x416   : > { %v10764_v11 = vor.u32 %v12257_v24, %v10761_v14  ;;  %v10768_v55 = vor.u32 %v12265_v57, %v10767_v58 }
 0x418   : > { %v6668_v6 = vpop.f32.mrf.mxu3  ;;  %v7287_v28 = vpop.f32.mrf.mxu2 }
 0x419   : > { %v6669_v4 = vadd.f32 %v6668_v6, %v17428_v25  ;;  %v14719_v0 = vadd.f32 %v7287_v28, %v7079_v53  ;;  %v17430_v53 = vld [vmem:[#allocation40_spill] sm:$0xff] }
 0x41a   : > { %v7081_v9 = vpop.f32.mrf.mxu1  ;;  %v6879_v59 = vpop.f32.mrf.mxu0 }
 0x41b   : > { %17429 = vst [vmem:[#allocation16_spill] sm:$0xff] %v14719_v0  ;;  %v6878_v29 = vadd.f32 %v6877_v18, %v6669_v4  ;;  %v7082_v15 = vadd.f32 %v7081_v9, %v6873_v62  ;;  %v12243_v4 = vld [vmem:[%s12805_s18 + $0x8fc] sm:$0xf] }
 0x41c   : > { %v12251_v9 = vld [vmem:[%s12805_s18 + $0x938] sm:$0xf0] }
 0x41d   : > { %7120 = vmatmul.bf16.gmra.mxu1 %v10652_v16  ;;  %7329 = vmatmul.bf16.gmra.mxu2 %v10656_v2  ;;  %v10709_v16 = vld [vmem:[%s12805_s18 + $0x934] sm:$0xf0]  ;;  %v10715_v2 = vld [vmem:[%s12805_s18 + $0x900] sm:$0xf] }
 0x41e   : > { %v10712_v14 = vor.u32 %v12243_v4, %v10709_v16  ;;  %v10716_v58 = vor.u32 %v12251_v9, %v10715_v2 }
 0x420   : > { %v6670_v46 = vpop.f32.mrf.mxu3  ;;  %v7290_v6 = vpop.f32.mrf.mxu2 }
 0x421   : > { %v6671_v28 = vadd.f32 %v6670_v46, %v17430_v53  ;;  %v14726_v35 = vadd.f32 %v7290_v6, %v7082_v15  ;;  %v17432_v15 = vld [vmem:[#allocation41_spill] sm:$0xff] }
 0x422   : > { %v7083_v18 = vpop.f32.mrf.mxu1  ;;  %v6882_v62 = vpop.f32.mrf.mxu0 }
 0x423   : > { %17431 = vst [vmem:[#allocation48_spill] sm:$0xff] %v14726_v35  ;;  %v6880_v32 = vadd.f32 %v6879_v59, %v6671_v28  ;;  %v7084_v25 = vadd.f32 %v7083_v18, %v6875_v61  ;;  %v12272_v28 = vld [vmem:[%s12805_s18 + $0x9e4] sm:$0xf] }
 0x424   : > { %v12280_v18 = vld [vmem:[%s12805_s18 + $0xa20] sm:$0xf0] }
 0x425   : > { %6712 = vmatmul.bf16.gmra.mxu3 %v10764_v11  ;;  %6921 = vmatmul.bf16.gmra.mxu0 %v10768_v55  ;;  %v10821_v11 = vld [vmem:[%s12805_s18 + $0xa1c] sm:$0xf0]  ;;  %v10827_v55 = vld [vmem:[%s12805_s18 + $0x9e8] sm:$0xf] }
 0x426   : > { %v10824_v16 = vor.u32 %v12272_v28, %v10821_v11  ;;  %v10828_v2 = vor.u32 %v12280_v18, %v10827_v55 }
 0x428   : > { %v6673_v0 = vpop.f32.mrf.mxu3  ;;  %v7292_v46 = vpop.f32.mrf.mxu2 }
 0x429   : > { %v6674_v6 = vadd.f32 %v6673_v0, %v17432_v15  ;;  %v14733_v24 = vadd.f32 %v7292_v46, %v7084_v25  ;;  %v17434_v25 = vld [vmem:[#allocation43_spill] sm:$0xff] }
 0x42a   : > { %v7086_v59 = vpop.f32.mrf.mxu1  ;;  %v6884_v61 = vpop.f32.mrf.mxu0 }
 0x42b   : > { %17433 = vst [vmem:[#allocation18_spill] sm:$0xff] %v14733_v24  ;;  %v6883_v57 = vadd.f32 %v6882_v62, %v6674_v6  ;;  %v7087_v53 = vadd.f32 %v7086_v59, %v6878_v29  ;;  %v12258_v6 = vld [vmem:[%s12805_s18 + $0x974] sm:$0xf] }
 0x42c   : > { %v12266_v59 = vld [vmem:[%s12805_s18 + $0x9b0] sm:$0xf0] }
 0x42d   : > { %7125 = vmatmul.bf16.gmra.mxu1 %v10712_v14  ;;  %7334 = vmatmul.bf16.gmra.mxu2 %v10716_v58  ;;  %v10769_v14 = vld [vmem:[%s12805_s18 + $0x9ac] sm:$0xf0]  ;;  %v10775_v58 = vld [vmem:[%s12805_s18 + $0x978] sm:$0xf] }
 0x42e   : > { %v10772_v11 = vor.u32 %v12258_v6, %v10769_v14  ;;  %v10776_v55 = vor.u32 %v12266_v59, %v10775_v58 }
 0x430   : > { %v6675_v35 = vpop.f32.mrf.mxu3  ;;  %v7295_v0 = vpop.f32.mrf.mxu2 }
 0x431   : > { %v6676_v46 = vadd.f32 %v6675_v35, %v17434_v25  ;;  %v14740_v4 = vadd.f32 %v7295_v0, %v7087_v53  ;;  %v17436_v53 = vld [vmem:[#allocation45_spill] sm:$0xff] }
 0x432   : > { %v7088_v62 = vpop.f32.mrf.mxu1  ;;  %v6887_v29 = vpop.f32.mrf.mxu0 }
 0x433   : > { %17435 = vst [vmem:[#allocation50_spill] sm:$0xff] %v14740_v4  ;;  %v6885_v9 = vadd.f32 %v6884_v61, %v6676_v46  ;;  %v7089_v15 = vadd.f32 %v7088_v62, %v6880_v32  ;;  %v12287_v46 = vld [vmem:[%s12805_s18 + $0xa5c] sm:$0xf] }
 0x434   : > { %v12295_v62 = vld [vmem:[%s12805_s18 + $0xa98] sm:$0xf0] }
 0x435   : > { %6717 = vmatmul.bf16.gmra.mxu3 %v10824_v16  ;;  %6926 = vmatmul.bf16.gmra.mxu0 %v10828_v2  ;;  %v10881_v16 = vld [vmem:[%s12805_s18 + $0xa94] sm:$0xf0]  ;;  %v10887_v2 = vld [vmem:[%s12805_s18 + $0xa60] sm:$0xf] }
 0x436   : > { %v10884_v14 = vor.u32 %v12287_v46, %v10881_v16  ;;  %v10888_v58 = vor.u32 %v12295_v62, %v10887_v2 }
 0x438   : > { %v6678_v24 = vpop.f32.mrf.mxu3  ;;  %v7297_v35 = vpop.f32.mrf.mxu2 }
 0x439   : > { %v6679_v0 = vadd.f32 %v6678_v24, %v17436_v53  ;;  %v14747_v28 = vadd.f32 %v7297_v35, %v7089_v15  ;;  %v17438_v15 = vld [vmem:[#allocation47_spill] sm:$0xff] }
 0x43a   : > { %v7091_v61 = vpop.f32.mrf.mxu1  ;;  %v6889_v32 = vpop.f32.mrf.mxu0 }
 0x43b   : > { %17437 = vst [vmem:[#allocation20_spill] sm:$0xff] %v14747_v28  ;;  %v6888_v18 = vadd.f32 %v6887_v29, %v6679_v0  ;;  %v7092_v25 = vadd.f32 %v7091_v61, %v6883_v57  ;;  %v12273_v0 = vld [vmem:[%s12805_s18 + $0x9ec] sm:$0xf] }
 0x43c   : > { %v12281_v61 = vld [vmem:[%s12805_s18 + $0xa28] sm:$0xf0] }
 0x43d   : > { %7130 = vmatmul.bf16.gmra.mxu1 %v10772_v11  ;;  %7339 = vmatmul.bf16.gmra.mxu2 %v10776_v55  ;;  %v10829_v11 = vld [vmem:[%s12805_s18 + $0xa24] sm:$0xf0]  ;;  %v10835_v55 = vld [vmem:[%s12805_s18 + $0x9f0] sm:$0xf] }
 0x43e   : > { %v10832_v16 = vor.u32 %v12273_v0, %v10829_v11  ;;  %v10836_v2 = vor.u32 %v12281_v61, %v10835_v55 }
 0x440   : > { %v6680_v4 = vpop.f32.mrf.mxu3  ;;  %v7300_v24 = vpop.f32.mrf.mxu2 }
 0x441   : > { %v6681_v35 = vadd.f32 %v6680_v4, %v17438_v15  ;;  %v14754_v6 = vadd.f32 %v7300_v24, %v7092_v25  ;;  %v17440_v25 = vld [vmem:[#allocation49_spill] sm:$0xff] }
 0x442   : > { %v7093_v29 = vpop.f32.mrf.mxu1  ;;  %v6892_v57 = vpop.f32.mrf.mxu0 }
 0x443   : > { %17439 = vst [vmem:[#allocation52_spill] sm:$0xff] %v14754_v6  ;;  %v6890_v59 = vadd.f32 %v6889_v32, %v6681_v35  ;;  %v7094_v53 = vadd.f32 %v7093_v29, %v6885_v9  ;;  %v12302_v35 = vld [vmem:[%s12805_s18 + $0xad4] sm:$0xf] }
 0x444   : > { %v12310_v29 = vld [vmem:[%s12805_s18 + $0xb10] sm:$0xf0] }
 0x445   : > { %6722 = vmatmul.bf16.gmra.mxu3 %v10884_v14  ;;  %6931 = vmatmul.bf16.gmra.mxu0 %v10888_v58  ;;  %v10941_v14 = vld [vmem:[%s12805_s18 + $0xb0c] sm:$0xf0]  ;;  %v10947_v58 = vld [vmem:[%s12805_s18 + $0xad8] sm:$0xf] }
 0x446   : > { %v10944_v11 = vor.u32 %v12302_v35, %v10941_v14  ;;  %v10948_v55 = vor.u32 %v12310_v29, %v10947_v58 }
 0x448   : > { %v6683_v28 = vpop.f32.mrf.mxu3  ;;  %v7302_v4 = vpop.f32.mrf.mxu2 }
 0x449   : > { %v6684_v24 = vadd.f32 %v6683_v28, %v17440_v25  ;;  %v14761_v46 = vadd.f32 %v7302_v4, %v7094_v53  ;;  %v17442_v53 = vld [vmem:[#allocation51_spill] sm:$0xff] }
 0x44a   : > { %v7096_v32 = vpop.f32.mrf.mxu1  ;;  %v6894_v9 = vpop.f32.mrf.mxu0 }
 0x44b   : > { %17441 = vst [vmem:[#allocation22_spill] sm:$0xff] %v14761_v46  ;;  %v6893_v62 = vadd.f32 %v6892_v57, %v6684_v24  ;;  %v7097_v15 = vadd.f32 %v7096_v32, %v6888_v18  ;;  %v12288_v24 = vld [vmem:[%s12805_s18 + $0xa64] sm:$0xf] }
 0x44c   : > { %v12296_v32 = vld [vmem:[%s12805_s18 + $0xaa0] sm:$0xf0] }
 0x44d   : > { %7135 = vmatmul.bf16.gmra.mxu1 %v10832_v16  ;;  %7344 = vmatmul.bf16.gmra.mxu2 %v10836_v2  ;;  %v10889_v16 = vld [vmem:[%s12805_s18 + $0xa9c] sm:$0xf0]  ;;  %v10895_v2 = vld [vmem:[%s12805_s18 + $0xa68] sm:$0xf] }
 0x44e   : > { %v10892_v14 = vor.u32 %v12288_v24, %v10889_v16  ;;  %v10896_v58 = vor.u32 %v12296_v32, %v10895_v2 }
 0x450   : > { %v6685_v6 = vpop.f32.mrf.mxu3  ;;  %v7305_v28 = vpop.f32.mrf.mxu2 }
 0x451   : > { %v6686_v4 = vadd.f32 %v6685_v6, %v17442_v53  ;;  %v14768_v0 = vadd.f32 %v7305_v28, %v7097_v15  ;;  %v17444_v15 = vld [vmem:[#allocation53_spill] sm:$0xff] }
 0x452   : > { %v7098_v57 = vpop.f32.mrf.mxu1  ;;  %v6897_v18 = vpop.f32.mrf.mxu0 }
 0x453   : > { %17443 = vst [vmem:[#allocation56_spill] sm:$0xff] %v14768_v0  ;;  %v6895_v61 = vadd.f32 %v6894_v9, %v6686_v4  ;;  %v7099_v25 = vadd.f32 %v7098_v57, %v6890_v59  ;;  %v12317_v4 = vld [vmem:[%s12805_s18 + $0xb4c] sm:$0xf] }
 0x454   : > { %v12325_v57 = vld [vmem:[%s12805_s18 + $0xb88] sm:$0xf0] }
 0x455   : > { %6727 = vmatmul.bf16.gmra.mxu3 %v10944_v11  ;;  %6936 = vmatmul.bf16.gmra.mxu0 %v10948_v55  ;;  %v11001_v11 = vld [vmem:[%s12805_s18 + $0xb84] sm:$0xf0]  ;;  %v11007_v55 = vld [vmem:[%s12805_s18 + $0xb50] sm:$0xf] }
 0x456   : > { %v11004_v16 = vor.u32 %v12317_v4, %v11001_v11  ;;  %v11008_v2 = vor.u32 %v12325_v57, %v11007_v55 }
 0x458   : > { %v6688_v46 = vpop.f32.mrf.mxu3  ;;  %v7307_v6 = vpop.f32.mrf.mxu2 }
 0x459   : > { %v6689_v28 = vadd.f32 %v6688_v46, %v17444_v15  ;;  %v14775_v35 = vadd.f32 %v7307_v6, %v7099_v25  ;;  %v17446_v25 = vld [vmem:[#allocation57_spill] sm:$0xff] }
 0x45a   : > { %v7101_v9 = vpop.f32.mrf.mxu1  ;;  %v6899_v59 = vpop.f32.mrf.mxu0 }
 0x45b   : > { %17445 = vst [vmem:[#allocation24_spill] sm:$0xff] %v14775_v35  ;;  %v6898_v29 = vadd.f32 %v6897_v18, %v6689_v28  ;;  %v7102_v53 = vadd.f32 %v7101_v9, %v6893_v62  ;;  %v12303_v28 = vld [vmem:[%s12805_s18 + $0xadc] sm:$0xf] }
 0x45c   : > { %v12311_v9 = vld [vmem:[%s12805_s18 + $0xb18] sm:$0xf0] }
 0x45d   : > { %7140 = vmatmul.bf16.gmra.mxu1 %v10892_v14  ;;  %7349 = vmatmul.bf16.gmra.mxu2 %v10896_v58  ;;  %v10949_v14 = vld [vmem:[%s12805_s18 + $0xb14] sm:$0xf0]  ;;  %v10955_v58 = vld [vmem:[%s12805_s18 + $0xae0] sm:$0xf] }
 0x45e   : > { %v10952_v11 = vor.u32 %v12303_v28, %v10949_v14  ;;  %v10956_v55 = vor.u32 %v12311_v9, %v10955_v58 }
 0x460   : > { %v6690_v0 = vpop.f32.mrf.mxu3  ;;  %v7310_v46 = vpop.f32.mrf.mxu2 }
 0x461   : > { %v6691_v6 = vadd.f32 %v6690_v0, %v17446_v25  ;;  %v14782_v24 = vadd.f32 %v7310_v46, %v7102_v53  ;;  %v17448_v53 = vld [vmem:[#allocation59_spill] sm:$0xff] }
 0x462   : > { %v7103_v18 = vpop.f32.mrf.mxu1  ;;  %v6902_v62 = vpop.f32.mrf.mxu0 }
 0x463   : > { %17447 = vst [vmem:[#allocation58_spill] sm:$0xff] %v14782_v24  ;;  %v6900_v32 = vadd.f32 %v6899_v59, %v6691_v6  ;;  %v7104_v15 = vadd.f32 %v7103_v18, %v6895_v61  ;;  %v12332_v6 = vld [vmem:[%s12805_s18 + $0xbc4] sm:$0xf] }
 0x464   : > { %v12340_v18 = vld [vmem:[%s12805_s18 + $0xc00] sm:$0xf0] }
 0x465   : > { %6732 = vmatmul.bf16.gmra.mxu3 %v11004_v16  ;;  %6941 = vmatmul.bf16.gmra.mxu0 %v11008_v2  ;;  %v11061_v16 = vld [vmem:[%s12805_s18 + $0xbfc] sm:$0xf0]  ;;  %v11067_v2 = vld [vmem:[%s12805_s18 + $0xbc8] sm:$0xf] }
 0x466   : > { %v11064_v14 = vor.u32 %v12332_v6, %v11061_v16  ;;  %v11068_v58 = vor.u32 %v12340_v18, %v11067_v2 }
 0x468   : > { %v6693_v35 = vpop.f32.mrf.mxu3  ;;  %v7312_v0 = vpop.f32.mrf.mxu2 }
 0x469   : > { %v6694_v46 = vadd.f32 %v6693_v35, %v17448_v53  ;;  %v14789_v4 = vadd.f32 %v7312_v0, %v7104_v15  ;;  %v17450_v15 = vld [vmem:[#allocation63_spill] sm:$0xff] }
 0x46a   : > { %v7106_v59 = vpop.f32.mrf.mxu1  ;;  %v6904_v61 = vpop.f32.mrf.mxu0 }
 0x46b   : > { %17449 = vst [vmem:[#allocation26_spill] sm:$0xff] %v14789_v4  ;;  %v6903_v57 = vadd.f32 %v6902_v62, %v6694_v46  ;;  %v7107_v25 = vadd.f32 %v7106_v59, %v6898_v29  ;;  %v12318_v46 = vld [vmem:[%s12805_s18 + $0xb54] sm:$0xf] }
 0x46c   : > { %v12326_v59 = vld [vmem:[%s12805_s18 + $0xb90] sm:$0xf0] }
 0x46d   : > { %7145 = vmatmul.bf16.gmra.mxu1 %v10952_v11  ;;  %7354 = vmatmul.bf16.gmra.mxu2 %v10956_v55  ;;  %v11009_v11 = vld [vmem:[%s12805_s18 + $0xb8c] sm:$0xf0]  ;;  %v11015_v55 = vld [vmem:[%s12805_s18 + $0xb58] sm:$0xf] }
 0x46e   : > { %v11012_v16 = vor.u32 %v12318_v46, %v11009_v11  ;;  %v11016_v2 = vor.u32 %v12326_v59, %v11015_v55 }
 0x470   : > { %v6695_v24 = vpop.f32.mrf.mxu3  ;;  %v7315_v35 = vpop.f32.mrf.mxu2 }
 0x471   : > { %v6696_v0 = vadd.f32 %v6695_v24, %v17450_v15  ;;  %v14796_v28 = vadd.f32 %v7315_v35, %v7107_v25  ;;  %v17452_v25 = vld [vmem:[#allocation65_spill] sm:$0xff] }
 0x472   : > { %v7108_v62 = vpop.f32.mrf.mxu1  ;;  %v6907_v29 = vpop.f32.mrf.mxu0 }
 0x473   : > { %17451 = vst [vmem:[#allocation62_spill] sm:$0xff] %v14796_v28  ;;  %v6905_v9 = vadd.f32 %v6904_v61, %v6696_v0  ;;  %v7109_v53 = vadd.f32 %v7108_v62, %v6900_v32  ;;  %v12347_v0 = vld [vmem:[%s12805_s18 + $0xc3c] sm:$0xf] }
 0x474   : > { %v12355_v62 = vld [vmem:[%s12805_s18 + $0xc78] sm:$0xf0] }
 0x475   : > { %6737 = vmatmul.bf16.gmra.mxu3 %v11064_v14  ;;  %6946 = vmatmul.bf16.gmra.mxu0 %v11068_v58  ;;  %v11121_v14 = vld [vmem:[%s12805_s18 + $0xc74] sm:$0xf0]  ;;  %v11127_v58 = vld [vmem:[%s12805_s18 + $0xc40] sm:$0xf] }
 0x476   : > { %v11124_v11 = vor.u32 %v12347_v0, %v11121_v14  ;;  %v11128_v55 = vor.u32 %v12355_v62, %v11127_v58 }
 0x478   : > { %v6698_v4 = vpop.f32.mrf.mxu3  ;;  %v7317_v24 = vpop.f32.mrf.mxu2 }
 0x479   : > { %v6699_v35 = vadd.f32 %v6698_v4, %v17452_v25  ;;  %v14803_v6 = vadd.f32 %v7317_v24, %v7109_v53  ;;  %v17454_v53 = vld [vmem:[#allocation70_spill] sm:$0xff] }
 0x47a   : > { %v7111_v61 = vpop.f32.mrf.mxu1  ;;  %v6909_v32 = vpop.f32.mrf.mxu0 }
 0x47b   : > { %17453 = vst [vmem:[#allocation28_spill] sm:$0xff] %v14803_v6  ;;  %v6908_v18 = vadd.f32 %v6907_v29, %v6699_v35  ;;  %v7112_v15 = vadd.f32 %v7111_v61, %v6903_v57  ;;  %v12333_v35 = vld [vmem:[%s12805_s18 + $0xbcc] sm:$0xf] }
 0x47c   : > { %v12341_v61 = vld [vmem:[%s12805_s18 + $0xc08] sm:$0xf0] }
 0x47d   : > { %7150 = vmatmul.bf16.gmra.mxu1 %v11012_v16  ;;  %7359 = vmatmul.bf16.gmra.mxu2 %v11016_v2  ;;  %v11069_v16 = vld [vmem:[%s12805_s18 + $0xc04] sm:$0xf0]  ;;  %v11075_v2 = vld [vmem:[%s12805_s18 + $0xbd0] sm:$0xf] }
 0x47e   : > { %v11072_v14 = vor.u32 %v12333_v35, %v11069_v16  ;;  %v11076_v58 = vor.u32 %v12341_v61, %v11075_v2 }
 0x480   : > { %v6700_v28 = vpop.f32.mrf.mxu3  ;;  %v7320_v4 = vpop.f32.mrf.mxu2 }
 0x481   : > { %v6701_v24 = vadd.f32 %v6700_v28, %v17454_v53  ;;  %v14810_v46 = vadd.f32 %v7320_v4, %v7112_v15  ;;  %v17456_v15 = vld [vmem:[#allocation74_spill] sm:$0xff] }
 0x482   : > { %v7113_v29 = vpop.f32.mrf.mxu1  ;;  %v6912_v57 = vpop.f32.mrf.mxu0 }
 0x483   : > { %17455 = vst [vmem:[#allocation64_spill] sm:$0xff] %v14810_v46  ;;  %v6910_v59 = vadd.f32 %v6909_v32, %v6701_v24  ;;  %v7114_v25 = vadd.f32 %v7113_v29, %v6905_v9  ;;  %v12362_v24 = vld [vmem:[%s12805_s18 + $0xcb4] sm:$0xf] }
 0x484   : > { %v12370_v29 = vld [vmem:[%s12805_s18 + $0xcf0] sm:$0xf0] }
 0x485   : > { %6742 = vmatmul.bf16.gmra.mxu3 %v11124_v11  ;;  %6951 = vmatmul.bf16.gmra.mxu0 %v11128_v55  ;;  %v11181_v11 = vld [vmem:[%s12805_s18 + $0xcec] sm:$0xf0]  ;;  %v11187_v55 = vld [vmem:[%s12805_s18 + $0xcb8] sm:$0xf] }
 0x486   : > { %v11184_v16 = vor.u32 %v12362_v24, %v11181_v11  ;;  %v11188_v2 = vor.u32 %v12370_v29, %v11187_v55 }
 0x488   : > { %v6703_v6 = vpop.f32.mrf.mxu3  ;;  %v7322_v28 = vpop.f32.mrf.mxu2 }
 0x489   : > { %v6704_v4 = vadd.f32 %v6703_v6, %v17456_v15  ;;  %v14817_v0 = vadd.f32 %v7322_v28, %v7114_v25  ;;  %v17458_v25 = vld [vmem:[#allocation75_spill] sm:$0xff] }
 0x48a   : > { %v7116_v32 = vpop.f32.mrf.mxu1  ;;  %v6914_v9 = vpop.f32.mrf.mxu0 }
 0x48b   : > { %17457 = vst [vmem:[#allocation30_spill] sm:$0xff] %v14817_v0  ;;  %v6913_v62 = vadd.f32 %v6912_v57, %v6704_v4  ;;  %v7117_v53 = vadd.f32 %v7116_v32, %v6908_v18  ;;  %v12348_v4 = vld [vmem:[%s12805_s18 + $0xc44] sm:$0xf] }
 0x48c   : > { %v12356_v32 = vld [vmem:[%s12805_s18 + $0xc80] sm:$0xf0] }
 0x48d   : > { %7155 = vmatmul.bf16.gmra.mxu1 %v11072_v14  ;;  %7364 = vmatmul.bf16.gmra.mxu2 %v11076_v58  ;;  %v11129_v14 = vld [vmem:[%s12805_s18 + $0xc7c] sm:$0xf0]  ;;  %v11135_v58 = vld [vmem:[%s12805_s18 + $0xc48] sm:$0xf] }
 0x48e   : > { %v11132_v11 = vor.u32 %v12348_v4, %v11129_v14  ;;  %v11136_v55 = vor.u32 %v12356_v32, %v11135_v58 }
 0x490   : > { %v6705_v46 = vpop.f32.mrf.mxu3  ;;  %v7325_v6 = vpop.f32.mrf.mxu2 }
 0x491   : > { %v6706_v28 = vadd.f32 %v6705_v46, %v17458_v25  ;;  %v14824_v35 = vadd.f32 %v7325_v6, %v7117_v53  ;;  %v17460_v53 = vld [vmem:[#allocation78_spill] sm:$0xff] }
 0x492   : > { %v7118_v57 = vpop.f32.mrf.mxu1  ;;  %v6917_v18 = vpop.f32.mrf.mxu0 }
 0x493   : > { %17459 = vst [vmem:[#allocation68_spill] sm:$0xff] %v14824_v35  ;;  %v6915_v61 = vadd.f32 %v6914_v9, %v6706_v28  ;;  %v7119_v15 = vadd.f32 %v7118_v57, %v6910_v59  ;;  %v12377_v28 = vld [vmem:[%s12805_s18 + $0xd2c] sm:$0xf] }
 0x494   : > { %v12385_v57 = vld [vmem:[%s12805_s18 + $0xd68] sm:$0xf0] }
 0x495   : > { %6747 = vmatmul.bf16.gmra.mxu3 %v11184_v16  ;;  %6956 = vmatmul.bf16.gmra.mxu0 %v11188_v2  ;;  %v11241_v16 = vld [vmem:[%s12805_s18 + $0xd64] sm:$0xf0]  ;;  %v11247_v2 = vld [vmem:[%s12805_s18 + $0xd30] sm:$0xf] }
 0x496   : > { %v11244_v14 = vor.u32 %v12377_v28, %v11241_v16  ;;  %v11248_v58 = vor.u32 %v12385_v57, %v11247_v2 }
 0x498   : > { %v6708_v0 = vpop.f32.mrf.mxu3  ;;  %v7327_v46 = vpop.f32.mrf.mxu2 }
 0x499   : > { %v6709_v6 = vadd.f32 %v6708_v0, %v17460_v53  ;;  %v14831_v24 = vadd.f32 %v7327_v46, %v7119_v15  ;;  %v12363_v53 = vld [vmem:[%s12805_s18 + $0xcbc] sm:$0xf] }
 0x49a   : > { %v7121_v9 = vpop.f32.mrf.mxu1  ;;  %v6919_v59 = vpop.f32.mrf.mxu0 }
 0x49b   : > { %v6918_v29 = vadd.f32 %v6917_v18, %v6709_v6  ;;  %v7122_v25 = vadd.f32 %v7121_v9, %v6913_v62  ;;  %v11189_v6 = vld [vmem:[%s12805_s18 + $0xcf4] sm:$0xf0] }
 0x49c   : > { %v11192_v28 = vor.u32 %v12363_v53, %v11189_v6 }
 0x49d   : > { %7160 = vmatmul.bf16.gmra.mxu1 %v11132_v11  ;;  %7369 = vmatmul.bf16.gmra.mxu2 %v11136_v55  ;;  %v11195_v11 = vld [vmem:[%s12805_s18 + $0xcc0] sm:$0xf]  ;;  %v12371_v55 = vld [vmem:[%s12805_s18 + $0xcf8] sm:$0xf0] }
 0x49e   : > { %v11196_v16 = vor.u32 %v12371_v55, %v11195_v11 }
 0x4a0   : > { %v6710_v35 = vpop.f32.mrf.mxu3  ;;  %v7330_v0 = vpop.f32.mrf.mxu2 }
 0x4a1   : > { %v6711_v15 = vadd.f32 %v6710_v35, %v14233_v13  ;;  %v14838_v4 = vadd.f32 %v7330_v0, %v7122_v25  ;;  %v12392_v0 = vld [vmem:[%s12805_s18 + $0xda4] sm:$0xf] }
 0x4a2   : > { %v7123_v18 = vpop.f32.mrf.mxu1  ;;  %v6922_v62 = vpop.f32.mrf.mxu0 }
 0x4a3   : > { %v6920_v32 = vadd.f32 %v6919_v59, %v6711_v15  ;;  %v7124_v46 = vadd.f32 %v7123_v18, %v6915_v61  ;;  %v11301_v15 = vld [vmem:[%s12805_s18 + $0xddc] sm:$0xf0] }
 0x4a4   : > { %v11304_v6 = vor.u32 %v12392_v0, %v11301_v15 }
 0x4a5   : > { %6752 = vmatmul.bf16.gmra.mxu3 %v11244_v14  ;;  %6961 = vmatmul.bf16.gmra.mxu0 %v11248_v58  ;;  %v11307_v14 = vld [vmem:[%s12805_s18 + $0xda8] sm:$0xf]  ;;  %v12400_v58 = vld [vmem:[%s12805_s18 + $0xde0] sm:$0xf0] }
 0x4a6   : > { %v11308_v11 = vor.u32 %v12400_v58, %v11307_v14 }
 0x4a8   : > { %v6713_v9 = vpop.f32.mrf.mxu3  ;;  %v7332_v13 = vpop.f32.mrf.mxu2 }
 0x4a9   : > { %v6714_v35 = vadd.f32 %v6713_v9, %v14247_v51  ;;  %v14845_v25 = vadd.f32 %v7332_v13, %v7124_v46  ;;  %v12378_v13 = vld [vmem:[%s12805_s18 + $0xd34] sm:$0xf] }
 0x4aa   : > { %v7126_v59 = vpop.f32.mrf.mxu1  ;;  %v6924_v61 = vpop.f32.mrf.mxu0 }
 0x4ab   : > { %v6923_v2 = vadd.f32 %v6922_v62, %v6714_v35  ;;  %v7127_v57 = vadd.f32 %v7126_v59, %v6918_v29  ;;  %v11249_v35 = vld [vmem:[%s12805_s18 + $0xd6c] sm:$0xf0] }
 0x4ac   : > { %v11252_v15 = vor.u32 %v12378_v13, %v11249_v35 }
 0x4ad   : > { %7165 = vmatmul.bf16.gmra.mxu1 %v11192_v28  ;;  %7374 = vmatmul.bf16.gmra.mxu2 %v11196_v16  ;;  %v11255_v28 = vld [vmem:[%s12805_s18 + $0xd38] sm:$0xf]  ;;  %v12386_v16 = vld [vmem:[%s12805_s18 + $0xd70] sm:$0xf0] }
 0x4ae   : > { %v11256_v14 = vor.u32 %v12386_v16, %v11255_v28 }
 0x4b0   : > { %v6715_v18 = vpop.f32.mrf.mxu3  ;;  %v7335_v51 = vpop.f32.mrf.mxu2 }
 0x4b1   : > { %v6716_v46 = vadd.f32 %v6715_v18, %v14273_v39  ;;  %v14852_v53 = vadd.f32 %v7335_v51, %v7127_v57  ;;  %v12407_v51 = vld [vmem:[%s12805_s18 + $0xe1c] sm:$0xf] }
 0x4b2   : > { %v7128_v62 = vpop.f32.mrf.mxu1  ;;  %v6927_v29 = vpop.f32.mrf.mxu0 }
 0x4b3   : > { %v6925_v55 = vadd.f32 %v6924_v61, %v6716_v46  ;;  %v7129_v9 = vadd.f32 %v7128_v62, %v6920_v32  ;;  %v11361_v46 = vld [vmem:[%s12805_s18 + $0xe54] sm:$0xf0] }
 0x4b4   : > { %v11364_v35 = vor.u32 %v12407_v51, %v11361_v46 }
 0x4b5   : > { %6757 = vmatmul.bf16.gmra.mxu3 %v11304_v6  ;;  %6966 = vmatmul.bf16.gmra.mxu0 %v11308_v11  ;;  %v11367_v6 = vld [vmem:[%s12805_s18 + $0xe20] sm:$0xf]  ;;  %v12415_v11 = vld [vmem:[%s12805_s18 + $0xe58] sm:$0xf0] }
 0x4b6   : > { %v11368_v28 = vor.u32 %v12415_v11, %v11367_v6 }
 0x4b8   : > { %v6718_v59 = vpop.f32.mrf.mxu3  ;;  %v7337_v39 = vpop.f32.mrf.mxu2 }
 0x4b9   : > { %v6719_v57 = vadd.f32 %v6718_v59, %v14308_v12  ;;  %v14859_v0 = vadd.f32 %v7337_v39, %v7129_v9  ;;  %v12393_v39 = vld [vmem:[%s12805_s18 + $0xdac] sm:$0xf] }
 0x4ba   : > { %v7131_v61 = vpop.f32.mrf.mxu1  ;;  %v6929_v32 = vpop.f32.mrf.mxu0 }
 0x4bb   : > { %v6928_v58 = vadd.f32 %v6927_v29, %v6719_v57  ;;  %v7132_v18 = vadd.f32 %v7131_v61, %v6923_v2  ;;  %v11309_v57 = vld [vmem:[%s12805_s18 + $0xde4] sm:$0xf0] }
 0x4bc   : > { %v11312_v46 = vor.u32 %v12393_v39, %v11309_v57 }
 0x4bd   : > { %7170 = vmatmul.bf16.gmra.mxu1 %v11252_v15  ;;  %7379 = vmatmul.bf16.gmra.mxu2 %v11256_v14  ;;  %v11315_v15 = vld [vmem:[%s12805_s18 + $0xdb0] sm:$0xf]  ;;  %v12401_v14 = vld [vmem:[%s12805_s18 + $0xde8] sm:$0xf0] }
 0x4be   : > { %v11316_v6 = vor.u32 %v12401_v14, %v11315_v15 }
 0x4c0   : > { %v6720_v62 = vpop.f32.mrf.mxu3  ;;  %v7340_v12 = vpop.f32.mrf.mxu2 }
 0x4c1   : > { %v6721_v9 = vadd.f32 %v6720_v62, %v14342_v47  ;;  %v14866_v13 = vadd.f32 %v7340_v12, %v7132_v18  ;;  %v12422_v12 = vld [vmem:[%s12805_s18 + $0xe94] sm:$0xf] }
 0x4c2   : > { %v7133_v29 = vpop.f32.mrf.mxu1  ;;  %v6932_v2 = vpop.f32.mrf.mxu0 }
 0x4c3   : > { %v6930_v16 = vadd.f32 %v6929_v32, %v6721_v9  ;;  %v7134_v59 = vadd.f32 %v7133_v29, %v6925_v55  ;;  %v11421_v9 = vld [vmem:[%s12805_s18 + $0xecc] sm:$0xf0] }
 0x4c4   : > { %v11424_v57 = vor.u32 %v12422_v12, %v11421_v9 }
 0x4c5   : > { %6762 = vmatmul.bf16.gmra.mxu3 %v11364_v35  ;;  %6971 = vmatmul.bf16.gmra.mxu0 %v11368_v28  ;;  %v11427_v35 = vld [vmem:[%s12805_s18 + $0xe98] sm:$0xf]  ;;  %v12430_v28 = vld [vmem:[%s12805_s18 + $0xed0] sm:$0xf0] }
 0x4c6   : > { %v11428_v15 = vor.u32 %v12430_v28, %v11427_v35 }
 0x4c8   : > { %v6723_v61 = vpop.f32.mrf.mxu3  ;;  %v7342_v47 = vpop.f32.mrf.mxu2 }
 0x4c9   : > { %v6724_v18 = vadd.f32 %v6723_v61, %v14372_v40  ;;  %v14873_v51 = vadd.f32 %v7342_v47, %v7134_v59  ;;  %v12408_v47 = vld [vmem:[%s12805_s18 + $0xe24] sm:$0xf] }
 0x4ca   : > { %v7136_v32 = vpop.f32.mrf.mxu1  ;;  %v6934_v55 = vpop.f32.mrf.mxu0 }
 0x4cb   : > { %v6933_v11 = vadd.f32 %v6932_v2, %v6724_v18  ;;  %v7137_v62 = vadd.f32 %v7136_v32, %v6928_v58  ;;  %v11369_v18 = vld [vmem:[%s12805_s18 + $0xe5c] sm:$0xf0] }
 0x4cc   : > { %v11372_v9 = vor.u32 %v12408_v47, %v11369_v18 }
 0x4cd   : > { %7175 = vmatmul.bf16.gmra.mxu1 %v11312_v46  ;;  %7384 = vmatmul.bf16.gmra.mxu2 %v11316_v6  ;;  %v11375_v46 = vld [vmem:[%s12805_s18 + $0xe28] sm:$0xf]  ;;  %v12416_v6 = vld [vmem:[%s12805_s18 + $0xe60] sm:$0xf0] }
 0x4ce   : > { %v11376_v35 = vor.u32 %v12416_v6, %v11375_v46 }
 0x4d0   : > { %v6725_v29 = vpop.f32.mrf.mxu3  ;;  %v7345_v40 = vpop.f32.mrf.mxu2 }
 0x4d1   : > { %v6726_v59 = vadd.f32 %v6725_v29, %v14412_v37  ;;  %v14880_v39 = vadd.f32 %v7345_v40, %v7137_v62  ;;  %v12437_v40 = vld [vmem:[%s12805_s18 + $0xf0c] sm:$0xf] }
 0x4d2   : > { %v7138_v2 = vpop.f32.mrf.mxu1  ;;  %v6937_v58 = vpop.f32.mrf.mxu0 }
 0x4d3   : > { %v6935_v14 = vadd.f32 %v6934_v55, %v6726_v59  ;;  %v7139_v61 = vadd.f32 %v7138_v2, %v6930_v16  ;;  %v11481_v59 = vld [vmem:[%s12805_s18 + $0xf44] sm:$0xf0] }
 0x4d4   : > { %v11484_v18 = vor.u32 %v12437_v40, %v11481_v59 }
 0x4d5   : > { %6767 = vmatmul.bf16.gmra.mxu3 %v11424_v57  ;;  %6976 = vmatmul.bf16.gmra.mxu0 %v11428_v15  ;;  %v11487_v57 = vld [vmem:[%s12805_s18 + $0xf10] sm:$0xf]  ;;  %v12445_v15 = vld [vmem:[%s12805_s18 + $0xf48] sm:$0xf0] }
 0x4d6   : > { %v11488_v46 = vor.u32 %v12445_v15, %v11487_v57 }
 0x4d8   : > { %v6728_v32 = vpop.f32.mrf.mxu3  ;;  %v7347_v37 = vpop.f32.mrf.mxu2 }
 0x4d9   : > { %v6729_v62 = vadd.f32 %v6728_v32, %v14444_v56  ;;  %v14887_v12 = vadd.f32 %v7347_v37, %v7139_v61  ;;  %v12423_v37 = vld [vmem:[%s12805_s18 + $0xe9c] sm:$0xf] }
 0x4da   : > { %v7141_v55 = vpop.f32.mrf.mxu1  ;;  %v6939_v16 = vpop.f32.mrf.mxu0 }
 0x4db   : > { %v6938_v28 = vadd.f32 %v6937_v58, %v6729_v62  ;;  %v7142_v29 = vadd.f32 %v7141_v55, %v6933_v11  ;;  %v11429_v62 = vld [vmem:[%s12805_s18 + $0xed4] sm:$0xf0] }
 0x4dc   : > { %v11432_v59 = vor.u32 %v12423_v37, %v11429_v62 }
 0x4dd   : > { %7180 = vmatmul.bf16.gmra.mxu1 %v11372_v9  ;;  %7389 = vmatmul.bf16.gmra.mxu2 %v11376_v35  ;;  %v11435_v9 = vld [vmem:[%s12805_s18 + $0xea0] sm:$0xf]  ;;  %v12431_v35 = vld [vmem:[%s12805_s18 + $0xed8] sm:$0xf0] }
 0x4de   : > { %v11436_v57 = vor.u32 %v12431_v35, %v11435_v9 }
 0x4e0   : > { %v6730_v2 = vpop.f32.mrf.mxu3  ;;  %v7350_v56 = vpop.f32.mrf.mxu2 }
 0x4e1   : > { %v6731_v61 = vadd.f32 %v6730_v2, %v14463_v7  ;;  %v14894_v47 = vadd.f32 %v7350_v56, %v7142_v29  ;;  %v12452_v56 = vld [vmem:[%s12805_s18 + $0xf84] sm:$0xf] }
 0x4e2   : > { %v7143_v58 = vpop.f32.mrf.mxu1  ;;  %v6942_v11 = vpop.f32.mrf.mxu0 }
 0x4e3   : > { %v6940_v6 = vadd.f32 %v6939_v16, %v6731_v61  ;;  %v7144_v32 = vadd.f32 %v7143_v58, %v6935_v14  ;;  %v11541_v61 = vld [vmem:[%s12805_s18 + $0xfbc] sm:$0xf0] }
 0x4e4   : > { %v11544_v62 = vor.u32 %v12452_v56, %v11541_v61 }
 0x4e5   : > { %6772 = vmatmul.bf16.gmra.mxu3 %v11484_v18  ;;  %6981 = vmatmul.bf16.gmra.mxu0 %v11488_v46  ;;  %v11547_v18 = vld [vmem:[%s12805_s18 + $0xf88] sm:$0xf]  ;;  %v12460_v46 = vld [vmem:[%s12805_s18 + $0xfc0] sm:$0xf0] }
 0x4e6   : > { %v11548_v9 = vor.u32 %v12460_v46, %v11547_v18 }
 0x4e8   : > { %v6733_v55 = vpop.f32.mrf.mxu3  ;;  %v7352_v7 = vpop.f32.mrf.mxu2 }
 0x4e9   : > { %v6734_v29 = vadd.f32 %v6733_v55, %v14474_v38  ;;  %v14901_v40 = vadd.f32 %v7352_v7, %v7144_v32  ;;  %v12438_v7 = vld [vmem:[%s12805_s18 + $0xf14] sm:$0xf] }
 0x4ea   : > { %v7146_v16 = vpop.f32.mrf.mxu1  ;;  %v6944_v14 = vpop.f32.mrf.mxu0 }
 0x4eb   : > { %v6943_v15 = vadd.f32 %v6942_v11, %v6734_v29  ;;  %v7147_v2 = vadd.f32 %v7146_v16, %v6938_v28  ;;  %v11489_v29 = vld [vmem:[%s12805_s18 + $0xf4c] sm:$0xf0] }
 0x4ec   : > { %v11492_v61 = vor.u32 %v12438_v7, %v11489_v29 }
 0x4ed   : > { %7185 = vmatmul.bf16.gmra.mxu1 %v11432_v59  ;;  %7394 = vmatmul.bf16.gmra.mxu2 %v11436_v57  ;;  %v11495_v59 = vld [vmem:[%s12805_s18 + $0xf18] sm:$0xf]  ;;  %v12446_v57 = vld [vmem:[%s12805_s18 + $0xf50] sm:$0xf0] }
 0x4ee   : > { %v11496_v18 = vor.u32 %v12446_v57, %v11495_v59 }
 0x4f0   : > { %v6735_v58 = vpop.f32.mrf.mxu3  ;;  %v7355_v38 = vpop.f32.mrf.mxu2 }
 0x4f1   : > { %v6736_v32 = vadd.f32 %v6735_v58, %v14485_v60  ;;  %v14908_v37 = vadd.f32 %v7355_v38, %v7147_v2  ;;  %v12467_v38 = vld [vmem:[%s12805_s18 + $0xffc] sm:$0xf] }
 0x4f2   : > { %v7148_v11 = vpop.f32.mrf.mxu1  ;;  %v6947_v28 = vpop.f32.mrf.mxu0 }
 0x4f3   : > { %v6945_v35 = vadd.f32 %v6944_v14, %v6736_v32  ;;  %v7149_v55 = vadd.f32 %v7148_v11, %v6940_v6  ;;  %v11601_v32 = vld [vmem:[%s12805_s18 + $0x1034] sm:$0xf0] }
 0x4f4   : > { %v11604_v29 = vor.u32 %v12467_v38, %v11601_v32 }
 0x4f5   : > { %6777 = vmatmul.bf16.gmra.mxu3 %v11544_v62  ;;  %6986 = vmatmul.bf16.gmra.mxu0 %v11548_v9  ;;  %v11607_v62 = vld [vmem:[%s12805_s18 + $0x1000] sm:$0xf]  ;;  %v12475_v9 = vld [vmem:[%s12805_s18 + $0x1038] sm:$0xf0] }
 0x4f6   : > { %v11608_v59 = vor.u32 %v12475_v9, %v11607_v62 }
 0x4f8   : > { %v6738_v16 = vpop.f32.mrf.mxu3  ;;  %v7357_v60 = vpop.f32.mrf.mxu2 }
 0x4f9   : > { %v6739_v2 = vadd.f32 %v6738_v16, %v14496_v26  ;;  %v14915_v56 = vadd.f32 %v7357_v60, %v7149_v55  ;;  %v12453_v60 = vld [vmem:[%s12805_s18 + $0xf8c] sm:$0xf] }
 0x4fa   : > { %v7151_v14 = vpop.f32.mrf.mxu1  ;;  %v6949_v6 = vpop.f32.mrf.mxu0 }
 0x4fb   : > { %v6948_v46 = vadd.f32 %v6947_v28, %v6739_v2  ;;  %v7152_v58 = vadd.f32 %v7151_v14, %v6943_v15  ;;  %v11549_v2 = vld [vmem:[%s12805_s18 + $0xfc4] sm:$0xf0] }
 0x4fc   : > { %v11552_v32 = vor.u32 %v12453_v60, %v11549_v2 }
 0x4fd   : > { %7190 = vmatmul.bf16.gmra.mxu1 %v11492_v61  ;;  %7399 = vmatmul.bf16.gmra.mxu2 %v11496_v18  ;;  %v11555_v61 = vld [vmem:[%s12805_s18 + $0xf90] sm:$0xf]  ;;  %v12461_v18 = vld [vmem:[%s12805_s18 + $0xfc8] sm:$0xf0] }
 0x4fe   : > { %v11556_v62 = vor.u32 %v12461_v18, %v11555_v61 }
 0x500   : > { %v6740_v11 = vpop.f32.mrf.mxu3  ;;  %v7360_v26 = vpop.f32.mrf.mxu2 }
 0x501   : > { %v6741_v55 = vadd.f32 %v6740_v11, %v14506_v41  ;;  %v14922_v7 = vadd.f32 %v7360_v26, %v7152_v58  ;;  %v12482_v26 = vld [vmem:[%s12805_s18 + $0x1074] sm:$0xf] }
 0x502   : > { %v7153_v28 = vpop.f32.mrf.mxu1  ;;  %v6952_v15 = vpop.f32.mrf.mxu0 }
 0x503   : > { %v6950_v57 = vadd.f32 %v6949_v6, %v6741_v55  ;;  %v7154_v16 = vadd.f32 %v7153_v28, %v6945_v35  ;;  %v11661_v55 = vld [vmem:[%s12805_s18 + $0x10ac] sm:$0xf0] }
 0x504   : > { %v11664_v2 = vor.u32 %v12482_v26, %v11661_v55 }
 0x505   : > { %6782 = vmatmul.bf16.gmra.mxu3 %v11604_v29  ;;  %6991 = vmatmul.bf16.gmra.mxu0 %v11608_v59  ;;  %v11667_v29 = vld [vmem:[%s12805_s18 + $0x1078] sm:$0xf]  ;;  %v12490_v59 = vld [vmem:[%s12805_s18 + $0x10b0] sm:$0xf0] }
 0x506   : > { %v11668_v61 = vor.u32 %v12490_v59, %v11667_v29 }
 0x508   : > { %v6743_v14 = vpop.f32.mrf.mxu3  ;;  %v7362_v41 = vpop.f32.mrf.mxu2 }
 0x509   : > { %v6744_v58 = vadd.f32 %v6743_v14, %v14516_v34  ;;  %v14929_v38 = vadd.f32 %v7362_v41, %v7154_v16  ;;  %v12468_v41 = vld [vmem:[%s12805_s18 + $0x1004] sm:$0xf] }
 0x50a   : > { %v7156_v6 = vpop.f32.mrf.mxu1  ;;  %v6954_v35 = vpop.f32.mrf.mxu0 }
 0x50b   : > { %v6953_v9 = vadd.f32 %v6952_v15, %v6744_v58  ;;  %v7157_v11 = vadd.f32 %v7156_v6, %v6948_v46  ;;  %v11609_v58 = vld [vmem:[%s12805_s18 + $0x103c] sm:$0xf0] }
 0x50c   : > { %v11612_v55 = vor.u32 %v12468_v41, %v11609_v58 }
 0x50d   : > { %7195 = vmatmul.bf16.gmra.mxu1 %v11552_v32  ;;  %7404 = vmatmul.bf16.gmra.mxu2 %v11556_v62  ;;  %v11615_v32 = vld [vmem:[%s12805_s18 + $0x1008] sm:$0xf]  ;;  %v12476_v62 = vld [vmem:[%s12805_s18 + $0x1040] sm:$0xf0] }
 0x50e   : > { %v11616_v29 = vor.u32 %v12476_v62, %v11615_v32 }
 0x510   : > { %v6745_v28 = vpop.f32.mrf.mxu3  ;;  %v7365_v34 = vpop.f32.mrf.mxu2 }
 0x511   : > { %v6746_v16 = vadd.f32 %v6745_v28, %v14526_v27  ;;  %v14936_v60 = vadd.f32 %v7365_v34, %v7157_v11  ;;  %v12497_v34 = vld [vmem:[%s12805_s18 + $0x10ec] sm:$0xf] }
 0x512   : > { %v7158_v15 = vpop.f32.mrf.mxu1  ;;  %v6957_v46 = vpop.f32.mrf.mxu0 }
 0x513   : > { %v6955_v18 = vadd.f32 %v6954_v35, %v6746_v16  ;;  %v7159_v14 = vadd.f32 %v7158_v15, %v6950_v57  ;;  %v11721_v16 = vld [vmem:[%s12805_s18 + $0x1124] sm:$0xf0] }
 0x514   : > { %v11724_v58 = vor.u32 %v12497_v34, %v11721_v16 }
 0x515   : > { %6787 = vmatmul.bf16.gmra.mxu3 %v11664_v2  ;;  %6996 = vmatmul.bf16.gmra.mxu0 %v11668_v61  ;;  %v11727_v2 = vld [vmem:[%s12805_s18 + $0x10f0] sm:$0xf]  ;;  %v12505_v61 = vld [vmem:[%s12805_s18 + $0x1128] sm:$0xf0] }
 0x516   : > { %v11728_v32 = vor.u32 %v12505_v61, %v11727_v2 }
 0x518   : > { %v6748_v6 = vpop.f32.mrf.mxu3  ;;  %v7367_v27 = vpop.f32.mrf.mxu2 }
 0x519   : > { %v6749_v11 = vadd.f32 %v6748_v6, %v14536_v36  ;;  %v14943_v26 = vadd.f32 %v7367_v27, %v7159_v14  ;;  %v12483_v27 = vld [vmem:[%s12805_s18 + $0x107c] sm:$0xf] }
 0x51a   : > { %v7161_v35 = vpop.f32.mrf.mxu1  ;;  %v6959_v57 = vpop.f32.mrf.mxu0 }
 0x51b   : > { %v6958_v59 = vadd.f32 %v6957_v46, %v6749_v11  ;;  %v7162_v28 = vadd.f32 %v7161_v35, %v6953_v9  ;;  %v11669_v11 = vld [vmem:[%s12805_s18 + $0x10b4] sm:$0xf0] }
 0x51c   : > { %v11672_v16 = vor.u32 %v12483_v27, %v11669_v11 }
 0x51d   : > { %7200 = vmatmul.bf16.gmra.mxu1 %v11612_v55  ;;  %7409 = vmatmul.bf16.gmra.mxu2 %v11616_v29  ;;  %v11675_v55 = vld [vmem:[%s12805_s18 + $0x1080] sm:$0xf]  ;;  %v12491_v29 = vld [vmem:[%s12805_s18 + $0x10b8] sm:$0xf0] }
 0x51e   : > { %v11676_v2 = vor.u32 %v12491_v29, %v11675_v55 }
 0x520   : > { %v6750_v15 = vpop.f32.mrf.mxu3  ;;  %v7370_v36 = vpop.f32.mrf.mxu2 }
 0x521   : > { %v6751_v14 = vadd.f32 %v6750_v15, %v14546_v23  ;;  %v14950_v41 = vadd.f32 %v7370_v36, %v7162_v28  ;;  %v12512_v36 = vld [vmem:[%s12805_s18 + $0x1164] sm:$0xf] }
 0x522   : > { %v7163_v46 = vpop.f32.mrf.mxu1  ;;  %v6962_v9 = vpop.f32.mrf.mxu0 }
 0x523   : > { %v6960_v62 = vadd.f32 %v6959_v57, %v6751_v14  ;;  %v7164_v6 = vadd.f32 %v7163_v46, %v6955_v18  ;;  %v11781_v14 = vld [vmem:[%s12805_s18 + $0x119c] sm:$0xf0] }
 0x524   : > { %v11784_v11 = vor.u32 %v12512_v36, %v11781_v14 }
 0x525   : > { %6792 = vmatmul.bf16.gmra.mxu3 %v11724_v58  ;;  %7001 = vmatmul.bf16.gmra.mxu0 %v11728_v32  ;;  %v11787_v58 = vld [vmem:[%s12805_s18 + $0x1168] sm:$0xf]  ;;  %v12520_v32 = vld [vmem:[%s12805_s18 + $0x11a0] sm:$0xf0] }
 0x526   : > { %v11788_v55 = vor.u32 %v12520_v32, %v11787_v58 }
 0x528   : > { %v6753_v35 = vpop.f32.mrf.mxu3  ;;  %v7372_v23 = vpop.f32.mrf.mxu2 }
 0x529   : > { %v6754_v28 = vadd.f32 %v6753_v35, %v14556_v63  ;;  %v14957_v34 = vadd.f32 %v7372_v23, %v7164_v6  ;;  %v12498_v23 = vld [vmem:[%s12805_s18 + $0x10f4] sm:$0xf] }
 0x52a   : > { %v7166_v57 = vpop.f32.mrf.mxu1  ;;  %v6964_v18 = vpop.f32.mrf.mxu0 }
 0x52b   : > { %v6963_v61 = vadd.f32 %v6962_v9, %v6754_v28  ;;  %v7167_v15 = vadd.f32 %v7166_v57, %v6958_v59  ;;  %v11729_v28 = vld [vmem:[%s12805_s18 + $0x112c] sm:$0xf0] }
 0x52c   : > { %v11732_v14 = vor.u32 %v12498_v23, %v11729_v28 }
 0x52d   : > { %7205 = vmatmul.bf16.gmra.mxu1 %v11672_v16  ;;  %7414 = vmatmul.bf16.gmra.mxu2 %v11676_v2  ;;  %v11735_v16 = vld [vmem:[%s12805_s18 + $0x10f8] sm:$0xf]  ;;  %v12506_v2 = vld [vmem:[%s12805_s18 + $0x1130] sm:$0xf0] }
 0x52e   : > { %v11736_v58 = vor.u32 %v12506_v2, %v11735_v16 }
 0x530   : > { %v6755_v46 = vpop.f32.mrf.mxu3  ;;  %v7375_v63 = vpop.f32.mrf.mxu2 }
 0x531   : > { %v6756_v6 = vadd.f32 %v6755_v46, %v14564_v31  ;;  %v14964_v27 = vadd.f32 %v7375_v63, %v7167_v15  ;;  %v12527_v63 = vld [vmem:[%s12805_s18 + $0x11dc] sm:$0xf] }
 0x532   : > { %v7168_v9 = vpop.f32.mrf.mxu1  ;;  %v6967_v59 = vpop.f32.mrf.mxu0 }
 0x533   : > { %v6965_v29 = vadd.f32 %v6964_v18, %v6756_v6  ;;  %v7169_v35 = vadd.f32 %v7168_v9, %v6960_v62  ;;  %v11841_v6 = vld [vmem:[%s12805_s18 + $0x1214] sm:$0xf0] }
 0x534   : > { %v11844_v28 = vor.u32 %v12527_v63, %v11841_v6 }
 0x535   : > { %6797 = vmatmul.bf16.gmra.mxu3 %v11784_v11  ;;  %7006 = vmatmul.bf16.gmra.mxu0 %v11788_v55  ;;  %v11847_v11 = vld [vmem:[%s12805_s18 + $0x11e0] sm:$0xf]  ;;  %v12535_v55 = vld [vmem:[%s12805_s18 + $0x1218] sm:$0xf0] }
 0x536   : > { %v11848_v16 = vor.u32 %v12535_v55, %v11847_v11 }
 0x538   : > { %v6758_v57 = vpop.f32.mrf.mxu3  ;;  %v7377_v31 = vpop.f32.mrf.mxu2 }
 0x539   : > { %v6759_v15 = vadd.f32 %v6758_v57, %v14571_v30  ;;  %v14971_v36 = vadd.f32 %v7377_v31, %v7169_v35  ;;  %v12513_v31 = vld [vmem:[%s12805_s18 + $0x116c] sm:$0xf] }
 0x53a   : > { %v7171_v18 = vpop.f32.mrf.mxu1  ;;  %v6969_v62 = vpop.f32.mrf.mxu0 }
 0x53b   : > { %v6968_v32 = vadd.f32 %v6967_v59, %v6759_v15  ;;  %v7172_v46 = vadd.f32 %v7171_v18, %v6963_v61  ;;  %v11789_v15 = vld [vmem:[%s12805_s18 + $0x11a4] sm:$0xf0] }
 0x53c   : > { %v11792_v6 = vor.u32 %v12513_v31, %v11789_v15 }
 0x53d   : > { %7210 = vmatmul.bf16.gmra.mxu1 %v11732_v14  ;;  %7419 = vmatmul.bf16.gmra.mxu2 %v11736_v58  ;;  %v11795_v14 = vld [vmem:[%s12805_s18 + $0x1170] sm:$0xf]  ;;  %v12521_v58 = vld [vmem:[%s12805_s18 + $0x11a8] sm:$0xf0] }
 0x53e   : > { %v11796_v11 = vor.u32 %v12521_v58, %v11795_v14 }
 0x540   : > { %v6760_v9 = vpop.f32.mrf.mxu3  ;;  %v7380_v30 = vpop.f32.mrf.mxu2 }
 0x541   : > { %v6761_v35 = vadd.f32 %v6760_v9, %v14578_v21  ;;  %v14978_v23 = vadd.f32 %v7380_v30, %v7172_v46  ;;  %v17462_v46 = vld [vmem:[#allocation76_spill] sm:$0xff] }
 0x542   : > { %v7173_v59 = vpop.f32.mrf.mxu1  ;;  %v6972_v61 = vpop.f32.mrf.mxu0 }
 0x543   : > { %17461 = vst [vmem:[#allocation32_spill] sm:$0xff] %v14978_v23  ;;  %v6970_v2 = vadd.f32 %v6969_v62, %v6761_v35  ;;  %v7174_v57 = vadd.f32 %v7173_v59, %v6965_v29  ;;  %v12542_v35 = vld [vmem:[%s12805_s18 + $0x1254] sm:$0xf] }
 0x544   : > { %v12550_v59 = vld [vmem:[%s12805_s18 + $0x1290] sm:$0xf0] }
 0x545   : > { %6802 = vmatmul.bf16.gmra.mxu3 %v11844_v28  ;;  %7011 = vmatmul.bf16.gmra.mxu0 %v11848_v16  ;;  %v11901_v28 = vld [vmem:[%s12805_s18 + $0x128c] sm:$0xf0]  ;;  %v11907_v16 = vld [vmem:[%s12805_s18 + $0x1258] sm:$0xf] }
 0x546   : > { %v11904_v15 = vor.u32 %v12542_v35, %v11901_v28  ;;  %v11908_v14 = vor.u32 %v12550_v59, %v11907_v16 }
 0x548   : > { %v6763_v18 = vpop.f32.mrf.mxu3  ;;  %v7382_v21 = vpop.f32.mrf.mxu2 }
 0x549   : > { %v6764_v9 = vadd.f32 %v6763_v18, %v17462_v46  ;;  %v14985_v63 = vadd.f32 %v7382_v21, %v7174_v57  ;;  %v17464_v57 = vld [vmem:[#allocation79_spill] sm:$0xff] }
 0x54a   : > { %v7176_v62 = vpop.f32.mrf.mxu1  ;;  %v6974_v29 = vpop.f32.mrf.mxu0 }
 0x54b   : > { %17463 = vst [vmem:[#allocation73_spill] sm:$0xff] %v14985_v63  ;;  %v6973_v55 = vadd.f32 %v6972_v61, %v6764_v9  ;;  %v7177_v30 = vadd.f32 %v7176_v62, %v6968_v32  ;;  %v12528_v9 = vld [vmem:[%s12805_s18 + $0x11e4] sm:$0xf] }
 0x54c   : > { %v12536_v62 = vld [vmem:[%s12805_s18 + $0x1220] sm:$0xf0] }
 0x54d   : > { %7215 = vmatmul.bf16.gmra.mxu1 %v11792_v6  ;;  %7424 = vmatmul.bf16.gmra.mxu2 %v11796_v11  ;;  %v11849_v6 = vld [vmem:[%s12805_s18 + $0x121c] sm:$0xf0]  ;;  %v11855_v11 = vld [vmem:[%s12805_s18 + $0x11e8] sm:$0xf] }
 0x54e   : > { %v11852_v28 = vor.u32 %v12528_v9, %v11849_v6  ;;  %v11856_v16 = vor.u32 %v12536_v62, %v11855_v11 }
 0x550   : > { %v6765_v23 = vpop.f32.mrf.mxu3  ;;  %v7385_v18 = vpop.f32.mrf.mxu2 }
 0x551   : > { %v6766_v21 = vadd.f32 %v6765_v23, %v17464_v57  ;;  %v14992_v31 = vadd.f32 %v7385_v18, %v7177_v30  ;;  %v11959_v57 = vld [vmem:[%s12805_s18 + $0x1c] sm:$0xf] }
 0x552   : > { %v7178_v61 = vpop.f32.mrf.mxu1  ;;  %v6977_v32 = vpop.f32.mrf.mxu0 }
 0x553   : > { %v6975_v58 = vadd.f32 %v6974_v29, %v6766_v21  ;;  %v7179_v46 = vadd.f32 %v7178_v61, %v6970_v2  ;;  %v9577_v21 = vld [vmem:[%s12805_s18 + $0x54] sm:$0xf0] }
 0x554   : > { %v9580_v9 = vor.u32 %v11959_v57, %v9577_v21 }
 0x555   : > { %6807 = vmatmul.bf16.gmra.mxu3 %v11904_v15  ;;  %7016 = vmatmul.bf16.gmra.mxu0 %v11908_v14  ;;  %v9583_v15 = vld [vmem:[%s12805_s18 + $0x20] sm:$0xf]  ;;  %v11967_v14 = vld [vmem:[%s12805_s18 + $0x58] sm:$0xf0] }
 0x556   : > { %v9584_v6 = vor.u32 %v11967_v14, %v9583_v15 }
 0x558   : > { %v6768_v63 = vpop.f32.mrf.mxu3  ;;  %v7387_v23 = vpop.f32.mrf.mxu2 }
 0x559   : > { %v6769_v30 = vadd.f32 %v6768_v63, %v14235_v1  ;;  %v14999_v35 = vadd.f32 %v7387_v23, %v7179_v46  ;;  %v12543_v23 = vld [vmem:[%s12805_s18 + $0x125c] sm:$0xf] }
 0x55a   : > { %v7181_v29 = vpop.f32.mrf.mxu1  ;;  %v6979_v2 = vpop.f32.mrf.mxu0 }
 0x55b   : > { %v6978_v59 = vadd.f32 %v6977_v32, %v6769_v30  ;;  %v7182_v18 = vadd.f32 %v7181_v29, %v6973_v55  ;;  %v11909_v30 = vld [vmem:[%s12805_s18 + $0x1294] sm:$0xf0] }
 0x55c   : > { %v11912_v21 = vor.u32 %v12543_v23, %v11909_v30 }
 0x55d   : > { %7220 = vmatmul.bf16.gmra.mxu1 %v11852_v28  ;;  %7429 = vmatmul.bf16.gmra.mxu2 %v11856_v16  ;;  %v11915_v28 = vld [vmem:[%s12805_s18 + $0x1260] sm:$0xf]  ;;  %v12551_v16 = vld [vmem:[%s12805_s18 + $0x1298] sm:$0xf0] }
 0x55e   : > { %v11916_v15 = vor.u32 %v12551_v16, %v11915_v28 }
 0x560   : > { %v6770_v61 = vpop.f32.mrf.mxu3  ;;  %v7390_v1 = vpop.f32.mrf.mxu2 }
 0x561   : > { %v6771_v63 = vadd.f32 %v6770_v61, %v14249_v44  ;;  %v15006_v46 = vadd.f32 %v7390_v1, %v7182_v18  ;;  %v11974_v1 = vld [vmem:[%s12805_s18 + $0x94] sm:$0xf] }
 0x562   : > { %v7183_v32 = vpop.f32.mrf.mxu1  ;;  %v6982_v55 = vpop.f32.mrf.mxu0 }
 0x563   : > { %v6980_v11 = vadd.f32 %v6979_v2, %v6771_v63  ;;  %v7184_v62 = vadd.f32 %v7183_v32, %v6975_v58  ;;  %v9637_v63 = vld [vmem:[%s12805_s18 + $0xcc] sm:$0xf0] }
 0x564   : > { %v9640_v30 = vor.u32 %v11974_v1, %v9637_v63 }
 0x565   : > { %7448 = vmatmul.bf16.vlgmr.msra.gmra.mxu3 %v9580_v9  ;;  %7657 = vmatmul.bf16.vlgmr.msra.gmra.mxu0 %v9584_v6  ;;  %v9643_v9 = vld [vmem:[%s12805_s18 + $0x98] sm:$0xf]  ;;  %v11982_v6 = vld [vmem:[%s12805_s18 + $0xd0] sm:$0xf0] }
 0x566   : > { %v9644_v28 = vor.u32 %v11982_v6, %v9643_v9 }
 0x568   : > { %v6773_v29 = vpop.f32.mrf.mxu3  ;;  %v7392_v44 = vpop.f32.mrf.mxu2 }
 0x569   : > { %v6774_v18 = vadd.f32 %v6773_v29, %v14275_v52  ;;  %v15013_v57 = vadd.f32 %v7392_v44, %v7184_v62  ;;  %v11960_v44 = vld [vmem:[%s12805_s18 + $0x24] sm:$0xf] }
 0x56a   : > { %v7186_v2 = vpop.f32.mrf.mxu1  ;;  %v6984_v58 = vpop.f32.mrf.mxu0 }
 0x56b   : > { %v6983_v14 = vadd.f32 %v6982_v55, %v6774_v18  ;;  %v7187_v61 = vadd.f32 %v7186_v2, %v6978_v59  ;;  %v9585_v18 = vld [vmem:[%s12805_s18 + $0x5c] sm:$0xf0] }
 0x56c   : > { %v9588_v63 = vor.u32 %v11960_v44, %v9585_v18 }
 0x56d   : > { %7225 = vmatmul.bf16.gmra.mxu1 %v11912_v21  ;;  %7434 = vmatmul.bf16.gmra.mxu2 %v11916_v15  ;;  %v9591_v21 = vld [vmem:[%s12805_s18 + $0x28] sm:$0xf]  ;;  %v11968_v15 = vld [vmem:[%s12805_s18 + $0x60] sm:$0xf0] }
 0x56e   : > { %v9592_v9 = vor.u32 %v11968_v15, %v9591_v21 }
 0x570   : > { %v6775_v32 = vpop.f32.mrf.mxu3  ;;  %v7395_v52 = vpop.f32.mrf.mxu2 }
 0x571   : > { %v6776_v62 = vadd.f32 %v6775_v32, %v14310_v49  ;;  %v15020_v23 = vadd.f32 %v7395_v52, %v7187_v61  ;;  %v11989_v52 = vld [vmem:[%s12805_s18 + $0x10c] sm:$0xf] }
 0x572   : > { %v7188_v55 = vpop.f32.mrf.mxu1  ;;  %v6987_v59 = vpop.f32.mrf.mxu0 }
 0x573   : > { %v6985_v16 = vadd.f32 %v6984_v58, %v6776_v62  ;;  %v7189_v29 = vadd.f32 %v7188_v55, %v6980_v11  ;;  %v9697_v62 = vld [vmem:[%s12805_s18 + $0x144] sm:$0xf0] }
 0x574   : > { %v9700_v18 = vor.u32 %v11989_v52, %v9697_v62 }
 0x575   : > { %7453 = vmatmul.bf16.gmra.mxu3 %v9640_v30  ;;  %7662 = vmatmul.bf16.gmra.mxu0 %v9644_v28  ;;  %v9703_v30 = vld [vmem:[%s12805_s18 + $0x110] sm:$0xf]  ;;  %v11997_v28 = vld [vmem:[%s12805_s18 + $0x148] sm:$0xf0] }
 0x576   : > { %v9704_v21 = vor.u32 %v11997_v28, %v9703_v30 }
 0x578   : > { %v6778_v2 = vpop.f32.mrf.mxu3  ;;  %v7397_v49 = vpop.f32.mrf.mxu2 }
 0x579   : > { %v6779_v61 = vadd.f32 %v6778_v2, %v14344_v10  ;;  %v15027_v1 = vadd.f32 %v7397_v49, %v7189_v29  ;;  %v11975_v49 = vld [vmem:[%s12805_s18 + $0x9c] sm:$0xf] }
 0x57a   : > { %v7191_v58 = vpop.f32.mrf.mxu1  ;;  %v6989_v11 = vpop.f32.mrf.mxu0 }
 0x57b   : > { %v6988_v6 = vadd.f32 %v6987_v59, %v6779_v61  ;;  %v7192_v32 = vadd.f32 %v7191_v58, %v6983_v14  ;;  %v9645_v61 = vld [vmem:[%s12805_s18 + $0xd4] sm:$0xf0] }
 0x57c   : > { %v9648_v62 = vor.u32 %v11975_v49, %v9645_v61 }
 0x57d   : > { %7866 = vmatmul.bf16.vlgmr.msra.gmra.mxu1 %v9588_v63  ;;  %8075 = vmatmul.bf16.vlgmr.msra.gmra.mxu2 %v9592_v9  ;;  %v9651_v63 = vld [vmem:[%s12805_s18 + $0xa0] sm:$0xf]  ;;  %v11983_v9 = vld [vmem:[%s12805_s18 + $0xd8] sm:$0xf0] }
 0x57e   : > { %v9652_v30 = vor.u32 %v11983_v9, %v9651_v63 }
 0x580   : > { %v6780_v55 = vpop.f32.mrf.mxu3  ;;  %v7400_v10 = vpop.f32.mrf.mxu2 }
 0x581   : > { %v6781_v29 = vadd.f32 %v6780_v55, %v14374_v5  ;;  %v15034_v44 = vadd.f32 %v7400_v10, %v7192_v32  ;;  %v12004_v10 = vld [vmem:[%s12805_s18 + $0x184] sm:$0xf] }
 0x582   : > { %v7193_v59 = vpop.f32.mrf.mxu1  ;;  %v6992_v14 = vpop.f32.mrf.mxu0 }
 0x583   : > { %v6990_v15 = vadd.f32 %v6989_v11, %v6781_v29  ;;  %v7194_v2 = vadd.f32 %v7193_v59, %v6985_v16  ;;  %v9757_v29 = vld [vmem:[%s12805_s18 + $0x1bc] sm:$0xf0] }
 0x584   : > { %v9760_v61 = vor.u32 %v12004_v10, %v9757_v29 }
 0x585   : > { %7458 = vmatmul.bf16.gmra.mxu3 %v9700_v18  ;;  %7667 = vmatmul.bf16.gmra.mxu0 %v9704_v21  ;;  %v9763_v18 = vld [vmem:[%s12805_s18 + $0x188] sm:$0xf]  ;;  %v12012_v21 = vld [vmem:[%s12805_s18 + $0x1c0] sm:$0xf0] }
 0x586   : > { %v9764_v63 = vor.u32 %v12012_v21, %v9763_v18 }
 0x588   : > { %v6783_v58 = vpop.f32.mrf.mxu3  ;;  %v7402_v5 = vpop.f32.mrf.mxu2 }
 0x589   : > { %v6784_v32 = vadd.f32 %v6783_v58, %v14414_v17  ;;  %v15041_v52 = vadd.f32 %v7402_v5, %v7194_v2  ;;  %v11990_v5 = vld [vmem:[%s12805_s18 + $0x114] sm:$0xf] }
 0x58a   : > { %v7196_v11 = vpop.f32.mrf.mxu1  ;;  %v6994_v16 = vpop.f32.mrf.mxu0 }
 0x58b   : > { %v6993_v28 = vadd.f32 %v6992_v14, %v6784_v32  ;;  %v7197_v55 = vadd.f32 %v7196_v11, %v6988_v6  ;;  %v9705_v32 = vld [vmem:[%s12805_s18 + $0x14c] sm:$0xf0] }
 0x58c   : > { %v9708_v29 = vor.u32 %v11990_v5, %v9705_v32 }
 0x58d   : > { %7871 = vmatmul.bf16.gmra.mxu1 %v9648_v62  ;;  %8080 = vmatmul.bf16.gmra.mxu2 %v9652_v30  ;;  %v9711_v62 = vld [vmem:[%s12805_s18 + $0x118] sm:$0xf]  ;;  %v11998_v30 = vld [vmem:[%s12805_s18 + $0x150] sm:$0xf0] }
 0x58e   : > { %v9712_v18 = vor.u32 %v11998_v30, %v9711_v62 }
 0x590   : > { %v6785_v59 = vpop.f32.mrf.mxu3  ;;  %v7405_v17 = vpop.f32.mrf.mxu2 }
 0x591   : > { %v6786_v2 = vadd.f32 %v6785_v59, %v14446_v33  ;;  %v15048_v49 = vadd.f32 %v7405_v17, %v7197_v55  ;;  %v12019_v17 = vld [vmem:[%s12805_s18 + $0x1fc] sm:$0xf] }
 0x592   : > { %v7198_v14 = vpop.f32.mrf.mxu1  ;;  %v6997_v6 = vpop.f32.mrf.mxu0 }
 0x593   : > { %v6995_v9 = vadd.f32 %v6994_v16, %v6786_v2  ;;  %v7199_v58 = vadd.f32 %v7198_v14, %v6990_v15  ;;  %v9817_v2 = vld [vmem:[%s12805_s18 + $0x234] sm:$0xf0] }
 0x594   : > { %v9820_v32 = vor.u32 %v12019_v17, %v9817_v2 }
 0x595   : > { %7463 = vmatmul.bf16.gmra.mxu3 %v9760_v61  ;;  %7672 = vmatmul.bf16.gmra.mxu0 %v9764_v63  ;;  %v9823_v61 = vld [vmem:[%s12805_s18 + $0x200] sm:$0xf]  ;;  %v12027_v63 = vld [vmem:[%s12805_s18 + $0x238] sm:$0xf0] }
 0x596   : > { %v9824_v62 = vor.u32 %v12027_v63, %v9823_v61 }
 0x598   : > { %v6788_v11 = vpop.f32.mrf.mxu3  ;;  %v7407_v33 = vpop.f32.mrf.mxu2 }
 0x599   : > { %v6789_v55 = vadd.f32 %v6788_v11, %v14465_v3  ;;  %v15055_v10 = vadd.f32 %v7407_v33, %v7199_v58  ;;  %v12005_v33 = vld [vmem:[%s12805_s18 + $0x18c] sm:$0xf] }
 0x59a   : > { %v7201_v16 = vpop.f32.mrf.mxu1  ;;  %v6999_v15 = vpop.f32.mrf.mxu0 }
 0x59b   : > { %v6998_v21 = vadd.f32 %v6997_v6, %v6789_v55  ;;  %v7202_v59 = vadd.f32 %v7201_v16, %v6993_v28  ;;  %v9765_v55 = vld [vmem:[%s12805_s18 + $0x1c4] sm:$0xf0] }
 0x59c   : > { %v9768_v2 = vor.u32 %v12005_v33, %v9765_v55 }
 0x59d   : > { %7876 = vmatmul.bf16.gmra.mxu1 %v9708_v29  ;;  %8085 = vmatmul.bf16.gmra.mxu2 %v9712_v18  ;;  %v9771_v29 = vld [vmem:[%s12805_s18 + $0x190] sm:$0xf]  ;;  %v12013_v18 = vld [vmem:[%s12805_s18 + $0x1c8] sm:$0xf0] }
 0x59e   : > { %v9772_v61 = vor.u32 %v12013_v18, %v9771_v29 }
 0x5a0   : > { %v6790_v14 = vpop.f32.mrf.mxu3  ;;  %v7410_v3 = vpop.f32.mrf.mxu2 }
 0x5a1   : > { %v6791_v58 = vadd.f32 %v6790_v14, %v14476_v42  ;;  %v15062_v5 = vadd.f32 %v7410_v3, %v7202_v59  ;;  %v12034_v3 = vld [vmem:[%s12805_s18 + $0x274] sm:$0xf] }
 0x5a2   : > { %v7203_v6 = vpop.f32.mrf.mxu1  ;;  %v7002_v28 = vpop.f32.mrf.mxu0 }
 0x5a3   : > { %v7000_v30 = vadd.f32 %v6999_v15, %v6791_v58  ;;  %v7204_v11 = vadd.f32 %v7203_v6, %v6995_v9  ;;  %v9877_v58 = vld [vmem:[%s12805_s18 + $0x2ac] sm:$0xf0] }
 0x5a4   : > { %v9880_v55 = vor.u32 %v12034_v3, %v9877_v58 }
 0x5a5   : > { %7468 = vmatmul.bf16.gmra.mxu3 %v9820_v32  ;;  %7677 = vmatmul.bf16.gmra.mxu0 %v9824_v62  ;;  %v9883_v32 = vld [vmem:[%s12805_s18 + $0x278] sm:$0xf]  ;;  %v12042_v62 = vld [vmem:[%s12805_s18 + $0x2b0] sm:$0xf0] }
 0x5a6   : > { %v9884_v29 = vor.u32 %v12042_v62, %v9883_v32 }
 0x5a8   : > { %v6793_v16 = vpop.f32.mrf.mxu3  ;;  %v7412_v42 = vpop.f32.mrf.mxu2 }
 0x5a9   : > { %v6794_v59 = vadd.f32 %v6793_v16, %v14487_v45  ;;  %v15069_v17 = vadd.f32 %v7412_v42, %v7204_v11  ;;  %v12020_v42 = vld [vmem:[%s12805_s18 + $0x204] sm:$0xf] }
 0x5aa   : > { %v7206_v15 = vpop.f32.mrf.mxu1  ;;  %v7004_v9 = vpop.f32.mrf.mxu0 }
 0x5ab   : > { %v7003_v63 = vadd.f32 %v7002_v28, %v6794_v59  ;;  %v7207_v14 = vadd.f32 %v7206_v15, %v6998_v21  ;;  %v9825_v59 = vld [vmem:[%s12805_s18 + $0x23c] sm:$0xf0] }
 0x5ac   : > { %v9828_v58 = vor.u32 %v12020_v42, %v9825_v59 }
 0x5ad   : > { %7881 = vmatmul.bf16.gmra.mxu1 %v9768_v2  ;;  %8090 = vmatmul.bf16.gmra.mxu2 %v9772_v61  ;;  %v9831_v2 = vld [vmem:[%s12805_s18 + $0x208] sm:$0xf]  ;;  %v12028_v61 = vld [vmem:[%s12805_s18 + $0x240] sm:$0xf0] }
 0x5ae   : > { %v9832_v32 = vor.u32 %v12028_v61, %v9831_v2 }
 0x5b0   : > { %v6795_v6 = vpop.f32.mrf.mxu3  ;;  %v7415_v45 = vpop.f32.mrf.mxu2 }
 0x5b1   : > { %v6796_v11 = vadd.f32 %v6795_v6, %v14498_v19  ;;  %v15076_v33 = vadd.f32 %v7415_v45, %v7207_v14  ;;  %v12049_v45 = vld [vmem:[%s12805_s18 + $0x2ec] sm:$0xf] }
 0x5b2   : > { %v7208_v28 = vpop.f32.mrf.mxu1  ;;  %v7007_v21 = vpop.f32.mrf.mxu0 }
 0x5b3   : > { %v7005_v18 = vadd.f32 %v7004_v9, %v6796_v11  ;;  %v7209_v16 = vadd.f32 %v7208_v28, %v7000_v30  ;;  %v9937_v11 = vld [vmem:[%s12805_s18 + $0x324] sm:$0xf0] }
 0x5b4   : > { %v9940_v59 = vor.u32 %v12049_v45, %v9937_v11 }
 0x5b5   : > { %7473 = vmatmul.bf16.gmra.mxu3 %v9880_v55  ;;  %7682 = vmatmul.bf16.gmra.mxu0 %v9884_v29  ;;  %v9943_v55 = vld [vmem:[%s12805_s18 + $0x2f0] sm:$0xf]  ;;  %v12057_v29 = vld [vmem:[%s12805_s18 + $0x328] sm:$0xf0] }
 0x5b6   : > { %v9944_v2 = vor.u32 %v12057_v29, %v9943_v55 }
 0x5b8   : > { %v6798_v15 = vpop.f32.mrf.mxu3  ;;  %v7417_v19 = vpop.f32.mrf.mxu2 }
 0x5b9   : > { %v6799_v14 = vadd.f32 %v6798_v15, %v14508_v8  ;;  %v15083_v3 = vadd.f32 %v7417_v19, %v7209_v16  ;;  %v12035_v19 = vld [vmem:[%s12805_s18 + $0x27c] sm:$0xf] }
 0x5ba   : > { %v7211_v9 = vpop.f32.mrf.mxu1  ;;  %v7009_v30 = vpop.f32.mrf.mxu0 }
 0x5bb   : > { %v7008_v62 = vadd.f32 %v7007_v21, %v6799_v14  ;;  %v7212_v6 = vadd.f32 %v7211_v9, %v7003_v63  ;;  %v9885_v14 = vld [vmem:[%s12805_s18 + $0x2b4] sm:$0xf0] }
 0x5bc   : > { %v9888_v11 = vor.u32 %v12035_v19, %v9885_v14 }
 0x5bd   : > { %7886 = vmatmul.bf16.gmra.mxu1 %v9828_v58  ;;  %8095 = vmatmul.bf16.gmra.mxu2 %v9832_v32  ;;  %v9891_v58 = vld [vmem:[%s12805_s18 + $0x280] sm:$0xf]  ;;  %v12043_v32 = vld [vmem:[%s12805_s18 + $0x2b8] sm:$0xf0] }
 0x5be   : > { %v9892_v55 = vor.u32 %v12043_v32, %v9891_v58 }
 0x5c0   : > { %v6800_v28 = vpop.f32.mrf.mxu3  ;;  %v7420_v8 = vpop.f32.mrf.mxu2 }
 0x5c1   : > { %v6801_v16 = vadd.f32 %v6800_v28, %v14518_v48  ;;  %v15090_v42 = vadd.f32 %v7420_v8, %v7212_v6  ;;  %v12064_v8 = vld [vmem:[%s12805_s18 + $0x364] sm:$0xf] }
 0x5c2   : > { %v7213_v21 = vpop.f32.mrf.mxu1  ;;  %v7012_v63 = vpop.f32.mrf.mxu0 }
 0x5c3   : > { %v7010_v61 = vadd.f32 %v7009_v30, %v6801_v16  ;;  %v7214_v15 = vadd.f32 %v7213_v21, %v7005_v18  ;;  %v9997_v16 = vld [vmem:[%s12805_s18 + $0x39c] sm:$0xf0] }
 0x5c4   : > { %v10000_v14 = vor.u32 %v12064_v8, %v9997_v16 }
 0x5c5   : > { %7478 = vmatmul.bf16.gmra.mxu3 %v9940_v59  ;;  %7687 = vmatmul.bf16.gmra.mxu0 %v9944_v2  ;;  %v10003_v59 = vld [vmem:[%s12805_s18 + $0x368] sm:$0xf]  ;;  %v12072_v2 = vld [vmem:[%s12805_s18 + $0x3a0] sm:$0xf0] }
 0x5c6   : > { %v10004_v58 = vor.u32 %v12072_v2, %v10003_v59 }
 0x5c8   : > { %v6803_v9 = vpop.f32.mrf.mxu3  ;;  %v7422_v48 = vpop.f32.mrf.mxu2 }
 0x5c9   : > { %v6804_v6 = vadd.f32 %v6803_v9, %v14528_v50  ;;  %v15097_v45 = vadd.f32 %v7422_v48, %v7214_v15  ;;  %v12050_v48 = vld [vmem:[%s12805_s18 + $0x2f4] sm:$0xf] }
 0x5ca   : > { %v7216_v30 = vpop.f32.mrf.mxu1  ;;  %v7014_v18 = vpop.f32.mrf.mxu0 }
 0x5cb   : > { %v7013_v29 = vadd.f32 %v7012_v63, %v6804_v6  ;;  %v7217_v28 = vadd.f32 %v7216_v30, %v7008_v62  ;;  %v9945_v6 = vld [vmem:[%s12805_s18 + $0x32c] sm:$0xf0] }
 0x5cc   : > { %v9948_v16 = vor.u32 %v12050_v48, %v9945_v6 }
 0x5cd   : > { %7891 = vmatmul.bf16.gmra.mxu1 %v9888_v11  ;;  %8100 = vmatmul.bf16.gmra.mxu2 %v9892_v55  ;;  %v9951_v11 = vld [vmem:[%s12805_s18 + $0x2f8] sm:$0xf]  ;;  %v12058_v55 = vld [vmem:[%s12805_s18 + $0x330] sm:$0xf0] }
 0x5ce   : > { %v9952_v59 = vor.u32 %v12058_v55, %v9951_v11 }
 0x5d0   : > { %v6805_v21 = vpop.f32.mrf.mxu3  ;;  %v7425_v50 = vpop.f32.mrf.mxu2 }
 0x5d1   : > { %v6806_v15 = vadd.f32 %v6805_v21, %v14538_v43  ;;  %v15104_v19 = vadd.f32 %v7425_v50, %v7217_v28  ;;  %v12079_v50 = vld [vmem:[%s12805_s18 + $0x3dc] sm:$0xf] }
 0x5d2   : > { %v7218_v63 = vpop.f32.mrf.mxu1  ;;  %v7017_v62 = vpop.f32.mrf.mxu0 }
 0x5d3   : > { %v7015_v32 = vadd.f32 %v7014_v18, %v6806_v15  ;;  %v7219_v9 = vadd.f32 %v7218_v63, %v7010_v61  ;;  %v10057_v15 = vld [vmem:[%s12805_s18 + $0x414] sm:$0xf0] }
 0x5d4   : > { %v10060_v6 = vor.u32 %v12079_v50, %v10057_v15 }
 0x5d5   : > { %7483 = vmatmul.bf16.gmra.mxu3 %v10000_v14  ;;  %7692 = vmatmul.bf16.gmra.mxu0 %v10004_v58  ;;  %v10063_v14 = vld [vmem:[%s12805_s18 + $0x3e0] sm:$0xf]  ;;  %v12087_v58 = vld [vmem:[%s12805_s18 + $0x418] sm:$0xf0] }
 0x5d6   : > { %v10064_v11 = vor.u32 %v12087_v58, %v10063_v14 }
 0x5d8   : > { %v6808_v30 = vpop.f32.mrf.mxu3  ;;  %v7427_v43 = vpop.f32.mrf.mxu2 }
 0x5d9   : > { %v6809_v28 = vadd.f32 %v6808_v30, %v14548_v54  ;;  %v15111_v8 = vadd.f32 %v7427_v43, %v7219_v9  ;;  %v12065_v43 = vld [vmem:[%s12805_s18 + $0x36c] sm:$0xf] }
 0x5da   : > { %v7221_v18 = vpop.f32.mrf.mxu1  ;;  %v7019_v61 = vpop.f32.mrf.mxu0 }
 0x5db   : > { %v7018_v2 = vadd.f32 %v7017_v62, %v6809_v28  ;;  %v7222_v21 = vadd.f32 %v7221_v18, %v7013_v29  ;;  %v10005_v28 = vld [vmem:[%s12805_s18 + $0x3a4] sm:$0xf0] }
 0x5dc   : > { %v10008_v15 = vor.u32 %v12065_v43, %v10005_v28 }
 0x5dd   : > { %7896 = vmatmul.bf16.gmra.mxu1 %v9948_v16  ;;  %8105 = vmatmul.bf16.gmra.mxu2 %v9952_v59  ;;  %v10011_v16 = vld [vmem:[%s12805_s18 + $0x370] sm:$0xf]  ;;  %v12073_v59 = vld [vmem:[%s12805_s18 + $0x3a8] sm:$0xf0] }
 0x5de   : > { %v10012_v14 = vor.u32 %v12073_v59, %v10011_v16 }
 0x5e0   : > { %v6810_v63 = vpop.f32.mrf.mxu3  ;;  %v7430_v54 = vpop.f32.mrf.mxu2 }
 0x5e1   : > { %v6811_v9 = vadd.f32 %v6810_v63, %v14558_v22  ;;  %v15118_v48 = vadd.f32 %v7430_v54, %v7222_v21  ;;  %v12094_v54 = vld [vmem:[%s12805_s18 + $0x454] sm:$0xf] }
 0x5e2   : > { %v7223_v62 = vpop.f32.mrf.mxu1  ;;  %v7658_v29 = vpop.f32.mrf.mxu0 }
 0x5e3   : > { %v7020_v55 = vadd.f32 %v7019_v61, %v6811_v9  ;;  %v7224_v30 = vadd.f32 %v7223_v62, %v7015_v32  ;;  %v10117_v9 = vld [vmem:[%s12805_s18 + $0x48c] sm:$0xf0] }
 0x5e4   : > { %v10120_v28 = vor.u32 %v12094_v54, %v10117_v9  ;;  %v17469_v54 = vld [vmem:[#allocation54_spill] sm:$0xff] }
 0x5e5   : > { %7488 = vmatmul.bf16.gmra.mxu3 %v10060_v6  ;;  %7697 = vmatmul.bf16.gmra.mxu0 %v10064_v11  ;;  %v10123_v6 = vld [vmem:[%s12805_s18 + $0x458] sm:$0xf]  ;;  %v12102_v11 = vld [vmem:[%s12805_s18 + $0x490] sm:$0xf0] }
 0x5e6   : > { %v10124_v16 = vor.u32 %v12102_v11, %v10123_v6 }
 0x5e8   : > { %v7432_v18 = vpop.f32.mrf.mxu2  ;;  %v7449_v22 = vpop.f32.mrf.mxu3 }
 0x5e9   : > { %v15124_v21 = vadd.f32 %v7432_v18, %v7224_v30  ;;  %v7450_v50 = vadd.f32 %v7449_v22, %v14586_v20  ;;  %v17467_v20 = vld [vmem:[#allocation55_spill] sm:$0xff] }
 0x5ea   : > { %v7226_v61 = vpop.f32.mrf.mxu1  ;;  %v7660_v32 = vpop.f32.mrf.mxu0 }
 0x5eb   : > { %17465 = vst [vmem:[#allocation5_spill] sm:$0xff] %v15124_v21  ;;  %v7227_v58 = vadd.f32 %v7226_v61, %v7018_v2  ;;  %v7659_v63 = vadd.f32 %v7658_v29, %v7450_v50  ;;  %v12080_v50 = vld [vmem:[%s12805_s18 + $0x3e4] sm:$0xf] }
 0x5ec   : > { %v12088_v61 = vld [vmem:[%s12805_s18 + $0x420] sm:$0xf0] }
 0x5ed   : > { %7901 = vmatmul.bf16.gmra.mxu1 %v10008_v15  ;;  %8110 = vmatmul.bf16.gmra.mxu2 %v10012_v14  ;;  %v10065_v15 = vld [vmem:[%s12805_s18 + $0x41c] sm:$0xf0]  ;;  %v10071_v14 = vld [vmem:[%s12805_s18 + $0x3e8] sm:$0xf] }
 0x5ee   : > { %v10068_v6 = vor.u32 %v12080_v50, %v10065_v15  ;;  %v10072_v11 = vor.u32 %v12088_v61, %v10071_v14 }
 0x5f0   : > { %v7435_v62 = vpop.f32.mrf.mxu2  ;;  %v7451_v30 = vpop.f32.mrf.mxu3 }
 0x5f1   : > { %v15131_v18 = vadd.f32 %v7435_v62, %v7227_v58  ;;  %v7452_v43 = vadd.f32 %v7451_v30, %v17467_v20 }
 0x5f2   : > { %v7228_v2 = vpop.f32.mrf.mxu1  ;;  %v7663_v29 = vpop.f32.mrf.mxu0 }
 0x5f3   : > { %17466 = vst [vmem:[#allocation6_spill] sm:$0xff] %v15131_v18  ;;  %v7229_v59 = vadd.f32 %v7228_v2, %v7020_v55  ;;  %v7661_v22 = vadd.f32 %v7660_v32, %v7452_v43  ;;  %v12109_v43 = vld [vmem:[%s12805_s18 + $0x4cc] sm:$0xf] }
 0x5f4   : > { %v12117_v2 = vld [vmem:[%s12805_s18 + $0x508] sm:$0xf0] }
 0x5f5   : > { %7493 = vmatmul.bf16.gmra.mxu3 %v10120_v28  ;;  %7702 = vmatmul.bf16.gmra.mxu0 %v10124_v16  ;;  %v10177_v28 = vld [vmem:[%s12805_s18 + $0x504] sm:$0xf0]  ;;  %v10183_v16 = vld [vmem:[%s12805_s18 + $0x4d0] sm:$0xf] }
 0x5f6   : > { %v10180_v15 = vor.u32 %v12109_v43, %v10177_v28  ;;  %v10184_v14 = vor.u32 %v12117_v2, %v10183_v16 }
 0x5f8   : > { %v7437_v58 = vpop.f32.mrf.mxu2  ;;  %v7454_v62 = vpop.f32.mrf.mxu3 }
 0x5f9   : > { %v15138_v18 = vadd.f32 %v7437_v58, %v7229_v59  ;;  %v7455_v9 = vadd.f32 %v7454_v62, %v17469_v54 }
 0x5fa   : > { %v7867_v55 = vpop.f32.mrf.mxu1  ;;  %v7665_v32 = vpop.f32.mrf.mxu0 }
 0x5fb   : > { %17468 = vst [vmem:[#allocation7_spill] sm:$0xff] %v15138_v18  ;;  %v7664_v30 = vadd.f32 %v7663_v29, %v7455_v9  ;;  %v7868_v20 = vadd.f32 %v7867_v55, %v7659_v63  ;;  %v17470_v18 = vld [vmem:[#allocation66_spill] sm:$0xff]  ;;  %v12095_v9 = vld [vmem:[%s12805_s18 + $0x45c] sm:$0xf] }
 0x5fc   : > { %v12103_v55 = vld [vmem:[%s12805_s18 + $0x498] sm:$0xf0] }
 0x5fd   : > { %7906 = vmatmul.bf16.gmra.mxu1 %v10068_v6  ;;  %8115 = vmatmul.bf16.gmra.mxu2 %v10072_v11  ;;  %v10125_v6 = vld [vmem:[%s12805_s18 + $0x494] sm:$0xf0]  ;;  %v10131_v11 = vld [vmem:[%s12805_s18 + $0x460] sm:$0xf] }
 0x5fe   : > { %v10128_v28 = vor.u32 %v12095_v9, %v10125_v6  ;;  %v10132_v16 = vor.u32 %v12103_v55, %v10131_v11 }
 0x600   : > { %v7456_v59 = vpop.f32.mrf.mxu3  ;;  %v8076_v58 = vpop.f32.mrf.mxu2 }
 0x601   : > { %v7457_v62 = vadd.f32 %v7456_v59, %v17470_v18  ;;  %v15146_v50 = vadd.f32 %v8076_v58, %v7868_v20  ;;  %v17472_v20 = vld [vmem:[#allocation67_spill] sm:$0xff] }
 0x602   : > { %v7869_v29 = vpop.f32.mrf.mxu1  ;;  %v7668_v63 = vpop.f32.mrf.mxu0 }
 0x603   : > { %17471 = vst [vmem:[#allocation8_spill] sm:$0xff] %v15146_v50  ;;  %v7666_v61 = vadd.f32 %v7665_v32, %v7457_v62  ;;  %v7870_v54 = vadd.f32 %v7869_v29, %v7661_v22  ;;  %v12124_v62 = vld [vmem:[%s12805_s18 + $0x544] sm:$0xf] }
 0x604   : > { %v12132_v29 = vld [vmem:[%s12805_s18 + $0x580] sm:$0xf0] }
 0x605   : > { %7498 = vmatmul.bf16.gmra.mxu3 %v10180_v15  ;;  %7707 = vmatmul.bf16.gmra.mxu0 %v10184_v14  ;;  %v10237_v15 = vld [vmem:[%s12805_s18 + $0x57c] sm:$0xf0]  ;;  %v10243_v14 = vld [vmem:[%s12805_s18 + $0x548] sm:$0xf] }
 0x606   : > { %v10240_v6 = vor.u32 %v12124_v62, %v10237_v15  ;;  %v10244_v11 = vor.u32 %v12132_v29, %v10243_v14 }
 0x608   : > { %v7459_v21 = vpop.f32.mrf.mxu3  ;;  %v8078_v18 = vpop.f32.mrf.mxu2 }
 0x609   : > { %v7460_v59 = vadd.f32 %v7459_v21, %v17472_v20  ;;  %v15153_v43 = vadd.f32 %v8078_v18, %v7870_v54  ;;  %v17474_v54 = vld [vmem:[#allocation10_spill] sm:$0xff] }
 0x60a   : > { %v7872_v32 = vpop.f32.mrf.mxu1  ;;  %v7670_v22 = vpop.f32.mrf.mxu0 }
 0x60b   : > { %17473 = vst [vmem:[#allocation9_spill] sm:$0xff] %v15153_v43  ;;  %v7669_v2 = vadd.f32 %v7668_v63, %v7460_v59  ;;  %v7873_v58 = vadd.f32 %v7872_v32, %v7664_v30  ;;  %v12110_v59 = vld [vmem:[%s12805_s18 + $0x4d4] sm:$0xf] }
 0x60c   : > { %v12118_v32 = vld [vmem:[%s12805_s18 + $0x510] sm:$0xf0] }
 0x60d   : > { %7911 = vmatmul.bf16.gmra.mxu1 %v10128_v28  ;;  %8120 = vmatmul.bf16.gmra.mxu2 %v10132_v16  ;;  %v10185_v28 = vld [vmem:[%s12805_s18 + $0x50c] sm:$0xf0]  ;;  %v10191_v16 = vld [vmem:[%s12805_s18 + $0x4d8] sm:$0xf] }
 0x60e   : > { %v10188_v15 = vor.u32 %v12110_v59, %v10185_v28  ;;  %v10192_v14 = vor.u32 %v12118_v32, %v10191_v16 }
 0x610   : > { %v7461_v50 = vpop.f32.mrf.mxu3  ;;  %v8081_v21 = vpop.f32.mrf.mxu2 }
 0x611   : > { %v7462_v18 = vadd.f32 %v7461_v50, %v17474_v54  ;;  %v15160_v9 = vadd.f32 %v8081_v21, %v7873_v58  ;;  %v17476_v58 = vld [vmem:[#allocation42_spill] sm:$0xff] }
 0x612   : > { %v7874_v63 = vpop.f32.mrf.mxu1  ;;  %v7673_v30 = vpop.f32.mrf.mxu0 }
 0x613   : > { %17475 = vst [vmem:[#allocation11_spill] sm:$0xff] %v15160_v9  ;;  %v7671_v55 = vadd.f32 %v7670_v22, %v7462_v18  ;;  %v7875_v20 = vadd.f32 %v7874_v63, %v7666_v61  ;;  %v12139_v18 = vld [vmem:[%s12805_s18 + $0x5bc] sm:$0xf] }
 0x614   : > { %v12147_v63 = vld [vmem:[%s12805_s18 + $0x5f8] sm:$0xf0] }
 0x615   : > { %7503 = vmatmul.bf16.gmra.mxu3 %v10240_v6  ;;  %7712 = vmatmul.bf16.gmra.mxu0 %v10244_v11  ;;  %v10297_v6 = vld [vmem:[%s12805_s18 + $0x5f4] sm:$0xf0]  ;;  %v10303_v11 = vld [vmem:[%s12805_s18 + $0x5c0] sm:$0xf] }
 0x616   : > { %v10300_v28 = vor.u32 %v12139_v18, %v10297_v6  ;;  %v10304_v16 = vor.u32 %v12147_v63, %v10303_v11 }
 0x618   : > { %v7464_v43 = vpop.f32.mrf.mxu3  ;;  %v8083_v50 = vpop.f32.mrf.mxu2 }
 0x619   : > { %v7465_v21 = vadd.f32 %v7464_v43, %v17476_v58  ;;  %v15167_v62 = vadd.f32 %v8083_v50, %v7875_v20  ;;  %v17478_v20 = vld [vmem:[#allocation60_spill] sm:$0xff] }
 0x61a   : > { %v7877_v22 = vpop.f32.mrf.mxu1  ;;  %v7675_v61 = vpop.f32.mrf.mxu0 }
 0x61b   : > { %17477 = vst [vmem:[#allocation13_spill] sm:$0xff] %v15167_v62  ;;  %v7674_v29 = vadd.f32 %v7673_v30, %v7465_v21  ;;  %v7878_v54 = vadd.f32 %v7877_v22, %v7669_v2  ;;  %v12125_v21 = vld [vmem:[%s12805_s18 + $0x54c] sm:$0xf] }
 0x61c   : > { %v12133_v22 = vld [vmem:[%s12805_s18 + $0x588] sm:$0xf0] }
 0x61d   : > { %7916 = vmatmul.bf16.gmra.mxu1 %v10188_v15  ;;  %8125 = vmatmul.bf16.gmra.mxu2 %v10192_v14  ;;  %v10245_v15 = vld [vmem:[%s12805_s18 + $0x584] sm:$0xf0]  ;;  %v10251_v14 = vld [vmem:[%s12805_s18 + $0x550] sm:$0xf] }
 0x61e   : > { %v10248_v6 = vor.u32 %v12125_v21, %v10245_v15  ;;  %v10252_v11 = vor.u32 %v12133_v22, %v10251_v14 }
 0x620   : > { %v7466_v9 = vpop.f32.mrf.mxu3  ;;  %v8086_v43 = vpop.f32.mrf.mxu2 }
 0x621   : > { %v7467_v50 = vadd.f32 %v7466_v9, %v17478_v20  ;;  %v15174_v59 = vadd.f32 %v8086_v43, %v7878_v54  ;;  %v17480_v54 = vld [vmem:[#allocation61_spill] sm:$0xff] }
 0x622   : > { %v7879_v30 = vpop.f32.mrf.mxu1  ;;  %v7678_v2 = vpop.f32.mrf.mxu0 }
 0x623   : > { %17479 = vst [vmem:[#allocation15_spill] sm:$0xff] %v15174_v59  ;;  %v7676_v32 = vadd.f32 %v7675_v61, %v7467_v50  ;;  %v7880_v58 = vadd.f32 %v7879_v30, %v7671_v55  ;;  %v12154_v50 = vld [vmem:[%s12805_s18 + $0x634] sm:$0xf] }
 0x624   : > { %v12162_v30 = vld [vmem:[%s12805_s18 + $0x670] sm:$0xf0] }
 0x625   : > { %7508 = vmatmul.bf16.gmra.mxu3 %v10300_v28  ;;  %7717 = vmatmul.bf16.gmra.mxu0 %v10304_v16  ;;  %v10357_v28 = vld [vmem:[%s12805_s18 + $0x66c] sm:$0xf0]  ;;  %v10363_v16 = vld [vmem:[%s12805_s18 + $0x638] sm:$0xf] }
 0x626   : > { %v10360_v15 = vor.u32 %v12154_v50, %v10357_v28  ;;  %v10364_v14 = vor.u32 %v12162_v30, %v10363_v16 }
 0x628   : > { %v7469_v62 = vpop.f32.mrf.mxu3  ;;  %v8088_v9 = vpop.f32.mrf.mxu2 }
 0x629   : > { %v7470_v43 = vadd.f32 %v7469_v62, %v17480_v54  ;;  %v15181_v18 = vadd.f32 %v8088_v9, %v7880_v58  ;;  %v17482_v58 = vld [vmem:[#allocation80_spill] sm:$0xff] }
 0x62a   : > { %v7882_v61 = vpop.f32.mrf.mxu1  ;;  %v7680_v55 = vpop.f32.mrf.mxu0 }
 0x62b   : > { %17481 = vst [vmem:[#allocation17_spill] sm:$0xff] %v15181_v18  ;;  %v7679_v63 = vadd.f32 %v7678_v2, %v7470_v43  ;;  %v7883_v20 = vadd.f32 %v7882_v61, %v7674_v29  ;;  %v12140_v43 = vld [vmem:[%s12805_s18 + $0x5c4] sm:$0xf] }
 0x62c   : > { %v12148_v61 = vld [vmem:[%s12805_s18 + $0x600] sm:$0xf0] }
 0x62d   : > { %7921 = vmatmul.bf16.gmra.mxu1 %v10248_v6  ;;  %8130 = vmatmul.bf16.gmra.mxu2 %v10252_v11  ;;  %v10305_v6 = vld [vmem:[%s12805_s18 + $0x5fc] sm:$0xf0]  ;;  %v10311_v11 = vld [vmem:[%s12805_s18 + $0x5c8] sm:$0xf] }
 0x62e   : > { %v10308_v28 = vor.u32 %v12140_v43, %v10305_v6  ;;  %v10312_v16 = vor.u32 %v12148_v61, %v10311_v11 }
 0x630   : > { %v7471_v59 = vpop.f32.mrf.mxu3  ;;  %v8091_v62 = vpop.f32.mrf.mxu2 }
 0x631   : > { %v7472_v9 = vadd.f32 %v7471_v59, %v17482_v58  ;;  %v15188_v21 = vadd.f32 %v8091_v62, %v7883_v20  ;;  %v17484_v20 = vld [vmem:[#allocation77_spill] sm:$0xff] }
 0x632   : > { %v7884_v2 = vpop.f32.mrf.mxu1  ;;  %v7683_v29 = vpop.f32.mrf.mxu0 }
 0x633   : > { %17483 = vst [vmem:[#allocation19_spill] sm:$0xff] %v15188_v21  ;;  %v7681_v22 = vadd.f32 %v7680_v55, %v7472_v9  ;;  %v7885_v54 = vadd.f32 %v7884_v2, %v7676_v32  ;;  %v12169_v9 = vld [vmem:[%s12805_s18 + $0x6ac] sm:$0xf] }
 0x634   : > { %v12177_v2 = vld [vmem:[%s12805_s18 + $0x6e8] sm:$0xf0] }
 0x635   : > { %7513 = vmatmul.bf16.gmra.mxu3 %v10360_v15  ;;  %7722 = vmatmul.bf16.gmra.mxu0 %v10364_v14  ;;  %v10417_v15 = vld [vmem:[%s12805_s18 + $0x6e4] sm:$0xf0]  ;;  %v10423_v14 = vld [vmem:[%s12805_s18 + $0x6b0] sm:$0xf] }
 0x636   : > { %v10420_v6 = vor.u32 %v12169_v9, %v10417_v15  ;;  %v10424_v11 = vor.u32 %v12177_v2, %v10423_v14 }
 0x638   : > { %v7474_v18 = vpop.f32.mrf.mxu3  ;;  %v8093_v59 = vpop.f32.mrf.mxu2 }
 0x639   : > { %v7475_v62 = vadd.f32 %v7474_v18, %v17484_v20  ;;  %v15195_v50 = vadd.f32 %v8093_v59, %v7885_v54  ;;  %v17486_v54 = vld [vmem:[#allocation69_spill] sm:$0xff] }
 0x63a   : > { %v7887_v55 = vpop.f32.mrf.mxu1  ;;  %v7685_v32 = vpop.f32.mrf.mxu0 }
 0x63b   : > { %17485 = vst [vmem:[#allocation21_spill] sm:$0xff] %v15195_v50  ;;  %v7684_v30 = vadd.f32 %v7683_v29, %v7475_v62  ;;  %v7888_v58 = vadd.f32 %v7887_v55, %v7679_v63  ;;  %v12155_v62 = vld [vmem:[%s12805_s18 + $0x63c] sm:$0xf] }
 0x63c   : > { %v12163_v55 = vld [vmem:[%s12805_s18 + $0x678] sm:$0xf0] }
 0x63d   : > { %7926 = vmatmul.bf16.gmra.mxu1 %v10308_v28  ;;  %8135 = vmatmul.bf16.gmra.mxu2 %v10312_v16  ;;  %v10365_v28 = vld [vmem:[%s12805_s18 + $0x674] sm:$0xf0]  ;;  %v10371_v16 = vld [vmem:[%s12805_s18 + $0x640] sm:$0xf] }
 0x63e   : > { %v10368_v15 = vor.u32 %v12155_v62, %v10365_v28  ;;  %v10372_v14 = vor.u32 %v12163_v55, %v10371_v16 }
 0x640   : > { %v7476_v21 = vpop.f32.mrf.mxu3  ;;  %v8096_v18 = vpop.f32.mrf.mxu2 }
 0x641   : > { %v7477_v59 = vadd.f32 %v7476_v21, %v17486_v54  ;;  %v15202_v43 = vadd.f32 %v8096_v18, %v7888_v58  ;;  %v17488_v58 = vld [vmem:[#allocation71_spill] sm:$0xff] }
 0x642   : > { %v7889_v29 = vpop.f32.mrf.mxu1  ;;  %v7688_v63 = vpop.f32.mrf.mxu0 }
 0x643   : > { %17487 = vst [vmem:[#allocation23_spill] sm:$0xff] %v15202_v43  ;;  %v7686_v61 = vadd.f32 %v7685_v32, %v7477_v59  ;;  %v7890_v20 = vadd.f32 %v7889_v29, %v7681_v22  ;;  %v12184_v59 = vld [vmem:[%s12805_s18 + $0x724] sm:$0xf] }
 0x644   : > { %v12192_v29 = vld [vmem:[%s12805_s18 + $0x760] sm:$0xf0] }
 0x645   : > { %7518 = vmatmul.bf16.gmra.mxu3 %v10420_v6  ;;  %7727 = vmatmul.bf16.gmra.mxu0 %v10424_v11  ;;  %v10477_v6 = vld [vmem:[%s12805_s18 + $0x75c] sm:$0xf0]  ;;  %v10483_v11 = vld [vmem:[%s12805_s18 + $0x728] sm:$0xf] }
 0x646   : > { %v10480_v28 = vor.u32 %v12184_v59, %v10477_v6  ;;  %v10484_v16 = vor.u32 %v12192_v29, %v10483_v11 }
 0x648   : > { %v7479_v50 = vpop.f32.mrf.mxu3  ;;  %v8098_v21 = vpop.f32.mrf.mxu2 }
 0x649   : > { %v7480_v18 = vadd.f32 %v7479_v50, %v17488_v58  ;;  %v15209_v9 = vadd.f32 %v8098_v21, %v7890_v20  ;;  %v17490_v20 = vld [vmem:[#allocation72_spill] sm:$0xff] }
 0x64a   : > { %v7892_v32 = vpop.f32.mrf.mxu1  ;;  %v7690_v22 = vpop.f32.mrf.mxu0 }
 0x64b   : > { %17489 = vst [vmem:[#allocation25_spill] sm:$0xff] %v15209_v9  ;;  %v7689_v2 = vadd.f32 %v7688_v63, %v7480_v18  ;;  %v7893_v54 = vadd.f32 %v7892_v32, %v7684_v30  ;;  %v12170_v18 = vld [vmem:[%s12805_s18 + $0x6b4] sm:$0xf] }
 0x64c   : > { %v12178_v32 = vld [vmem:[%s12805_s18 + $0x6f0] sm:$0xf0] }
 0x64d   : > { %7931 = vmatmul.bf16.gmra.mxu1 %v10368_v15  ;;  %8140 = vmatmul.bf16.gmra.mxu2 %v10372_v14  ;;  %v10425_v15 = vld [vmem:[%s12805_s18 + $0x6ec] sm:$0xf0]  ;;  %v10431_v14 = vld [vmem:[%s12805_s18 + $0x6b8] sm:$0xf] }
 0x64e   : > { %v10428_v6 = vor.u32 %v12170_v18, %v10425_v15  ;;  %v10432_v11 = vor.u32 %v12178_v32, %v10431_v14 }
 0x650   : > { %v7481_v43 = vpop.f32.mrf.mxu3  ;;  %v8101_v50 = vpop.f32.mrf.mxu2 }
 0x651   : > { %v7482_v21 = vadd.f32 %v7481_v43, %v17490_v20  ;;  %v15216_v62 = vadd.f32 %v8101_v50, %v7893_v54  ;;  %v17492_v54 = vld [vmem:[#allocation81_spill] sm:$0xff] }
 0x652   : > { %v7894_v63 = vpop.f32.mrf.mxu1  ;;  %v7693_v30 = vpop.f32.mrf.mxu0 }
 0x653   : > { %17491 = vst [vmem:[#allocation27_spill] sm:$0xff] %v15216_v62  ;;  %v7691_v55 = vadd.f32 %v7690_v22, %v7482_v21  ;;  %v7895_v58 = vadd.f32 %v7894_v63, %v7686_v61  ;;  %v12199_v21 = vld [vmem:[%s12805_s18 + $0x79c] sm:$0xf] }
 0x654   : > { %v12207_v63 = vld [vmem:[%s12805_s18 + $0x7d8] sm:$0xf0] }
 0x655   : > { %7523 = vmatmul.bf16.gmra.mxu3 %v10480_v28  ;;  %7732 = vmatmul.bf16.gmra.mxu0 %v10484_v16  ;;  %v10537_v28 = vld [vmem:[%s12805_s18 + $0x7d4] sm:$0xf0]  ;;  %v10543_v16 = vld [vmem:[%s12805_s18 + $0x7a0] sm:$0xf] }
 0x656   : > { %v10540_v15 = vor.u32 %v12199_v21, %v10537_v28  ;;  %v10544_v14 = vor.u32 %v12207_v63, %v10543_v16 }
 0x658   : > { %v7484_v9 = vpop.f32.mrf.mxu3  ;;  %v8103_v43 = vpop.f32.mrf.mxu2 }
 0x659   : > { %v7485_v50 = vadd.f32 %v7484_v9, %v17492_v54  ;;  %v15223_v59 = vadd.f32 %v8103_v43, %v7895_v58  ;;  %v17494_v58 = vld [vmem:[#allocation12_spill] sm:$0xff] }
 0x65a   : > { %v7897_v22 = vpop.f32.mrf.mxu1  ;;  %v7695_v61 = vpop.f32.mrf.mxu0 }
 0x65b   : > { %17493 = vst [vmem:[#allocation29_spill] sm:$0xff] %v15223_v59  ;;  %v7694_v29 = vadd.f32 %v7693_v30, %v7485_v50  ;;  %v7898_v20 = vadd.f32 %v7897_v22, %v7689_v2  ;;  %v12185_v50 = vld [vmem:[%s12805_s18 + $0x72c] sm:$0xf] }
 0x65c   : > { %v12193_v22 = vld [vmem:[%s12805_s18 + $0x768] sm:$0xf0] }
 0x65d   : > { %7936 = vmatmul.bf16.gmra.mxu1 %v10428_v6  ;;  %8145 = vmatmul.bf16.gmra.mxu2 %v10432_v11  ;;  %v10485_v6 = vld [vmem:[%s12805_s18 + $0x764] sm:$0xf0]  ;;  %v10491_v11 = vld [vmem:[%s12805_s18 + $0x730] sm:$0xf] }
 0x65e   : > { %v10488_v28 = vor.u32 %v12185_v50, %v10485_v6  ;;  %v10492_v16 = vor.u32 %v12193_v22, %v10491_v11 }
 0x660   : > { %v7486_v62 = vpop.f32.mrf.mxu3  ;;  %v8106_v9 = vpop.f32.mrf.mxu2 }
 0x661   : > { %v7487_v43 = vadd.f32 %v7486_v62, %v17494_v58  ;;  %v15230_v18 = vadd.f32 %v8106_v9, %v7898_v20  ;;  %v17496_v20 = vld [vmem:[#allocation44_spill] sm:$0xff] }
 0x662   : > { %v7899_v30 = vpop.f32.mrf.mxu1  ;;  %v7698_v2 = vpop.f32.mrf.mxu0 }
 0x663   : > { %17495 = vst [vmem:[#allocation31_spill] sm:$0xff] %v15230_v18  ;;  %v7696_v32 = vadd.f32 %v7695_v61, %v7487_v43  ;;  %v7900_v54 = vadd.f32 %v7899_v30, %v7691_v55  ;;  %v12214_v43 = vld [vmem:[%s12805_s18 + $0x814] sm:$0xf] }
 0x664   : > { %v12222_v30 = vld [vmem:[%s12805_s18 + $0x850] sm:$0xf0] }
 0x665   : > { %7528 = vmatmul.bf16.gmra.mxu3 %v10540_v15  ;;  %7737 = vmatmul.bf16.gmra.mxu0 %v10544_v14  ;;  %v10597_v15 = vld [vmem:[%s12805_s18 + $0x84c] sm:$0xf0]  ;;  %v10603_v14 = vld [vmem:[%s12805_s18 + $0x818] sm:$0xf] }
 0x666   : > { %v10600_v6 = vor.u32 %v12214_v43, %v10597_v15  ;;  %v10604_v11 = vor.u32 %v12222_v30, %v10603_v14 }
 0x668   : > { %v7489_v59 = vpop.f32.mrf.mxu3  ;;  %v8108_v62 = vpop.f32.mrf.mxu2 }
 0x669   : > { %v7490_v9 = vadd.f32 %v7489_v59, %v17496_v20  ;;  %v15237_v21 = vadd.f32 %v8108_v62, %v7900_v54  ;;  %v17498_v54 = vld [vmem:[#allocation14_spill] sm:$0xff] }
 0x66a   : > { %v7902_v61 = vpop.f32.mrf.mxu1  ;;  %v7700_v55 = vpop.f32.mrf.mxu0 }
 0x66b   : > { %17497 = vst [vmem:[#allocation33_spill] sm:$0xff] %v15237_v21  ;;  %v7699_v63 = vadd.f32 %v7698_v2, %v7490_v9  ;;  %v7903_v58 = vadd.f32 %v7902_v61, %v7694_v29  ;;  %v12200_v9 = vld [vmem:[%s12805_s18 + $0x7a4] sm:$0xf] }
 0x66c   : > { %v12208_v61 = vld [vmem:[%s12805_s18 + $0x7e0] sm:$0xf0] }
 0x66d   : > { %7941 = vmatmul.bf16.gmra.mxu1 %v10488_v28  ;;  %8150 = vmatmul.bf16.gmra.mxu2 %v10492_v16  ;;  %v10545_v28 = vld [vmem:[%s12805_s18 + $0x7dc] sm:$0xf0]  ;;  %v10551_v16 = vld [vmem:[%s12805_s18 + $0x7a8] sm:$0xf] }
 0x66e   : > { %v10548_v15 = vor.u32 %v12200_v9, %v10545_v28  ;;  %v10552_v14 = vor.u32 %v12208_v61, %v10551_v16 }
 0x670   : > { %v7491_v18 = vpop.f32.mrf.mxu3  ;;  %v8111_v59 = vpop.f32.mrf.mxu2 }
 0x671   : > { %v7492_v62 = vadd.f32 %v7491_v18, %v17498_v54  ;;  %v15244_v50 = vadd.f32 %v8111_v59, %v7903_v58  ;;  %v17500_v58 = vld [vmem:[#allocation46_spill] sm:$0xff] }
 0x672   : > { %v7904_v2 = vpop.f32.mrf.mxu1  ;;  %v7703_v29 = vpop.f32.mrf.mxu0 }
 0x673   : > { %17499 = vst [vmem:[#allocation34_spill] sm:$0xff] %v15244_v50  ;;  %v7701_v22 = vadd.f32 %v7700_v55, %v7492_v62  ;;  %v7905_v20 = vadd.f32 %v7904_v2, %v7696_v32  ;;  %v12229_v62 = vld [vmem:[%s12805_s18 + $0x88c] sm:$0xf] }
 0x674   : > { %v12237_v2 = vld [vmem:[%s12805_s18 + $0x8c8] sm:$0xf0] }
 0x675   : > { %7533 = vmatmul.bf16.gmra.mxu3 %v10600_v6  ;;  %7742 = vmatmul.bf16.gmra.mxu0 %v10604_v11  ;;  %v10657_v6 = vld [vmem:[%s12805_s18 + $0x8c4] sm:$0xf0]  ;;  %v10663_v11 = vld [vmem:[%s12805_s18 + $0x890] sm:$0xf] }
 0x676   : > { %v10660_v28 = vor.u32 %v12229_v62, %v10657_v6  ;;  %v10664_v16 = vor.u32 %v12237_v2, %v10663_v11 }
 0x678   : > { %v7494_v21 = vpop.f32.mrf.mxu3  ;;  %v8113_v18 = vpop.f32.mrf.mxu2 }
 0x679   : > { %v7495_v59 = vadd.f32 %v7494_v21, %v17500_v58  ;;  %v15251_v43 = vadd.f32 %v8113_v18, %v7905_v20  ;;  %v17502_v20 = vld [vmem:[#allocation16_spill] sm:$0xff] }
 0x67a   : > { %v7907_v55 = vpop.f32.mrf.mxu1  ;;  %v7705_v32 = vpop.f32.mrf.mxu0 }
 0x67b   : > { %17501 = vst [vmem:[#allocation35_spill] sm:$0xff] %v15251_v43  ;;  %v7704_v30 = vadd.f32 %v7703_v29, %v7495_v59  ;;  %v7908_v54 = vadd.f32 %v7907_v55, %v7699_v63  ;;  %v12215_v59 = vld [vmem:[%s12805_s18 + $0x81c] sm:$0xf] }
 0x67c   : > { %v12223_v55 = vld [vmem:[%s12805_s18 + $0x858] sm:$0xf0] }
 0x67d   : > { %7946 = vmatmul.bf16.gmra.mxu1 %v10548_v15  ;;  %8155 = vmatmul.bf16.gmra.mxu2 %v10552_v14  ;;  %v10605_v15 = vld [vmem:[%s12805_s18 + $0x854] sm:$0xf0]  ;;  %v10611_v14 = vld [vmem:[%s12805_s18 + $0x820] sm:$0xf] }
 0x67e   : > { %v10608_v6 = vor.u32 %v12215_v59, %v10605_v15  ;;  %v10612_v11 = vor.u32 %v12223_v55, %v10611_v14 }
 0x680   : > { %v7496_v50 = vpop.f32.mrf.mxu3  ;;  %v8116_v21 = vpop.f32.mrf.mxu2 }
 0x681   : > { %v7497_v18 = vadd.f32 %v7496_v50, %v17502_v20  ;;  %v15258_v9 = vadd.f32 %v8116_v21, %v7908_v54  ;;  %v17504_v54 = vld [vmem:[#allocation48_spill] sm:$0xff] }
 0x682   : > { %v7909_v29 = vpop.f32.mrf.mxu1  ;;  %v7708_v63 = vpop.f32.mrf.mxu0 }
 0x683   : > { %17503 = vst [vmem:[#allocation36_spill] sm:$0xff] %v15258_v9  ;;  %v7706_v61 = vadd.f32 %v7705_v32, %v7497_v18  ;;  %v7910_v58 = vadd.f32 %v7909_v29, %v7701_v22  ;;  %v12244_v18 = vld [vmem:[%s12805_s18 + $0x904] sm:$0xf] }
 0x684   : > { %v12252_v29 = vld [vmem:[%s12805_s18 + $0x940] sm:$0xf0] }
 0x685   : > { %7538 = vmatmul.bf16.gmra.mxu3 %v10660_v28  ;;  %7747 = vmatmul.bf16.gmra.mxu0 %v10664_v16  ;;  %v10717_v28 = vld [vmem:[%s12805_s18 + $0x93c] sm:$0xf0]  ;;  %v10723_v16 = vld [vmem:[%s12805_s18 + $0x908] sm:$0xf] }
 0x686   : > { %v10720_v15 = vor.u32 %v12244_v18, %v10717_v28  ;;  %v10724_v14 = vor.u32 %v12252_v29, %v10723_v16 }
 0x688   : > { %v7499_v43 = vpop.f32.mrf.mxu3  ;;  %v8118_v50 = vpop.f32.mrf.mxu2 }
 0x689   : > { %v7500_v21 = vadd.f32 %v7499_v43, %v17504_v54  ;;  %v15265_v62 = vadd.f32 %v8118_v50, %v7910_v58  ;;  %v17506_v58 = vld [vmem:[#allocation18_spill] sm:$0xff] }
 0x68a   : > { %v7912_v32 = vpop.f32.mrf.mxu1  ;;  %v7710_v22 = vpop.f32.mrf.mxu0 }
 0x68b   : > { %17505 = vst [vmem:[#allocation37_spill] sm:$0xff] %v15265_v62  ;;  %v7709_v2 = vadd.f32 %v7708_v63, %v7500_v21  ;;  %v7913_v20 = vadd.f32 %v7912_v32, %v7704_v30  ;;  %v12230_v21 = vld [vmem:[%s12805_s18 + $0x894] sm:$0xf] }
 0x68c   : > { %v12238_v32 = vld [vmem:[%s12805_s18 + $0x8d0] sm:$0xf0] }
 0x68d   : > { %7951 = vmatmul.bf16.gmra.mxu1 %v10608_v6  ;;  %8160 = vmatmul.bf16.gmra.mxu2 %v10612_v11  ;;  %v10665_v6 = vld [vmem:[%s12805_s18 + $0x8cc] sm:$0xf0]  ;;  %v10671_v11 = vld [vmem:[%s12805_s18 + $0x898] sm:$0xf] }
 0x68e   : > { %v10668_v28 = vor.u32 %v12230_v21, %v10665_v6  ;;  %v10672_v16 = vor.u32 %v12238_v32, %v10671_v11 }
 0x690   : > { %v7501_v9 = vpop.f32.mrf.mxu3  ;;  %v8121_v43 = vpop.f32.mrf.mxu2 }
 0x691   : > { %v7502_v50 = vadd.f32 %v7501_v9, %v17506_v58  ;;  %v15272_v59 = vadd.f32 %v8121_v43, %v7913_v20  ;;  %v17508_v20 = vld [vmem:[#allocation50_spill] sm:$0xff] }
 0x692   : > { %v7914_v63 = vpop.f32.mrf.mxu1  ;;  %v7713_v30 = vpop.f32.mrf.mxu0 }
 0x693   : > { %17507 = vst [vmem:[#allocation38_spill] sm:$0xff] %v15272_v59  ;;  %v7711_v55 = vadd.f32 %v7710_v22, %v7502_v50  ;;  %v7915_v54 = vadd.f32 %v7914_v63, %v7706_v61  ;;  %v12259_v50 = vld [vmem:[%s12805_s18 + $0x97c] sm:$0xf] }
 0x694   : > { %v12267_v63 = vld [vmem:[%s12805_s18 + $0x9b8] sm:$0xf0] }
 0x695   : > { %7543 = vmatmul.bf16.gmra.mxu3 %v10720_v15  ;;  %7752 = vmatmul.bf16.gmra.mxu0 %v10724_v14  ;;  %v10777_v15 = vld [vmem:[%s12805_s18 + $0x9b4] sm:$0xf0]  ;;  %v10783_v14 = vld [vmem:[%s12805_s18 + $0x980] sm:$0xf] }
 0x696   : > { %v10780_v6 = vor.u32 %v12259_v50, %v10777_v15  ;;  %v10784_v11 = vor.u32 %v12267_v63, %v10783_v14 }
 0x698   : > { %v7504_v62 = vpop.f32.mrf.mxu3  ;;  %v8123_v9 = vpop.f32.mrf.mxu2 }
 0x699   : > { %v7505_v43 = vadd.f32 %v7504_v62, %v17508_v20  ;;  %v15279_v18 = vadd.f32 %v8123_v9, %v7915_v54  ;;  %v17510_v54 = vld [vmem:[#allocation20_spill] sm:$0xff] }
 0x69a   : > { %v7917_v22 = vpop.f32.mrf.mxu1  ;;  %v7715_v61 = vpop.f32.mrf.mxu0 }
 0x69b   : > { %17509 = vst [vmem:[#allocation39_spill] sm:$0xff] %v15279_v18  ;;  %v7714_v29 = vadd.f32 %v7713_v30, %v7505_v43  ;;  %v7918_v58 = vadd.f32 %v7917_v22, %v7709_v2  ;;  %v12245_v43 = vld [vmem:[%s12805_s18 + $0x90c] sm:$0xf] }
 0x69c   : > { %v12253_v22 = vld [vmem:[%s12805_s18 + $0x948] sm:$0xf0] }
 0x69d   : > { %7956 = vmatmul.bf16.gmra.mxu1 %v10668_v28  ;;  %8165 = vmatmul.bf16.gmra.mxu2 %v10672_v16  ;;  %v10725_v28 = vld [vmem:[%s12805_s18 + $0x944] sm:$0xf0]  ;;  %v10731_v16 = vld [vmem:[%s12805_s18 + $0x910] sm:$0xf] }
 0x69e   : > { %v10728_v15 = vor.u32 %v12245_v43, %v10725_v28  ;;  %v10732_v14 = vor.u32 %v12253_v22, %v10731_v16 }
 0x6a0   : > { %v7506_v59 = vpop.f32.mrf.mxu3  ;;  %v8126_v62 = vpop.f32.mrf.mxu2 }
 0x6a1   : > { %v7507_v9 = vadd.f32 %v7506_v59, %v17510_v54  ;;  %v15286_v21 = vadd.f32 %v8126_v62, %v7918_v58  ;;  %v17512_v58 = vld [vmem:[#allocation52_spill] sm:$0xff] }
 0x6a2   : > { %v7919_v30 = vpop.f32.mrf.mxu1  ;;  %v7718_v2 = vpop.f32.mrf.mxu0 }
 0x6a3   : > { %17511 = vst [vmem:[#allocation40_spill] sm:$0xff] %v15286_v21  ;;  %v7716_v32 = vadd.f32 %v7715_v61, %v7507_v9  ;;  %v7920_v20 = vadd.f32 %v7919_v30, %v7711_v55  ;;  %v12274_v9 = vld [vmem:[%s12805_s18 + $0x9f4] sm:$0xf] }
 0x6a4   : > { %v12282_v30 = vld [vmem:[%s12805_s18 + $0xa30] sm:$0xf0] }
 0x6a5   : > { %7548 = vmatmul.bf16.gmra.mxu3 %v10780_v6  ;;  %7757 = vmatmul.bf16.gmra.mxu0 %v10784_v11  ;;  %v10837_v6 = vld [vmem:[%s12805_s18 + $0xa2c] sm:$0xf0]  ;;  %v10843_v11 = vld [vmem:[%s12805_s18 + $0x9f8] sm:$0xf] }
 0x6a6   : > { %v10840_v28 = vor.u32 %v12274_v9, %v10837_v6  ;;  %v10844_v16 = vor.u32 %v12282_v30, %v10843_v11 }
 0x6a8   : > { %v7509_v18 = vpop.f32.mrf.mxu3  ;;  %v8128_v59 = vpop.f32.mrf.mxu2 }
 0x6a9   : > { %v7510_v62 = vadd.f32 %v7509_v18, %v17512_v58  ;;  %v15293_v50 = vadd.f32 %v8128_v59, %v7920_v20  ;;  %v17514_v20 = vld [vmem:[#allocation22_spill] sm:$0xff] }
 0x6aa   : > { %v7922_v61 = vpop.f32.mrf.mxu1  ;;  %v7720_v55 = vpop.f32.mrf.mxu0 }
 0x6ab   : > { %17513 = vst [vmem:[#allocation41_spill] sm:$0xff] %v15293_v50  ;;  %v7719_v63 = vadd.f32 %v7718_v2, %v7510_v62  ;;  %v7923_v54 = vadd.f32 %v7922_v61, %v7714_v29  ;;  %v12260_v62 = vld [vmem:[%s12805_s18 + $0x984] sm:$0xf] }
 0x6ac   : > { %v12268_v61 = vld [vmem:[%s12805_s18 + $0x9c0] sm:$0xf0] }
 0x6ad   : > { %7961 = vmatmul.bf16.gmra.mxu1 %v10728_v15  ;;  %8170 = vmatmul.bf16.gmra.mxu2 %v10732_v14  ;;  %v10785_v15 = vld [vmem:[%s12805_s18 + $0x9bc] sm:$0xf0]  ;;  %v10791_v14 = vld [vmem:[%s12805_s18 + $0x988] sm:$0xf] }
 0x6ae   : > { %v10788_v6 = vor.u32 %v12260_v62, %v10785_v15  ;;  %v10792_v11 = vor.u32 %v12268_v61, %v10791_v14 }
 0x6b0   : > { %v7511_v21 = vpop.f32.mrf.mxu3  ;;  %v8131_v18 = vpop.f32.mrf.mxu2 }
 0x6b1   : > { %v7512_v59 = vadd.f32 %v7511_v21, %v17514_v20  ;;  %v15300_v43 = vadd.f32 %v8131_v18, %v7923_v54  ;;  %v17516_v54 = vld [vmem:[#allocation56_spill] sm:$0xff] }
 0x6b2   : > { %v7924_v2 = vpop.f32.mrf.mxu1  ;;  %v7723_v29 = vpop.f32.mrf.mxu0 }
 0x6b3   : > { %17515 = vst [vmem:[#allocation43_spill] sm:$0xff] %v15300_v43  ;;  %v7721_v22 = vadd.f32 %v7720_v55, %v7512_v59  ;;  %v7925_v58 = vadd.f32 %v7924_v2, %v7716_v32  ;;  %v12289_v59 = vld [vmem:[%s12805_s18 + $0xa6c] sm:$0xf] }
 0x6b4   : > { %v12297_v2 = vld [vmem:[%s12805_s18 + $0xaa8] sm:$0xf0] }
 0x6b5   : > { %7553 = vmatmul.bf16.gmra.mxu3 %v10840_v28  ;;  %7762 = vmatmul.bf16.gmra.mxu0 %v10844_v16  ;;  %v10897_v28 = vld [vmem:[%s12805_s18 + $0xaa4] sm:$0xf0]  ;;  %v10903_v16 = vld [vmem:[%s12805_s18 + $0xa70] sm:$0xf] }
 0x6b6   : > { %v10900_v15 = vor.u32 %v12289_v59, %v10897_v28  ;;  %v10904_v14 = vor.u32 %v12297_v2, %v10903_v16 }
 0x6b8   : > { %v7514_v50 = vpop.f32.mrf.mxu3  ;;  %v8133_v21 = vpop.f32.mrf.mxu2 }
 0x6b9   : > { %v7515_v18 = vadd.f32 %v7514_v50, %v17516_v54  ;;  %v15307_v9 = vadd.f32 %v8133_v21, %v7925_v58  ;;  %v17518_v58 = vld [vmem:[#allocation24_spill] sm:$0xff] }
 0x6ba   : > { %v7927_v55 = vpop.f32.mrf.mxu1  ;;  %v7725_v32 = vpop.f32.mrf.mxu0 }
 0x6bb   : > { %17517 = vst [vmem:[#allocation45_spill] sm:$0xff] %v15307_v9  ;;  %v7724_v30 = vadd.f32 %v7723_v29, %v7515_v18  ;;  %v7928_v20 = vadd.f32 %v7927_v55, %v7719_v63  ;;  %v12275_v18 = vld [vmem:[%s12805_s18 + $0x9fc] sm:$0xf] }
 0x6bc   : > { %v12283_v55 = vld [vmem:[%s12805_s18 + $0xa38] sm:$0xf0] }
 0x6bd   : > { %7966 = vmatmul.bf16.gmra.mxu1 %v10788_v6  ;;  %8175 = vmatmul.bf16.gmra.mxu2 %v10792_v11  ;;  %v10845_v6 = vld [vmem:[%s12805_s18 + $0xa34] sm:$0xf0]  ;;  %v10851_v11 = vld [vmem:[%s12805_s18 + $0xa00] sm:$0xf] }
 0x6be   : > { %v10848_v28 = vor.u32 %v12275_v18, %v10845_v6  ;;  %v10852_v16 = vor.u32 %v12283_v55, %v10851_v11 }
 0x6c0   : > { %v7516_v43 = vpop.f32.mrf.mxu3  ;;  %v8136_v50 = vpop.f32.mrf.mxu2 }
 0x6c1   : > { %v7517_v21 = vadd.f32 %v7516_v43, %v17518_v58  ;;  %v15314_v62 = vadd.f32 %v8136_v50, %v7928_v20  ;;  %v17520_v20 = vld [vmem:[#allocation58_spill] sm:$0xff] }
 0x6c2   : > { %v7929_v29 = vpop.f32.mrf.mxu1  ;;  %v7728_v63 = vpop.f32.mrf.mxu0 }
 0x6c3   : > { %17519 = vst [vmem:[#allocation47_spill] sm:$0xff] %v15314_v62  ;;  %v7726_v61 = vadd.f32 %v7725_v32, %v7517_v21  ;;  %v7930_v54 = vadd.f32 %v7929_v29, %v7721_v22  ;;  %v12304_v21 = vld [vmem:[%s12805_s18 + $0xae4] sm:$0xf] }
 0x6c4   : > { %v12312_v29 = vld [vmem:[%s12805_s18 + $0xb20] sm:$0xf0] }
 0x6c5   : > { %7558 = vmatmul.bf16.gmra.mxu3 %v10900_v15  ;;  %7767 = vmatmul.bf16.gmra.mxu0 %v10904_v14  ;;  %v10957_v15 = vld [vmem:[%s12805_s18 + $0xb1c] sm:$0xf0]  ;;  %v10963_v14 = vld [vmem:[%s12805_s18 + $0xae8] sm:$0xf] }
 0x6c6   : > { %v10960_v6 = vor.u32 %v12304_v21, %v10957_v15  ;;  %v10964_v11 = vor.u32 %v12312_v29, %v10963_v14 }
 0x6c8   : > { %v7519_v9 = vpop.f32.mrf.mxu3  ;;  %v8138_v43 = vpop.f32.mrf.mxu2 }
 0x6c9   : > { %v7520_v50 = vadd.f32 %v7519_v9, %v17520_v20  ;;  %v15321_v59 = vadd.f32 %v8138_v43, %v7930_v54  ;;  %v17522_v54 = vld [vmem:[#allocation26_spill] sm:$0xff] }
 0x6ca   : > { %v7932_v32 = vpop.f32.mrf.mxu1  ;;  %v7730_v22 = vpop.f32.mrf.mxu0 }
 0x6cb   : > { %17521 = vst [vmem:[#allocation49_spill] sm:$0xff] %v15321_v59  ;;  %v7729_v2 = vadd.f32 %v7728_v63, %v7520_v50  ;;  %v7933_v58 = vadd.f32 %v7932_v32, %v7724_v30  ;;  %v12290_v50 = vld [vmem:[%s12805_s18 + $0xa74] sm:$0xf] }
 0x6cc   : > { %v12298_v32 = vld [vmem:[%s12805_s18 + $0xab0] sm:$0xf0] }
 0x6cd   : > { %7971 = vmatmul.bf16.gmra.mxu1 %v10848_v28  ;;  %8180 = vmatmul.bf16.gmra.mxu2 %v10852_v16  ;;  %v10905_v28 = vld [vmem:[%s12805_s18 + $0xaac] sm:$0xf0]  ;;  %v10911_v16 = vld [vmem:[%s12805_s18 + $0xa78] sm:$0xf] }
 0x6ce   : > { %v10908_v15 = vor.u32 %v12290_v50, %v10905_v28  ;;  %v10912_v14 = vor.u32 %v12298_v32, %v10911_v16 }
 0x6d0   : > { %v7521_v62 = vpop.f32.mrf.mxu3  ;;  %v8141_v9 = vpop.f32.mrf.mxu2 }
 0x6d1   : > { %v7522_v43 = vadd.f32 %v7521_v62, %v17522_v54  ;;  %v15328_v18 = vadd.f32 %v8141_v9, %v7933_v58  ;;  %v17524_v58 = vld [vmem:[#allocation62_spill] sm:$0xff] }
 0x6d2   : > { %v7934_v63 = vpop.f32.mrf.mxu1  ;;  %v7733_v30 = vpop.f32.mrf.mxu0 }
 0x6d3   : > { %17523 = vst [vmem:[#allocation51_spill] sm:$0xff] %v15328_v18  ;;  %v7731_v55 = vadd.f32 %v7730_v22, %v7522_v43  ;;  %v7935_v20 = vadd.f32 %v7934_v63, %v7726_v61  ;;  %v12319_v43 = vld [vmem:[%s12805_s18 + $0xb5c] sm:$0xf] }
 0x6d4   : > { %v12327_v63 = vld [vmem:[%s12805_s18 + $0xb98] sm:$0xf0] }
 0x6d5   : > { %7563 = vmatmul.bf16.gmra.mxu3 %v10960_v6  ;;  %7772 = vmatmul.bf16.gmra.mxu0 %v10964_v11  ;;  %v11017_v6 = vld [vmem:[%s12805_s18 + $0xb94] sm:$0xf0]  ;;  %v11023_v11 = vld [vmem:[%s12805_s18 + $0xb60] sm:$0xf] }
 0x6d6   : > { %v11020_v28 = vor.u32 %v12319_v43, %v11017_v6  ;;  %v11024_v16 = vor.u32 %v12327_v63, %v11023_v11 }
 0x6d8   : > { %v7524_v59 = vpop.f32.mrf.mxu3  ;;  %v8143_v62 = vpop.f32.mrf.mxu2 }
 0x6d9   : > { %v7525_v9 = vadd.f32 %v7524_v59, %v17524_v58  ;;  %v15335_v21 = vadd.f32 %v8143_v62, %v7935_v20  ;;  %v17526_v20 = vld [vmem:[#allocation28_spill] sm:$0xff] }
 0x6da   : > { %v7937_v22 = vpop.f32.mrf.mxu1  ;;  %v7735_v61 = vpop.f32.mrf.mxu0 }
 0x6db   : > { %17525 = vst [vmem:[#allocation53_spill] sm:$0xff] %v15335_v21  ;;  %v7734_v29 = vadd.f32 %v7733_v30, %v7525_v9  ;;  %v7938_v54 = vadd.f32 %v7937_v22, %v7729_v2  ;;  %v12305_v9 = vld [vmem:[%s12805_s18 + $0xaec] sm:$0xf] }
 0x6dc   : > { %v12313_v22 = vld [vmem:[%s12805_s18 + $0xb28] sm:$0xf0] }
 0x6dd   : > { %7976 = vmatmul.bf16.gmra.mxu1 %v10908_v15  ;;  %8185 = vmatmul.bf16.gmra.mxu2 %v10912_v14  ;;  %v10965_v15 = vld [vmem:[%s12805_s18 + $0xb24] sm:$0xf0]  ;;  %v10971_v14 = vld [vmem:[%s12805_s18 + $0xaf0] sm:$0xf] }
 0x6de   : > { %v10968_v6 = vor.u32 %v12305_v9, %v10965_v15  ;;  %v10972_v11 = vor.u32 %v12313_v22, %v10971_v14 }
 0x6e0   : > { %v7526_v18 = vpop.f32.mrf.mxu3  ;;  %v8146_v59 = vpop.f32.mrf.mxu2 }
 0x6e1   : > { %v7527_v62 = vadd.f32 %v7526_v18, %v17526_v20  ;;  %v15342_v50 = vadd.f32 %v8146_v59, %v7938_v54  ;;  %v17528_v54 = vld [vmem:[#allocation64_spill] sm:$0xff] }
 0x6e2   : > { %v7939_v30 = vpop.f32.mrf.mxu1  ;;  %v7738_v2 = vpop.f32.mrf.mxu0 }
 0x6e3   : > { %17527 = vst [vmem:[#allocation57_spill] sm:$0xff] %v15342_v50  ;;  %v7736_v32 = vadd.f32 %v7735_v61, %v7527_v62  ;;  %v7940_v58 = vadd.f32 %v7939_v30, %v7731_v55  ;;  %v12334_v62 = vld [vmem:[%s12805_s18 + $0xbd4] sm:$0xf] }
 0x6e4   : > { %v12342_v30 = vld [vmem:[%s12805_s18 + $0xc10] sm:$0xf0] }
 0x6e5   : > { %7568 = vmatmul.bf16.gmra.mxu3 %v11020_v28  ;;  %7777 = vmatmul.bf16.gmra.mxu0 %v11024_v16  ;;  %v11077_v28 = vld [vmem:[%s12805_s18 + $0xc0c] sm:$0xf0]  ;;  %v11083_v16 = vld [vmem:[%s12805_s18 + $0xbd8] sm:$0xf] }
 0x6e6   : > { %v11080_v15 = vor.u32 %v12334_v62, %v11077_v28  ;;  %v11084_v14 = vor.u32 %v12342_v30, %v11083_v16 }
 0x6e8   : > { %v7529_v21 = vpop.f32.mrf.mxu3  ;;  %v8148_v18 = vpop.f32.mrf.mxu2 }
 0x6e9   : > { %v7530_v59 = vadd.f32 %v7529_v21, %v17528_v54  ;;  %v15349_v43 = vadd.f32 %v8148_v18, %v7940_v58  ;;  %v17530_v58 = vld [vmem:[#allocation30_spill] sm:$0xff] }
 0x6ea   : > { %v7942_v61 = vpop.f32.mrf.mxu1  ;;  %v7740_v55 = vpop.f32.mrf.mxu0 }
 0x6eb   : > { %17529 = vst [vmem:[#allocation59_spill] sm:$0xff] %v15349_v43  ;;  %v7739_v63 = vadd.f32 %v7738_v2, %v7530_v59  ;;  %v7943_v20 = vadd.f32 %v7942_v61, %v7734_v29  ;;  %v12320_v59 = vld [vmem:[%s12805_s18 + $0xb64] sm:$0xf] }
 0x6ec   : > { %v12328_v61 = vld [vmem:[%s12805_s18 + $0xba0] sm:$0xf0] }
 0x6ed   : > { %7981 = vmatmul.bf16.gmra.mxu1 %v10968_v6  ;;  %8190 = vmatmul.bf16.gmra.mxu2 %v10972_v11  ;;  %v11025_v6 = vld [vmem:[%s12805_s18 + $0xb9c] sm:$0xf0]  ;;  %v11031_v11 = vld [vmem:[%s12805_s18 + $0xb68] sm:$0xf] }
 0x6ee   : > { %v11028_v28 = vor.u32 %v12320_v59, %v11025_v6  ;;  %v11032_v16 = vor.u32 %v12328_v61, %v11031_v11 }
 0x6f0   : > { %v7531_v50 = vpop.f32.mrf.mxu3  ;;  %v8151_v21 = vpop.f32.mrf.mxu2 }
 0x6f1   : > { %v7532_v18 = vadd.f32 %v7531_v50, %v17530_v58  ;;  %v15356_v9 = vadd.f32 %v8151_v21, %v7943_v20  ;;  %v17532_v20 = vld [vmem:[#allocation68_spill] sm:$0xff] }
 0x6f2   : > { %v7944_v2 = vpop.f32.mrf.mxu1  ;;  %v7743_v29 = vpop.f32.mrf.mxu0 }
 0x6f3   : > { %17531 = vst [vmem:[#allocation63_spill] sm:$0xff] %v15356_v9  ;;  %v7741_v22 = vadd.f32 %v7740_v55, %v7532_v18  ;;  %v7945_v54 = vadd.f32 %v7944_v2, %v7736_v32  ;;  %v12349_v18 = vld [vmem:[%s12805_s18 + $0xc4c] sm:$0xf] }
 0x6f4   : > { %v12357_v2 = vld [vmem:[%s12805_s18 + $0xc88] sm:$0xf0] }
 0x6f5   : > { %7573 = vmatmul.bf16.gmra.mxu3 %v11080_v15  ;;  %7782 = vmatmul.bf16.gmra.mxu0 %v11084_v14  ;;  %v11137_v15 = vld [vmem:[%s12805_s18 + $0xc84] sm:$0xf0]  ;;  %v11143_v14 = vld [vmem:[%s12805_s18 + $0xc50] sm:$0xf] }
 0x6f6   : > { %v11140_v6 = vor.u32 %v12349_v18, %v11137_v15  ;;  %v11144_v11 = vor.u32 %v12357_v2, %v11143_v14 }
 0x6f8   : > { %v7534_v43 = vpop.f32.mrf.mxu3  ;;  %v8153_v50 = vpop.f32.mrf.mxu2 }
 0x6f9   : > { %v7535_v21 = vadd.f32 %v7534_v43, %v17532_v20  ;;  %v15363_v62 = vadd.f32 %v8153_v50, %v7945_v54  ;;  %v12335_v20 = vld [vmem:[%s12805_s18 + $0xbdc] sm:$0xf] }
 0x6fa   : > { %v7947_v55 = vpop.f32.mrf.mxu1  ;;  %v7745_v32 = vpop.f32.mrf.mxu0 }
 0x6fb   : > { %v7744_v30 = vadd.f32 %v7743_v29, %v7535_v21  ;;  %v7948_v58 = vadd.f32 %v7947_v55, %v7739_v63  ;;  %v11085_v21 = vld [vmem:[%s12805_s18 + $0xc14] sm:$0xf0] }
 0x6fc   : > { %v11088_v18 = vor.u32 %v12335_v20, %v11085_v21 }
 0x6fd   : > { %7986 = vmatmul.bf16.gmra.mxu1 %v11028_v28  ;;  %8195 = vmatmul.bf16.gmra.mxu2 %v11032_v16  ;;  %v11091_v28 = vld [vmem:[%s12805_s18 + $0xbe0] sm:$0xf]  ;;  %v12343_v16 = vld [vmem:[%s12805_s18 + $0xc18] sm:$0xf0] }
 0x6fe   : > { %v11092_v15 = vor.u32 %v12343_v16, %v11091_v28 }
 0x700   : > { %v7536_v9 = vpop.f32.mrf.mxu3  ;;  %v8156_v43 = vpop.f32.mrf.mxu2 }
 0x701   : > { %v7537_v54 = vadd.f32 %v7536_v9, %v14831_v24  ;;  %v15370_v59 = vadd.f32 %v8156_v43, %v7948_v58  ;;  %v12364_v43 = vld [vmem:[%s12805_s18 + $0xcc4] sm:$0xf] }
 0x702   : > { %v7949_v29 = vpop.f32.mrf.mxu1  ;;  %v7748_v63 = vpop.f32.mrf.mxu0 }
 0x703   : > { %v7746_v61 = vadd.f32 %v7745_v32, %v7537_v54  ;;  %v7950_v50 = vadd.f32 %v7949_v29, %v7741_v22  ;;  %v11197_v54 = vld [vmem:[%s12805_s18 + $0xcfc] sm:$0xf0] }
 0x704   : > { %v11200_v21 = vor.u32 %v12364_v43, %v11197_v54 }
 0x705   : > { %7578 = vmatmul.bf16.gmra.mxu3 %v11140_v6  ;;  %7787 = vmatmul.bf16.gmra.mxu0 %v11144_v11  ;;  %v11203_v6 = vld [vmem:[%s12805_s18 + $0xcc8] sm:$0xf]  ;;  %v12372_v11 = vld [vmem:[%s12805_s18 + $0xd00] sm:$0xf0] }
 0x706   : > { %v11204_v28 = vor.u32 %v12372_v11, %v11203_v6 }
 0x708   : > { %v7539_v55 = vpop.f32.mrf.mxu3  ;;  %v8158_v24 = vpop.f32.mrf.mxu2 }
 0x709   : > { %v7540_v9 = vadd.f32 %v7539_v55, %v14838_v4  ;;  %v15377_v58 = vadd.f32 %v8158_v24, %v7950_v50  ;;  %v12350_v24 = vld [vmem:[%s12805_s18 + $0xc54] sm:$0xf] }
 0x70a   : > { %v7952_v32 = vpop.f32.mrf.mxu1  ;;  %v7750_v22 = vpop.f32.mrf.mxu0 }
 0x70b   : > { %v7749_v14 = vadd.f32 %v7748_v63, %v7540_v9  ;;  %v7953_v2 = vadd.f32 %v7952_v32, %v7744_v30  ;;  %v11145_v9 = vld [vmem:[%s12805_s18 + $0xc8c] sm:$0xf0] }
 0x70c   : > { %v11148_v54 = vor.u32 %v12350_v24, %v11145_v9 }
 0x70d   : > { %7991 = vmatmul.bf16.gmra.mxu1 %v11088_v18  ;;  %8200 = vmatmul.bf16.gmra.mxu2 %v11092_v15  ;;  %v11151_v18 = vld [vmem:[%s12805_s18 + $0xc58] sm:$0xf]  ;;  %v12358_v15 = vld [vmem:[%s12805_s18 + $0xc90] sm:$0xf0] }
 0x70e   : > { %v11152_v6 = vor.u32 %v12358_v15, %v11151_v18 }
 0x710   : > { %v7541_v29 = vpop.f32.mrf.mxu3  ;;  %v8161_v4 = vpop.f32.mrf.mxu2 }
 0x711   : > { %v7542_v50 = vadd.f32 %v7541_v29, %v14845_v25  ;;  %v15384_v20 = vadd.f32 %v8161_v4, %v7953_v2  ;;  %v12379_v4 = vld [vmem:[%s12805_s18 + $0xd3c] sm:$0xf] }
 0x712   : > { %v7954_v63 = vpop.f32.mrf.mxu1  ;;  %v7753_v30 = vpop.f32.mrf.mxu0 }
 0x713   : > { %v7751_v16 = vadd.f32 %v7750_v22, %v7542_v50  ;;  %v7955_v55 = vadd.f32 %v7954_v63, %v7746_v61  ;;  %v11257_v50 = vld [vmem:[%s12805_s18 + $0xd74] sm:$0xf0] }
 0x714   : > { %v11260_v9 = vor.u32 %v12379_v4, %v11257_v50 }
 0x715   : > { %7583 = vmatmul.bf16.gmra.mxu3 %v11200_v21  ;;  %7792 = vmatmul.bf16.gmra.mxu0 %v11204_v28  ;;  %v11263_v21 = vld [vmem:[%s12805_s18 + $0xd40] sm:$0xf]  ;;  %v12387_v28 = vld [vmem:[%s12805_s18 + $0xd78] sm:$0xf0] }
 0x716   : > { %v11264_v18 = vor.u32 %v12387_v28, %v11263_v21 }
 0x718   : > { %v7544_v32 = vpop.f32.mrf.mxu3  ;;  %v8163_v25 = vpop.f32.mrf.mxu2 }
 0x719   : > { %v7545_v2 = vadd.f32 %v7544_v32, %v14852_v53  ;;  %v15391_v43 = vadd.f32 %v8163_v25, %v7955_v55  ;;  %v12365_v25 = vld [vmem:[%s12805_s18 + $0xccc] sm:$0xf] }
 0x71a   : > { %v7957_v22 = vpop.f32.mrf.mxu1  ;;  %v7755_v61 = vpop.f32.mrf.mxu0 }
 0x71b   : > { %v7754_v11 = vadd.f32 %v7753_v30, %v7545_v2  ;;  %v7958_v29 = vadd.f32 %v7957_v22, %v7749_v14  ;;  %v11205_v2 = vld [vmem:[%s12805_s18 + $0xd04] sm:$0xf0] }
 0x71c   : > { %v11208_v50 = vor.u32 %v12365_v25, %v11205_v2 }
 0x71d   : > { %7996 = vmatmul.bf16.gmra.mxu1 %v11148_v54  ;;  %8205 = vmatmul.bf16.gmra.mxu2 %v11152_v6  ;;  %v11211_v54 = vld [vmem:[%s12805_s18 + $0xcd0] sm:$0xf]  ;;  %v12373_v6 = vld [vmem:[%s12805_s18 + $0xd08] sm:$0xf0] }
 0x71e   : > { %v11212_v21 = vor.u32 %v12373_v6, %v11211_v54 }
 0x720   : > { %v7546_v63 = vpop.f32.mrf.mxu3  ;;  %v8166_v53 = vpop.f32.mrf.mxu2 }
 0x721   : > { %v7547_v55 = vadd.f32 %v7546_v63, %v14859_v0  ;;  %v15398_v24 = vadd.f32 %v8166_v53, %v7958_v29  ;;  %v12394_v53 = vld [vmem:[%s12805_s18 + $0xdb4] sm:$0xf] }
 0x722   : > { %v7959_v30 = vpop.f32.mrf.mxu1  ;;  %v7758_v14 = vpop.f32.mrf.mxu0 }
 0x723   : > { %v7756_v15 = vadd.f32 %v7755_v61, %v7547_v55  ;;  %v7960_v32 = vadd.f32 %v7959_v30, %v7751_v16  ;;  %v11317_v55 = vld [vmem:[%s12805_s18 + $0xdec] sm:$0xf0] }
 0x724   : > { %v11320_v2 = vor.u32 %v12394_v53, %v11317_v55 }
 0x725   : > { %7588 = vmatmul.bf16.gmra.mxu3 %v11260_v9  ;;  %7797 = vmatmul.bf16.gmra.mxu0 %v11264_v18  ;;  %v11323_v9 = vld [vmem:[%s12805_s18 + $0xdb8] sm:$0xf]  ;;  %v12402_v18 = vld [vmem:[%s12805_s18 + $0xdf0] sm:$0xf0] }
 0x726   : > { %v11324_v54 = vor.u32 %v12402_v18, %v11323_v9 }
 0x728   : > { %v7549_v22 = vpop.f32.mrf.mxu3  ;;  %v8168_v0 = vpop.f32.mrf.mxu2 }
 0x729   : > { %v7550_v29 = vadd.f32 %v7549_v22, %v14866_v13  ;;  %v15405_v4 = vadd.f32 %v8168_v0, %v7960_v32  ;;  %v12380_v0 = vld [vmem:[%s12805_s18 + $0xd44] sm:$0xf] }
 0x72a   : > { %v7962_v61 = vpop.f32.mrf.mxu1  ;;  %v7760_v16 = vpop.f32.mrf.mxu0 }
 0x72b   : > { %v7759_v28 = vadd.f32 %v7758_v14, %v7550_v29  ;;  %v7963_v63 = vadd.f32 %v7962_v61, %v7754_v11  ;;  %v11265_v29 = vld [vmem:[%s12805_s18 + $0xd7c] sm:$0xf0] }
 0x72c   : > { %v11268_v55 = vor.u32 %v12380_v0, %v11265_v29 }
 0x72d   : > { %8001 = vmatmul.bf16.gmra.mxu1 %v11208_v50  ;;  %8210 = vmatmul.bf16.gmra.mxu2 %v11212_v21  ;;  %v11271_v50 = vld [vmem:[%s12805_s18 + $0xd48] sm:$0xf]  ;;  %v12388_v21 = vld [vmem:[%s12805_s18 + $0xd80] sm:$0xf0] }
 0x72e   : > { %v11272_v9 = vor.u32 %v12388_v21, %v11271_v50 }
 0x730   : > { %v7551_v30 = vpop.f32.mrf.mxu3  ;;  %v8171_v13 = vpop.f32.mrf.mxu2 }
 0x731   : > { %v7552_v32 = vadd.f32 %v7551_v30, %v14873_v51  ;;  %v15412_v25 = vadd.f32 %v8171_v13, %v7963_v63  ;;  %v12409_v13 = vld [vmem:[%s12805_s18 + $0xe2c] sm:$0xf] }
 0x732   : > { %v7964_v14 = vpop.f32.mrf.mxu1  ;;  %v7763_v11 = vpop.f32.mrf.mxu0 }
 0x733   : > { %v7761_v6 = vadd.f32 %v7760_v16, %v7552_v32  ;;  %v7965_v22 = vadd.f32 %v7964_v14, %v7756_v15  ;;  %v11377_v32 = vld [vmem:[%s12805_s18 + $0xe64] sm:$0xf0] }
 0x734   : > { %v11380_v29 = vor.u32 %v12409_v13, %v11377_v32 }
 0x735   : > { %7593 = vmatmul.bf16.gmra.mxu3 %v11320_v2  ;;  %7802 = vmatmul.bf16.gmra.mxu0 %v11324_v54  ;;  %v11383_v2 = vld [vmem:[%s12805_s18 + $0xe30] sm:$0xf]  ;;  %v12417_v54 = vld [vmem:[%s12805_s18 + $0xe68] sm:$0xf0] }
 0x736   : > { %v11384_v50 = vor.u32 %v12417_v54, %v11383_v2 }
 0x738   : > { %v7554_v61 = vpop.f32.mrf.mxu3  ;;  %v8173_v51 = vpop.f32.mrf.mxu2 }
 0x739   : > { %v7555_v63 = vadd.f32 %v7554_v61, %v14880_v39  ;;  %v15419_v53 = vadd.f32 %v8173_v51, %v7965_v22  ;;  %v12395_v51 = vld [vmem:[%s12805_s18 + $0xdbc] sm:$0xf] }
 0x73a   : > { %v7967_v16 = vpop.f32.mrf.mxu1  ;;  %v7765_v15 = vpop.f32.mrf.mxu0 }
 0x73b   : > { %v7764_v18 = vadd.f32 %v7763_v11, %v7555_v63  ;;  %v7968_v30 = vadd.f32 %v7967_v16, %v7759_v28  ;;  %v11325_v63 = vld [vmem:[%s12805_s18 + $0xdf4] sm:$0xf0] }
 0x73c   : > { %v11328_v32 = vor.u32 %v12395_v51, %v11325_v63 }
 0x73d   : > { %8006 = vmatmul.bf16.gmra.mxu1 %v11268_v55  ;;  %8215 = vmatmul.bf16.gmra.mxu2 %v11272_v9  ;;  %v11331_v55 = vld [vmem:[%s12805_s18 + $0xdc0] sm:$0xf]  ;;  %v12403_v9 = vld [vmem:[%s12805_s18 + $0xdf8] sm:$0xf0] }
 0x73e   : > { %v11332_v2 = vor.u32 %v12403_v9, %v11331_v55 }
 0x740   : > { %v7556_v14 = vpop.f32.mrf.mxu3  ;;  %v8176_v39 = vpop.f32.mrf.mxu2 }
 0x741   : > { %v7557_v22 = vadd.f32 %v7556_v14, %v14887_v12  ;;  %v15426_v0 = vadd.f32 %v8176_v39, %v7968_v30  ;;  %v12424_v39 = vld [vmem:[%s12805_s18 + $0xea4] sm:$0xf] }
 0x742   : > { %v7969_v11 = vpop.f32.mrf.mxu1  ;;  %v7768_v28 = vpop.f32.mrf.mxu0 }
 0x743   : > { %v7766_v21 = vadd.f32 %v7765_v15, %v7557_v22  ;;  %v7970_v61 = vadd.f32 %v7969_v11, %v7761_v6  ;;  %v11437_v22 = vld [vmem:[%s12805_s18 + $0xedc] sm:$0xf0] }
 0x744   : > { %v11440_v63 = vor.u32 %v12424_v39, %v11437_v22 }
 0x745   : > { %7598 = vmatmul.bf16.gmra.mxu3 %v11380_v29  ;;  %7807 = vmatmul.bf16.gmra.mxu0 %v11384_v50  ;;  %v11443_v29 = vld [vmem:[%s12805_s18 + $0xea8] sm:$0xf]  ;;  %v12432_v50 = vld [vmem:[%s12805_s18 + $0xee0] sm:$0xf0] }
 0x746   : > { %v11444_v55 = vor.u32 %v12432_v50, %v11443_v29 }
 0x748   : > { %v7559_v16 = vpop.f32.mrf.mxu3  ;;  %v8178_v12 = vpop.f32.mrf.mxu2 }
 0x749   : > { %v7560_v30 = vadd.f32 %v7559_v16, %v14894_v47  ;;  %v15433_v13 = vadd.f32 %v8178_v12, %v7970_v61  ;;  %v12410_v12 = vld [vmem:[%s12805_s18 + $0xe34] sm:$0xf] }
 0x74a   : > { %v7972_v15 = vpop.f32.mrf.mxu1  ;;  %v7770_v6 = vpop.f32.mrf.mxu0 }
 0x74b   : > { %v7769_v54 = vadd.f32 %v7768_v28, %v7560_v30  ;;  %v7973_v14 = vadd.f32 %v7972_v15, %v7764_v18  ;;  %v11385_v30 = vld [vmem:[%s12805_s18 + $0xe6c] sm:$0xf0] }
 0x74c   : > { %v11388_v22 = vor.u32 %v12410_v12, %v11385_v30 }
 0x74d   : > { %8011 = vmatmul.bf16.gmra.mxu1 %v11328_v32  ;;  %8220 = vmatmul.bf16.gmra.mxu2 %v11332_v2  ;;  %v11391_v32 = vld [vmem:[%s12805_s18 + $0xe38] sm:$0xf]  ;;  %v12418_v2 = vld [vmem:[%s12805_s18 + $0xe70] sm:$0xf0] }
 0x74e   : > { %v11392_v29 = vor.u32 %v12418_v2, %v11391_v32 }
 0x750   : > { %v7561_v11 = vpop.f32.mrf.mxu3  ;;  %v8181_v47 = vpop.f32.mrf.mxu2 }
 0x751   : > { %v7562_v61 = vadd.f32 %v7561_v11, %v14901_v40  ;;  %v15440_v51 = vadd.f32 %v8181_v47, %v7973_v14  ;;  %v12439_v47 = vld [vmem:[%s12805_s18 + $0xf1c] sm:$0xf] }
 0x752   : > { %v7974_v28 = vpop.f32.mrf.mxu1  ;;  %v7773_v18 = vpop.f32.mrf.mxu0 }
 0x753   : > { %v7771_v9 = vadd.f32 %v7770_v6, %v7562_v61  ;;  %v7975_v16 = vadd.f32 %v7974_v28, %v7766_v21  ;;  %v11497_v61 = vld [vmem:[%s12805_s18 + $0xf54] sm:$0xf0] }
 0x754   : > { %v11500_v30 = vor.u32 %v12439_v47, %v11497_v61 }
 0x755   : > { %7603 = vmatmul.bf16.gmra.mxu3 %v11440_v63  ;;  %7812 = vmatmul.bf16.gmra.mxu0 %v11444_v55  ;;  %v11503_v63 = vld [vmem:[%s12805_s18 + $0xf20] sm:$0xf]  ;;  %v12447_v55 = vld [vmem:[%s12805_s18 + $0xf58] sm:$0xf0] }
 0x756   : > { %v11504_v32 = vor.u32 %v12447_v55, %v11503_v63 }
 0x758   : > { %v7564_v15 = vpop.f32.mrf.mxu3  ;;  %v8183_v40 = vpop.f32.mrf.mxu2 }
 0x759   : > { %v7565_v14 = vadd.f32 %v7564_v15, %v14908_v37  ;;  %v15447_v39 = vadd.f32 %v8183_v40, %v7975_v16  ;;  %v12425_v40 = vld [vmem:[%s12805_s18 + $0xeac] sm:$0xf] }
 0x75a   : > { %v7977_v6 = vpop.f32.mrf.mxu1  ;;  %v7775_v21 = vpop.f32.mrf.mxu0 }
 0x75b   : > { %v7774_v50 = vadd.f32 %v7773_v18, %v7565_v14  ;;  %v7978_v11 = vadd.f32 %v7977_v6, %v7769_v54  ;;  %v11445_v14 = vld [vmem:[%s12805_s18 + $0xee4] sm:$0xf0] }
 0x75c   : > { %v11448_v61 = vor.u32 %v12425_v40, %v11445_v14 }
 0x75d   : > { %8016 = vmatmul.bf16.gmra.mxu1 %v11388_v22  ;;  %8225 = vmatmul.bf16.gmra.mxu2 %v11392_v29  ;;  %v11451_v22 = vld [vmem:[%s12805_s18 + $0xeb0] sm:$0xf]  ;;  %v12433_v29 = vld [vmem:[%s12805_s18 + $0xee8] sm:$0xf0] }
 0x75e   : > { %v11452_v63 = vor.u32 %v12433_v29, %v11451_v22 }
 0x760   : > { %v7566_v28 = vpop.f32.mrf.mxu3  ;;  %v8186_v37 = vpop.f32.mrf.mxu2 }
 0x761   : > { %v7567_v16 = vadd.f32 %v7566_v28, %v14915_v56  ;;  %v15454_v12 = vadd.f32 %v8186_v37, %v7978_v11  ;;  %v12454_v37 = vld [vmem:[%s12805_s18 + $0xf94] sm:$0xf] }
 0x762   : > { %v7979_v18 = vpop.f32.mrf.mxu1  ;;  %v7778_v54 = vpop.f32.mrf.mxu0 }
 0x763   : > { %v7776_v2 = vadd.f32 %v7775_v21, %v7567_v16  ;;  %v7980_v15 = vadd.f32 %v7979_v18, %v7771_v9  ;;  %v11557_v16 = vld [vmem:[%s12805_s18 + $0xfcc] sm:$0xf0] }
 0x764   : > { %v11560_v14 = vor.u32 %v12454_v37, %v11557_v16 }
 0x765   : > { %7608 = vmatmul.bf16.gmra.mxu3 %v11500_v30  ;;  %7817 = vmatmul.bf16.gmra.mxu0 %v11504_v32  ;;  %v11563_v30 = vld [vmem:[%s12805_s18 + $0xf98] sm:$0xf]  ;;  %v12462_v32 = vld [vmem:[%s12805_s18 + $0xfd0] sm:$0xf0] }
 0x766   : > { %v11564_v22 = vor.u32 %v12462_v32, %v11563_v30 }
 0x768   : > { %v7569_v6 = vpop.f32.mrf.mxu3  ;;  %v8188_v56 = vpop.f32.mrf.mxu2 }
 0x769   : > { %v7570_v11 = vadd.f32 %v7569_v6, %v14922_v7  ;;  %v15461_v47 = vadd.f32 %v8188_v56, %v7980_v15  ;;  %v12440_v56 = vld [vmem:[%s12805_s18 + $0xf24] sm:$0xf] }
 0x76a   : > { %v7982_v21 = vpop.f32.mrf.mxu1  ;;  %v7780_v9 = vpop.f32.mrf.mxu0 }
 0x76b   : > { %v7779_v55 = vadd.f32 %v7778_v54, %v7570_v11  ;;  %v7983_v28 = vadd.f32 %v7982_v21, %v7774_v50  ;;  %v11505_v11 = vld [vmem:[%s12805_s18 + $0xf5c] sm:$0xf0] }
 0x76c   : > { %v11508_v16 = vor.u32 %v12440_v56, %v11505_v11 }
 0x76d   : > { %8021 = vmatmul.bf16.gmra.mxu1 %v11448_v61  ;;  %8230 = vmatmul.bf16.gmra.mxu2 %v11452_v63  ;;  %v11511_v61 = vld [vmem:[%s12805_s18 + $0xf28] sm:$0xf]  ;;  %v12448_v63 = vld [vmem:[%s12805_s18 + $0xf60] sm:$0xf0] }
 0x76e   : > { %v11512_v30 = vor.u32 %v12448_v63, %v11511_v61 }
 0x770   : > { %v7571_v18 = vpop.f32.mrf.mxu3  ;;  %v8191_v7 = vpop.f32.mrf.mxu2 }
 0x771   : > { %v7572_v15 = vadd.f32 %v7571_v18, %v14929_v38  ;;  %v15468_v40 = vadd.f32 %v8191_v7, %v7983_v28  ;;  %v12469_v7 = vld [vmem:[%s12805_s18 + $0x100c] sm:$0xf] }
 0x772   : > { %v7984_v54 = vpop.f32.mrf.mxu1  ;;  %v7783_v50 = vpop.f32.mrf.mxu0 }
 0x773   : > { %v7781_v29 = vadd.f32 %v7780_v9, %v7572_v15  ;;  %v7985_v6 = vadd.f32 %v7984_v54, %v7776_v2  ;;  %v11617_v15 = vld [vmem:[%s12805_s18 + $0x1044] sm:$0xf0] }
 0x774   : > { %v11620_v11 = vor.u32 %v12469_v7, %v11617_v15 }
 0x775   : > { %7613 = vmatmul.bf16.gmra.mxu3 %v11560_v14  ;;  %7822 = vmatmul.bf16.gmra.mxu0 %v11564_v22  ;;  %v11623_v14 = vld [vmem:[%s12805_s18 + $0x1010] sm:$0xf]  ;;  %v12477_v22 = vld [vmem:[%s12805_s18 + $0x1048] sm:$0xf0] }
 0x776   : > { %v11624_v61 = vor.u32 %v12477_v22, %v11623_v14 }
 0x778   : > { %v7574_v21 = vpop.f32.mrf.mxu3  ;;  %v8193_v38 = vpop.f32.mrf.mxu2 }
 0x779   : > { %v7575_v28 = vadd.f32 %v7574_v21, %v14936_v60  ;;  %v15475_v37 = vadd.f32 %v8193_v38, %v7985_v6  ;;  %v12455_v38 = vld [vmem:[%s12805_s18 + $0xf9c] sm:$0xf] }
 0x77a   : > { %v7987_v9 = vpop.f32.mrf.mxu1  ;;  %v7785_v2 = vpop.f32.mrf.mxu0 }
 0x77b   : > { %v7784_v32 = vadd.f32 %v7783_v50, %v7575_v28  ;;  %v7988_v18 = vadd.f32 %v7987_v9, %v7779_v55  ;;  %v11565_v28 = vld [vmem:[%s12805_s18 + $0xfd4] sm:$0xf0] }
 0x77c   : > { %v11568_v15 = vor.u32 %v12455_v38, %v11565_v28 }
 0x77d   : > { %8026 = vmatmul.bf16.gmra.mxu1 %v11508_v16  ;;  %8235 = vmatmul.bf16.gmra.mxu2 %v11512_v30  ;;  %v11571_v16 = vld [vmem:[%s12805_s18 + $0xfa0] sm:$0xf]  ;;  %v12463_v30 = vld [vmem:[%s12805_s18 + $0xfd8] sm:$0xf0] }
 0x77e   : > { %v11572_v14 = vor.u32 %v12463_v30, %v11571_v16 }
 0x780   : > { %v7576_v54 = vpop.f32.mrf.mxu3  ;;  %v8196_v60 = vpop.f32.mrf.mxu2 }
 0x781   : > { %v7577_v6 = vadd.f32 %v7576_v54, %v14943_v26  ;;  %v15482_v56 = vadd.f32 %v8196_v60, %v7988_v18  ;;  %v12484_v60 = vld [vmem:[%s12805_s18 + $0x1084] sm:$0xf] }
 0x782   : > { %v7989_v50 = vpop.f32.mrf.mxu1  ;;  %v7788_v55 = vpop.f32.mrf.mxu0 }
 0x783   : > { %v7786_v63 = vadd.f32 %v7785_v2, %v7577_v6  ;;  %v7990_v21 = vadd.f32 %v7989_v50, %v7781_v29  ;;  %v11677_v6 = vld [vmem:[%s12805_s18 + $0x10bc] sm:$0xf0] }
 0x784   : > { %v11680_v28 = vor.u32 %v12484_v60, %v11677_v6 }
 0x785   : > { %7618 = vmatmul.bf16.gmra.mxu3 %v11620_v11  ;;  %7827 = vmatmul.bf16.gmra.mxu0 %v11624_v61  ;;  %v11683_v11 = vld [vmem:[%s12805_s18 + $0x1088] sm:$0xf]  ;;  %v12492_v61 = vld [vmem:[%s12805_s18 + $0x10c0] sm:$0xf0] }
 0x786   : > { %v11684_v16 = vor.u32 %v12492_v61, %v11683_v11 }
 0x788   : > { %v7579_v9 = vpop.f32.mrf.mxu3  ;;  %v8198_v26 = vpop.f32.mrf.mxu2 }
 0x789   : > { %v7580_v18 = vadd.f32 %v7579_v9, %v14950_v41  ;;  %v15489_v7 = vadd.f32 %v8198_v26, %v7990_v21  ;;  %v12470_v26 = vld [vmem:[%s12805_s18 + $0x1014] sm:$0xf] }
 0x78a   : > { %v7992_v2 = vpop.f32.mrf.mxu1  ;;  %v7790_v29 = vpop.f32.mrf.mxu0 }
 0x78b   : > { %v7789_v22 = vadd.f32 %v7788_v55, %v7580_v18  ;;  %v7993_v54 = vadd.f32 %v7992_v2, %v7784_v32  ;;  %v11625_v18 = vld [vmem:[%s12805_s18 + $0x104c] sm:$0xf0] }
 0x78c   : > { %v11628_v6 = vor.u32 %v12470_v26, %v11625_v18 }
 0x78d   : > { %8031 = vmatmul.bf16.gmra.mxu1 %v11568_v15  ;;  %8240 = vmatmul.bf16.gmra.mxu2 %v11572_v14  ;;  %v11631_v15 = vld [vmem:[%s12805_s18 + $0x1018] sm:$0xf]  ;;  %v12478_v14 = vld [vmem:[%s12805_s18 + $0x1050] sm:$0xf0] }
 0x78e   : > { %v11632_v11 = vor.u32 %v12478_v14, %v11631_v15 }
 0x790   : > { %v7581_v50 = vpop.f32.mrf.mxu3  ;;  %v8201_v41 = vpop.f32.mrf.mxu2 }
 0x791   : > { %v7582_v21 = vadd.f32 %v7581_v50, %v14957_v34  ;;  %v15496_v38 = vadd.f32 %v8201_v41, %v7993_v54  ;;  %v12499_v41 = vld [vmem:[%s12805_s18 + $0x10fc] sm:$0xf] }
 0x792   : > { %v7994_v55 = vpop.f32.mrf.mxu1  ;;  %v7793_v32 = vpop.f32.mrf.mxu0 }
 0x793   : > { %v7791_v30 = vadd.f32 %v7790_v29, %v7582_v21  ;;  %v7995_v9 = vadd.f32 %v7994_v55, %v7786_v63  ;;  %v11737_v21 = vld [vmem:[%s12805_s18 + $0x1134] sm:$0xf0] }
 0x794   : > { %v11740_v18 = vor.u32 %v12499_v41, %v11737_v21 }
 0x795   : > { %7623 = vmatmul.bf16.gmra.mxu3 %v11680_v28  ;;  %7832 = vmatmul.bf16.gmra.mxu0 %v11684_v16  ;;  %v11743_v28 = vld [vmem:[%s12805_s18 + $0x1100] sm:$0xf]  ;;  %v12507_v16 = vld [vmem:[%s12805_s18 + $0x1138] sm:$0xf0] }
 0x796   : > { %v11744_v15 = vor.u32 %v12507_v16, %v11743_v28 }
 0x798   : > { %v7584_v2 = vpop.f32.mrf.mxu3  ;;  %v8203_v34 = vpop.f32.mrf.mxu2 }
 0x799   : > { %v7585_v54 = vadd.f32 %v7584_v2, %v14964_v27  ;;  %v15503_v60 = vadd.f32 %v8203_v34, %v7995_v9  ;;  %v12485_v34 = vld [vmem:[%s12805_s18 + $0x108c] sm:$0xf] }
 0x79a   : > { %v7997_v29 = vpop.f32.mrf.mxu1  ;;  %v7795_v63 = vpop.f32.mrf.mxu0 }
 0x79b   : > { %v7794_v61 = vadd.f32 %v7793_v32, %v7585_v54  ;;  %v7998_v50 = vadd.f32 %v7997_v29, %v7789_v22  ;;  %v11685_v54 = vld [vmem:[%s12805_s18 + $0x10c4] sm:$0xf0] }
 0x79c   : > { %v11688_v21 = vor.u32 %v12485_v34, %v11685_v54 }
 0x79d   : > { %8036 = vmatmul.bf16.gmra.mxu1 %v11628_v6  ;;  %8245 = vmatmul.bf16.gmra.mxu2 %v11632_v11  ;;  %v11691_v6 = vld [vmem:[%s12805_s18 + $0x1090] sm:$0xf]  ;;  %v12493_v11 = vld [vmem:[%s12805_s18 + $0x10c8] sm:$0xf0] }
 0x79e   : > { %v11692_v28 = vor.u32 %v12493_v11, %v11691_v6 }
 0x7a0   : > { %v7586_v55 = vpop.f32.mrf.mxu3  ;;  %v8206_v27 = vpop.f32.mrf.mxu2 }
 0x7a1   : > { %v7587_v9 = vadd.f32 %v7586_v55, %v14971_v36  ;;  %v15510_v26 = vadd.f32 %v8206_v27, %v7998_v50  ;;  %v17534_v50 = vld [vmem:[#allocation32_spill] sm:$0xff] }
 0x7a2   : > { %v7999_v32 = vpop.f32.mrf.mxu1  ;;  %v7798_v22 = vpop.f32.mrf.mxu0 }
 0x7a3   : > { %17533 = vst [vmem:[#allocation65_spill] sm:$0xff] %v15510_v26  ;;  %v7796_v14 = vadd.f32 %v7795_v63, %v7587_v9  ;;  %v8000_v2 = vadd.f32 %v7999_v32, %v7791_v30  ;;  %v12514_v9 = vld [vmem:[%s12805_s18 + $0x1174] sm:$0xf] }
 0x7a4   : > { %v12522_v32 = vld [vmem:[%s12805_s18 + $0x11b0] sm:$0xf0] }
 0x7a5   : > { %7628 = vmatmul.bf16.gmra.mxu3 %v11740_v18  ;;  %7837 = vmatmul.bf16.gmra.mxu0 %v11744_v15  ;;  %v11797_v18 = vld [vmem:[%s12805_s18 + $0x11ac] sm:$0xf0]  ;;  %v11803_v15 = vld [vmem:[%s12805_s18 + $0x1178] sm:$0xf] }
 0x7a6   : > { %v11800_v54 = vor.u32 %v12514_v9, %v11797_v18  ;;  %v11804_v6 = vor.u32 %v12522_v32, %v11803_v15 }
 0x7a8   : > { %v7589_v29 = vpop.f32.mrf.mxu3  ;;  %v8208_v36 = vpop.f32.mrf.mxu2 }
 0x7a9   : > { %v7590_v55 = vadd.f32 %v7589_v29, %v17534_v50  ;;  %v15517_v41 = vadd.f32 %v8208_v36, %v8000_v2  ;;  %v17536_v2 = vld [vmem:[#allocation73_spill] sm:$0xff] }
 0x7aa   : > { %v8002_v63 = vpop.f32.mrf.mxu1  ;;  %v7800_v30 = vpop.f32.mrf.mxu0 }
 0x7ab   : > { %17535 = vst [vmem:[#allocation70_spill] sm:$0xff] %v15517_v41  ;;  %v7799_v16 = vadd.f32 %v7798_v22, %v7590_v55  ;;  %v8003_v27 = vadd.f32 %v8002_v63, %v7794_v61  ;;  %v12500_v55 = vld [vmem:[%s12805_s18 + $0x1104] sm:$0xf] }
 0x7ac   : > { %v12508_v63 = vld [vmem:[%s12805_s18 + $0x1140] sm:$0xf0] }
 0x7ad   : > { %8041 = vmatmul.bf16.gmra.mxu1 %v11688_v21  ;;  %8250 = vmatmul.bf16.gmra.mxu2 %v11692_v28  ;;  %v11745_v21 = vld [vmem:[%s12805_s18 + $0x113c] sm:$0xf0]  ;;  %v11751_v28 = vld [vmem:[%s12805_s18 + $0x1108] sm:$0xf] }
 0x7ae   : > { %v11748_v18 = vor.u32 %v12500_v55, %v11745_v21  ;;  %v11752_v15 = vor.u32 %v12508_v63, %v11751_v28 }
 0x7b0   : > { %v7591_v26 = vpop.f32.mrf.mxu3  ;;  %v8211_v29 = vpop.f32.mrf.mxu2 }
 0x7b1   : > { %v7592_v36 = vadd.f32 %v7591_v26, %v17536_v2  ;;  %v15524_v34 = vadd.f32 %v8211_v29, %v8003_v27  ;;  %v12529_v2 = vld [vmem:[%s12805_s18 + $0x11ec] sm:$0xf] }
 0x7b2   : > { %v8004_v22 = vpop.f32.mrf.mxu1  ;;  %v7803_v61 = vpop.f32.mrf.mxu0 }
 0x7b3   : > { %v7801_v11 = vadd.f32 %v7800_v30, %v7592_v36  ;;  %v8005_v50 = vadd.f32 %v8004_v22, %v7796_v14  ;;  %v11857_v36 = vld [vmem:[%s12805_s18 + $0x1224] sm:$0xf0] }
 0x7b4   : > { %v11860_v55 = vor.u32 %v12529_v2, %v11857_v36 }
 0x7b5   : > { %7633 = vmatmul.bf16.gmra.mxu3 %v11800_v54  ;;  %7842 = vmatmul.bf16.gmra.mxu0 %v11804_v6  ;;  %v11863_v54 = vld [vmem:[%s12805_s18 + $0x11f0] sm:$0xf]  ;;  %v12537_v6 = vld [vmem:[%s12805_s18 + $0x1228] sm:$0xf0] }
 0x7b6   : > { %v11864_v21 = vor.u32 %v12537_v6, %v11863_v54 }
 0x7b8   : > { %v7594_v41 = vpop.f32.mrf.mxu3  ;;  %v8213_v26 = vpop.f32.mrf.mxu2 }
 0x7b9   : > { %v7595_v27 = vadd.f32 %v7594_v41, %v14992_v31  ;;  %v15531_v9 = vadd.f32 %v8213_v26, %v8005_v50  ;;  %v12515_v26 = vld [vmem:[%s12805_s18 + $0x117c] sm:$0xf] }
 0x7ba   : > { %v8007_v30 = vpop.f32.mrf.mxu1  ;;  %v7805_v14 = vpop.f32.mrf.mxu0 }
 0x7bb   : > { %v7804_v32 = vadd.f32 %v7803_v61, %v7595_v27  ;;  %v8008_v29 = vadd.f32 %v8007_v30, %v7799_v16  ;;  %v11805_v27 = vld [vmem:[%s12805_s18 + $0x11b4] sm:$0xf0] }
 0x7bc   : > { %v11808_v36 = vor.u32 %v12515_v26, %v11805_v27 }
 0x7bd   : > { %8046 = vmatmul.bf16.gmra.mxu1 %v11748_v18  ;;  %8255 = vmatmul.bf16.gmra.mxu2 %v11752_v15  ;;  %v11811_v18 = vld [vmem:[%s12805_s18 + $0x1180] sm:$0xf]  ;;  %v12523_v15 = vld [vmem:[%s12805_s18 + $0x11b8] sm:$0xf0] }
 0x7be   : > { %v11812_v54 = vor.u32 %v12523_v15, %v11811_v18 }
 0x7c0   : > { %v7596_v22 = vpop.f32.mrf.mxu3  ;;  %v8216_v31 = vpop.f32.mrf.mxu2 }
 0x7c1   : > { %v7597_v41 = vadd.f32 %v7596_v22, %v14999_v35  ;;  %v15538_v50 = vadd.f32 %v8216_v31, %v8008_v29  ;;  %v12544_v31 = vld [vmem:[%s12805_s18 + $0x1264] sm:$0xf] }
 0x7c2   : > { %v8009_v61 = vpop.f32.mrf.mxu1  ;;  %v7808_v16 = vpop.f32.mrf.mxu0 }
 0x7c3   : > { %v7806_v28 = vadd.f32 %v7805_v14, %v7597_v41  ;;  %v8010_v63 = vadd.f32 %v8009_v61, %v7801_v11  ;;  %v11917_v41 = vld [vmem:[%s12805_s18 + $0x129c] sm:$0xf0] }
 0x7c4   : > { %v11920_v27 = vor.u32 %v12544_v31, %v11917_v41 }
 0x7c5   : > { %7638 = vmatmul.bf16.gmra.mxu3 %v11860_v55  ;;  %7847 = vmatmul.bf16.gmra.mxu0 %v11864_v21  ;;  %v11923_v55 = vld [vmem:[%s12805_s18 + $0x1268] sm:$0xf]  ;;  %v12552_v21 = vld [vmem:[%s12805_s18 + $0x12a0] sm:$0xf0] }
 0x7c6   : > { %v11924_v18 = vor.u32 %v12552_v21, %v11923_v55 }
 0x7c8   : > { %v7599_v30 = vpop.f32.mrf.mxu3  ;;  %v8218_v35 = vpop.f32.mrf.mxu2 }
 0x7c9   : > { %v7600_v29 = vadd.f32 %v7599_v30, %v15006_v46  ;;  %v15545_v2 = vadd.f32 %v8218_v35, %v8010_v63  ;;  %v12530_v35 = vld [vmem:[%s12805_s18 + $0x11f4] sm:$0xf] }
 0x7ca   : > { %v8012_v14 = vpop.f32.mrf.mxu1  ;;  %v7810_v11 = vpop.f32.mrf.mxu0 }
 0x7cb   : > { %v7809_v6 = vadd.f32 %v7808_v16, %v7600_v29  ;;  %v8013_v22 = vadd.f32 %v8012_v14, %v7804_v32  ;;  %v11865_v29 = vld [vmem:[%s12805_s18 + $0x122c] sm:$0xf0] }
 0x7cc   : > { %v11868_v41 = vor.u32 %v12530_v35, %v11865_v29 }
 0x7cd   : > { %8051 = vmatmul.bf16.gmra.mxu1 %v11808_v36  ;;  %8260 = vmatmul.bf16.gmra.mxu2 %v11812_v54  ;;  %v11871_v36 = vld [vmem:[%s12805_s18 + $0x11f8] sm:$0xf]  ;;  %v12538_v54 = vld [vmem:[%s12805_s18 + $0x1230] sm:$0xf0] }
 0x7ce   : > { %v11872_v55 = vor.u32 %v12538_v54, %v11871_v36 }
 0x7d0   : > { %v7601_v61 = vpop.f32.mrf.mxu3  ;;  %v8221_v46 = vpop.f32.mrf.mxu2 }
 0x7d1   : > { %v7602_v63 = vadd.f32 %v7601_v61, %v15013_v57  ;;  %v15552_v26 = vadd.f32 %v8221_v46, %v8013_v22  ;;  %v11961_v46 = vld [vmem:[%s12805_s18 + $0x2c] sm:$0xf] }
 0x7d2   : > { %v8014_v16 = vpop.f32.mrf.mxu1  ;;  %v7813_v32 = vpop.f32.mrf.mxu0 }
 0x7d3   : > { %v7811_v15 = vadd.f32 %v7810_v11, %v7602_v63  ;;  %v8015_v30 = vadd.f32 %v8014_v16, %v7806_v28  ;;  %v9593_v63 = vld [vmem:[%s12805_s18 + $0x64] sm:$0xf0] }
 0x7d4   : > { %v9596_v29 = vor.u32 %v11961_v46, %v9593_v63 }
 0x7d5   : > { %7643 = vmatmul.bf16.gmra.mxu3 %v11920_v27  ;;  %7852 = vmatmul.bf16.gmra.mxu0 %v11924_v18  ;;  %v9599_v27 = vld [vmem:[%s12805_s18 + $0x30] sm:$0xf]  ;;  %v11969_v18 = vld [vmem:[%s12805_s18 + $0x68] sm:$0xf0] }
 0x7d6   : > { %v9600_v36 = vor.u32 %v11969_v18, %v9599_v27 }
 0x7d8   : > { %v7604_v14 = vpop.f32.mrf.mxu3  ;;  %v8223_v57 = vpop.f32.mrf.mxu2 }
 0x7d9   : > { %v7605_v22 = vadd.f32 %v7604_v14, %v15020_v23  ;;  %v15559_v31 = vadd.f32 %v8223_v57, %v8015_v30  ;;  %v12545_v57 = vld [vmem:[%s12805_s18 + $0x126c] sm:$0xf] }
 0x7da   : > { %v8017_v11 = vpop.f32.mrf.mxu1  ;;  %v7815_v28 = vpop.f32.mrf.mxu0 }
 0x7db   : > { %v7814_v21 = vadd.f32 %v7813_v32, %v7605_v22  ;;  %v8018_v61 = vadd.f32 %v8017_v11, %v7809_v6  ;;  %v11925_v22 = vld [vmem:[%s12805_s18 + $0x12a4] sm:$0xf0] }
 0x7dc   : > { %v11928_v63 = vor.u32 %v12545_v57, %v11925_v22 }
 0x7dd   : > { %8056 = vmatmul.bf16.gmra.mxu1 %v11868_v41  ;;  %8265 = vmatmul.bf16.gmra.mxu2 %v11872_v55  ;;  %v11931_v41 = vld [vmem:[%s12805_s18 + $0x1270] sm:$0xf]  ;;  %v12553_v55 = vld [vmem:[%s12805_s18 + $0x12a8] sm:$0xf0] }
 0x7de   : > { %v11932_v27 = vor.u32 %v12553_v55, %v11931_v41 }
 0x7e0   : > { %v7606_v16 = vpop.f32.mrf.mxu3  ;;  %v8226_v23 = vpop.f32.mrf.mxu2 }
 0x7e1   : > { %v7607_v30 = vadd.f32 %v7606_v16, %v15027_v1  ;;  %v15566_v35 = vadd.f32 %v8226_v23, %v8018_v61  ;;  %v11976_v23 = vld [vmem:[%s12805_s18 + $0xa4] sm:$0xf] }
 0x7e2   : > { %v8019_v32 = vpop.f32.mrf.mxu1  ;;  %v7818_v6 = vpop.f32.mrf.mxu0 }
 0x7e3   : > { %v7816_v54 = vadd.f32 %v7815_v28, %v7607_v30  ;;  %v8020_v14 = vadd.f32 %v8019_v32, %v7811_v15  ;;  %v9653_v30 = vld [vmem:[%s12805_s18 + $0xdc] sm:$0xf0] }
 0x7e4   : > { %v9656_v22 = vor.u32 %v11976_v23, %v9653_v30 }
 0x7e5   : > { %8284 = vmatmul.bf16.vlgmr.msrb.gmra.mxu3 %v9596_v29  ;;  %8493 = vmatmul.bf16.vlgmr.msrb.gmra.mxu0 %v9600_v36  ;;  %v9659_v29 = vld [vmem:[%s12805_s18 + $0xa8] sm:$0xf]  ;;  %v11984_v36 = vld [vmem:[%s12805_s18 + $0xe0] sm:$0xf0] }
 0x7e6   : > { %v9660_v41 = vor.u32 %v11984_v36, %v9659_v29 }
 0x7e8   : > { %v7609_v11 = vpop.f32.mrf.mxu3  ;;  %v8228_v1 = vpop.f32.mrf.mxu2 }
 0x7e9   : > { %v7610_v61 = vadd.f32 %v7609_v11, %v15034_v44  ;;  %v15573_v46 = vadd.f32 %v8228_v1, %v8020_v14  ;;  %v11962_v1 = vld [vmem:[%s12805_s18 + $0x34] sm:$0xf] }
 0x7ea   : > { %v8022_v28 = vpop.f32.mrf.mxu1  ;;  %v7820_v15 = vpop.f32.mrf.mxu0 }
 0x7eb   : > { %v7819_v18 = vadd.f32 %v7818_v6, %v7610_v61  ;;  %v8023_v16 = vadd.f32 %v8022_v28, %v7814_v21  ;;  %v9601_v61 = vld [vmem:[%s12805_s18 + $0x6c] sm:$0xf0] }
 0x7ec   : > { %v9604_v30 = vor.u32 %v11962_v1, %v9601_v61 }
 0x7ed   : > { %8061 = vmatmul.bf16.gmra.mxu1 %v11928_v63  ;;  %8270 = vmatmul.bf16.gmra.mxu2 %v11932_v27  ;;  %v9607_v63 = vld [vmem:[%s12805_s18 + $0x38] sm:$0xf]  ;;  %v11970_v27 = vld [vmem:[%s12805_s18 + $0x70] sm:$0xf0] }
 0x7ee   : > { %v9608_v29 = vor.u32 %v11970_v27, %v9607_v63 }
 0x7f0   : > { %v7611_v32 = vpop.f32.mrf.mxu3  ;;  %v8231_v44 = vpop.f32.mrf.mxu2 }
 0x7f1   : > { %v7612_v14 = vadd.f32 %v7611_v32, %v15041_v52  ;;  %v15580_v57 = vadd.f32 %v8231_v44, %v8023_v16  ;;  %v11991_v44 = vld [vmem:[%s12805_s18 + $0x11c] sm:$0xf] }
 0x7f2   : > { %v8024_v6 = vpop.f32.mrf.mxu1  ;;  %v7823_v21 = vpop.f32.mrf.mxu0 }
 0x7f3   : > { %v7821_v55 = vadd.f32 %v7820_v15, %v7612_v14  ;;  %v8025_v11 = vadd.f32 %v8024_v6, %v7816_v54  ;;  %v9713_v14 = vld [vmem:[%s12805_s18 + $0x154] sm:$0xf0] }
 0x7f4   : > { %v9716_v61 = vor.u32 %v11991_v44, %v9713_v14 }
 0x7f5   : > { %8289 = vmatmul.bf16.gmra.mxu3 %v9656_v22  ;;  %8498 = vmatmul.bf16.gmra.mxu0 %v9660_v41  ;;  %v9719_v22 = vld [vmem:[%s12805_s18 + $0x120] sm:$0xf]  ;;  %v11999_v41 = vld [vmem:[%s12805_s18 + $0x158] sm:$0xf0] }
 0x7f6   : > { %v9720_v63 = vor.u32 %v11999_v41, %v9719_v22 }
 0x7f8   : > { %v7614_v28 = vpop.f32.mrf.mxu3  ;;  %v8233_v52 = vpop.f32.mrf.mxu2 }
 0x7f9   : > { %v7615_v16 = vadd.f32 %v7614_v28, %v15048_v49  ;;  %v15587_v23 = vadd.f32 %v8233_v52, %v8025_v11  ;;  %v11977_v52 = vld [vmem:[%s12805_s18 + $0xac] sm:$0xf] }
 0x7fa   : > { %v8027_v15 = vpop.f32.mrf.mxu1  ;;  %v7825_v54 = vpop.f32.mrf.mxu0 }
 0x7fb   : > { %v7824_v36 = vadd.f32 %v7823_v21, %v7615_v16  ;;  %v8028_v32 = vadd.f32 %v8027_v15, %v7819_v18  ;;  %v9661_v16 = vld [vmem:[%s12805_s18 + $0xe4] sm:$0xf0] }
 0x7fc   : > { %v9664_v14 = vor.u32 %v11977_v52, %v9661_v16 }
 0x7fd   : > { %8702 = vmatmul.bf16.vlgmr.msrb.gmra.mxu1 %v9604_v30  ;;  %8911 = vmatmul.bf16.vlgmr.msrb.gmra.mxu2 %v9608_v29  ;;  %v9667_v30 = vld [vmem:[%s12805_s18 + $0xb0] sm:$0xf]  ;;  %v11985_v29 = vld [vmem:[%s12805_s18 + $0xe8] sm:$0xf0] }
 0x7fe   : > { %v9668_v22 = vor.u32 %v11985_v29, %v9667_v30 }
 0x800   : > { %v7616_v6 = vpop.f32.mrf.mxu3  ;;  %v8236_v49 = vpop.f32.mrf.mxu2 }
 0x801   : > { %v7617_v11 = vadd.f32 %v7616_v6, %v15055_v10  ;;  %v15594_v1 = vadd.f32 %v8236_v49, %v8028_v32  ;;  %v12006_v49 = vld [vmem:[%s12805_s18 + $0x194] sm:$0xf] }
 0x802   : > { %v8029_v21 = vpop.f32.mrf.mxu1  ;;  %v7828_v18 = vpop.f32.mrf.mxu0 }
 0x803   : > { %v7826_v27 = vadd.f32 %v7825_v54, %v7617_v11  ;;  %v8030_v28 = vadd.f32 %v8029_v21, %v7821_v55  ;;  %v9773_v11 = vld [vmem:[%s12805_s18 + $0x1cc] sm:$0xf0] }
 0x804   : > { %v9776_v16 = vor.u32 %v12006_v49, %v9773_v11 }
 0x805   : > { %8294 = vmatmul.bf16.gmra.mxu3 %v9716_v61  ;;  %8503 = vmatmul.bf16.gmra.mxu0 %v9720_v63  ;;  %v9779_v61 = vld [vmem:[%s12805_s18 + $0x198] sm:$0xf]  ;;  %v12014_v63 = vld [vmem:[%s12805_s18 + $0x1d0] sm:$0xf0] }
 0x806   : > { %v9780_v30 = vor.u32 %v12014_v63, %v9779_v61 }
 0x808   : > { %v7619_v15 = vpop.f32.mrf.mxu3  ;;  %v8238_v10 = vpop.f32.mrf.mxu2 }
 0x809   : > { %v7620_v32 = vadd.f32 %v7619_v15, %v15062_v5  ;;  %v15601_v44 = vadd.f32 %v8238_v10, %v8030_v28  ;;  %v11992_v10 = vld [vmem:[%s12805_s18 + $0x124] sm:$0xf] }
 0x80a   : > { %v8032_v54 = vpop.f32.mrf.mxu1  ;;  %v7830_v55 = vpop.f32.mrf.mxu0 }
 0x80b   : > { %v7829_v41 = vadd.f32 %v7828_v18, %v7620_v32  ;;  %v8033_v6 = vadd.f32 %v8032_v54, %v7824_v36  ;;  %v9721_v32 = vld [vmem:[%s12805_s18 + $0x15c] sm:$0xf0] }
 0x80c   : > { %v9724_v11 = vor.u32 %v11992_v10, %v9721_v32 }
 0x80d   : > { %8707 = vmatmul.bf16.gmra.mxu1 %v9664_v14  ;;  %8916 = vmatmul.bf16.gmra.mxu2 %v9668_v22  ;;  %v9727_v14 = vld [vmem:[%s12805_s18 + $0x128] sm:$0xf]  ;;  %v12000_v22 = vld [vmem:[%s12805_s18 + $0x160] sm:$0xf0] }
 0x80e   : > { %v9728_v61 = vor.u32 %v12000_v22, %v9727_v14 }
 0x810   : > { %v7621_v21 = vpop.f32.mrf.mxu3  ;;  %v8241_v5 = vpop.f32.mrf.mxu2 }
 0x811   : > { %v7622_v28 = vadd.f32 %v7621_v21, %v15069_v17  ;;  %v15608_v52 = vadd.f32 %v8241_v5, %v8033_v6  ;;  %v12021_v5 = vld [vmem:[%s12805_s18 + $0x20c] sm:$0xf] }
 0x812   : > { %v8034_v18 = vpop.f32.mrf.mxu1  ;;  %v7833_v36 = vpop.f32.mrf.mxu0 }
 0x813   : > { %v7831_v29 = vadd.f32 %v7830_v55, %v7622_v28  ;;  %v8035_v15 = vadd.f32 %v8034_v18, %v7826_v27  ;;  %v9833_v28 = vld [vmem:[%s12805_s18 + $0x244] sm:$0xf0] }
 0x814   : > { %v9836_v32 = vor.u32 %v12021_v5, %v9833_v28 }
 0x815   : > { %8299 = vmatmul.bf16.gmra.mxu3 %v9776_v16  ;;  %8508 = vmatmul.bf16.gmra.mxu0 %v9780_v30  ;;  %v9839_v16 = vld [vmem:[%s12805_s18 + $0x210] sm:$0xf]  ;;  %v12029_v30 = vld [vmem:[%s12805_s18 + $0x248] sm:$0xf0] }
 0x816   : > { %v9840_v14 = vor.u32 %v12029_v30, %v9839_v16 }
 0x818   : > { %v7624_v54 = vpop.f32.mrf.mxu3  ;;  %v8243_v17 = vpop.f32.mrf.mxu2 }
 0x819   : > { %v7625_v6 = vadd.f32 %v7624_v54, %v15076_v33  ;;  %v15615_v49 = vadd.f32 %v8243_v17, %v8035_v15  ;;  %v12007_v17 = vld [vmem:[%s12805_s18 + $0x19c] sm:$0xf] }
 0x81a   : > { %v8037_v55 = vpop.f32.mrf.mxu1  ;;  %v7835_v27 = vpop.f32.mrf.mxu0 }
 0x81b   : > { %v7834_v63 = vadd.f32 %v7833_v36, %v7625_v6  ;;  %v8038_v21 = vadd.f32 %v8037_v55, %v7829_v41  ;;  %v9781_v6 = vld [vmem:[%s12805_s18 + $0x1d4] sm:$0xf0] }
 0x81c   : > { %v9784_v28 = vor.u32 %v12007_v17, %v9781_v6 }
 0x81d   : > { %8712 = vmatmul.bf16.gmra.mxu1 %v9724_v11  ;;  %8921 = vmatmul.bf16.gmra.mxu2 %v9728_v61  ;;  %v9787_v11 = vld [vmem:[%s12805_s18 + $0x1a0] sm:$0xf]  ;;  %v12015_v61 = vld [vmem:[%s12805_s18 + $0x1d8] sm:$0xf0] }
 0x81e   : > { %v9788_v16 = vor.u32 %v12015_v61, %v9787_v11 }
 0x820   : > { %v7626_v18 = vpop.f32.mrf.mxu3  ;;  %v8246_v33 = vpop.f32.mrf.mxu2 }
 0x821   : > { %v7627_v15 = vadd.f32 %v7626_v18, %v15083_v3  ;;  %v15622_v10 = vadd.f32 %v8246_v33, %v8038_v21  ;;  %v12036_v33 = vld [vmem:[%s12805_s18 + $0x284] sm:$0xf] }
 0x822   : > { %v8039_v36 = vpop.f32.mrf.mxu1  ;;  %v7838_v41 = vpop.f32.mrf.mxu0 }
 0x823   : > { %v7836_v22 = vadd.f32 %v7835_v27, %v7627_v15  ;;  %v8040_v54 = vadd.f32 %v8039_v36, %v7831_v29  ;;  %v9893_v15 = vld [vmem:[%s12805_s18 + $0x2bc] sm:$0xf0] }
 0x824   : > { %v9896_v6 = vor.u32 %v12036_v33, %v9893_v15 }
 0x825   : > { %8304 = vmatmul.bf16.gmra.mxu3 %v9836_v32  ;;  %8513 = vmatmul.bf16.gmra.mxu0 %v9840_v14  ;;  %v9899_v32 = vld [vmem:[%s12805_s18 + $0x288] sm:$0xf]  ;;  %v12044_v14 = vld [vmem:[%s12805_s18 + $0x2c0] sm:$0xf0] }
 0x826   : > { %v9900_v11 = vor.u32 %v12044_v14, %v9899_v32 }
 0x828   : > { %v7629_v55 = vpop.f32.mrf.mxu3  ;;  %v8248_v3 = vpop.f32.mrf.mxu2 }
 0x829   : > { %v7630_v21 = vadd.f32 %v7629_v55, %v15090_v42  ;;  %v15629_v5 = vadd.f32 %v8248_v3, %v8040_v54  ;;  %v12022_v3 = vld [vmem:[%s12805_s18 + $0x214] sm:$0xf] }
 0x82a   : > { %v8042_v27 = vpop.f32.mrf.mxu1  ;;  %v7840_v29 = vpop.f32.mrf.mxu0 }
 0x82b   : > { %v7839_v30 = vadd.f32 %v7838_v41, %v7630_v21  ;;  %v8043_v18 = vadd.f32 %v8042_v27, %v7834_v63  ;;  %v9841_v21 = vld [vmem:[%s12805_s18 + $0x24c] sm:$0xf0] }
 0x82c   : > { %v9844_v15 = vor.u32 %v12022_v3, %v9841_v21 }
 0x82d   : > { %8717 = vmatmul.bf16.gmra.mxu1 %v9784_v28  ;;  %8926 = vmatmul.bf16.gmra.mxu2 %v9788_v16  ;;  %v9847_v28 = vld [vmem:[%s12805_s18 + $0x218] sm:$0xf]  ;;  %v12030_v16 = vld [vmem:[%s12805_s18 + $0x250] sm:$0xf0] }
 0x82e   : > { %v9848_v32 = vor.u32 %v12030_v16, %v9847_v28 }
 0x830   : > { %v7631_v36 = vpop.f32.mrf.mxu3  ;;  %v8251_v42 = vpop.f32.mrf.mxu2 }
 0x831   : > { %v7632_v54 = vadd.f32 %v7631_v36, %v15097_v45  ;;  %v15636_v17 = vadd.f32 %v8251_v42, %v8043_v18  ;;  %v12051_v42 = vld [vmem:[%s12805_s18 + $0x2fc] sm:$0xf] }
 0x832   : > { %v8044_v41 = vpop.f32.mrf.mxu1  ;;  %v7843_v63 = vpop.f32.mrf.mxu0 }
 0x833   : > { %v7841_v61 = vadd.f32 %v7840_v29, %v7632_v54  ;;  %v8045_v55 = vadd.f32 %v8044_v41, %v7836_v22  ;;  %v9953_v54 = vld [vmem:[%s12805_s18 + $0x334] sm:$0xf0] }
 0x834   : > { %v9956_v21 = vor.u32 %v12051_v42, %v9953_v54 }
 0x835   : > { %8309 = vmatmul.bf16.gmra.mxu3 %v9896_v6  ;;  %8518 = vmatmul.bf16.gmra.mxu0 %v9900_v11  ;;  %v9959_v6 = vld [vmem:[%s12805_s18 + $0x300] sm:$0xf]  ;;  %v12059_v11 = vld [vmem:[%s12805_s18 + $0x338] sm:$0xf0] }
 0x836   : > { %v9960_v28 = vor.u32 %v12059_v11, %v9959_v6 }
 0x838   : > { %v7634_v27 = vpop.f32.mrf.mxu3  ;;  %v8253_v45 = vpop.f32.mrf.mxu2 }
 0x839   : > { %v7635_v18 = vadd.f32 %v7634_v27, %v15104_v19  ;;  %v15643_v33 = vadd.f32 %v8253_v45, %v8045_v55  ;;  %v12037_v45 = vld [vmem:[%s12805_s18 + $0x28c] sm:$0xf] }
 0x83a   : > { %v8047_v29 = vpop.f32.mrf.mxu1  ;;  %v7845_v22 = vpop.f32.mrf.mxu0 }
 0x83b   : > { %v7844_v14 = vadd.f32 %v7843_v63, %v7635_v18  ;;  %v8048_v36 = vadd.f32 %v8047_v29, %v7839_v30  ;;  %v9901_v18 = vld [vmem:[%s12805_s18 + $0x2c4] sm:$0xf0] }
 0x83c   : > { %v9904_v54 = vor.u32 %v12037_v45, %v9901_v18 }
 0x83d   : > { %8722 = vmatmul.bf16.gmra.mxu1 %v9844_v15  ;;  %8931 = vmatmul.bf16.gmra.mxu2 %v9848_v32  ;;  %v9907_v15 = vld [vmem:[%s12805_s18 + $0x290] sm:$0xf]  ;;  %v12045_v32 = vld [vmem:[%s12805_s18 + $0x2c8] sm:$0xf0] }
 0x83e   : > { %v9908_v6 = vor.u32 %v12045_v32, %v9907_v15 }
 0x840   : > { %v7636_v41 = vpop.f32.mrf.mxu3  ;;  %v8256_v19 = vpop.f32.mrf.mxu2 }
 0x841   : > { %v7637_v55 = vadd.f32 %v7636_v41, %v15111_v8  ;;  %v15650_v3 = vadd.f32 %v8256_v19, %v8048_v36  ;;  %v12066_v19 = vld [vmem:[%s12805_s18 + $0x374] sm:$0xf] }
 0x842   : > { %v8049_v63 = vpop.f32.mrf.mxu1  ;;  %v7848_v30 = vpop.f32.mrf.mxu0 }
 0x843   : > { %v7846_v16 = vadd.f32 %v7845_v22, %v7637_v55  ;;  %v8050_v27 = vadd.f32 %v8049_v63, %v7841_v61  ;;  %v10013_v55 = vld [vmem:[%s12805_s18 + $0x3ac] sm:$0xf0] }
 0x844   : > { %v10016_v18 = vor.u32 %v12066_v19, %v10013_v55 }
 0x845   : > { %8314 = vmatmul.bf16.gmra.mxu3 %v9956_v21  ;;  %8523 = vmatmul.bf16.gmra.mxu0 %v9960_v28  ;;  %v10019_v21 = vld [vmem:[%s12805_s18 + $0x378] sm:$0xf]  ;;  %v12074_v28 = vld [vmem:[%s12805_s18 + $0x3b0] sm:$0xf0] }
 0x846   : > { %v10020_v15 = vor.u32 %v12074_v28, %v10019_v21 }
 0x848   : > { %v7639_v29 = vpop.f32.mrf.mxu3  ;;  %v8258_v8 = vpop.f32.mrf.mxu2 }
 0x849   : > { %v7640_v36 = vadd.f32 %v7639_v29, %v15118_v48  ;;  %v15657_v42 = vadd.f32 %v8258_v8, %v8050_v27  ;;  %v17538_v27 = vld [vmem:[#allocation5_spill] sm:$0xff] }
 0x84a   : > { %v8052_v22 = vpop.f32.mrf.mxu1  ;;  %v7850_v61 = vpop.f32.mrf.mxu0 }
 0x84b   : > { %17537 = vst [vmem:[#allocation74_spill] sm:$0xff] %v15657_v42  ;;  %v7849_v11 = vadd.f32 %v7848_v30, %v7640_v36  ;;  %v8053_v41 = vadd.f32 %v8052_v22, %v7844_v14  ;;  %v12052_v36 = vld [vmem:[%s12805_s18 + $0x304] sm:$0xf] }
 0x84c   : > { %v12060_v22 = vld [vmem:[%s12805_s18 + $0x340] sm:$0xf0] }
 0x84d   : > { %8727 = vmatmul.bf16.gmra.mxu1 %v9904_v54  ;;  %8936 = vmatmul.bf16.gmra.mxu2 %v9908_v6  ;;  %v9961_v54 = vld [vmem:[%s12805_s18 + $0x33c] sm:$0xf0]  ;;  %v9967_v6 = vld [vmem:[%s12805_s18 + $0x308] sm:$0xf] }
 0x84e   : > { %v9964_v55 = vor.u32 %v12052_v36, %v9961_v54  ;;  %v9968_v21 = vor.u32 %v12060_v22, %v9967_v6 }
 0x850   : > { %v7641_v63 = vpop.f32.mrf.mxu3  ;;  %v8261_v48 = vpop.f32.mrf.mxu2 }
 0x851   : > { %v7642_v29 = vadd.f32 %v7641_v63, %v17538_v27  ;;  %v15664_v45 = vadd.f32 %v8261_v48, %v8053_v41  ;;  %v17540_v41 = vld [vmem:[#allocation6_spill] sm:$0xff] }
 0x852   : > { %v8054_v30 = vpop.f32.mrf.mxu1  ;;  %v7853_v14 = vpop.f32.mrf.mxu0 }
 0x853   : > { %17539 = vst [vmem:[#allocation75_spill] sm:$0xff] %v15664_v45  ;;  %v7851_v32 = vadd.f32 %v7850_v61, %v7642_v29  ;;  %v8055_v8 = vadd.f32 %v8054_v30, %v7846_v16  ;;  %v12081_v29 = vld [vmem:[%s12805_s18 + $0x3ec] sm:$0xf] }
 0x854   : > { %v12089_v30 = vld [vmem:[%s12805_s18 + $0x428] sm:$0xf0] }
 0x855   : > { %8319 = vmatmul.bf16.gmra.mxu3 %v10016_v18  ;;  %8528 = vmatmul.bf16.gmra.mxu0 %v10020_v15  ;;  %v10073_v18 = vld [vmem:[%s12805_s18 + $0x424] sm:$0xf0]  ;;  %v10079_v15 = vld [vmem:[%s12805_s18 + $0x3f0] sm:$0xf] }
 0x856   : > { %v10076_v54 = vor.u32 %v12081_v29, %v10073_v18  ;;  %v10080_v6 = vor.u32 %v12089_v30, %v10079_v15  ;;  %v17545_v29 = vld [vmem:[#allocation8_spill] sm:$0xff] }
 0x858   : > { %v7644_v42 = vpop.f32.mrf.mxu3  ;;  %v8263_v63 = vpop.f32.mrf.mxu2 }
 0x859   : > { %v7645_v48 = vadd.f32 %v7644_v42, %v17540_v41  ;;  %v15671_v19 = vadd.f32 %v8263_v63, %v8055_v8  ;;  %v17542_v8 = vld [vmem:[#allocation7_spill] sm:$0xff] }
 0x85a   : > { %v8057_v61 = vpop.f32.mrf.mxu1  ;;  %v7855_v16 = vpop.f32.mrf.mxu0 }
 0x85b   : > { %17541 = vst [vmem:[#allocation78_spill] sm:$0xff] %v15671_v19  ;;  %v7854_v28 = vadd.f32 %v7853_v14, %v7645_v48  ;;  %v8058_v27 = vadd.f32 %v8057_v61, %v7849_v11  ;;  %v12067_v48 = vld [vmem:[%s12805_s18 + $0x37c] sm:$0xf] }
 0x85c   : > { %v12075_v61 = vld [vmem:[%s12805_s18 + $0x3b8] sm:$0xf0] }
 0x85d   : > { %8732 = vmatmul.bf16.gmra.mxu1 %v9964_v55  ;;  %8941 = vmatmul.bf16.gmra.mxu2 %v9968_v21  ;;  %v10021_v55 = vld [vmem:[%s12805_s18 + $0x3b4] sm:$0xf0]  ;;  %v10027_v21 = vld [vmem:[%s12805_s18 + $0x380] sm:$0xf] }
 0x85e   : > { %v10024_v15 = vor.u32 %v12067_v48, %v10021_v55  ;;  %v10028_v30 = vor.u32 %v12075_v61, %v10027_v21  ;;  %v17547_v48 = vld [vmem:[#allocation9_spill] sm:$0xff] }
 0x860   : > { %v7646_v45 = vpop.f32.mrf.mxu3  ;;  %v8266_v42 = vpop.f32.mrf.mxu2 }
 0x861   : > { %v7647_v63 = vadd.f32 %v7646_v45, %v17542_v8  ;;  %v15678_v36 = vadd.f32 %v8266_v42, %v8058_v27 }
 0x862   : > { %v8059_v14 = vpop.f32.mrf.mxu1  ;;  %v8494_v11 = vpop.f32.mrf.mxu0 }
 0x863   : > { %17543 = vst [vmem:[#allocation76_spill] sm:$0xff] %v15678_v36  ;;  %v7856_v22 = vadd.f32 %v7855_v16, %v7647_v63  ;;  %v8060_v41 = vadd.f32 %v8059_v14, %v7851_v32  ;;  %v12096_v63 = vld [vmem:[%s12805_s18 + $0x464] sm:$0xf] }
 0x864   : > { %v12104_v14 = vld [vmem:[%s12805_s18 + $0x4a0] sm:$0xf0] }
 0x865   : > { %8324 = vmatmul.bf16.gmra.mxu3 %v10076_v54  ;;  %8533 = vmatmul.bf16.gmra.mxu0 %v10080_v6  ;;  %v10133_v54 = vld [vmem:[%s12805_s18 + $0x49c] sm:$0xf0]  ;;  %v10139_v6 = vld [vmem:[%s12805_s18 + $0x468] sm:$0xf] }
 0x866   : > { %v10136_v21 = vor.u32 %v12096_v63, %v10133_v54  ;;  %v10140_v61 = vor.u32 %v12104_v14, %v10139_v6  ;;  %v17549_v63 = vld [vmem:[#allocation11_spill] sm:$0xff] }
 0x868   : > { %v8268_v19 = vpop.f32.mrf.mxu2  ;;  %v8285_v45 = vpop.f32.mrf.mxu3 }
 0x869   : > { %v15684_v27 = vadd.f32 %v8268_v19, %v8060_v41  ;;  %v8286_v18 = vadd.f32 %v8285_v45, %v17545_v29 }
 0x86a   : > { %v8062_v16 = vpop.f32.mrf.mxu1  ;;  %v8496_v32 = vpop.f32.mrf.mxu0 }
 0x86b   : > { %17544 = vst [vmem:[#allocation79_spill] sm:$0xff] %v15684_v27  ;;  %v8063_v42 = vadd.f32 %v8062_v16, %v7854_v28  ;;  %v8495_v8 = vadd.f32 %v8494_v11, %v8286_v18  ;;  %v12082_v18 = vld [vmem:[%s12805_s18 + $0x3f4] sm:$0xf] }
 0x86c   : > { %v12090_v16 = vld [vmem:[%s12805_s18 + $0x430] sm:$0xf0] }
 0x86d   : > { %8737 = vmatmul.bf16.gmra.mxu1 %v10024_v15  ;;  %8946 = vmatmul.bf16.gmra.mxu2 %v10028_v30  ;;  %v10081_v15 = vld [vmem:[%s12805_s18 + $0x42c] sm:$0xf0]  ;;  %v10087_v30 = vld [vmem:[%s12805_s18 + $0x3f8] sm:$0xf] }
 0x86e   : > { %v10084_v6 = vor.u32 %v12082_v18, %v10081_v15  ;;  %v10088_v14 = vor.u32 %v12090_v16, %v10087_v30 }
 0x870   : > { %v8271_v19 = vpop.f32.mrf.mxu2  ;;  %v8287_v41 = vpop.f32.mrf.mxu3 }
 0x871   : > { %v15691_v27 = vadd.f32 %v8271_v19, %v8063_v42  ;;  %v8288_v55 = vadd.f32 %v8287_v41, %v17547_v48 }
 0x872   : > { %v8064_v28 = vpop.f32.mrf.mxu1  ;;  %v8499_v11 = vpop.f32.mrf.mxu0 }
 0x873   : > { %17546 = vst [vmem:[#allocation55_spill] sm:$0xff] %v15691_v27  ;;  %v8065_v45 = vadd.f32 %v8064_v28, %v7856_v22  ;;  %v8497_v29 = vadd.f32 %v8496_v32, %v8288_v55  ;;  %v12111_v55 = vld [vmem:[%s12805_s18 + $0x4dc] sm:$0xf] }
 0x874   : > { %v12119_v28 = vld [vmem:[%s12805_s18 + $0x518] sm:$0xf0] }
 0x875   : > { %8329 = vmatmul.bf16.gmra.mxu3 %v10136_v21  ;;  %8538 = vmatmul.bf16.gmra.mxu0 %v10140_v61  ;;  %v10193_v21 = vld [vmem:[%s12805_s18 + $0x514] sm:$0xf0]  ;;  %v10199_v61 = vld [vmem:[%s12805_s18 + $0x4e0] sm:$0xf] }
 0x876   : > { %v10196_v15 = vor.u32 %v12111_v55, %v10193_v21  ;;  %v10200_v30 = vor.u32 %v12119_v28, %v10199_v61 }
 0x878   : > { %v8273_v42 = vpop.f32.mrf.mxu2  ;;  %v8290_v19 = vpop.f32.mrf.mxu3 }
 0x879   : > { %v15698_v27 = vadd.f32 %v8273_v42, %v8065_v45  ;;  %v8291_v54 = vadd.f32 %v8290_v19, %v17549_v63 }
 0x87a   : > { %v8703_v22 = vpop.f32.mrf.mxu1  ;;  %v8501_v32 = vpop.f32.mrf.mxu0 }
 0x87b   : > { %17548 = vst [vmem:[#allocation54_spill] sm:$0xff] %v15698_v27  ;;  %v8500_v41 = vadd.f32 %v8499_v11, %v8291_v54  ;;  %v8704_v48 = vadd.f32 %v8703_v22, %v8495_v8  ;;  %v17550_v27 = vld [vmem:[#allocation13_spill] sm:$0xff]  ;;  %v12097_v54 = vld [vmem:[%s12805_s18 + $0x46c] sm:$0xf] }
 0x87c   : > { %v12105_v22 = vld [vmem:[%s12805_s18 + $0x4a8] sm:$0xf0] }
 0x87d   : > { %8742 = vmatmul.bf16.gmra.mxu1 %v10084_v6  ;;  %8951 = vmatmul.bf16.gmra.mxu2 %v10088_v14  ;;  %v10141_v6 = vld [vmem:[%s12805_s18 + $0x4a4] sm:$0xf0]  ;;  %v10147_v14 = vld [vmem:[%s12805_s18 + $0x470] sm:$0xf] }
 0x87e   : > { %v10144_v21 = vor.u32 %v12097_v54, %v10141_v6  ;;  %v10148_v61 = vor.u32 %v12105_v22, %v10147_v14 }
 0x880   : > { %v8292_v45 = vpop.f32.mrf.mxu3  ;;  %v8912_v42 = vpop.f32.mrf.mxu2 }
 0x881   : > { %v8293_v19 = vadd.f32 %v8292_v45, %v17550_v27  ;;  %v15706_v18 = vadd.f32 %v8912_v42, %v8704_v48  ;;  %v17552_v48 = vld [vmem:[#allocation15_spill] sm:$0xff] }
 0x882   : > { %v8705_v11 = vpop.f32.mrf.mxu1  ;;  %v8504_v8 = vpop.f32.mrf.mxu0 }
 0x883   : > { %17551 = vst [vmem:[#allocation66_spill] sm:$0xff] %v15706_v18  ;;  %v8502_v16 = vadd.f32 %v8501_v32, %v8293_v19  ;;  %v8706_v63 = vadd.f32 %v8705_v11, %v8497_v29  ;;  %v12126_v19 = vld [vmem:[%s12805_s18 + $0x554] sm:$0xf] }
 0x884   : > { %v12134_v11 = vld [vmem:[%s12805_s18 + $0x590] sm:$0xf0] }
 0x885   : > { %8334 = vmatmul.bf16.gmra.mxu3 %v10196_v15  ;;  %8543 = vmatmul.bf16.gmra.mxu0 %v10200_v30  ;;  %v10253_v15 = vld [vmem:[%s12805_s18 + $0x58c] sm:$0xf0]  ;;  %v10259_v30 = vld [vmem:[%s12805_s18 + $0x558] sm:$0xf] }
 0x886   : > { %v10256_v6 = vor.u32 %v12126_v19, %v10253_v15  ;;  %v10260_v14 = vor.u32 %v12134_v11, %v10259_v30 }
 0x888   : > { %v8295_v36 = vpop.f32.mrf.mxu3  ;;  %v8914_v27 = vpop.f32.mrf.mxu2 }
 0x889   : > { %v8296_v45 = vadd.f32 %v8295_v36, %v17552_v48  ;;  %v15713_v55 = vadd.f32 %v8914_v27, %v8706_v63  ;;  %v17554_v63 = vld [vmem:[#allocation17_spill] sm:$0xff] }
 0x88a   : > { %v8708_v32 = vpop.f32.mrf.mxu1  ;;  %v8506_v29 = vpop.f32.mrf.mxu0 }
 0x88b   : > { %17553 = vst [vmem:[#allocation67_spill] sm:$0xff] %v15713_v55  ;;  %v8505_v28 = vadd.f32 %v8504_v8, %v8296_v45  ;;  %v8709_v42 = vadd.f32 %v8708_v32, %v8500_v41  ;;  %v12112_v45 = vld [vmem:[%s12805_s18 + $0x4e4] sm:$0xf] }
 0x88c   : > { %v12120_v32 = vld [vmem:[%s12805_s18 + $0x520] sm:$0xf0] }
 0x88d   : > { %8747 = vmatmul.bf16.gmra.mxu1 %v10144_v21  ;;  %8956 = vmatmul.bf16.gmra.mxu2 %v10148_v61  ;;  %v10201_v21 = vld [vmem:[%s12805_s18 + $0x51c] sm:$0xf0]  ;;  %v10207_v61 = vld [vmem:[%s12805_s18 + $0x4e8] sm:$0xf] }
 0x88e   : > { %v10204_v15 = vor.u32 %v12112_v45, %v10201_v21  ;;  %v10208_v30 = vor.u32 %v12120_v32, %v10207_v61 }
 0x890   : > { %v8297_v18 = vpop.f32.mrf.mxu3  ;;  %v8917_v36 = vpop.f32.mrf.mxu2 }
 0x891   : > { %v8298_v27 = vadd.f32 %v8297_v18, %v17554_v63  ;;  %v15720_v54 = vadd.f32 %v8917_v36, %v8709_v42  ;;  %v17556_v42 = vld [vmem:[#allocation19_spill] sm:$0xff] }
 0x892   : > { %v8710_v8 = vpop.f32.mrf.mxu1  ;;  %v8509_v41 = vpop.f32.mrf.mxu0 }
 0x893   : > { %17555 = vst [vmem:[#allocation10_spill] sm:$0xff] %v15720_v54  ;;  %v8507_v22 = vadd.f32 %v8506_v29, %v8298_v27  ;;  %v8711_v48 = vadd.f32 %v8710_v8, %v8502_v16  ;;  %v12141_v27 = vld [vmem:[%s12805_s18 + $0x5cc] sm:$0xf] }
 0x894   : > { %v12149_v8 = vld [vmem:[%s12805_s18 + $0x608] sm:$0xf0] }
 0x895   : > { %8339 = vmatmul.bf16.gmra.mxu3 %v10256_v6  ;;  %8548 = vmatmul.bf16.gmra.mxu0 %v10260_v14  ;;  %v10313_v6 = vld [vmem:[%s12805_s18 + $0x604] sm:$0xf0]  ;;  %v10319_v14 = vld [vmem:[%s12805_s18 + $0x5d0] sm:$0xf] }
 0x896   : > { %v10316_v21 = vor.u32 %v12141_v27, %v10313_v6  ;;  %v10320_v61 = vor.u32 %v12149_v8, %v10319_v14 }
 0x898   : > { %v8300_v55 = vpop.f32.mrf.mxu3  ;;  %v8919_v18 = vpop.f32.mrf.mxu2 }
 0x899   : > { %v8301_v36 = vadd.f32 %v8300_v55, %v17556_v42  ;;  %v15727_v19 = vadd.f32 %v8919_v18, %v8711_v48  ;;  %v17558_v48 = vld [vmem:[#allocation21_spill] sm:$0xff] }
 0x89a   : > { %v8713_v29 = vpop.f32.mrf.mxu1  ;;  %v8511_v16 = vpop.f32.mrf.mxu0 }
 0x89b   : > { %17557 = vst [vmem:[#allocation42_spill] sm:$0xff] %v15727_v19  ;;  %v8510_v11 = vadd.f32 %v8509_v41, %v8301_v36  ;;  %v8714_v63 = vadd.f32 %v8713_v29, %v8505_v28  ;;  %v12127_v36 = vld [vmem:[%s12805_s18 + $0x55c] sm:$0xf] }
 0x89c   : > { %v12135_v29 = vld [vmem:[%s12805_s18 + $0x598] sm:$0xf0] }
 0x89d   : > { %8752 = vmatmul.bf16.gmra.mxu1 %v10204_v15  ;;  %8961 = vmatmul.bf16.gmra.mxu2 %v10208_v30  ;;  %v10261_v15 = vld [vmem:[%s12805_s18 + $0x594] sm:$0xf0]  ;;  %v10267_v30 = vld [vmem:[%s12805_s18 + $0x560] sm:$0xf] }
 0x89e   : > { %v10264_v6 = vor.u32 %v12127_v36, %v10261_v15  ;;  %v10268_v14 = vor.u32 %v12135_v29, %v10267_v30 }
 0x8a0   : > { %v8302_v54 = vpop.f32.mrf.mxu3  ;;  %v8922_v55 = vpop.f32.mrf.mxu2 }
 0x8a1   : > { %v8303_v18 = vadd.f32 %v8302_v54, %v17558_v48  ;;  %v15734_v45 = vadd.f32 %v8922_v55, %v8714_v63  ;;  %v17560_v63 = vld [vmem:[#allocation23_spill] sm:$0xff] }
 0x8a2   : > { %v8715_v41 = vpop.f32.mrf.mxu1  ;;  %v8514_v28 = vpop.f32.mrf.mxu0 }
 0x8a3   : > { %17559 = vst [vmem:[#allocation60_spill] sm:$0xff] %v15734_v45  ;;  %v8512_v32 = vadd.f32 %v8511_v16, %v8303_v18  ;;  %v8716_v42 = vadd.f32 %v8715_v41, %v8507_v22  ;;  %v12156_v18 = vld [vmem:[%s12805_s18 + $0x644] sm:$0xf] }
 0x8a4   : > { %v12164_v41 = vld [vmem:[%s12805_s18 + $0x680] sm:$0xf0] }
 0x8a5   : > { %8344 = vmatmul.bf16.gmra.mxu3 %v10316_v21  ;;  %8553 = vmatmul.bf16.gmra.mxu0 %v10320_v61  ;;  %v10373_v21 = vld [vmem:[%s12805_s18 + $0x67c] sm:$0xf0]  ;;  %v10379_v61 = vld [vmem:[%s12805_s18 + $0x648] sm:$0xf] }
 0x8a6   : > { %v10376_v15 = vor.u32 %v12156_v18, %v10373_v21  ;;  %v10380_v30 = vor.u32 %v12164_v41, %v10379_v61 }
 0x8a8   : > { %v8305_v19 = vpop.f32.mrf.mxu3  ;;  %v8924_v54 = vpop.f32.mrf.mxu2 }
 0x8a9   : > { %v8306_v55 = vadd.f32 %v8305_v19, %v17560_v63  ;;  %v15741_v27 = vadd.f32 %v8924_v54, %v8716_v42  ;;  %v17562_v42 = vld [vmem:[#allocation25_spill] sm:$0xff] }
 0x8aa   : > { %v8718_v16 = vpop.f32.mrf.mxu1  ;;  %v8516_v22 = vpop.f32.mrf.mxu0 }
 0x8ab   : > { %17561 = vst [vmem:[#allocation61_spill] sm:$0xff] %v15741_v27  ;;  %v8515_v8 = vadd.f32 %v8514_v28, %v8306_v55  ;;  %v8719_v48 = vadd.f32 %v8718_v16, %v8510_v11  ;;  %v12142_v55 = vld [vmem:[%s12805_s18 + $0x5d4] sm:$0xf] }
 0x8ac   : > { %v12150_v16 = vld [vmem:[%s12805_s18 + $0x610] sm:$0xf0] }
 0x8ad   : > { %8757 = vmatmul.bf16.gmra.mxu1 %v10264_v6  ;;  %8966 = vmatmul.bf16.gmra.mxu2 %v10268_v14  ;;  %v10321_v6 = vld [vmem:[%s12805_s18 + $0x60c] sm:$0xf0]  ;;  %v10327_v14 = vld [vmem:[%s12805_s18 + $0x5d8] sm:$0xf] }
 0x8ae   : > { %v10324_v21 = vor.u32 %v12142_v55, %v10321_v6  ;;  %v10328_v61 = vor.u32 %v12150_v16, %v10327_v14 }
 0x8b0   : > { %v8307_v45 = vpop.f32.mrf.mxu3  ;;  %v8927_v19 = vpop.f32.mrf.mxu2 }
 0x8b1   : > { %v8308_v54 = vadd.f32 %v8307_v45, %v17562_v42  ;;  %v15748_v36 = vadd.f32 %v8927_v19, %v8719_v48  ;;  %v17564_v48 = vld [vmem:[#allocation27_spill] sm:$0xff] }
 0x8b2   : > { %v8720_v28 = vpop.f32.mrf.mxu1  ;;  %v8519_v11 = vpop.f32.mrf.mxu0 }
 0x8b3   : > { %17563 = vst [vmem:[#allocation80_spill] sm:$0xff] %v15748_v36  ;;  %v8517_v29 = vadd.f32 %v8516_v22, %v8308_v54  ;;  %v8721_v63 = vadd.f32 %v8720_v28, %v8512_v32  ;;  %v12171_v54 = vld [vmem:[%s12805_s18 + $0x6bc] sm:$0xf] }
 0x8b4   : > { %v12179_v28 = vld [vmem:[%s12805_s18 + $0x6f8] sm:$0xf0] }
 0x8b5   : > { %8349 = vmatmul.bf16.gmra.mxu3 %v10376_v15  ;;  %8558 = vmatmul.bf16.gmra.mxu0 %v10380_v30  ;;  %v10433_v15 = vld [vmem:[%s12805_s18 + $0x6f4] sm:$0xf0]  ;;  %v10439_v30 = vld [vmem:[%s12805_s18 + $0x6c0] sm:$0xf] }
 0x8b6   : > { %v10436_v6 = vor.u32 %v12171_v54, %v10433_v15  ;;  %v10440_v14 = vor.u32 %v12179_v28, %v10439_v30 }
 0x8b8   : > { %v8310_v27 = vpop.f32.mrf.mxu3  ;;  %v8929_v45 = vpop.f32.mrf.mxu2 }
 0x8b9   : > { %v8311_v19 = vadd.f32 %v8310_v27, %v17564_v48  ;;  %v15755_v18 = vadd.f32 %v8929_v45, %v8721_v63  ;;  %v17566_v63 = vld [vmem:[#allocation29_spill] sm:$0xff] }
 0x8ba   : > { %v8723_v22 = vpop.f32.mrf.mxu1  ;;  %v8521_v32 = vpop.f32.mrf.mxu0 }
 0x8bb   : > { %17565 = vst [vmem:[#allocation77_spill] sm:$0xff] %v15755_v18  ;;  %v8520_v41 = vadd.f32 %v8519_v11, %v8311_v19  ;;  %v8724_v42 = vadd.f32 %v8723_v22, %v8515_v8  ;;  %v12157_v19 = vld [vmem:[%s12805_s18 + $0x64c] sm:$0xf] }
 0x8bc   : > { %v12165_v22 = vld [vmem:[%s12805_s18 + $0x688] sm:$0xf0] }
 0x8bd   : > { %8762 = vmatmul.bf16.gmra.mxu1 %v10324_v21  ;;  %8971 = vmatmul.bf16.gmra.mxu2 %v10328_v61  ;;  %v10381_v21 = vld [vmem:[%s12805_s18 + $0x684] sm:$0xf0]  ;;  %v10387_v61 = vld [vmem:[%s12805_s18 + $0x650] sm:$0xf] }
 0x8be   : > { %v10384_v15 = vor.u32 %v12157_v19, %v10381_v21  ;;  %v10388_v30 = vor.u32 %v12165_v22, %v10387_v61 }
 0x8c0   : > { %v8312_v36 = vpop.f32.mrf.mxu3  ;;  %v8932_v27 = vpop.f32.mrf.mxu2 }
 0x8c1   : > { %v8313_v45 = vadd.f32 %v8312_v36, %v17566_v63  ;;  %v15762_v55 = vadd.f32 %v8932_v27, %v8724_v42  ;;  %v17568_v42 = vld [vmem:[#allocation31_spill] sm:$0xff] }
 0x8c2   : > { %v8725_v11 = vpop.f32.mrf.mxu1  ;;  %v8524_v8 = vpop.f32.mrf.mxu0 }
 0x8c3   : > { %17567 = vst [vmem:[#allocation69_spill] sm:$0xff] %v15762_v55  ;;  %v8522_v16 = vadd.f32 %v8521_v32, %v8313_v45  ;;  %v8726_v48 = vadd.f32 %v8725_v11, %v8517_v29  ;;  %v12186_v45 = vld [vmem:[%s12805_s18 + $0x734] sm:$0xf] }
 0x8c4   : > { %v12194_v11 = vld [vmem:[%s12805_s18 + $0x770] sm:$0xf0] }
 0x8c5   : > { %8354 = vmatmul.bf16.gmra.mxu3 %v10436_v6  ;;  %8563 = vmatmul.bf16.gmra.mxu0 %v10440_v14  ;;  %v10493_v6 = vld [vmem:[%s12805_s18 + $0x76c] sm:$0xf0]  ;;  %v10499_v14 = vld [vmem:[%s12805_s18 + $0x738] sm:$0xf] }
 0x8c6   : > { %v10496_v21 = vor.u32 %v12186_v45, %v10493_v6  ;;  %v10500_v61 = vor.u32 %v12194_v11, %v10499_v14 }
 0x8c8   : > { %v8315_v18 = vpop.f32.mrf.mxu3  ;;  %v8934_v36 = vpop.f32.mrf.mxu2 }
 0x8c9   : > { %v8316_v27 = vadd.f32 %v8315_v18, %v17568_v42  ;;  %v15769_v54 = vadd.f32 %v8934_v36, %v8726_v48  ;;  %v17570_v48 = vld [vmem:[#allocation33_spill] sm:$0xff] }
 0x8ca   : > { %v8728_v32 = vpop.f32.mrf.mxu1  ;;  %v8526_v29 = vpop.f32.mrf.mxu0 }
 0x8cb   : > { %17569 = vst [vmem:[#allocation71_spill] sm:$0xff] %v15769_v54  ;;  %v8525_v28 = vadd.f32 %v8524_v8, %v8316_v27  ;;  %v8729_v63 = vadd.f32 %v8728_v32, %v8520_v41  ;;  %v12172_v27 = vld [vmem:[%s12805_s18 + $0x6c4] sm:$0xf] }
 0x8cc   : > { %v12180_v32 = vld [vmem:[%s12805_s18 + $0x700] sm:$0xf0] }
 0x8cd   : > { %8767 = vmatmul.bf16.gmra.mxu1 %v10384_v15  ;;  %8976 = vmatmul.bf16.gmra.mxu2 %v10388_v30  ;;  %v10441_v15 = vld [vmem:[%s12805_s18 + $0x6fc] sm:$0xf0]  ;;  %v10447_v30 = vld [vmem:[%s12805_s18 + $0x6c8] sm:$0xf] }
 0x8ce   : > { %v10444_v6 = vor.u32 %v12172_v27, %v10441_v15  ;;  %v10448_v14 = vor.u32 %v12180_v32, %v10447_v30 }
 0x8d0   : > { %v8317_v55 = vpop.f32.mrf.mxu3  ;;  %v8937_v18 = vpop.f32.mrf.mxu2 }
 0x8d1   : > { %v8318_v36 = vadd.f32 %v8317_v55, %v17570_v48  ;;  %v15776_v19 = vadd.f32 %v8937_v18, %v8729_v63  ;;  %v17572_v63 = vld [vmem:[#allocation34_spill] sm:$0xff] }
 0x8d2   : > { %v8730_v8 = vpop.f32.mrf.mxu1  ;;  %v8529_v41 = vpop.f32.mrf.mxu0 }
 0x8d3   : > { %17571 = vst [vmem:[#allocation72_spill] sm:$0xff] %v15776_v19  ;;  %v8527_v22 = vadd.f32 %v8526_v29, %v8318_v36  ;;  %v8731_v42 = vadd.f32 %v8730_v8, %v8522_v16  ;;  %v12201_v36 = vld [vmem:[%s12805_s18 + $0x7ac] sm:$0xf] }
 0x8d4   : > { %v12209_v8 = vld [vmem:[%s12805_s18 + $0x7e8] sm:$0xf0] }
 0x8d5   : > { %8359 = vmatmul.bf16.gmra.mxu3 %v10496_v21  ;;  %8568 = vmatmul.bf16.gmra.mxu0 %v10500_v61  ;;  %v10553_v21 = vld [vmem:[%s12805_s18 + $0x7e4] sm:$0xf0]  ;;  %v10559_v61 = vld [vmem:[%s12805_s18 + $0x7b0] sm:$0xf] }
 0x8d6   : > { %v10556_v15 = vor.u32 %v12201_v36, %v10553_v21  ;;  %v10560_v30 = vor.u32 %v12209_v8, %v10559_v61 }
 0x8d8   : > { %v8320_v54 = vpop.f32.mrf.mxu3  ;;  %v8939_v55 = vpop.f32.mrf.mxu2 }
 0x8d9   : > { %v8321_v18 = vadd.f32 %v8320_v54, %v17572_v63  ;;  %v15783_v45 = vadd.f32 %v8939_v55, %v8731_v42  ;;  %v17574_v42 = vld [vmem:[#allocation35_spill] sm:$0xff] }
 0x8da   : > { %v8733_v29 = vpop.f32.mrf.mxu1  ;;  %v8531_v16 = vpop.f32.mrf.mxu0 }
 0x8db   : > { %17573 = vst [vmem:[#allocation81_spill] sm:$0xff] %v15783_v45  ;;  %v8530_v11 = vadd.f32 %v8529_v41, %v8321_v18  ;;  %v8734_v48 = vadd.f32 %v8733_v29, %v8525_v28  ;;  %v12187_v18 = vld [vmem:[%s12805_s18 + $0x73c] sm:$0xf] }
 0x8dc   : > { %v12195_v29 = vld [vmem:[%s12805_s18 + $0x778] sm:$0xf0] }
 0x8dd   : > { %8772 = vmatmul.bf16.gmra.mxu1 %v10444_v6  ;;  %8981 = vmatmul.bf16.gmra.mxu2 %v10448_v14  ;;  %v10501_v6 = vld [vmem:[%s12805_s18 + $0x774] sm:$0xf0]  ;;  %v10507_v14 = vld [vmem:[%s12805_s18 + $0x740] sm:$0xf] }
 0x8de   : > { %v10504_v21 = vor.u32 %v12187_v18, %v10501_v6  ;;  %v10508_v61 = vor.u32 %v12195_v29, %v10507_v14 }
 0x8e0   : > { %v8322_v19 = vpop.f32.mrf.mxu3  ;;  %v8942_v54 = vpop.f32.mrf.mxu2 }
 0x8e1   : > { %v8323_v55 = vadd.f32 %v8322_v19, %v17574_v42  ;;  %v15790_v27 = vadd.f32 %v8942_v54, %v8734_v48  ;;  %v17576_v48 = vld [vmem:[#allocation36_spill] sm:$0xff] }
 0x8e2   : > { %v8735_v41 = vpop.f32.mrf.mxu1  ;;  %v8534_v28 = vpop.f32.mrf.mxu0 }
 0x8e3   : > { %17575 = vst [vmem:[#allocation12_spill] sm:$0xff] %v15790_v27  ;;  %v8532_v32 = vadd.f32 %v8531_v16, %v8323_v55  ;;  %v8736_v63 = vadd.f32 %v8735_v41, %v8527_v22  ;;  %v12216_v55 = vld [vmem:[%s12805_s18 + $0x824] sm:$0xf] }
 0x8e4   : > { %v12224_v41 = vld [vmem:[%s12805_s18 + $0x860] sm:$0xf0] }
 0x8e5   : > { %8364 = vmatmul.bf16.gmra.mxu3 %v10556_v15  ;;  %8573 = vmatmul.bf16.gmra.mxu0 %v10560_v30  ;;  %v10613_v15 = vld [vmem:[%s12805_s18 + $0x85c] sm:$0xf0]  ;;  %v10619_v30 = vld [vmem:[%s12805_s18 + $0x828] sm:$0xf] }
 0x8e6   : > { %v10616_v6 = vor.u32 %v12216_v55, %v10613_v15  ;;  %v10620_v14 = vor.u32 %v12224_v41, %v10619_v30 }
 0x8e8   : > { %v8325_v45 = vpop.f32.mrf.mxu3  ;;  %v8944_v19 = vpop.f32.mrf.mxu2 }
 0x8e9   : > { %v8326_v54 = vadd.f32 %v8325_v45, %v17576_v48  ;;  %v15797_v36 = vadd.f32 %v8944_v19, %v8736_v63  ;;  %v17578_v63 = vld [vmem:[#allocation37_spill] sm:$0xff] }
 0x8ea   : > { %v8738_v16 = vpop.f32.mrf.mxu1  ;;  %v8536_v22 = vpop.f32.mrf.mxu0 }
 0x8eb   : > { %17577 = vst [vmem:[#allocation44_spill] sm:$0xff] %v15797_v36  ;;  %v8535_v8 = vadd.f32 %v8534_v28, %v8326_v54  ;;  %v8739_v42 = vadd.f32 %v8738_v16, %v8530_v11  ;;  %v12202_v54 = vld [vmem:[%s12805_s18 + $0x7b4] sm:$0xf] }
 0x8ec   : > { %v12210_v16 = vld [vmem:[%s12805_s18 + $0x7f0] sm:$0xf0] }
 0x8ed   : > { %8777 = vmatmul.bf16.gmra.mxu1 %v10504_v21  ;;  %8986 = vmatmul.bf16.gmra.mxu2 %v10508_v61  ;;  %v10561_v21 = vld [vmem:[%s12805_s18 + $0x7ec] sm:$0xf0]  ;;  %v10567_v61 = vld [vmem:[%s12805_s18 + $0x7b8] sm:$0xf] }
 0x8ee   : > { %v10564_v15 = vor.u32 %v12202_v54, %v10561_v21  ;;  %v10568_v30 = vor.u32 %v12210_v16, %v10567_v61 }
 0x8f0   : > { %v8327_v27 = vpop.f32.mrf.mxu3  ;;  %v8947_v45 = vpop.f32.mrf.mxu2 }
 0x8f1   : > { %v8328_v19 = vadd.f32 %v8327_v27, %v17578_v63  ;;  %v15804_v18 = vadd.f32 %v8947_v45, %v8739_v42  ;;  %v17580_v42 = vld [vmem:[#allocation38_spill] sm:$0xff] }
 0x8f2   : > { %v8740_v28 = vpop.f32.mrf.mxu1  ;;  %v8539_v11 = vpop.f32.mrf.mxu0 }
 0x8f3   : > { %17579 = vst [vmem:[#allocation14_spill] sm:$0xff] %v15804_v18  ;;  %v8537_v29 = vadd.f32 %v8536_v22, %v8328_v19  ;;  %v8741_v48 = vadd.f32 %v8740_v28, %v8532_v32  ;;  %v12231_v19 = vld [vmem:[%s12805_s18 + $0x89c] sm:$0xf] }
 0x8f4   : > { %v12239_v28 = vld [vmem:[%s12805_s18 + $0x8d8] sm:$0xf0] }
 0x8f5   : > { %8369 = vmatmul.bf16.gmra.mxu3 %v10616_v6  ;;  %8578 = vmatmul.bf16.gmra.mxu0 %v10620_v14  ;;  %v10673_v6 = vld [vmem:[%s12805_s18 + $0x8d4] sm:$0xf0]  ;;  %v10679_v14 = vld [vmem:[%s12805_s18 + $0x8a0] sm:$0xf] }
 0x8f6   : > { %v10676_v21 = vor.u32 %v12231_v19, %v10673_v6  ;;  %v10680_v61 = vor.u32 %v12239_v28, %v10679_v14 }
 0x8f8   : > { %v8330_v36 = vpop.f32.mrf.mxu3  ;;  %v8949_v27 = vpop.f32.mrf.mxu2 }
 0x8f9   : > { %v8331_v45 = vadd.f32 %v8330_v36, %v17580_v42  ;;  %v15811_v55 = vadd.f32 %v8949_v27, %v8741_v48  ;;  %v17582_v48 = vld [vmem:[#allocation39_spill] sm:$0xff] }
 0x8fa   : > { %v8743_v22 = vpop.f32.mrf.mxu1  ;;  %v8541_v32 = vpop.f32.mrf.mxu0 }
 0x8fb   : > { %17581 = vst [vmem:[#allocation46_spill] sm:$0xff] %v15811_v55  ;;  %v8540_v41 = vadd.f32 %v8539_v11, %v8331_v45  ;;  %v8744_v63 = vadd.f32 %v8743_v22, %v8535_v8  ;;  %v12217_v45 = vld [vmem:[%s12805_s18 + $0x82c] sm:$0xf] }
 0x8fc   : > { %v12225_v22 = vld [vmem:[%s12805_s18 + $0x868] sm:$0xf0] }
 0x8fd   : > { %8782 = vmatmul.bf16.gmra.mxu1 %v10564_v15  ;;  %8991 = vmatmul.bf16.gmra.mxu2 %v10568_v30  ;;  %v10621_v15 = vld [vmem:[%s12805_s18 + $0x864] sm:$0xf0]  ;;  %v10627_v30 = vld [vmem:[%s12805_s18 + $0x830] sm:$0xf] }
 0x8fe   : > { %v10624_v6 = vor.u32 %v12217_v45, %v10621_v15  ;;  %v10628_v14 = vor.u32 %v12225_v22, %v10627_v30 }
 0x900   : > { %v8332_v18 = vpop.f32.mrf.mxu3  ;;  %v8952_v36 = vpop.f32.mrf.mxu2 }
 0x901   : > { %v8333_v27 = vadd.f32 %v8332_v18, %v17582_v48  ;;  %v15818_v54 = vadd.f32 %v8952_v36, %v8744_v63  ;;  %v17584_v63 = vld [vmem:[#allocation40_spill] sm:$0xff] }
 0x902   : > { %v8745_v11 = vpop.f32.mrf.mxu1  ;;  %v8544_v8 = vpop.f32.mrf.mxu0 }
 0x903   : > { %17583 = vst [vmem:[#allocation16_spill] sm:$0xff] %v15818_v54  ;;  %v8542_v16 = vadd.f32 %v8541_v32, %v8333_v27  ;;  %v8746_v42 = vadd.f32 %v8745_v11, %v8537_v29  ;;  %v12246_v27 = vld [vmem:[%s12805_s18 + $0x914] sm:$0xf] }
 0x904   : > { %v12254_v11 = vld [vmem:[%s12805_s18 + $0x950] sm:$0xf0] }
 0x905   : > { %8374 = vmatmul.bf16.gmra.mxu3 %v10676_v21  ;;  %8583 = vmatmul.bf16.gmra.mxu0 %v10680_v61  ;;  %v10733_v21 = vld [vmem:[%s12805_s18 + $0x94c] sm:$0xf0]  ;;  %v10739_v61 = vld [vmem:[%s12805_s18 + $0x918] sm:$0xf] }
 0x906   : > { %v10736_v15 = vor.u32 %v12246_v27, %v10733_v21  ;;  %v10740_v30 = vor.u32 %v12254_v11, %v10739_v61 }
 0x908   : > { %v8335_v55 = vpop.f32.mrf.mxu3  ;;  %v8954_v18 = vpop.f32.mrf.mxu2 }
 0x909   : > { %v8336_v36 = vadd.f32 %v8335_v55, %v17584_v63  ;;  %v15825_v19 = vadd.f32 %v8954_v18, %v8746_v42  ;;  %v17586_v42 = vld [vmem:[#allocation41_spill] sm:$0xff] }
 0x90a   : > { %v8748_v32 = vpop.f32.mrf.mxu1  ;;  %v8546_v29 = vpop.f32.mrf.mxu0 }
 0x90b   : > { %17585 = vst [vmem:[#allocation48_spill] sm:$0xff] %v15825_v19  ;;  %v8545_v28 = vadd.f32 %v8544_v8, %v8336_v36  ;;  %v8749_v48 = vadd.f32 %v8748_v32, %v8540_v41  ;;  %v12232_v36 = vld [vmem:[%s12805_s18 + $0x8a4] sm:$0xf] }
 0x90c   : > { %v12240_v32 = vld [vmem:[%s12805_s18 + $0x8e0] sm:$0xf0] }
 0x90d   : > { %8787 = vmatmul.bf16.gmra.mxu1 %v10624_v6  ;;  %8996 = vmatmul.bf16.gmra.mxu2 %v10628_v14  ;;  %v10681_v6 = vld [vmem:[%s12805_s18 + $0x8dc] sm:$0xf0]  ;;  %v10687_v14 = vld [vmem:[%s12805_s18 + $0x8a8] sm:$0xf] }
 0x90e   : > { %v10684_v21 = vor.u32 %v12232_v36, %v10681_v6  ;;  %v10688_v61 = vor.u32 %v12240_v32, %v10687_v14 }
 0x910   : > { %v8337_v54 = vpop.f32.mrf.mxu3  ;;  %v8957_v55 = vpop.f32.mrf.mxu2 }
 0x911   : > { %v8338_v18 = vadd.f32 %v8337_v54, %v17586_v42  ;;  %v15832_v45 = vadd.f32 %v8957_v55, %v8749_v48  ;;  %v17588_v48 = vld [vmem:[#allocation43_spill] sm:$0xff] }
 0x912   : > { %v8750_v8 = vpop.f32.mrf.mxu1  ;;  %v8549_v41 = vpop.f32.mrf.mxu0 }
 0x913   : > { %17587 = vst [vmem:[#allocation18_spill] sm:$0xff] %v15832_v45  ;;  %v8547_v22 = vadd.f32 %v8546_v29, %v8338_v18  ;;  %v8751_v63 = vadd.f32 %v8750_v8, %v8542_v16  ;;  %v12261_v18 = vld [vmem:[%s12805_s18 + $0x98c] sm:$0xf] }
 0x914   : > { %v12269_v8 = vld [vmem:[%s12805_s18 + $0x9c8] sm:$0xf0] }
 0x915   : > { %8379 = vmatmul.bf16.gmra.mxu3 %v10736_v15  ;;  %8588 = vmatmul.bf16.gmra.mxu0 %v10740_v30  ;;  %v10793_v15 = vld [vmem:[%s12805_s18 + $0x9c4] sm:$0xf0]  ;;  %v10799_v30 = vld [vmem:[%s12805_s18 + $0x990] sm:$0xf] }
 0x916   : > { %v10796_v6 = vor.u32 %v12261_v18, %v10793_v15  ;;  %v10800_v14 = vor.u32 %v12269_v8, %v10799_v30 }
 0x918   : > { %v8340_v19 = vpop.f32.mrf.mxu3  ;;  %v8959_v54 = vpop.f32.mrf.mxu2 }
 0x919   : > { %v8341_v55 = vadd.f32 %v8340_v19, %v17588_v48  ;;  %v15839_v27 = vadd.f32 %v8959_v54, %v8751_v63  ;;  %v17590_v63 = vld [vmem:[#allocation45_spill] sm:$0xff] }
 0x91a   : > { %v8753_v29 = vpop.f32.mrf.mxu1  ;;  %v8551_v16 = vpop.f32.mrf.mxu0 }
 0x91b   : > { %17589 = vst [vmem:[#allocation50_spill] sm:$0xff] %v15839_v27  ;;  %v8550_v11 = vadd.f32 %v8549_v41, %v8341_v55  ;;  %v8754_v42 = vadd.f32 %v8753_v29, %v8545_v28  ;;  %v12247_v55 = vld [vmem:[%s12805_s18 + $0x91c] sm:$0xf] }
 0x91c   : > { %v12255_v29 = vld [vmem:[%s12805_s18 + $0x958] sm:$0xf0] }
 0x91d   : > { %8792 = vmatmul.bf16.gmra.mxu1 %v10684_v21  ;;  %9001 = vmatmul.bf16.gmra.mxu2 %v10688_v61  ;;  %v10741_v21 = vld [vmem:[%s12805_s18 + $0x954] sm:$0xf0]  ;;  %v10747_v61 = vld [vmem:[%s12805_s18 + $0x920] sm:$0xf] }
 0x91e   : > { %v10744_v15 = vor.u32 %v12247_v55, %v10741_v21  ;;  %v10748_v30 = vor.u32 %v12255_v29, %v10747_v61 }
 0x920   : > { %v8342_v45 = vpop.f32.mrf.mxu3  ;;  %v8962_v19 = vpop.f32.mrf.mxu2 }
 0x921   : > { %v8343_v54 = vadd.f32 %v8342_v45, %v17590_v63  ;;  %v15846_v36 = vadd.f32 %v8962_v19, %v8754_v42  ;;  %v17592_v42 = vld [vmem:[#allocation47_spill] sm:$0xff] }
 0x922   : > { %v8755_v41 = vpop.f32.mrf.mxu1  ;;  %v8554_v28 = vpop.f32.mrf.mxu0 }
 0x923   : > { %17591 = vst [vmem:[#allocation20_spill] sm:$0xff] %v15846_v36  ;;  %v8552_v32 = vadd.f32 %v8551_v16, %v8343_v54  ;;  %v8756_v48 = vadd.f32 %v8755_v41, %v8547_v22  ;;  %v12276_v54 = vld [vmem:[%s12805_s18 + $0xa04] sm:$0xf] }
 0x924   : > { %v12284_v41 = vld [vmem:[%s12805_s18 + $0xa40] sm:$0xf0] }
 0x925   : > { %8384 = vmatmul.bf16.gmra.mxu3 %v10796_v6  ;;  %8593 = vmatmul.bf16.gmra.mxu0 %v10800_v14  ;;  %v10853_v6 = vld [vmem:[%s12805_s18 + $0xa3c] sm:$0xf0]  ;;  %v10859_v14 = vld [vmem:[%s12805_s18 + $0xa08] sm:$0xf] }
 0x926   : > { %v10856_v21 = vor.u32 %v12276_v54, %v10853_v6  ;;  %v10860_v61 = vor.u32 %v12284_v41, %v10859_v14 }
 0x928   : > { %v8345_v27 = vpop.f32.mrf.mxu3  ;;  %v8964_v45 = vpop.f32.mrf.mxu2 }
 0x929   : > { %v8346_v19 = vadd.f32 %v8345_v27, %v17592_v42  ;;  %v15853_v18 = vadd.f32 %v8964_v45, %v8756_v48  ;;  %v17594_v48 = vld [vmem:[#allocation49_spill] sm:$0xff] }
 0x92a   : > { %v8758_v16 = vpop.f32.mrf.mxu1  ;;  %v8556_v22 = vpop.f32.mrf.mxu0 }
 0x92b   : > { %17593 = vst [vmem:[#allocation52_spill] sm:$0xff] %v15853_v18  ;;  %v8555_v8 = vadd.f32 %v8554_v28, %v8346_v19  ;;  %v8759_v63 = vadd.f32 %v8758_v16, %v8550_v11  ;;  %v12262_v19 = vld [vmem:[%s12805_s18 + $0x994] sm:$0xf] }
 0x92c   : > { %v12270_v16 = vld [vmem:[%s12805_s18 + $0x9d0] sm:$0xf0] }
 0x92d   : > { %8797 = vmatmul.bf16.gmra.mxu1 %v10744_v15  ;;  %9006 = vmatmul.bf16.gmra.mxu2 %v10748_v30  ;;  %v10801_v15 = vld [vmem:[%s12805_s18 + $0x9cc] sm:$0xf0]  ;;  %v10807_v30 = vld [vmem:[%s12805_s18 + $0x998] sm:$0xf] }
 0x92e   : > { %v10804_v6 = vor.u32 %v12262_v19, %v10801_v15  ;;  %v10808_v14 = vor.u32 %v12270_v16, %v10807_v30 }
 0x930   : > { %v8347_v36 = vpop.f32.mrf.mxu3  ;;  %v8967_v27 = vpop.f32.mrf.mxu2 }
 0x931   : > { %v8348_v45 = vadd.f32 %v8347_v36, %v17594_v48  ;;  %v15860_v55 = vadd.f32 %v8967_v27, %v8759_v63  ;;  %v17596_v63 = vld [vmem:[#allocation51_spill] sm:$0xff] }
 0x932   : > { %v8760_v28 = vpop.f32.mrf.mxu1  ;;  %v8559_v11 = vpop.f32.mrf.mxu0 }
 0x933   : > { %17595 = vst [vmem:[#allocation22_spill] sm:$0xff] %v15860_v55  ;;  %v8557_v29 = vadd.f32 %v8556_v22, %v8348_v45  ;;  %v8761_v42 = vadd.f32 %v8760_v28, %v8552_v32  ;;  %v12291_v45 = vld [vmem:[%s12805_s18 + $0xa7c] sm:$0xf] }
 0x934   : > { %v12299_v28 = vld [vmem:[%s12805_s18 + $0xab8] sm:$0xf0] }
 0x935   : > { %8389 = vmatmul.bf16.gmra.mxu3 %v10856_v21  ;;  %8598 = vmatmul.bf16.gmra.mxu0 %v10860_v61  ;;  %v10913_v21 = vld [vmem:[%s12805_s18 + $0xab4] sm:$0xf0]  ;;  %v10919_v61 = vld [vmem:[%s12805_s18 + $0xa80] sm:$0xf] }
 0x936   : > { %v10916_v15 = vor.u32 %v12291_v45, %v10913_v21  ;;  %v10920_v30 = vor.u32 %v12299_v28, %v10919_v61 }
 0x938   : > { %v8350_v18 = vpop.f32.mrf.mxu3  ;;  %v8969_v36 = vpop.f32.mrf.mxu2 }
 0x939   : > { %v8351_v27 = vadd.f32 %v8350_v18, %v17596_v63  ;;  %v15867_v54 = vadd.f32 %v8969_v36, %v8761_v42  ;;  %v17598_v42 = vld [vmem:[#allocation53_spill] sm:$0xff] }
 0x93a   : > { %v8763_v22 = vpop.f32.mrf.mxu1  ;;  %v8561_v32 = vpop.f32.mrf.mxu0 }
 0x93b   : > { %17597 = vst [vmem:[#allocation56_spill] sm:$0xff] %v15867_v54  ;;  %v8560_v41 = vadd.f32 %v8559_v11, %v8351_v27  ;;  %v8764_v48 = vadd.f32 %v8763_v22, %v8555_v8  ;;  %v12277_v27 = vld [vmem:[%s12805_s18 + $0xa0c] sm:$0xf] }
 0x93c   : > { %v12285_v22 = vld [vmem:[%s12805_s18 + $0xa48] sm:$0xf0] }
 0x93d   : > { %8802 = vmatmul.bf16.gmra.mxu1 %v10804_v6  ;;  %9011 = vmatmul.bf16.gmra.mxu2 %v10808_v14  ;;  %v10861_v6 = vld [vmem:[%s12805_s18 + $0xa44] sm:$0xf0]  ;;  %v10867_v14 = vld [vmem:[%s12805_s18 + $0xa10] sm:$0xf] }
 0x93e   : > { %v10864_v21 = vor.u32 %v12277_v27, %v10861_v6  ;;  %v10868_v61 = vor.u32 %v12285_v22, %v10867_v14 }
 0x940   : > { %v8352_v55 = vpop.f32.mrf.mxu3  ;;  %v8972_v18 = vpop.f32.mrf.mxu2 }
 0x941   : > { %v8353_v36 = vadd.f32 %v8352_v55, %v17598_v42  ;;  %v15874_v19 = vadd.f32 %v8972_v18, %v8764_v48  ;;  %v17600_v48 = vld [vmem:[#allocation57_spill] sm:$0xff] }
 0x942   : > { %v8765_v11 = vpop.f32.mrf.mxu1  ;;  %v8564_v8 = vpop.f32.mrf.mxu0 }
 0x943   : > { %17599 = vst [vmem:[#allocation24_spill] sm:$0xff] %v15874_v19  ;;  %v8562_v16 = vadd.f32 %v8561_v32, %v8353_v36  ;;  %v8766_v63 = vadd.f32 %v8765_v11, %v8557_v29  ;;  %v12306_v36 = vld [vmem:[%s12805_s18 + $0xaf4] sm:$0xf] }
 0x944   : > { %v12314_v11 = vld [vmem:[%s12805_s18 + $0xb30] sm:$0xf0] }
 0x945   : > { %8394 = vmatmul.bf16.gmra.mxu3 %v10916_v15  ;;  %8603 = vmatmul.bf16.gmra.mxu0 %v10920_v30  ;;  %v10973_v15 = vld [vmem:[%s12805_s18 + $0xb2c] sm:$0xf0]  ;;  %v10979_v30 = vld [vmem:[%s12805_s18 + $0xaf8] sm:$0xf] }
 0x946   : > { %v10976_v6 = vor.u32 %v12306_v36, %v10973_v15  ;;  %v10980_v14 = vor.u32 %v12314_v11, %v10979_v30 }
 0x948   : > { %v8355_v54 = vpop.f32.mrf.mxu3  ;;  %v8974_v55 = vpop.f32.mrf.mxu2 }
 0x949   : > { %v8356_v18 = vadd.f32 %v8355_v54, %v17600_v48  ;;  %v15881_v45 = vadd.f32 %v8974_v55, %v8766_v63  ;;  %v17602_v63 = vld [vmem:[#allocation59_spill] sm:$0xff] }
 0x94a   : > { %v8768_v32 = vpop.f32.mrf.mxu1  ;;  %v8566_v29 = vpop.f32.mrf.mxu0 }
 0x94b   : > { %17601 = vst [vmem:[#allocation58_spill] sm:$0xff] %v15881_v45  ;;  %v8565_v28 = vadd.f32 %v8564_v8, %v8356_v18  ;;  %v8769_v42 = vadd.f32 %v8768_v32, %v8560_v41  ;;  %v12292_v18 = vld [vmem:[%s12805_s18 + $0xa84] sm:$0xf] }
 0x94c   : > { %v12300_v32 = vld [vmem:[%s12805_s18 + $0xac0] sm:$0xf0] }
 0x94d   : > { %8807 = vmatmul.bf16.gmra.mxu1 %v10864_v21  ;;  %9016 = vmatmul.bf16.gmra.mxu2 %v10868_v61  ;;  %v10921_v21 = vld [vmem:[%s12805_s18 + $0xabc] sm:$0xf0]  ;;  %v10927_v61 = vld [vmem:[%s12805_s18 + $0xa88] sm:$0xf] }
 0x94e   : > { %v10924_v15 = vor.u32 %v12292_v18, %v10921_v21  ;;  %v10928_v30 = vor.u32 %v12300_v32, %v10927_v61 }
 0x950   : > { %v8357_v19 = vpop.f32.mrf.mxu3  ;;  %v8977_v54 = vpop.f32.mrf.mxu2 }
 0x951   : > { %v8358_v55 = vadd.f32 %v8357_v19, %v17602_v63  ;;  %v15888_v27 = vadd.f32 %v8977_v54, %v8769_v42  ;;  %v17604_v42 = vld [vmem:[#allocation63_spill] sm:$0xff] }
 0x952   : > { %v8770_v8 = vpop.f32.mrf.mxu1  ;;  %v8569_v41 = vpop.f32.mrf.mxu0 }
 0x953   : > { %17603 = vst [vmem:[#allocation26_spill] sm:$0xff] %v15888_v27  ;;  %v8567_v22 = vadd.f32 %v8566_v29, %v8358_v55  ;;  %v8771_v48 = vadd.f32 %v8770_v8, %v8562_v16  ;;  %v12321_v55 = vld [vmem:[%s12805_s18 + $0xb6c] sm:$0xf] }
 0x954   : > { %v12329_v8 = vld [vmem:[%s12805_s18 + $0xba8] sm:$0xf0] }
 0x955   : > { %8399 = vmatmul.bf16.gmra.mxu3 %v10976_v6  ;;  %8608 = vmatmul.bf16.gmra.mxu0 %v10980_v14  ;;  %v11033_v6 = vld [vmem:[%s12805_s18 + $0xba4] sm:$0xf0]  ;;  %v11039_v14 = vld [vmem:[%s12805_s18 + $0xb70] sm:$0xf] }
 0x956   : > { %v11036_v21 = vor.u32 %v12321_v55, %v11033_v6  ;;  %v11040_v61 = vor.u32 %v12329_v8, %v11039_v14 }
 0x958   : > { %v8360_v45 = vpop.f32.mrf.mxu3  ;;  %v8979_v19 = vpop.f32.mrf.mxu2 }
 0x959   : > { %v8361_v54 = vadd.f32 %v8360_v45, %v17604_v42  ;;  %v15895_v36 = vadd.f32 %v8979_v19, %v8771_v48  ;;  %v12307_v42 = vld [vmem:[%s12805_s18 + $0xafc] sm:$0xf] }
 0x95a   : > { %v8773_v29 = vpop.f32.mrf.mxu1  ;;  %v8571_v16 = vpop.f32.mrf.mxu0 }
 0x95b   : > { %v8570_v11 = vadd.f32 %v8569_v41, %v8361_v54  ;;  %v8774_v63 = vadd.f32 %v8773_v29, %v8565_v28  ;;  %v10981_v54 = vld [vmem:[%s12805_s18 + $0xb34] sm:$0xf0] }
 0x95c   : > { %v10984_v55 = vor.u32 %v12307_v42, %v10981_v54 }
 0x95d   : > { %8812 = vmatmul.bf16.gmra.mxu1 %v10924_v15  ;;  %9021 = vmatmul.bf16.gmra.mxu2 %v10928_v30  ;;  %v10987_v15 = vld [vmem:[%s12805_s18 + $0xb00] sm:$0xf]  ;;  %v12315_v30 = vld [vmem:[%s12805_s18 + $0xb38] sm:$0xf0] }
 0x95e   : > { %v10988_v6 = vor.u32 %v12315_v30, %v10987_v15 }
 0x960   : > { %v8362_v27 = vpop.f32.mrf.mxu3  ;;  %v8982_v45 = vpop.f32.mrf.mxu2 }
 0x961   : > { %v8363_v48 = vadd.f32 %v8362_v27, %v15363_v62  ;;  %v15902_v18 = vadd.f32 %v8982_v45, %v8774_v63  ;;  %v12336_v45 = vld [vmem:[%s12805_s18 + $0xbe4] sm:$0xf] }
 0x962   : > { %v8775_v41 = vpop.f32.mrf.mxu1  ;;  %v8574_v28 = vpop.f32.mrf.mxu0 }
 0x963   : > { %v8572_v32 = vadd.f32 %v8571_v16, %v8363_v48  ;;  %v8776_v19 = vadd.f32 %v8775_v41, %v8567_v22  ;;  %v11093_v48 = vld [vmem:[%s12805_s18 + $0xc1c] sm:$0xf0] }
 0x964   : > { %v11096_v54 = vor.u32 %v12336_v45, %v11093_v48 }
 0x965   : > { %8404 = vmatmul.bf16.gmra.mxu3 %v11036_v21  ;;  %8613 = vmatmul.bf16.gmra.mxu0 %v11040_v61  ;;  %v11099_v21 = vld [vmem:[%s12805_s18 + $0xbe8] sm:$0xf]  ;;  %v12344_v61 = vld [vmem:[%s12805_s18 + $0xc20] sm:$0xf0] }
 0x966   : > { %v11100_v15 = vor.u32 %v12344_v61, %v11099_v21 }
 0x968   : > { %v8365_v29 = vpop.f32.mrf.mxu3  ;;  %v8984_v62 = vpop.f32.mrf.mxu2 }
 0x969   : > { %v8366_v27 = vadd.f32 %v8365_v29, %v15370_v59  ;;  %v15909_v63 = vadd.f32 %v8984_v62, %v8776_v19  ;;  %v12322_v62 = vld [vmem:[%s12805_s18 + $0xb74] sm:$0xf] }
 0x96a   : > { %v8778_v16 = vpop.f32.mrf.mxu1  ;;  %v8576_v22 = vpop.f32.mrf.mxu0 }
 0x96b   : > { %v8575_v14 = vadd.f32 %v8574_v28, %v8366_v27  ;;  %v8779_v8 = vadd.f32 %v8778_v16, %v8570_v11  ;;  %v11041_v27 = vld [vmem:[%s12805_s18 + $0xbac] sm:$0xf0] }
 0x96c   : > { %v11044_v48 = vor.u32 %v12322_v62, %v11041_v27 }
 0x96d   : > { %8817 = vmatmul.bf16.gmra.mxu1 %v10984_v55  ;;  %9026 = vmatmul.bf16.gmra.mxu2 %v10988_v6  ;;  %v11047_v55 = vld [vmem:[%s12805_s18 + $0xb78] sm:$0xf]  ;;  %v12330_v6 = vld [vmem:[%s12805_s18 + $0xbb0] sm:$0xf0] }
 0x96e   : > { %v11048_v21 = vor.u32 %v12330_v6, %v11047_v55 }
 0x970   : > { %v8367_v41 = vpop.f32.mrf.mxu3  ;;  %v8987_v59 = vpop.f32.mrf.mxu2 }
 0x971   : > { %v8368_v19 = vadd.f32 %v8367_v41, %v15377_v58  ;;  %v15916_v42 = vadd.f32 %v8987_v59, %v8779_v8  ;;  %v12351_v59 = vld [vmem:[%s12805_s18 + $0xc5c] sm:$0xf] }
 0x972   : > { %v8780_v28 = vpop.f32.mrf.mxu1  ;;  %v8579_v11 = vpop.f32.mrf.mxu0 }
 0x973   : > { %v8577_v30 = vadd.f32 %v8576_v22, %v8368_v19  ;;  %v8781_v29 = vadd.f32 %v8780_v28, %v8572_v32  ;;  %v11153_v19 = vld [vmem:[%s12805_s18 + $0xc94] sm:$0xf0] }
 0x974   : > { %v11156_v27 = vor.u32 %v12351_v59, %v11153_v19 }
 0x975   : > { %8409 = vmatmul.bf16.gmra.mxu3 %v11096_v54  ;;  %8618 = vmatmul.bf16.gmra.mxu0 %v11100_v15  ;;  %v11159_v54 = vld [vmem:[%s12805_s18 + $0xc60] sm:$0xf]  ;;  %v12359_v15 = vld [vmem:[%s12805_s18 + $0xc98] sm:$0xf0] }
 0x976   : > { %v11160_v55 = vor.u32 %v12359_v15, %v11159_v54 }
 0x978   : > { %v8370_v16 = vpop.f32.mrf.mxu3  ;;  %v8989_v58 = vpop.f32.mrf.mxu2 }
 0x979   : > { %v8371_v8 = vadd.f32 %v8370_v16, %v15384_v20  ;;  %v15923_v45 = vadd.f32 %v8989_v58, %v8781_v29  ;;  %v12337_v58 = vld [vmem:[%s12805_s18 + $0xbec] sm:$0xf] }
 0x97a   : > { %v8783_v22 = vpop.f32.mrf.mxu1  ;;  %v8581_v32 = vpop.f32.mrf.mxu0 }
 0x97b   : > { %v8580_v61 = vadd.f32 %v8579_v11, %v8371_v8  ;;  %v8784_v41 = vadd.f32 %v8783_v22, %v8575_v14  ;;  %v11101_v8 = vld [vmem:[%s12805_s18 + $0xc24] sm:$0xf0] }
 0x97c   : > { %v11104_v19 = vor.u32 %v12337_v58, %v11101_v8 }
 0x97d   : > { %8822 = vmatmul.bf16.gmra.mxu1 %v11044_v48  ;;  %9031 = vmatmul.bf16.gmra.mxu2 %v11048_v21  ;;  %v11107_v48 = vld [vmem:[%s12805_s18 + $0xbf0] sm:$0xf]  ;;  %v12345_v21 = vld [vmem:[%s12805_s18 + $0xc28] sm:$0xf0] }
 0x97e   : > { %v11108_v54 = vor.u32 %v12345_v21, %v11107_v48 }
 0x980   : > { %v8372_v28 = vpop.f32.mrf.mxu3  ;;  %v8992_v20 = vpop.f32.mrf.mxu2 }
 0x981   : > { %v8373_v29 = vadd.f32 %v8372_v28, %v15391_v43  ;;  %v15930_v62 = vadd.f32 %v8992_v20, %v8784_v41  ;;  %v12366_v20 = vld [vmem:[%s12805_s18 + $0xcd4] sm:$0xf] }
 0x982   : > { %v8785_v11 = vpop.f32.mrf.mxu1  ;;  %v8584_v14 = vpop.f32.mrf.mxu0 }
 0x983   : > { %v8582_v6 = vadd.f32 %v8581_v32, %v8373_v29  ;;  %v8786_v16 = vadd.f32 %v8785_v11, %v8577_v30  ;;  %v11213_v29 = vld [vmem:[%s12805_s18 + $0xd0c] sm:$0xf0] }
 0x984   : > { %v11216_v8 = vor.u32 %v12366_v20, %v11213_v29 }
 0x985   : > { %8414 = vmatmul.bf16.gmra.mxu3 %v11156_v27  ;;  %8623 = vmatmul.bf16.gmra.mxu0 %v11160_v55  ;;  %v11219_v27 = vld [vmem:[%s12805_s18 + $0xcd8] sm:$0xf]  ;;  %v12374_v55 = vld [vmem:[%s12805_s18 + $0xd10] sm:$0xf0] }
 0x986   : > { %v11220_v48 = vor.u32 %v12374_v55, %v11219_v27 }
 0x988   : > { %v8375_v22 = vpop.f32.mrf.mxu3  ;;  %v8994_v43 = vpop.f32.mrf.mxu2 }
 0x989   : > { %v8376_v41 = vadd.f32 %v8375_v22, %v15398_v24  ;;  %v15937_v59 = vadd.f32 %v8994_v43, %v8786_v16  ;;  %v12352_v43 = vld [vmem:[%s12805_s18 + $0xc64] sm:$0xf] }
 0x98a   : > { %v8788_v32 = vpop.f32.mrf.mxu1  ;;  %v8586_v30 = vpop.f32.mrf.mxu0 }
 0x98b   : > { %v8585_v15 = vadd.f32 %v8584_v14, %v8376_v41  ;;  %v8789_v28 = vadd.f32 %v8788_v32, %v8580_v61  ;;  %v11161_v41 = vld [vmem:[%s12805_s18 + $0xc9c] sm:$0xf0] }
 0x98c   : > { %v11164_v29 = vor.u32 %v12352_v43, %v11161_v41 }
 0x98d   : > { %8827 = vmatmul.bf16.gmra.mxu1 %v11104_v19  ;;  %9036 = vmatmul.bf16.gmra.mxu2 %v11108_v54  ;;  %v11167_v19 = vld [vmem:[%s12805_s18 + $0xc68] sm:$0xf]  ;;  %v12360_v54 = vld [vmem:[%s12805_s18 + $0xca0] sm:$0xf0] }
 0x98e   : > { %v11168_v27 = vor.u32 %v12360_v54, %v11167_v19 }
 0x990   : > { %v8377_v11 = vpop.f32.mrf.mxu3  ;;  %v8997_v24 = vpop.f32.mrf.mxu2 }
 0x991   : > { %v8378_v16 = vadd.f32 %v8377_v11, %v15405_v4  ;;  %v15944_v58 = vadd.f32 %v8997_v24, %v8789_v28  ;;  %v12381_v24 = vld [vmem:[%s12805_s18 + $0xd4c] sm:$0xf] }
 0x992   : > { %v8790_v14 = vpop.f32.mrf.mxu1  ;;  %v8589_v61 = vpop.f32.mrf.mxu0 }
 0x993   : > { %v8587_v21 = vadd.f32 %v8586_v30, %v8378_v16  ;;  %v8791_v22 = vadd.f32 %v8790_v14, %v8582_v6  ;;  %v11273_v16 = vld [vmem:[%s12805_s18 + $0xd84] sm:$0xf0] }
 0x994   : > { %v11276_v41 = vor.u32 %v12381_v24, %v11273_v16 }
 0x995   : > { %8419 = vmatmul.bf16.gmra.mxu3 %v11216_v8  ;;  %8628 = vmatmul.bf16.gmra.mxu0 %v11220_v48  ;;  %v11279_v8 = vld [vmem:[%s12805_s18 + $0xd50] sm:$0xf]  ;;  %v12389_v48 = vld [vmem:[%s12805_s18 + $0xd88] sm:$0xf0] }
 0x996   : > { %v11280_v19 = vor.u32 %v12389_v48, %v11279_v8 }
 0x998   : > { %v8380_v32 = vpop.f32.mrf.mxu3  ;;  %v8999_v4 = vpop.f32.mrf.mxu2 }
 0x999   : > { %v8381_v28 = vadd.f32 %v8380_v32, %v15412_v25  ;;  %v15951_v20 = vadd.f32 %v8999_v4, %v8791_v22  ;;  %v12367_v4 = vld [vmem:[%s12805_s18 + $0xcdc] sm:$0xf] }
 0x99a   : > { %v8793_v30 = vpop.f32.mrf.mxu1  ;;  %v8591_v6 = vpop.f32.mrf.mxu0 }
 0x99b   : > { %v8590_v55 = vadd.f32 %v8589_v61, %v8381_v28  ;;  %v8794_v11 = vadd.f32 %v8793_v30, %v8585_v15  ;;  %v11221_v28 = vld [vmem:[%s12805_s18 + $0xd14] sm:$0xf0] }
 0x99c   : > { %v11224_v16 = vor.u32 %v12367_v4, %v11221_v28 }
 0x99d   : > { %8832 = vmatmul.bf16.gmra.mxu1 %v11164_v29  ;;  %9041 = vmatmul.bf16.gmra.mxu2 %v11168_v27  ;;  %v11227_v29 = vld [vmem:[%s12805_s18 + $0xce0] sm:$0xf]  ;;  %v12375_v27 = vld [vmem:[%s12805_s18 + $0xd18] sm:$0xf0] }
 0x99e   : > { %v11228_v8 = vor.u32 %v12375_v27, %v11227_v29 }
 0x9a0   : > { %v8382_v14 = vpop.f32.mrf.mxu3  ;;  %v9002_v25 = vpop.f32.mrf.mxu2 }
 0x9a1   : > { %v8383_v22 = vadd.f32 %v8382_v14, %v15419_v53  ;;  %v15958_v43 = vadd.f32 %v9002_v25, %v8794_v11  ;;  %v12396_v25 = vld [vmem:[%s12805_s18 + $0xdc4] sm:$0xf] }
 0x9a2   : > { %v8795_v61 = vpop.f32.mrf.mxu1  ;;  %v8594_v15 = vpop.f32.mrf.mxu0 }
 0x9a3   : > { %v8592_v54 = vadd.f32 %v8591_v6, %v8383_v22  ;;  %v8796_v32 = vadd.f32 %v8795_v61, %v8587_v21  ;;  %v11333_v22 = vld [vmem:[%s12805_s18 + $0xdfc] sm:$0xf0] }
 0x9a4   : > { %v11336_v28 = vor.u32 %v12396_v25, %v11333_v22 }
 0x9a5   : > { %8424 = vmatmul.bf16.gmra.mxu3 %v11276_v41  ;;  %8633 = vmatmul.bf16.gmra.mxu0 %v11280_v19  ;;  %v11339_v41 = vld [vmem:[%s12805_s18 + $0xdc8] sm:$0xf]  ;;  %v12404_v19 = vld [vmem:[%s12805_s18 + $0xe00] sm:$0xf0] }
 0x9a6   : > { %v11340_v29 = vor.u32 %v12404_v19, %v11339_v41 }
 0x9a8   : > { %v8385_v30 = vpop.f32.mrf.mxu3  ;;  %v9004_v53 = vpop.f32.mrf.mxu2 }
 0x9a9   : > { %v8386_v11 = vadd.f32 %v8385_v30, %v15426_v0  ;;  %v15965_v24 = vadd.f32 %v9004_v53, %v8796_v32  ;;  %v12382_v53 = vld [vmem:[%s12805_s18 + $0xd54] sm:$0xf] }
 0x9aa   : > { %v8798_v6 = vpop.f32.mrf.mxu1  ;;  %v8596_v21 = vpop.f32.mrf.mxu0 }
 0x9ab   : > { %v8595_v48 = vadd.f32 %v8594_v15, %v8386_v11  ;;  %v8799_v14 = vadd.f32 %v8798_v6, %v8590_v55  ;;  %v11281_v11 = vld [vmem:[%s12805_s18 + $0xd8c] sm:$0xf0] }
 0x9ac   : > { %v11284_v22 = vor.u32 %v12382_v53, %v11281_v11 }
 0x9ad   : > { %8837 = vmatmul.bf16.gmra.mxu1 %v11224_v16  ;;  %9046 = vmatmul.bf16.gmra.mxu2 %v11228_v8  ;;  %v11287_v16 = vld [vmem:[%s12805_s18 + $0xd58] sm:$0xf]  ;;  %v12390_v8 = vld [vmem:[%s12805_s18 + $0xd90] sm:$0xf0] }
 0x9ae   : > { %v11288_v41 = vor.u32 %v12390_v8, %v11287_v16 }
 0x9b0   : > { %v8387_v61 = vpop.f32.mrf.mxu3  ;;  %v9007_v0 = vpop.f32.mrf.mxu2 }
 0x9b1   : > { %v8388_v32 = vadd.f32 %v8387_v61, %v15433_v13  ;;  %v15972_v4 = vadd.f32 %v9007_v0, %v8799_v14  ;;  %v12411_v0 = vld [vmem:[%s12805_s18 + $0xe3c] sm:$0xf] }
 0x9b2   : > { %v8800_v15 = vpop.f32.mrf.mxu1  ;;  %v8599_v55 = vpop.f32.mrf.mxu0 }
 0x9b3   : > { %v8597_v27 = vadd.f32 %v8596_v21, %v8388_v32  ;;  %v8801_v30 = vadd.f32 %v8800_v15, %v8592_v54  ;;  %v11393_v32 = vld [vmem:[%s12805_s18 + $0xe74] sm:$0xf0] }
 0x9b4   : > { %v11396_v11 = vor.u32 %v12411_v0, %v11393_v32 }
 0x9b5   : > { %8429 = vmatmul.bf16.gmra.mxu3 %v11336_v28  ;;  %8638 = vmatmul.bf16.gmra.mxu0 %v11340_v29  ;;  %v11399_v28 = vld [vmem:[%s12805_s18 + $0xe40] sm:$0xf]  ;;  %v12419_v29 = vld [vmem:[%s12805_s18 + $0xe78] sm:$0xf0] }
 0x9b6   : > { %v11400_v16 = vor.u32 %v12419_v29, %v11399_v28 }
 0x9b8   : > { %v8390_v6 = vpop.f32.mrf.mxu3  ;;  %v9009_v13 = vpop.f32.mrf.mxu2 }
 0x9b9   : > { %v8391_v14 = vadd.f32 %v8390_v6, %v15440_v51  ;;  %v15979_v25 = vadd.f32 %v9009_v13, %v8801_v30  ;;  %v12397_v13 = vld [vmem:[%s12805_s18 + $0xdcc] sm:$0xf] }
 0x9ba   : > { %v8803_v21 = vpop.f32.mrf.mxu1  ;;  %v8601_v54 = vpop.f32.mrf.mxu0 }
 0x9bb   : > { %v8600_v19 = vadd.f32 %v8599_v55, %v8391_v14  ;;  %v8804_v61 = vadd.f32 %v8803_v21, %v8595_v48  ;;  %v11341_v14 = vld [vmem:[%s12805_s18 + $0xe04] sm:$0xf0] }
 0x9bc   : > { %v11344_v32 = vor.u32 %v12397_v13, %v11341_v14 }
 0x9bd   : > { %8842 = vmatmul.bf16.gmra.mxu1 %v11284_v22  ;;  %9051 = vmatmul.bf16.gmra.mxu2 %v11288_v41  ;;  %v11347_v22 = vld [vmem:[%s12805_s18 + $0xdd0] sm:$0xf]  ;;  %v12405_v41 = vld [vmem:[%s12805_s18 + $0xe08] sm:$0xf0] }
 0x9be   : > { %v11348_v28 = vor.u32 %v12405_v41, %v11347_v22 }
 0x9c0   : > { %v8392_v15 = vpop.f32.mrf.mxu3  ;;  %v9012_v51 = vpop.f32.mrf.mxu2 }
 0x9c1   : > { %v8393_v30 = vadd.f32 %v8392_v15, %v15447_v39  ;;  %v15986_v53 = vadd.f32 %v9012_v51, %v8804_v61  ;;  %v12426_v51 = vld [vmem:[%s12805_s18 + $0xeb4] sm:$0xf] }
 0x9c2   : > { %v8805_v55 = vpop.f32.mrf.mxu1  ;;  %v8604_v48 = vpop.f32.mrf.mxu0 }
 0x9c3   : > { %v8602_v8 = vadd.f32 %v8601_v54, %v8393_v30  ;;  %v8806_v6 = vadd.f32 %v8805_v55, %v8597_v27  ;;  %v11453_v30 = vld [vmem:[%s12805_s18 + $0xeec] sm:$0xf0] }
 0x9c4   : > { %v11456_v14 = vor.u32 %v12426_v51, %v11453_v30 }
 0x9c5   : > { %8434 = vmatmul.bf16.gmra.mxu3 %v11396_v11  ;;  %8643 = vmatmul.bf16.gmra.mxu0 %v11400_v16  ;;  %v11459_v11 = vld [vmem:[%s12805_s18 + $0xeb8] sm:$0xf]  ;;  %v12434_v16 = vld [vmem:[%s12805_s18 + $0xef0] sm:$0xf0] }
 0x9c6   : > { %v11460_v22 = vor.u32 %v12434_v16, %v11459_v11 }
 0x9c8   : > { %v8395_v21 = vpop.f32.mrf.mxu3  ;;  %v9014_v39 = vpop.f32.mrf.mxu2 }
 0x9c9   : > { %v8396_v61 = vadd.f32 %v8395_v21, %v15454_v12  ;;  %v15993_v0 = vadd.f32 %v9014_v39, %v8806_v6  ;;  %v12412_v39 = vld [vmem:[%s12805_s18 + $0xe44] sm:$0xf] }
 0x9ca   : > { %v8808_v54 = vpop.f32.mrf.mxu1  ;;  %v8606_v27 = vpop.f32.mrf.mxu0 }
 0x9cb   : > { %v8605_v29 = vadd.f32 %v8604_v48, %v8396_v61  ;;  %v8809_v15 = vadd.f32 %v8808_v54, %v8600_v19  ;;  %v11401_v61 = vld [vmem:[%s12805_s18 + $0xe7c] sm:$0xf0] }
 0x9cc   : > { %v11404_v30 = vor.u32 %v12412_v39, %v11401_v61 }
 0x9cd   : > { %8847 = vmatmul.bf16.gmra.mxu1 %v11344_v32  ;;  %9056 = vmatmul.bf16.gmra.mxu2 %v11348_v28  ;;  %v11407_v32 = vld [vmem:[%s12805_s18 + $0xe48] sm:$0xf]  ;;  %v12420_v28 = vld [vmem:[%s12805_s18 + $0xe80] sm:$0xf0] }
 0x9ce   : > { %v11408_v11 = vor.u32 %v12420_v28, %v11407_v32 }
 0x9d0   : > { %v8397_v55 = vpop.f32.mrf.mxu3  ;;  %v9017_v12 = vpop.f32.mrf.mxu2 }
 0x9d1   : > { %v8398_v6 = vadd.f32 %v8397_v55, %v15461_v47  ;;  %v16000_v13 = vadd.f32 %v9017_v12, %v8809_v15  ;;  %v12441_v12 = vld [vmem:[%s12805_s18 + $0xf2c] sm:$0xf] }
 0x9d2   : > { %v8810_v48 = vpop.f32.mrf.mxu1  ;;  %v8609_v19 = vpop.f32.mrf.mxu0 }
 0x9d3   : > { %v8607_v41 = vadd.f32 %v8606_v27, %v8398_v6  ;;  %v8811_v21 = vadd.f32 %v8810_v48, %v8602_v8  ;;  %v11513_v6 = vld [vmem:[%s12805_s18 + $0xf64] sm:$0xf0] }
 0x9d4   : > { %v11516_v61 = vor.u32 %v12441_v12, %v11513_v6 }
 0x9d5   : > { %8439 = vmatmul.bf16.gmra.mxu3 %v11456_v14  ;;  %8648 = vmatmul.bf16.gmra.mxu0 %v11460_v22  ;;  %v11519_v14 = vld [vmem:[%s12805_s18 + $0xf30] sm:$0xf]  ;;  %v12449_v22 = vld [vmem:[%s12805_s18 + $0xf68] sm:$0xf0] }
 0x9d6   : > { %v11520_v32 = vor.u32 %v12449_v22, %v11519_v14 }
 0x9d8   : > { %v8400_v54 = vpop.f32.mrf.mxu3  ;;  %v9019_v47 = vpop.f32.mrf.mxu2 }
 0x9d9   : > { %v8401_v15 = vadd.f32 %v8400_v54, %v15468_v40  ;;  %v16007_v51 = vadd.f32 %v9019_v47, %v8811_v21  ;;  %v12427_v47 = vld [vmem:[%s12805_s18 + $0xebc] sm:$0xf] }
 0x9da   : > { %v8813_v27 = vpop.f32.mrf.mxu1  ;;  %v8611_v8 = vpop.f32.mrf.mxu0 }
 0x9db   : > { %v8610_v16 = vadd.f32 %v8609_v19, %v8401_v15  ;;  %v8814_v55 = vadd.f32 %v8813_v27, %v8605_v29  ;;  %v11461_v15 = vld [vmem:[%s12805_s18 + $0xef4] sm:$0xf0] }
 0x9dc   : > { %v11464_v6 = vor.u32 %v12427_v47, %v11461_v15 }
 0x9dd   : > { %8852 = vmatmul.bf16.gmra.mxu1 %v11404_v30  ;;  %9061 = vmatmul.bf16.gmra.mxu2 %v11408_v11  ;;  %v11467_v30 = vld [vmem:[%s12805_s18 + $0xec0] sm:$0xf]  ;;  %v12435_v11 = vld [vmem:[%s12805_s18 + $0xef8] sm:$0xf0] }
 0x9de   : > { %v11468_v14 = vor.u32 %v12435_v11, %v11467_v30 }
 0x9e0   : > { %v8402_v48 = vpop.f32.mrf.mxu3  ;;  %v9022_v40 = vpop.f32.mrf.mxu2 }
 0x9e1   : > { %v8403_v21 = vadd.f32 %v8402_v48, %v15475_v37  ;;  %v16014_v39 = vadd.f32 %v9022_v40, %v8814_v55  ;;  %v12456_v40 = vld [vmem:[%s12805_s18 + $0xfa4] sm:$0xf] }
 0x9e2   : > { %v8815_v19 = vpop.f32.mrf.mxu1  ;;  %v8614_v29 = vpop.f32.mrf.mxu0 }
 0x9e3   : > { %v8612_v28 = vadd.f32 %v8611_v8, %v8403_v21  ;;  %v8816_v54 = vadd.f32 %v8815_v19, %v8607_v41  ;;  %v11573_v21 = vld [vmem:[%s12805_s18 + $0xfdc] sm:$0xf0] }
 0x9e4   : > { %v11576_v15 = vor.u32 %v12456_v40, %v11573_v21 }
 0x9e5   : > { %8444 = vmatmul.bf16.gmra.mxu3 %v11516_v61  ;;  %8653 = vmatmul.bf16.gmra.mxu0 %v11520_v32  ;;  %v11579_v61 = vld [vmem:[%s12805_s18 + $0xfa8] sm:$0xf]  ;;  %v12464_v32 = vld [vmem:[%s12805_s18 + $0xfe0] sm:$0xf0] }
 0x9e6   : > { %v11580_v30 = vor.u32 %v12464_v32, %v11579_v61 }
 0x9e8   : > { %v8405_v27 = vpop.f32.mrf.mxu3  ;;  %v9024_v37 = vpop.f32.mrf.mxu2 }
 0x9e9   : > { %v8406_v55 = vadd.f32 %v8405_v27, %v15482_v56  ;;  %v16021_v12 = vadd.f32 %v9024_v37, %v8816_v54  ;;  %v12442_v37 = vld [vmem:[%s12805_s18 + $0xf34] sm:$0xf] }
 0x9ea   : > { %v8818_v8 = vpop.f32.mrf.mxu1  ;;  %v8616_v41 = vpop.f32.mrf.mxu0 }
 0x9eb   : > { %v8615_v22 = vadd.f32 %v8614_v29, %v8406_v55  ;;  %v8819_v48 = vadd.f32 %v8818_v8, %v8610_v16  ;;  %v11521_v55 = vld [vmem:[%s12805_s18 + $0xf6c] sm:$0xf0] }
 0x9ec   : > { %v11524_v21 = vor.u32 %v12442_v37, %v11521_v55 }
 0x9ed   : > { %8857 = vmatmul.bf16.gmra.mxu1 %v11464_v6  ;;  %9066 = vmatmul.bf16.gmra.mxu2 %v11468_v14  ;;  %v11527_v6 = vld [vmem:[%s12805_s18 + $0xf38] sm:$0xf]  ;;  %v12450_v14 = vld [vmem:[%s12805_s18 + $0xf70] sm:$0xf0] }
 0x9ee   : > { %v11528_v61 = vor.u32 %v12450_v14, %v11527_v6 }
 0x9f0   : > { %v8407_v19 = vpop.f32.mrf.mxu3  ;;  %v9027_v56 = vpop.f32.mrf.mxu2 }
 0x9f1   : > { %v8408_v54 = vadd.f32 %v8407_v19, %v15489_v7  ;;  %v16028_v47 = vadd.f32 %v9027_v56, %v8819_v48  ;;  %v12471_v56 = vld [vmem:[%s12805_s18 + $0x101c] sm:$0xf] }
 0x9f2   : > { %v8820_v29 = vpop.f32.mrf.mxu1  ;;  %v8619_v16 = vpop.f32.mrf.mxu0 }
 0x9f3   : > { %v8617_v11 = vadd.f32 %v8616_v41, %v8408_v54  ;;  %v8821_v27 = vadd.f32 %v8820_v29, %v8612_v28  ;;  %v11633_v54 = vld [vmem:[%s12805_s18 + $0x1054] sm:$0xf0] }
 0x9f4   : > { %v11636_v55 = vor.u32 %v12471_v56, %v11633_v54 }
 0x9f5   : > { %8449 = vmatmul.bf16.gmra.mxu3 %v11576_v15  ;;  %8658 = vmatmul.bf16.gmra.mxu0 %v11580_v30  ;;  %v11639_v15 = vld [vmem:[%s12805_s18 + $0x1020] sm:$0xf]  ;;  %v12479_v30 = vld [vmem:[%s12805_s18 + $0x1058] sm:$0xf0] }
 0x9f6   : > { %v11640_v6 = vor.u32 %v12479_v30, %v11639_v15 }
 0x9f8   : > { %v8410_v8 = vpop.f32.mrf.mxu3  ;;  %v9029_v7 = vpop.f32.mrf.mxu2 }
 0x9f9   : > { %v8411_v48 = vadd.f32 %v8410_v8, %v15496_v38  ;;  %v16035_v40 = vadd.f32 %v9029_v7, %v8821_v27  ;;  %v12457_v7 = vld [vmem:[%s12805_s18 + $0xfac] sm:$0xf] }
 0x9fa   : > { %v8823_v41 = vpop.f32.mrf.mxu1  ;;  %v8621_v28 = vpop.f32.mrf.mxu0 }
 0x9fb   : > { %v8620_v32 = vadd.f32 %v8619_v16, %v8411_v48  ;;  %v8824_v19 = vadd.f32 %v8823_v41, %v8615_v22  ;;  %v11581_v48 = vld [vmem:[%s12805_s18 + $0xfe4] sm:$0xf0] }
 0x9fc   : > { %v11584_v54 = vor.u32 %v12457_v7, %v11581_v48 }
 0x9fd   : > { %8862 = vmatmul.bf16.gmra.mxu1 %v11524_v21  ;;  %9071 = vmatmul.bf16.gmra.mxu2 %v11528_v61  ;;  %v11587_v21 = vld [vmem:[%s12805_s18 + $0xfb0] sm:$0xf]  ;;  %v12465_v61 = vld [vmem:[%s12805_s18 + $0xfe8] sm:$0xf0] }
 0x9fe   : > { %v11588_v15 = vor.u32 %v12465_v61, %v11587_v21 }
 0xa00   : > { %v8412_v29 = vpop.f32.mrf.mxu3  ;;  %v9032_v38 = vpop.f32.mrf.mxu2 }
 0xa01   : > { %v8413_v27 = vadd.f32 %v8412_v29, %v15503_v60  ;;  %v16042_v37 = vadd.f32 %v9032_v38, %v8824_v19  ;;  %v17606_v19 = vld [vmem:[#allocation65_spill] sm:$0xff] }
 0xa02   : > { %v8825_v16 = vpop.f32.mrf.mxu1  ;;  %v8624_v22 = vpop.f32.mrf.mxu0 }
 0xa03   : > { %17605 = vst [vmem:[#allocation62_spill] sm:$0xff] %v16042_v37  ;;  %v8622_v14 = vadd.f32 %v8621_v28, %v8413_v27  ;;  %v8826_v8 = vadd.f32 %v8825_v16, %v8617_v11  ;;  %v12486_v27 = vld [vmem:[%s12805_s18 + $0x1094] sm:$0xf] }
 0xa04   : > { %v12494_v16 = vld [vmem:[%s12805_s18 + $0x10d0] sm:$0xf0] }
 0xa05   : > { %8454 = vmatmul.bf16.gmra.mxu3 %v11636_v55  ;;  %8663 = vmatmul.bf16.gmra.mxu0 %v11640_v6  ;;  %v11693_v55 = vld [vmem:[%s12805_s18 + $0x10cc] sm:$0xf0]  ;;  %v11699_v6 = vld [vmem:[%s12805_s18 + $0x1098] sm:$0xf] }
 0xa06   : > { %v11696_v48 = vor.u32 %v12486_v27, %v11693_v55  ;;  %v11700_v21 = vor.u32 %v12494_v16, %v11699_v6 }
 0xa08   : > { %v8415_v41 = vpop.f32.mrf.mxu3  ;;  %v9034_v60 = vpop.f32.mrf.mxu2 }
 0xa09   : > { %v8416_v29 = vadd.f32 %v8415_v41, %v17606_v19  ;;  %v16049_v56 = vadd.f32 %v9034_v60, %v8826_v8  ;;  %v17608_v8 = vld [vmem:[#allocation70_spill] sm:$0xff] }
 0xa0a   : > { %v8828_v28 = vpop.f32.mrf.mxu1  ;;  %v8626_v11 = vpop.f32.mrf.mxu0 }
 0xa0b   : > { %17607 = vst [vmem:[#allocation28_spill] sm:$0xff] %v16049_v56  ;;  %v8625_v30 = vadd.f32 %v8624_v22, %v8416_v29  ;;  %v8829_v38 = vadd.f32 %v8828_v28, %v8620_v32  ;;  %v12472_v29 = vld [vmem:[%s12805_s18 + $0x1024] sm:$0xf] }
 0xa0c   : > { %v12480_v28 = vld [vmem:[%s12805_s18 + $0x1060] sm:$0xf0] }
 0xa0d   : > { %8867 = vmatmul.bf16.gmra.mxu1 %v11584_v54  ;;  %9076 = vmatmul.bf16.gmra.mxu2 %v11588_v15  ;;  %v11641_v54 = vld [vmem:[%s12805_s18 + $0x105c] sm:$0xf0]  ;;  %v11647_v15 = vld [vmem:[%s12805_s18 + $0x1028] sm:$0xf] }
 0xa0e   : > { %v11644_v55 = vor.u32 %v12472_v29, %v11641_v54  ;;  %v11648_v6 = vor.u32 %v12480_v28, %v11647_v15 }
 0xa10   : > { %v8417_v37 = vpop.f32.mrf.mxu3  ;;  %v9037_v41 = vpop.f32.mrf.mxu2 }
 0xa11   : > { %v8418_v60 = vadd.f32 %v8417_v37, %v17608_v8  ;;  %v16056_v7 = vadd.f32 %v9037_v41, %v8829_v38  ;;  %v12501_v8 = vld [vmem:[%s12805_s18 + $0x110c] sm:$0xf] }
 0xa12   : > { %v8830_v22 = vpop.f32.mrf.mxu1  ;;  %v8629_v32 = vpop.f32.mrf.mxu0 }
 0xa13   : > { %v8627_v61 = vadd.f32 %v8626_v11, %v8418_v60  ;;  %v8831_v19 = vadd.f32 %v8830_v22, %v8622_v14  ;;  %v11753_v60 = vld [vmem:[%s12805_s18 + $0x1144] sm:$0xf0] }
 0xa14   : > { %v11756_v29 = vor.u32 %v12501_v8, %v11753_v60 }
 0xa15   : > { %8459 = vmatmul.bf16.gmra.mxu3 %v11696_v48  ;;  %8668 = vmatmul.bf16.gmra.mxu0 %v11700_v21  ;;  %v11759_v48 = vld [vmem:[%s12805_s18 + $0x1110] sm:$0xf]  ;;  %v12509_v21 = vld [vmem:[%s12805_s18 + $0x1148] sm:$0xf0] }
 0xa16   : > { %v11760_v54 = vor.u32 %v12509_v21, %v11759_v48 }
 0xa18   : > { %v8420_v56 = vpop.f32.mrf.mxu3  ;;  %v9039_v37 = vpop.f32.mrf.mxu2 }
 0xa19   : > { %v8421_v38 = vadd.f32 %v8420_v56, %v15524_v34  ;;  %v16063_v27 = vadd.f32 %v9039_v37, %v8831_v19  ;;  %v12487_v37 = vld [vmem:[%s12805_s18 + $0x109c] sm:$0xf] }
 0xa1a   : > { %v8833_v11 = vpop.f32.mrf.mxu1  ;;  %v8631_v14 = vpop.f32.mrf.mxu0 }
 0xa1b   : > { %v8630_v16 = vadd.f32 %v8629_v32, %v8421_v38  ;;  %v8834_v41 = vadd.f32 %v8833_v11, %v8625_v30  ;;  %v11701_v38 = vld [vmem:[%s12805_s18 + $0x10d4] sm:$0xf0] }
 0xa1c   : > { %v11704_v60 = vor.u32 %v12487_v37, %v11701_v38 }
 0xa1d   : > { %8872 = vmatmul.bf16.gmra.mxu1 %v11644_v55  ;;  %9081 = vmatmul.bf16.gmra.mxu2 %v11648_v6  ;;  %v11707_v55 = vld [vmem:[%s12805_s18 + $0x10a0] sm:$0xf]  ;;  %v12495_v6 = vld [vmem:[%s12805_s18 + $0x10d8] sm:$0xf0] }
 0xa1e   : > { %v11708_v48 = vor.u32 %v12495_v6, %v11707_v55 }
 0xa20   : > { %v8422_v22 = vpop.f32.mrf.mxu3  ;;  %v9042_v34 = vpop.f32.mrf.mxu2 }
 0xa21   : > { %v8423_v56 = vadd.f32 %v8422_v22, %v15531_v9  ;;  %v16070_v19 = vadd.f32 %v9042_v34, %v8834_v41  ;;  %v12516_v34 = vld [vmem:[%s12805_s18 + $0x1184] sm:$0xf] }
 0xa22   : > { %v8835_v32 = vpop.f32.mrf.mxu1  ;;  %v8634_v30 = vpop.f32.mrf.mxu0 }
 0xa23   : > { %v8632_v15 = vadd.f32 %v8631_v14, %v8423_v56  ;;  %v8836_v28 = vadd.f32 %v8835_v32, %v8627_v61  ;;  %v11813_v56 = vld [vmem:[%s12805_s18 + $0x11bc] sm:$0xf0] }
 0xa24   : > { %v11816_v38 = vor.u32 %v12516_v34, %v11813_v56 }
 0xa25   : > { %8464 = vmatmul.bf16.gmra.mxu3 %v11756_v29  ;;  %8673 = vmatmul.bf16.gmra.mxu0 %v11760_v54  ;;  %v11819_v29 = vld [vmem:[%s12805_s18 + $0x1188] sm:$0xf]  ;;  %v12524_v54 = vld [vmem:[%s12805_s18 + $0x11c0] sm:$0xf0] }
 0xa26   : > { %v11820_v55 = vor.u32 %v12524_v54, %v11819_v29 }
 0xa28   : > { %v8425_v11 = vpop.f32.mrf.mxu3  ;;  %v9044_v9 = vpop.f32.mrf.mxu2 }
 0xa29   : > { %v8426_v41 = vadd.f32 %v8425_v11, %v15538_v50  ;;  %v16077_v8 = vadd.f32 %v9044_v9, %v8836_v28  ;;  %v12502_v9 = vld [vmem:[%s12805_s18 + $0x1114] sm:$0xf] }
 0xa2a   : > { %v8838_v14 = vpop.f32.mrf.mxu1  ;;  %v8636_v61 = vpop.f32.mrf.mxu0 }
 0xa2b   : > { %v8635_v21 = vadd.f32 %v8634_v30, %v8426_v41  ;;  %v8839_v22 = vadd.f32 %v8838_v14, %v8630_v16  ;;  %v11761_v41 = vld [vmem:[%s12805_s18 + $0x114c] sm:$0xf0] }
 0xa2c   : > { %v11764_v56 = vor.u32 %v12502_v9, %v11761_v41 }
 0xa2d   : > { %8877 = vmatmul.bf16.gmra.mxu1 %v11704_v60  ;;  %9086 = vmatmul.bf16.gmra.mxu2 %v11708_v48  ;;  %v11767_v60 = vld [vmem:[%s12805_s18 + $0x1118] sm:$0xf]  ;;  %v12510_v48 = vld [vmem:[%s12805_s18 + $0x1150] sm:$0xf0] }
 0xa2e   : > { %v11768_v29 = vor.u32 %v12510_v48, %v11767_v60 }
 0xa30   : > { %v8427_v32 = vpop.f32.mrf.mxu3  ;;  %v9047_v50 = vpop.f32.mrf.mxu2 }
 0xa31   : > { %v8428_v28 = vadd.f32 %v8427_v32, %v15545_v2  ;;  %v16084_v37 = vadd.f32 %v9047_v50, %v8839_v22  ;;  %v12531_v50 = vld [vmem:[%s12805_s18 + $0x11fc] sm:$0xf] }
 0xa32   : > { %v8840_v30 = vpop.f32.mrf.mxu1  ;;  %v8639_v16 = vpop.f32.mrf.mxu0 }
 0xa33   : > { %v8637_v6 = vadd.f32 %v8636_v61, %v8428_v28  ;;  %v8841_v11 = vadd.f32 %v8840_v30, %v8632_v15  ;;  %v11873_v28 = vld [vmem:[%s12805_s18 + $0x1234] sm:$0xf0] }
 0xa34   : > { %v11876_v41 = vor.u32 %v12531_v50, %v11873_v28 }
 0xa35   : > { %8469 = vmatmul.bf16.gmra.mxu3 %v11816_v38  ;;  %8678 = vmatmul.bf16.gmra.mxu0 %v11820_v55  ;;  %v11879_v38 = vld [vmem:[%s12805_s18 + $0x1200] sm:$0xf]  ;;  %v12539_v55 = vld [vmem:[%s12805_s18 + $0x1238] sm:$0xf0] }
 0xa36   : > { %v11880_v60 = vor.u32 %v12539_v55, %v11879_v38 }
 0xa38   : > { %v8430_v14 = vpop.f32.mrf.mxu3  ;;  %v9049_v2 = vpop.f32.mrf.mxu2 }
 0xa39   : > { %v8431_v22 = vadd.f32 %v8430_v14, %v15552_v26  ;;  %v16091_v34 = vadd.f32 %v9049_v2, %v8841_v11  ;;  %v12517_v2 = vld [vmem:[%s12805_s18 + $0x118c] sm:$0xf] }
 0xa3a   : > { %v8843_v61 = vpop.f32.mrf.mxu1  ;;  %v8641_v15 = vpop.f32.mrf.mxu0 }
 0xa3b   : > { %17609 = vst [vmem:[#allocation64_spill] sm:$0xff] %v16091_v34  ;;  %v8640_v54 = vadd.f32 %v8639_v16, %v8431_v22  ;;  %v8844_v32 = vadd.f32 %v8843_v61, %v8635_v21  ;;  %v11821_v22 = vld [vmem:[%s12805_s18 + $0x11c4] sm:$0xf0] }
 0xa3c   : > { %v11824_v28 = vor.u32 %v12517_v2, %v11821_v22 }
 0xa3d   : > { %8882 = vmatmul.bf16.gmra.mxu1 %v11764_v56  ;;  %9091 = vmatmul.bf16.gmra.mxu2 %v11768_v29  ;;  %v11827_v56 = vld [vmem:[%s12805_s18 + $0x1190] sm:$0xf]  ;;  %v12525_v29 = vld [vmem:[%s12805_s18 + $0x11c8] sm:$0xf0] }
 0xa3e   : > { %v11828_v38 = vor.u32 %v12525_v29, %v11827_v56 }
 0xa40   : > { %v8432_v30 = vpop.f32.mrf.mxu3  ;;  %v9052_v26 = vpop.f32.mrf.mxu2 }
 0xa41   : > { %v8433_v11 = vadd.f32 %v8432_v30, %v15559_v31  ;;  %v16098_v9 = vadd.f32 %v9052_v26, %v8844_v32  ;;  %v12546_v26 = vld [vmem:[%s12805_s18 + $0x1274] sm:$0xf] }
 0xa42   : > { %v8845_v16 = vpop.f32.mrf.mxu1  ;;  %v8644_v21 = vpop.f32.mrf.mxu0 }
 0xa43   : > { %17610 = vst [vmem:[#allocation30_spill] sm:$0xff] %v16098_v9  ;;  %v8642_v48 = vadd.f32 %v8641_v15, %v8433_v11  ;;  %v8846_v14 = vadd.f32 %v8845_v16, %v8637_v6  ;;  %v11933_v11 = vld [vmem:[%s12805_s18 + $0x12ac] sm:$0xf0] }
 0xa44   : > { %v11936_v22 = vor.u32 %v12546_v26, %v11933_v11 }
 0xa45   : > { %8474 = vmatmul.bf16.gmra.mxu3 %v11876_v41  ;;  %8683 = vmatmul.bf16.gmra.mxu0 %v11880_v60  ;;  %v11939_v41 = vld [vmem:[%s12805_s18 + $0x1278] sm:$0xf]  ;;  %v12554_v60 = vld [vmem:[%s12805_s18 + $0x12b0] sm:$0xf0] }
 0xa46   : > { %v11940_v56 = vor.u32 %v12554_v60, %v11939_v41 }
 0xa48   : > { %v8435_v61 = vpop.f32.mrf.mxu3  ;;  %v9054_v31 = vpop.f32.mrf.mxu2 }
 0xa49   : > { %v8436_v32 = vadd.f32 %v8435_v61, %v15566_v35  ;;  %v16105_v50 = vadd.f32 %v9054_v31, %v8846_v14  ;;  %v12532_v31 = vld [vmem:[%s12805_s18 + $0x1204] sm:$0xf] }
 0xa4a   : > { %v8848_v15 = vpop.f32.mrf.mxu1  ;;  %v8646_v6 = vpop.f32.mrf.mxu0 }
 0xa4b   : > { %17611 = vst [vmem:[#allocation68_spill] sm:$0xff] %v16105_v50  ;;  %v8645_v55 = vadd.f32 %v8644_v21, %v8436_v32  ;;  %v8849_v30 = vadd.f32 %v8848_v15, %v8640_v54  ;;  %v11881_v32 = vld [vmem:[%s12805_s18 + $0x123c] sm:$0xf0] }
 0xa4d   : > { %8887 = vmatmul.bf16.gmra.mxu1 %v11824_v28  ;;  %9096 = vmatmul.bf16.gmra.mxu2 %v11828_v38  ;;  %v11887_v28 = vld [vmem:[%s12805_s18 + $0x1208] sm:$0xf]  ;;  %v12540_v38 = vld [vmem:[%s12805_s18 + $0x1240] sm:$0xf0] }
 0xa50   : > { %v8437_v16 = vpop.f32.mrf.mxu3  ;;  %v9057_v35 = vpop.f32.mrf.mxu2 }
 0xa51   : > { %v8438_v14 = vadd.f32 %v8437_v16, %v15573_v46  ;;  %v16112_v2 = vadd.f32 %v9057_v35, %v8849_v30  ;;  %v11884_v46 = vor.u32 %v12532_v31, %v11881_v32  ;;  %v11888_v30 = vor.u32 %v12540_v38, %v11887_v28  ;;  %v12555_v31 = vld [vmem:[%s12805_s18 + $0x12b8] sm:$0xf0] }
 0xa52   : > { %v8850_v21 = vpop.f32.mrf.mxu1  ;;  %v8649_v54 = vpop.f32.mrf.mxu0 }
 0xa53   : > { %v8647_v29 = vadd.f32 %v8646_v6, %v8438_v14  ;;  %v8851_v61 = vadd.f32 %v8850_v21, %v8642_v48  ;;  %v11941_v21 = vld [vmem:[%s12805_s18 + $0x12b4] sm:$0xf0] }
 0xa55   : > { %8479 = vmatmul.bf16.gmra.mxu3 %v11936_v22  ;;  %8688 = vmatmul.bf16.gmra.mxu0 %v11940_v56  ;;  %v12547_v56 = vld [vmem:[%s12805_s18 + $0x127c] sm:$0xf] }
 0xa58   : > { %v8440_v15 = vpop.f32.mrf.mxu3  ;;  %v9059_v50 = vpop.f32.mrf.mxu2 }
 0xa59   : > { %v8441_v9 = vadd.f32 %v8440_v15, %v15580_v57  ;;  %v16119_v34 = vadd.f32 %v9059_v50, %v8851_v61  ;;  %v11947_v61 = vld [vmem:[%s12805_s18 + $0x1280] sm:$0xf] }
 0xa5a   : > { %v8853_v26 = vpop.f32.mrf.mxu1  ;;  %v8651_v6 = vpop.f32.mrf.mxu0  ;;  %v11948_v38 = vor.u32 %v12555_v31, %v11947_v61 }
 0xa5b   : > { %v8650_v48 = vadd.f32 %v8649_v54, %v8441_v9  ;;  %v8854_v11 = vadd.f32 %v8853_v26, %v8645_v55  ;;  %v11944_v54 = vor.u32 %v12547_v56, %v11941_v21 }
 0xa5d   : > { %8892 = vmatmul.bf16.gmra.mxu1 %v11884_v46  ;;  %9101 = vmatmul.bf16.gmra.mxu2 %v11888_v30 }
 0xa60   : > { %v8442_v41 = vpop.f32.mrf.mxu3  ;;  %v9062_v60 = vpop.f32.mrf.mxu2 }
 0xa61   : > { %v8443_v16 = vadd.f32 %v8442_v41, %v15587_v23  ;;  %v16122_v35 = vadd.f32 %v9062_v60, %v8854_v11 }
 0xa62   : > { %v8855_v57 = vpop.f32.mrf.mxu1  ;;  %v8654_v50 = vpop.f32.mrf.mxu0 }
 0xa63   : > { %v8652_v14 = vadd.f32 %v8651_v6, %v8443_v16  ;;  %v8856_v22 = vadd.f32 %v8855_v57, %v8647_v29 }
 0xa68   : > { %v8445_v32 = vpop.f32.mrf.mxu3  ;;  %v9064_v28 = vpop.f32.mrf.mxu2 }
 0xa69   : > { %v8446_v9 = vadd.f32 %v8445_v32, %v15594_v1  ;;  %v16129_v55 = vadd.f32 %v9064_v28, %v8856_v22 }
 0xa6a   : > { %v8858_v15 = vpop.f32.mrf.mxu1  ;;  %v8656_v23 = vpop.f32.mrf.mxu0 }
 0xa6b   : > { %v8655_v46 = vadd.f32 %v8654_v50, %v8446_v9  ;;  %v8859_v30 = vadd.f32 %v8858_v15, %v8650_v48 }
 0xa6d   : > { %8897 = vmatmul.bf16.gmra.mxu1 %v11944_v54  ;;  %9106 = vmatmul.bf16.gmra.mxu2 %v11948_v38 }
 0xa70   : > { %v8447_v26 = vpop.f32.mrf.mxu3  ;;  %v9067_v29 = vpop.f32.mrf.mxu2 }
 0xa71   : > { %v8448_v6 = vadd.f32 %v8447_v26, %v15601_v44  ;;  %v16132_v11 = vadd.f32 %v9067_v29, %v8859_v30 }
 0xa72   : > { %v8860_v41 = vpop.f32.mrf.mxu1  ;;  %v8659_v60 = vpop.f32.mrf.mxu0 }
 0xa73   : > { %v8657_v16 = vadd.f32 %v8656_v23, %v8448_v6  ;;  %v8861_v1 = vadd.f32 %v8860_v41, %v8652_v14 }
 0xa78   : > { %v8450_v57 = vpop.f32.mrf.mxu3  ;;  %v9069_v22 = vpop.f32.mrf.mxu2 }
 0xa79   : > { %v8451_v56 = vadd.f32 %v8450_v57, %v15608_v52  ;;  %v16135_v21 = vadd.f32 %v9069_v22, %v8861_v1 }
 0xa7a   : > { %v8863_v50 = vpop.f32.mrf.mxu1  ;;  %v8661_v48 = vpop.f32.mrf.mxu0 }
 0xa7b   : > { %v8660_v61 = vadd.f32 %v8659_v60, %v8451_v56  ;;  %v8864_v31 = vadd.f32 %v8863_v50, %v8655_v46 }
 0xa80   : > { %v8452_v32 = vpop.f32.mrf.mxu3  ;;  %v9072_v28 = vpop.f32.mrf.mxu2 }
 0xa81   : > { %v8453_v44 = vadd.f32 %v8452_v32, %v15615_v49  ;;  %v16138_v9 = vadd.f32 %v9072_v28, %v8864_v31 }
 0xa82   : > { %v8865_v54 = vpop.f32.mrf.mxu1  ;;  %v8664_v38 = vpop.f32.mrf.mxu0 }
 0xa83   : > { %v8662_v15 = vadd.f32 %v8661_v48, %v8453_v44  ;;  %v8866_v14 = vadd.f32 %v8865_v54, %v8657_v16 }
 0xa88   : > { %v8455_v23 = vpop.f32.mrf.mxu3  ;;  %v9074_v30 = vpop.f32.mrf.mxu2 }
 0xa89   : > { %v8456_v52 = vadd.f32 %v8455_v23, %v15622_v10  ;;  %v16141_v26 = vadd.f32 %v9074_v30, %v8866_v14 }
 0xa8a   : > { %v8868_v29 = vpop.f32.mrf.mxu1  ;;  %v8666_v46 = vpop.f32.mrf.mxu0 }
 0xa8b   : > { %v8665_v6 = vadd.f32 %v8664_v38, %v8456_v52  ;;  %v8869_v41 = vadd.f32 %v8868_v29, %v8660_v61 }
 0xa90   : > { %v8457_v60 = vpop.f32.mrf.mxu3  ;;  %v9077_v1 = vpop.f32.mrf.mxu2 }
 0xa91   : > { %v8458_v49 = vadd.f32 %v8457_v60, %v15629_v5  ;;  %v16144_v57 = vadd.f32 %v9077_v1, %v8869_v41 }
 0xa92   : > { %v8870_v22 = vpop.f32.mrf.mxu1  ;;  %v8669_v16 = vpop.f32.mrf.mxu0 }
 0xa93   : > { %v8667_v56 = vadd.f32 %v8666_v46, %v8458_v49  ;;  %v8871_v50 = vadd.f32 %v8870_v22, %v8662_v15 }
 0xa98   : > { %v8460_v48 = vpop.f32.mrf.mxu3  ;;  %v9079_v31 = vpop.f32.mrf.mxu2 }
 0xa99   : > { %v8461_v10 = vadd.f32 %v8460_v48, %v15636_v17  ;;  %v16147_v32 = vadd.f32 %v9079_v31, %v8871_v50 }
 0xa9a   : > { %v8873_v28 = vpop.f32.mrf.mxu1  ;;  %v8671_v54 = vpop.f32.mrf.mxu0 }
 0xa9b   : > { %v8670_v44 = vadd.f32 %v8669_v16, %v8461_v10  ;;  %v8874_v61 = vadd.f32 %v8873_v28, %v8665_v6 }
 0xaa0   : > { %v8462_v38 = vpop.f32.mrf.mxu3  ;;  %v9082_v14 = vpop.f32.mrf.mxu2 }
 0xaa1   : > { %v8463_v5 = vadd.f32 %v8462_v38, %v15643_v33  ;;  %v16150_v23 = vadd.f32 %v9082_v14, %v8874_v61 }
 0xaa2   : > { %v8875_v30 = vpop.f32.mrf.mxu1  ;;  %v8674_v1 = vpop.f32.mrf.mxu0 }
 0xaa3   : > { %v8672_v52 = vadd.f32 %v8671_v54, %v8463_v5  ;;  %v8876_v15 = vadd.f32 %v8875_v30, %v8667_v56 }
 0xaa8   : > { %v8465_v29 = vpop.f32.mrf.mxu3  ;;  %v9084_v41 = vpop.f32.mrf.mxu2 }
 0xaa9   : > { %v16152_v46 = vadd.f32 %v9084_v41, %v8876_v15  ;;  %v8466_v31 = vadd.f32 %v8465_v29, %v15650_v3 }
 0xaaa   : > { %v8878_v17 = vpop.f32.mrf.mxu1  ;;  %v8676_v48 = vpop.f32.mrf.mxu0 }
 0xaab   : > { %v8879_v60 = vadd.f32 %v8878_v17, %v8670_v44  ;;  %v8675_v61 = vadd.f32 %v8674_v1, %v8466_v31  ;;  %v17613_v44 = vld [vmem:[#allocation74_spill] sm:$0xff] }
 0xab0   : > { %v9087_v49 = vpop.f32.mrf.mxu2  ;;  %v8467_v6 = vpop.f32.mrf.mxu3 }
 0xab1   : > { %v16154_v22 = vadd.f32 %v9087_v49, %v8879_v60  ;;  %v8468_v5 = vadd.f32 %v8467_v6, %v17613_v44  ;;  %v17614_v49 = vld [vmem:[#allocation75_spill] sm:$0xff] }
 0xab2   : > { %v8880_v50 = vpop.f32.mrf.mxu1  ;;  %v8679_v38 = vpop.f32.mrf.mxu0 }
 0xab3   : > { %v8881_v16 = vadd.f32 %v8880_v50, %v8672_v52  ;;  %v8677_v41 = vadd.f32 %v8676_v48, %v8468_v5 }
 0xab8   : > { %v9089_v33 = vpop.f32.mrf.mxu2  ;;  %v8470_v28 = vpop.f32.mrf.mxu3 }
 0xab9   : > { %v16157_v10 = vadd.f32 %v9089_v33, %v8881_v16  ;;  %v8471_v50 = vadd.f32 %v8470_v28, %v17614_v49 }
 0xaba   : > { %v8883_v56 = vpop.f32.mrf.mxu1  ;;  %v8681_v29 = vpop.f32.mrf.mxu0 }
 0xabb   : > { %17612 = vst [vmem:[#allocation32_spill] sm:$0xff] %v16157_v10  ;;  %v8884_v54 = vadd.f32 %v8883_v56, %v8675_v61  ;;  %v8680_v33 = vadd.f32 %v8679_v38, %v8471_v50  ;;  %v17616_v61 = vld [vmem:[#allocation78_spill] sm:$0xff] }
 0xac0   : > { %v9092_v14 = vpop.f32.mrf.mxu2  ;;  %v8472_v17 = vpop.f32.mrf.mxu3 }
 0xac1   : > { %v16160_v30 = vadd.f32 %v9092_v14, %v8884_v54  ;;  %v8473_v10 = vadd.f32 %v8472_v17, %v17616_v61 }
 0xac2   : > { %v8885_v15 = vpop.f32.mrf.mxu1  ;;  %v8684_v14 = vpop.f32.mrf.mxu0 }
 0xac3   : > { %v8886_v52 = vadd.f32 %v8885_v15, %v8677_v41  ;;  %v8682_v48 = vadd.f32 %v8681_v29, %v8473_v10  ;;  %v17617_v15 = vld [vmem:[#allocation76_spill] sm:$0xff] }
 0xac8   : > { %v9094_v60 = vpop.f32.mrf.mxu2  ;;  %v8475_v31 = vpop.f32.mrf.mxu3 }
 0xac9   : > { %v16163_v3 = vadd.f32 %v9094_v60, %v8886_v52  ;;  %v8476_v41 = vadd.f32 %v8475_v31, %v17617_v15 }
 0xaca   : > { %v8888_v16 = vpop.f32.mrf.mxu1  ;;  %v8686_v38 = vpop.f32.mrf.mxu0 }
 0xacb   : > { %17615 = vst [vmem:[#allocation73_spill] sm:$0xff] %v16163_v3  ;;  %v8889_v1 = vadd.f32 %v8888_v16, %v8680_v33  ;;  %v8685_v49 = vadd.f32 %v8684_v14, %v8476_v41  ;;  %v17619_v33 = vld [vmem:[#allocation79_spill] sm:$0xff] }
 0xad0   : > { %v9097_v56 = vpop.f32.mrf.mxu2  ;;  %v8477_v52 = vpop.f32.mrf.mxu3 }
 0xad1   : > { %v16166_v6 = vadd.f32 %v9097_v56, %v8889_v1  ;;  %v8478_v3 = vadd.f32 %v8477_v52, %v17619_v33 }
 0xad2   : > { %v8890_v54 = vpop.f32.mrf.mxu1  ;;  %v8689_v29 = vpop.f32.mrf.mxu0 }
 0xad3   : > { %v8891_v44 = vadd.f32 %v8890_v54, %v8682_v48  ;;  %v8687_v61 = vadd.f32 %v8686_v38, %v8478_v3  ;;  %v17620_v48 = vld [vmem:[#allocation55_spill] sm:$0xff] }
 0xad8   : > { %v9099_v5 = vpop.f32.mrf.mxu2  ;;  %v8480_v56 = vpop.f32.mrf.mxu3 }
 0xad9   : > { %v16169_v28 = vadd.f32 %v9099_v5, %v8891_v44  ;;  %v8481_v31 = vadd.f32 %v8480_v56, %v17620_v48 }
 0xada   : > { %v8893_v60 = vpop.f32.mrf.mxu1 }
 0xadb   : > { %17618 = vst [vmem:[#allocation5_spill] sm:$0xff] %v16169_v28  ;;  %v8894_v50 = vadd.f32 %v8893_v60, %v8685_v49  ;;  %v8690_v15 = vadd.f32 %v8689_v29, %v8481_v31  ;;  %v17621_v49 = vld [vmem:[#allocation54_spill] sm:$0xff] }
 0xae0   : > { %v9102_v16 = vpop.f32.mrf.mxu2  ;;  %v8482_v14 = vpop.f32.mrf.mxu3 }
 0xae1   : > { %v16172_v17 = vadd.f32 %v9102_v16, %v8894_v50  ;;  %v8483_v28 = vadd.f32 %v8482_v14, %v17621_v49  ;;  %v8691_v50 = vpop.f32.mrf.mxu0 }
 0xae2   : > { %v8895_v1 = vpop.f32.mrf.mxu1 }
 0xae3   : > { %v8896_v10 = vadd.f32 %v8895_v1, %v8687_v61  ;;  %v8692_v33 = vadd.f32 %v8691_v50, %v8483_v28 }
 0xae8   : > { %v9104_v54 = vpop.f32.mrf.mxu2 }
 0xae9   : > { %v16175_v44 = vadd.f32 %v9104_v54, %v8896_v10 }
 0xaea   : > { %v8898_v5 = vpop.f32.mrf.mxu1 }
 0xaeb   : > { %v8899_v41 = vadd.f32 %v8898_v5, %v8690_v15 }
 0xaf0   : > { %v9107_v60 = vpop.f32.mrf.mxu2 }
 0xaf1   : > { %v16178_v52 = vadd.f32 %v9107_v60, %v8899_v41 }
 0xaf2   : > { %v8900_v16 = vpop.f32.mrf.mxu1 }
 0xaf3   : > { %v8901_v3 = vadd.f32 %v8900_v16, %v8692_v33 }
 0xaf5   : > { %9115 = sbr.rel (%p11949_p0) target bundleno = 2891 (0xb4b), region = 40 }
 0xaf8   : > { %v9109_v38 = vpop.f32.mrf.mxu2 }
 0xaf9   : > { %v16180_v1 = vadd.f32 %v9109_v38, %v8901_v3 }
 0xafa   : > { %vm9116_vm0 = vcmask 400384   ;;  %v17622_v56 = vld [vmem:[#allocation66_spill] sm:$0xff]  ;;  %v17623_v61 = vld [vmem:[#allocation67_spill] sm:$0xff]  ;;  %v17626_v29 = vld [vmem:[#allocation60_spill] sm:$0xff] }
 0xafb   : > { %9117 = vst.msk [vmem:[%s17245_s3] sm:$0xff] %vm9116_vm0, %v17622_v56  ;;  %v17624_v28 = vld [vmem:[#allocation10_spill] sm:$0xff]  ;;  %v17627_v54 = vld [vmem:[#allocation61_spill] sm:$0xff]  ;;  %v17628_v48 = vld [vmem:[#allocation80_spill] sm:$0xff] }
 0xafc   : > { %9118 = vst.msk [vmem:[%s17245_s3 + $0x8] sm:$0xff] %vm9116_vm0, %v17623_v61  ;;  %v17625_v10 = vld [vmem:[#allocation42_spill] sm:$0xff]  ;;  %v17629_v31 = vld [vmem:[#allocation77_spill] sm:$0xff]  ;;  %v17631_v15 = vld [vmem:[#allocation71_spill] sm:$0xff] }
 0xafd   : > { %9119 = vst.msk [vmem:[%s17245_s3 + $0x10] sm:$0xff] %vm9116_vm0, %v17624_v28  ;;  %v17630_v5 = vld [vmem:[#allocation69_spill] sm:$0xff]  ;;  %v17632_v14 = vld [vmem:[#allocation72_spill] sm:$0xff]  ;;  %v17636_v50 = vld [vmem:[#allocation14_spill] sm:$0xff] }
 0xafe   : > { %9120 = vst.msk [vmem:[%s17245_s3 + $0x18] sm:$0xff] %vm9116_vm0, %v17625_v10  ;;  %v17633_v41 = vld [vmem:[#allocation81_spill] sm:$0xff]  ;;  %v17634_v60 = vld [vmem:[#allocation12_spill] sm:$0xff]  ;;  %v17637_v16 = vld [vmem:[#allocation46_spill] sm:$0xff] }
 0xaff   : > { %9121 = vst.msk [vmem:[%s17245_s3 + $0x20] sm:$0xff] %vm9116_vm0, %v17626_v29  ;;  %v17635_v49 = vld [vmem:[#allocation44_spill] sm:$0xff]  ;;  %v17640_v38 = vld [vmem:[#allocation18_spill] sm:$0xff] }
 0xb00   : > { %9122 = vst.msk [vmem:[%s17245_s3 + $0x28] sm:$0xff] %vm9116_vm0, %v17627_v54  ;;  %v17638_v33 = vld [vmem:[#allocation16_spill] sm:$0xff]  ;;  %v17641_v56 = vld [vmem:[#allocation50_spill] sm:$0xff] }
 0xb01   : > { %9123 = vst.msk [vmem:[%s17245_s3 + $0x30] sm:$0xff] %vm9116_vm0, %v17628_v48  ;;  %v17639_v3 = vld [vmem:[#allocation48_spill] sm:$0xff]  ;;  %v17644_v10 = vld [vmem:[#allocation22_spill] sm:$0xff] }
 0xb02   : > { %9124 = vst.msk [vmem:[%s17245_s3 + $0x38] sm:$0xff] %vm9116_vm0, %v17629_v31  ;;  %v17642_v61 = vld [vmem:[#allocation20_spill] sm:$0xff]  ;;  %v17647_v48 = vld [vmem:[#allocation58_spill] sm:$0xff] }
 0xb03   : > { %9125 = vst.msk [vmem:[%s17245_s3 + $0x40] sm:$0xff] %vm9116_vm0, %v17630_v5  ;;  %v17643_v28 = vld [vmem:[#allocation52_spill] sm:$0xff]  ;;  %v17648_v31 = vld [vmem:[#allocation26_spill] sm:$0xff] }
 0xb04   : > { %9126 = vst.msk [vmem:[%s17245_s3 + $0x48] sm:$0xff] %vm9116_vm0, %v17631_v15  ;;  %v17645_v29 = vld [vmem:[#allocation56_spill] sm:$0xff]  ;;  %v17649_v5 = vld [vmem:[#allocation62_spill] sm:$0xff] }
 0xb05   : > { %9127 = vst.msk [vmem:[%s17245_s3 + $0x50] sm:$0xff] %vm9116_vm0, %v17632_v14  ;;  %v17646_v54 = vld [vmem:[#allocation24_spill] sm:$0xff] }
 0xb06   : > { %9128 = vst.msk [vmem:[%s17245_s3 + $0x58] sm:$0xff] %vm9116_vm0, %v17633_v41  ;;  %v17650_v15 = vld [vmem:[#allocation28_spill] sm:$0xff]  ;;  %v17652_v41 = vld [vmem:[#allocation30_spill] sm:$0xff] }
 0xb07   : > { %9129 = vst.msk [vmem:[%s17245_s3 + $0x60] sm:$0xff] %vm9116_vm0, %v17634_v60  ;;  %v17651_v14 = vld [vmem:[#allocation64_spill] sm:$0xff] }
 0xb08   : > { %9130 = vst.msk [vmem:[%s17245_s3 + $0x68] sm:$0xff] %vm9116_vm0, %v17635_v49  ;;  %v17653_v60 = vld [vmem:[#allocation68_spill] sm:$0xff] }
 0xb09   : > { %9131 = vst.msk [vmem:[%s17245_s3 + $0x70] sm:$0xff] %vm9116_vm0, %v17636_v50  ;;  %v17654_v49 = vld [vmem:[#allocation32_spill] sm:$0xff]  ;;  %v17655_v50 = vld [vmem:[#allocation73_spill] sm:$0xff] }
 0xb0a   : > { %9132 = vst.msk [vmem:[%s17245_s3 + $0x78] sm:$0xff] %vm9116_vm0, %v17637_v16  ;;  %v17656_v16 = vld [vmem:[#allocation5_spill] sm:$0xff] }
 0xb0b   : > { %9133 = vst.msk [vmem:[%s17245_s3 + $0x80] sm:$0xff] %vm9116_vm0, %v17638_v33 }
 0xb0c   : > { %9134 = vst.msk [vmem:[%s17245_s3 + $0x88] sm:$0xff] %vm9116_vm0, %v17639_v3 }
 0xb0d   : > { %9135 = vst.msk [vmem:[%s17245_s3 + $0x90] sm:$0xff] %vm9116_vm0, %v17640_v38 }
 0xb0e   : > { %9136 = vst.msk [vmem:[%s17245_s3 + $0x98] sm:$0xff] %vm9116_vm0, %v17641_v56 }
 0xb0f   : > { %9137 = vst.msk [vmem:[%s17245_s3 + $0xa0] sm:$0xff] %vm9116_vm0, %v17642_v61 }
 0xb10   : > { %9138 = vst.msk [vmem:[%s17245_s3 + $0xa8] sm:$0xff] %vm9116_vm0, %v17643_v28 }
 0xb11   : > { %9139 = vst.msk [vmem:[%s17245_s3 + $0xb0] sm:$0xff] %vm9116_vm0, %v17644_v10 }
 0xb12   : > { %9140 = vst.msk [vmem:[%s17245_s3 + $0xb8] sm:$0xff] %vm9116_vm0, %v17645_v29 }
 0xb13   : > { %9141 = vst.msk [vmem:[%s17245_s3 + $0xc0] sm:$0xff] %vm9116_vm0, %v17646_v54 }
 0xb14   : > { %9142 = vst.msk [vmem:[%s17245_s3 + $0xc8] sm:$0xff] %vm9116_vm0, %v17647_v48 }
 0xb15   : > { %9143 = vst.msk [vmem:[%s17245_s3 + $0xd0] sm:$0xff] %vm9116_vm0, %v17648_v31 }
 0xb16   : > { %9144 = vst.msk [vmem:[%s17245_s3 + $0xd8] sm:$0xff] %vm9116_vm0, %v15895_v36 }
 0xb17   : > { %9145 = vst.msk [vmem:[%s17245_s3 + $0xe0] sm:$0xff] %vm9116_vm0, %v15902_v18 }
 0xb18   : > { %9146 = vst.msk [vmem:[%s17245_s3 + $0xe8] sm:$0xff] %vm9116_vm0, %v15909_v63 }
 0xb19   : > { %9147 = vst.msk [vmem:[%s17245_s3 + $0xf0] sm:$0xff] %vm9116_vm0, %v15916_v42 }
 0xb1a   : > { %9148 = vst.msk [vmem:[%s17245_s3 + $0xf8] sm:$0xff] %vm9116_vm0, %v15923_v45 }
 0xb1b   : > { %9149 = vst.msk [vmem:[%s17245_s3 + $0x100] sm:$0xff] %vm9116_vm0, %v15930_v62 }
 0xb1c   : > { %9150 = vst.msk [vmem:[%s17245_s3 + $0x108] sm:$0xff] %vm9116_vm0, %v15937_v59 }
 0xb1d   : > { %9151 = vst.msk [vmem:[%s17245_s3 + $0x110] sm:$0xff] %vm9116_vm0, %v15944_v58 }
 0xb1e   : > { %9152 = vst.msk [vmem:[%s17245_s3 + $0x118] sm:$0xff] %vm9116_vm0, %v15951_v20 }
 0xb1f   : > { %9153 = vst.msk [vmem:[%s17245_s3 + $0x120] sm:$0xff] %vm9116_vm0, %v15958_v43 }
 0xb20   : > { %9154 = vst.msk [vmem:[%s17245_s3 + $0x128] sm:$0xff] %vm9116_vm0, %v15965_v24 }
 0xb21   : > { %9155 = vst.msk [vmem:[%s17245_s3 + $0x130] sm:$0xff] %vm9116_vm0, %v15972_v4 }
 0xb22   : > { %9156 = vst.msk [vmem:[%s17245_s3 + $0x138] sm:$0xff] %vm9116_vm0, %v15979_v25 }
 0xb23   : > { %9157 = vst.msk [vmem:[%s17245_s3 + $0x140] sm:$0xff] %vm9116_vm0, %v15986_v53 }
 0xb24   : > { %9158 = vst.msk [vmem:[%s17245_s3 + $0x148] sm:$0xff] %vm9116_vm0, %v15993_v0 }
 0xb25   : > { %9159 = vst.msk [vmem:[%s17245_s3 + $0x150] sm:$0xff] %vm9116_vm0, %v16000_v13 }
 0xb26   : > { %9160 = vst.msk [vmem:[%s17245_s3 + $0x158] sm:$0xff] %vm9116_vm0, %v16007_v51 }
 0xb27   : > { %9161 = vst.msk [vmem:[%s17245_s3 + $0x160] sm:$0xff] %vm9116_vm0, %v16014_v39 }
 0xb28   : > { %9162 = vst.msk [vmem:[%s17245_s3 + $0x168] sm:$0xff] %vm9116_vm0, %v16021_v12 }
 0xb29   : > { %9163 = vst.msk [vmem:[%s17245_s3 + $0x170] sm:$0xff] %vm9116_vm0, %v16028_v47 }
 0xb2a   : > { %9164 = vst.msk [vmem:[%s17245_s3 + $0x178] sm:$0xff] %vm9116_vm0, %v16035_v40 }
 0xb2b   : > { %9165 = vst.msk [vmem:[%s17245_s3 + $0x180] sm:$0xff] %vm9116_vm0, %v17649_v5 }
 0xb2c   : > { %9166 = vst.msk [vmem:[%s17245_s3 + $0x188] sm:$0xff] %vm9116_vm0, %v17650_v15 }
 0xb2d   : > { %9167 = vst.msk [vmem:[%s17245_s3 + $0x190] sm:$0xff] %vm9116_vm0, %v16056_v7 }
 0xb2e   : > { %9168 = vst.msk [vmem:[%s17245_s3 + $0x198] sm:$0xff] %vm9116_vm0, %v16063_v27 }
 0xb2f   : > { %9169 = vst.msk [vmem:[%s17245_s3 + $0x1a0] sm:$0xff] %vm9116_vm0, %v16070_v19 }
 0xb30   : > { %9170 = vst.msk [vmem:[%s17245_s3 + $0x1a8] sm:$0xff] %vm9116_vm0, %v16077_v8 }
 0xb31   : > { %9171 = vst.msk [vmem:[%s17245_s3 + $0x1b0] sm:$0xff] %vm9116_vm0, %v16084_v37 }
 0xb32   : > { %9172 = vst.msk [vmem:[%s17245_s3 + $0x1b8] sm:$0xff] %vm9116_vm0, %v17651_v14 }
 0xb33   : > { %9173 = vst.msk [vmem:[%s17245_s3 + $0x1c0] sm:$0xff] %vm9116_vm0, %v17652_v41 }
 0xb34   : > { %9174 = vst.msk [vmem:[%s17245_s3 + $0x1c8] sm:$0xff] %vm9116_vm0, %v17653_v60 }
 0xb35   : > { %9175 = vst.msk [vmem:[%s17245_s3 + $0x1d0] sm:$0xff] %vm9116_vm0, %v16112_v2 }
 0xb36   : > { %9176 = vst.msk [vmem:[%s17245_s3 + $0x1d8] sm:$0xff] %vm9116_vm0, %v16119_v34 }
 0xb37   : > { %9177 = vst.msk [vmem:[%s17245_s3 + $0x1e0] sm:$0xff] %vm9116_vm0, %v16122_v35 }
 0xb38   : > { %9178 = vst.msk [vmem:[%s17245_s3 + $0x1e8] sm:$0xff] %vm9116_vm0, %v16129_v55 }
 0xb39   : > { %9179 = vst.msk [vmem:[%s17245_s3 + $0x1f0] sm:$0xff] %vm9116_vm0, %v16132_v11 }
 0xb3a   : > { %9180 = vst.msk [vmem:[%s17245_s3 + $0x1f8] sm:$0xff] %vm9116_vm0, %v16135_v21 }
 0xb3b   : > { %9181 = vst.msk [vmem:[%s17245_s3 + $0x200] sm:$0xff] %vm9116_vm0, %v16138_v9 }
 0xb3c   : > { %9182 = vst.msk [vmem:[%s17245_s3 + $0x208] sm:$0xff] %vm9116_vm0, %v16141_v26 }
 0xb3d   : > { %9183 = vst.msk [vmem:[%s17245_s3 + $0x210] sm:$0xff] %vm9116_vm0, %v16144_v57 }
 0xb3e   : > { %9184 = vst.msk [vmem:[%s17245_s3 + $0x218] sm:$0xff] %vm9116_vm0, %v16147_v32 }
 0xb3f   : > { %9185 = vst.msk [vmem:[%s17245_s3 + $0x220] sm:$0xff] %vm9116_vm0, %v16150_v23 }
 0xb40   : > { %9186 = vst.msk [vmem:[%s17245_s3 + $0x228] sm:$0xff] %vm9116_vm0, %v16152_v46 }
 0xb41   : > { %9187 = vst.msk [vmem:[%s17245_s3 + $0x230] sm:$0xff] %vm9116_vm0, %v16154_v22 }
 0xb42   : > { %9188 = vst.msk [vmem:[%s17245_s3 + $0x238] sm:$0xff] %vm9116_vm0, %v17654_v49 }
 0xb43   : > { %9189 = vst.msk [vmem:[%s17245_s3 + $0x240] sm:$0xff] %vm9116_vm0, %v16160_v30 }
 0xb44   : > { %9190 = vst.msk [vmem:[%s17245_s3 + $0x248] sm:$0xff] %vm9116_vm0, %v17655_v50 }
 0xb45   : > { %9191 = vst.msk [vmem:[%s17245_s3 + $0x250] sm:$0xff] %vm9116_vm0, %v16166_v6 }
 0xb46   : > { %9192 = vst.msk [vmem:[%s17245_s3 + $0x258] sm:$0xff] %vm9116_vm0, %v17656_v16 }
 0xb47   : > { %9193 = vst.msk [vmem:[%s17245_s3 + $0x260] sm:$0xff] %vm9116_vm0, %v16172_v17 }
 0xb48   : > { %9194 = vst.msk [vmem:[%s17245_s3 + $0x268] sm:$0xff] %vm9116_vm0, %v16175_v44 }
 0xb49   : > { %9195 = vst.msk [vmem:[%s17245_s3 + $0x270] sm:$0xff] %vm9116_vm0, %v16178_v52 }
 0xb4a   : > { %9196 = vst.msk [vmem:[%s17245_s3 + $0x278] sm:$0xff] %vm9116_vm0, %v16180_v1 }
 0xb4b PF: > { %p11950_p1 = scmp.le.s32.totalorder %s12716_s15, 0 }
 0xb4d   : > { %9200 = sbr.rel (%p11950_p1) target bundleno = 2982 (0xba6), region = 44 }
 0xb52   : > { %v9201_v33 = vld [vmem:[%s17245_s3] sm:$0xff]  ;;  %vm9361_vm1 = vcmask 400384   ;;  %v9202_v3 = vld [vmem:[%s17245_s3 + $0x8] sm:$0xff]  ;;  %v9203_v38 = vld [vmem:[%s17245_s3 + $0x10] sm:$0xff] }
 0xb53   : > { %v17657_v56 = vld [vmem:[#allocation66_spill] sm:$0xff]  ;;  %v17658_v28 = vld [vmem:[#allocation67_spill] sm:$0xff]  ;;  %v9204_v48 = vld [vmem:[%s17245_s3 + $0x18] sm:$0xff] }
 0xb54   : > { %v9281_v61 = vadd.f32 %v9201_v33, %v17657_v56  ;;  %v9282_v10 = vadd.f32 %v9202_v3, %v17658_v28  ;;  %v17659_v29 = vld [vmem:[#allocation10_spill] sm:$0xff]  ;;  %v9205_v31 = vld [vmem:[%s17245_s3 + $0x20] sm:$0xff]  ;;  %v9207_v41 = vld [vmem:[%s17245_s3 + $0x30] sm:$0xff] }
 0xb55   : > { %v9283_v54 = vadd.f32 %v9203_v38, %v17659_v29  ;;  %v9206_v5 = vld [vmem:[%s17245_s3 + $0x28] sm:$0xff]  ;;  %v17661_v60 = vld [vmem:[#allocation60_spill] sm:$0xff]  ;;  %v17662_v16 = vld [vmem:[#allocation61_spill] sm:$0xff] }
 0xb56   : > { %v17660_v15 = vld [vmem:[#allocation42_spill] sm:$0xff]  ;;  %9362 = vst.msk [vmem:[%s17245_s3] sm:$0xff] %vm9361_vm1, %v9281_v61  ;;  %v9285_v49 = vadd.f32 %v9205_v31, %v17661_v60  ;;  %v9208_v50 = vld [vmem:[%s17245_s3 + $0x38] sm:$0xff]  ;;  %v9286_v33 = vadd.f32 %v9206_v5, %v17662_v16  ;;  %v9209_v3 = vld [vmem:[%s17245_s3 + $0x40] sm:$0xff] }
 0xb57   : > { %v9284_v14 = vadd.f32 %v9204_v48, %v17660_v15  ;;  %9363 = vst.msk [vmem:[%s17245_s3 + $0x8] sm:$0xff] %vm9361_vm1, %v9282_v10  ;;  %v17663_v38 = vld [vmem:[#allocation80_spill] sm:$0xff]  ;;  %v9210_v61 = vld [vmem:[%s17245_s3 + $0x48] sm:$0xff]  ;;  %v17664_v28 = vld [vmem:[#allocation77_spill] sm:$0xff] }
 0xb58   : > { %9364 = vst.msk [vmem:[%s17245_s3 + $0x10] sm:$0xff] %vm9361_vm1, %v9283_v54  ;;  %v9287_v56 = vadd.f32 %v9207_v41, %v17663_v38  ;;  %v9288_v10 = vadd.f32 %v9208_v50, %v17664_v28  ;;  %v9211_v29 = vld [vmem:[%s17245_s3 + $0x50] sm:$0xff]  ;;  %v17665_v54 = vld [vmem:[#allocation69_spill] sm:$0xff]  ;;  %v9212_v31 = vld [vmem:[%s17245_s3 + $0x58] sm:$0xff] }
 0xb59   : > { %9365 = vst.msk [vmem:[%s17245_s3 + $0x18] sm:$0xff] %vm9361_vm1, %v9284_v14  ;;  %v9289_v48 = vadd.f32 %v9209_v3, %v17665_v54  ;;  %v17666_v5 = vld [vmem:[#allocation71_spill] sm:$0xff]  ;;  %v9213_v14 = vld [vmem:[%s17245_s3 + $0x60] sm:$0xff]  ;;  %v17667_v41 = vld [vmem:[#allocation72_spill] sm:$0xff] }
 0xb5a   : > { %9366 = vst.msk [vmem:[%s17245_s3 + $0x20] sm:$0xff] %vm9361_vm1, %v9285_v49  ;;  %v9290_v15 = vadd.f32 %v9210_v61, %v17666_v5  ;;  %v9291_v60 = vadd.f32 %v9211_v29, %v17667_v41  ;;  %v9214_v49 = vld [vmem:[%s17245_s3 + $0x68] sm:$0xff]  ;;  %v17668_v50 = vld [vmem:[#allocation81_spill] sm:$0xff]  ;;  %v17669_v3 = vld [vmem:[#allocation12_spill] sm:$0xff] }
 0xb5b   : > { %9367 = vst.msk [vmem:[%s17245_s3 + $0x28] sm:$0xff] %vm9361_vm1, %v9286_v33  ;;  %v9292_v16 = vadd.f32 %v9212_v31, %v17668_v50  ;;  %v9215_v33 = vld [vmem:[%s17245_s3 + $0x70] sm:$0xff]  ;;  %v9293_v38 = vadd.f32 %v9213_v14, %v17669_v3  ;;  %v17670_v61 = vld [vmem:[#allocation44_spill] sm:$0xff]  ;;  %v17671_v29 = vld [vmem:[#allocation14_spill] sm:$0xff] }
 0xb5c   : > { %9368 = vst.msk [vmem:[%s17245_s3 + $0x30] sm:$0xff] %vm9361_vm1, %v9287_v56  ;;  %v9216_v56 = vld [vmem:[%s17245_s3 + $0x78] sm:$0xff]  ;;  %v9294_v28 = vadd.f32 %v9214_v49, %v17670_v61  ;;  %v9295_v54 = vadd.f32 %v9215_v33, %v17671_v29  ;;  %v17672_v31 = vld [vmem:[#allocation46_spill] sm:$0xff] }
 0xb5d   : > { %9369 = vst.msk [vmem:[%s17245_s3 + $0x38] sm:$0xff] %vm9361_vm1, %v9288_v10  ;;  %v9217_v10 = vld [vmem:[%s17245_s3 + $0x80] sm:$0xff]  ;;  %v9296_v5 = vadd.f32 %v9216_v56, %v17672_v31  ;;  %v17673_v14 = vld [vmem:[#allocation16_spill] sm:$0xff]  ;;  %v17675_v33 = vld [vmem:[#allocation18_spill] sm:$0xff] }
 0xb5e   : > { %9370 = vst.msk [vmem:[%s17245_s3 + $0x40] sm:$0xff] %vm9361_vm1, %v9289_v48  ;;  %v9218_v48 = vld [vmem:[%s17245_s3 + $0x88] sm:$0xff]  ;;  %v9297_v41 = vadd.f32 %v9217_v10, %v17673_v14  ;;  %v17674_v49 = vld [vmem:[#allocation48_spill] sm:$0xff] }
 0xb5f   : > { %9371 = vst.msk [vmem:[%s17245_s3 + $0x48] sm:$0xff] %vm9361_vm1, %v9290_v15  ;;  %v9219_v15 = vld [vmem:[%s17245_s3 + $0x90] sm:$0xff]  ;;  %v9298_v50 = vadd.f32 %v9218_v48, %v17674_v49  ;;  %v17676_v56 = vld [vmem:[#allocation50_spill] sm:$0xff]  ;;  %v17677_v10 = vld [vmem:[#allocation20_spill] sm:$0xff] }
 0xb60   : > { %9372 = vst.msk [vmem:[%s17245_s3 + $0x50] sm:$0xff] %vm9361_vm1, %v9291_v60  ;;  %v9220_v60 = vld [vmem:[%s17245_s3 + $0x98] sm:$0xff]  ;;  %v9299_v3 = vadd.f32 %v9219_v15, %v17675_v33  ;;  %v17679_v15 = vld [vmem:[#allocation22_spill] sm:$0xff] }
 0xb61   : > { %9373 = vst.msk [vmem:[%s17245_s3 + $0x58] sm:$0xff] %vm9361_vm1, %v9292_v16  ;;  %v9221_v16 = vld [vmem:[%s17245_s3 + $0xa0] sm:$0xff]  ;;  %v9300_v61 = vadd.f32 %v9220_v60, %v17676_v56  ;;  %v17678_v48 = vld [vmem:[#allocation52_spill] sm:$0xff] }
 0xb62   : > { %9374 = vst.msk [vmem:[%s17245_s3 + $0x60] sm:$0xff] %vm9361_vm1, %v9293_v38  ;;  %v9222_v38 = vld [vmem:[%s17245_s3 + $0xa8] sm:$0xff]  ;;  %v9301_v29 = vadd.f32 %v9221_v16, %v17677_v10  ;;  %v17680_v60 = vld [vmem:[#allocation56_spill] sm:$0xff] }
 0xb63   : > { %9375 = vst.msk [vmem:[%s17245_s3 + $0x68] sm:$0xff] %vm9361_vm1, %v9294_v28  ;;  %v9223_v28 = vld [vmem:[%s17245_s3 + $0xb0] sm:$0xff]  ;;  %v9302_v31 = vadd.f32 %v9222_v38, %v17678_v48  ;;  %v17681_v16 = vld [vmem:[#allocation24_spill] sm:$0xff]  ;;  %v17682_v38 = vld [vmem:[#allocation58_spill] sm:$0xff] }
 0xb64   : > { %9376 = vst.msk [vmem:[%s17245_s3 + $0x70] sm:$0xff] %vm9361_vm1, %v9295_v54  ;;  %v9224_v54 = vld [vmem:[%s17245_s3 + $0xb8] sm:$0xff]  ;;  %v9303_v14 = vadd.f32 %v9223_v28, %v17679_v15  ;;  %v17683_v28 = vld [vmem:[#allocation26_spill] sm:$0xff]  ;;  %v9231_v48 = vld [vmem:[%s17245_s3 + $0xf0] sm:$0xff] }
 0xb65   : > { %9377 = vst.msk [vmem:[%s17245_s3 + $0x78] sm:$0xff] %vm9361_vm1, %v9296_v5  ;;  %v9225_v5 = vld [vmem:[%s17245_s3 + $0xc0] sm:$0xff]  ;;  %v9304_v49 = vadd.f32 %v9224_v54, %v17680_v60  ;;  %v9236_v60 = vld [vmem:[%s17245_s3 + $0x118] sm:$0xff] }
 0xb66   : > { %9378 = vst.msk [vmem:[%s17245_s3 + $0x80] sm:$0xff] %vm9361_vm1, %v9297_v41  ;;  %v9226_v41 = vld [vmem:[%s17245_s3 + $0xc8] sm:$0xff]  ;;  %v9305_v33 = vadd.f32 %v9225_v5, %v17681_v16  ;;  %v9232_v5 = vld [vmem:[%s17245_s3 + $0xf8] sm:$0xff]  ;;  %v9233_v15 = vld [vmem:[%s17245_s3 + $0x100] sm:$0xff] }
 0xb67   : > { %9379 = vst.msk [vmem:[%s17245_s3 + $0x88] sm:$0xff] %vm9361_vm1, %v9298_v50  ;;  %v9227_v50 = vld [vmem:[%s17245_s3 + $0xd0] sm:$0xff]  ;;  %v9306_v56 = vadd.f32 %v9226_v41, %v17682_v38  ;;  %v9242_v38 = vld [vmem:[%s17245_s3 + $0x148] sm:$0xff] }
 0xb68   : > { %9380 = vst.msk [vmem:[%s17245_s3 + $0x90] sm:$0xff] %vm9361_vm1, %v9299_v3  ;;  %v9228_v3 = vld [vmem:[%s17245_s3 + $0xd8] sm:$0xff]  ;;  %v9307_v10 = vadd.f32 %v9227_v50, %v17683_v28  ;;  %v9235_v41 = vld [vmem:[%s17245_s3 + $0x110] sm:$0xff]  ;;  %v9238_v50 = vld [vmem:[%s17245_s3 + $0x128] sm:$0xff] }
 0xb69   : > { %9381 = vst.msk [vmem:[%s17245_s3 + $0x98] sm:$0xff] %vm9361_vm1, %v9300_v61  ;;  %v9229_v61 = vld [vmem:[%s17245_s3 + $0xe0] sm:$0xff]  ;;  %v9308_v54 = vadd.f32 %v9228_v3, %v15895_v36  ;;  %v9239_v16 = vld [vmem:[%s17245_s3 + $0x130] sm:$0xff] }
 0xb6a   : > { %9382 = vst.msk [vmem:[%s17245_s3 + $0xa0] sm:$0xff] %vm9361_vm1, %v9301_v29  ;;  %v9230_v29 = vld [vmem:[%s17245_s3 + $0xe8] sm:$0xff]  ;;  %v9241_v3 = vld [vmem:[%s17245_s3 + $0x140] sm:$0xff] }
 0xb6b   : > { %9383 = vst.msk [vmem:[%s17245_s3 + $0xa8] sm:$0xff] %vm9361_vm1, %v9302_v31  ;;  %v9309_v31 = vadd.f32 %v9229_v61, %v15902_v18  ;;  %v9310_v36 = vadd.f32 %v9230_v29, %v15909_v63  ;;  %v9311_v18 = vadd.f32 %v9231_v48, %v15916_v42  ;;  %v9312_v63 = vadd.f32 %v9232_v5, %v15923_v45  ;;  %v9244_v61 = vld [vmem:[%s17245_s3 + $0x158] sm:$0xff]  ;;  %v9245_v28 = vld [vmem:[%s17245_s3 + $0x160] sm:$0xff]  ;;  %v9247_v29 = vld [vmem:[%s17245_s3 + $0x170] sm:$0xff] }
 0xb6c   : > { %9384 = vst.msk [vmem:[%s17245_s3 + $0xb0] sm:$0xff] %vm9361_vm1, %v9303_v14  ;;  %v9234_v14 = vld [vmem:[%s17245_s3 + $0x108] sm:$0xff]  ;;  %v9313_v42 = vadd.f32 %v9233_v15, %v15930_v62  ;;  %v9315_v62 = vadd.f32 %v9235_v41, %v15944_v58  ;;  %v9249_v48 = vld [vmem:[%s17245_s3 + $0x180] sm:$0xff]  ;;  %v9251_v5 = vld [vmem:[%s17245_s3 + $0x190] sm:$0xff] }
 0xb6d   : > { %9385 = vst.msk [vmem:[%s17245_s3 + $0xb8] sm:$0xff] %vm9361_vm1, %v9304_v49  ;;  %v9314_v45 = vadd.f32 %v9234_v14, %v15937_v59  ;;  %v9237_v49 = vld [vmem:[%s17245_s3 + $0x120] sm:$0xff]  ;;  %v9316_v59 = vadd.f32 %v9236_v60, %v15951_v20  ;;  %v9318_v20 = vadd.f32 %v9238_v50, %v15965_v24  ;;  %v9252_v15 = vld [vmem:[%s17245_s3 + $0x198] sm:$0xff]  ;;  %v9254_v41 = vld [vmem:[%s17245_s3 + $0x1a8] sm:$0xff] }
 0xb6e   : > { %9386 = vst.msk [vmem:[%s17245_s3 + $0xc0] sm:$0xff] %vm9361_vm1, %v9305_v33  ;;  %v9317_v58 = vadd.f32 %v9237_v49, %v15958_v43  ;;  %v9240_v33 = vld [vmem:[%s17245_s3 + $0x138] sm:$0xff]  ;;  %v9319_v43 = vadd.f32 %v9239_v16, %v15972_v4  ;;  %v9321_v4 = vadd.f32 %v9241_v3, %v15986_v53  ;;  %v9253_v14 = vld [vmem:[%s17245_s3 + $0x1a0] sm:$0xff]  ;;  %v9255_v60 = vld [vmem:[%s17245_s3 + $0x1b0] sm:$0xff] }
 0xb6f   : > { %9387 = vst.msk [vmem:[%s17245_s3 + $0xc8] sm:$0xff] %vm9361_vm1, %v9306_v56  ;;  %v9320_v24 = vadd.f32 %v9240_v33, %v15979_v25  ;;  %v9243_v56 = vld [vmem:[%s17245_s3 + $0x150] sm:$0xff]  ;;  %v9322_v25 = vadd.f32 %v9242_v38, %v15993_v0  ;;  %v9324_v0 = vadd.f32 %v9244_v61, %v16007_v51  ;;  %v9257_v49 = vld [vmem:[%s17245_s3 + $0x1c0] sm:$0xff]  ;;  %v17688_v33 = vld [vmem:[#allocation68_spill] sm:$0xff] }
 0xb70   : > { %9388 = vst.msk [vmem:[%s17245_s3 + $0xd0] sm:$0xff] %vm9361_vm1, %v9307_v10  ;;  %v9323_v53 = vadd.f32 %v9243_v56, %v16000_v13  ;;  %v9246_v10 = vld [vmem:[%s17245_s3 + $0x168] sm:$0xff]  ;;  %v9325_v13 = vadd.f32 %v9245_v28, %v16014_v39  ;;  %v9327_v39 = vadd.f32 %v9247_v29, %v16028_v47  ;;  %v9261_v3 = vld [vmem:[%s17245_s3 + $0x1e0] sm:$0xff]  ;;  %v9263_v56 = vld [vmem:[%s17245_s3 + $0x1f0] sm:$0xff] }
 0xb71   : > { %9389 = vst.msk [vmem:[%s17245_s3 + $0xd8] sm:$0xff] %vm9361_vm1, %v9308_v54  ;;  %v9248_v54 = vld [vmem:[%s17245_s3 + $0x178] sm:$0xff]  ;;  %v9326_v51 = vadd.f32 %v9246_v10, %v16021_v12  ;;  %v17684_v47 = vld [vmem:[#allocation62_spill] sm:$0xff]  ;;  %v9265_v61 = vld [vmem:[%s17245_s3 + $0x200] sm:$0xff] }
 0xb72   : > { %9390 = vst.msk [vmem:[%s17245_s3 + $0xe0] sm:$0xff] %vm9361_vm1, %v9309_v31  ;;  %v9250_v31 = vld [vmem:[%s17245_s3 + $0x188] sm:$0xff]  ;;  %v9328_v12 = vadd.f32 %v9248_v54, %v16035_v40  ;;  %v17685_v40 = vld [vmem:[#allocation28_spill] sm:$0xff]  ;;  %v9267_v28 = vld [vmem:[%s17245_s3 + $0x210] sm:$0xff] }
 0xb73   : > { %9391 = vst.msk [vmem:[%s17245_s3 + $0xe8] sm:$0xff] %vm9361_vm1, %v9310_v36  ;;  %v9329_v36 = vadd.f32 %v9249_v48, %v17684_v47  ;;  %v9262_v38 = vld [vmem:[%s17245_s3 + $0x1e8] sm:$0xff]  ;;  %v9269_v10 = vld [vmem:[%s17245_s3 + $0x220] sm:$0xff]  ;;  %v9271_v29 = vld [vmem:[%s17245_s3 + $0x230] sm:$0xff] }
 0xb74   : > { %9392 = vst.msk [vmem:[%s17245_s3 + $0xf0] sm:$0xff] %vm9361_vm1, %v9311_v18  ;;  %v9330_v18 = vadd.f32 %v9250_v31, %v17685_v40  ;;  %v9273_v54 = vld [vmem:[%s17245_s3 + $0x240] sm:$0xff]  ;;  %v9276_v31 = vld [vmem:[%s17245_s3 + $0x258] sm:$0xff] }
 0xb75   : > { %9393 = vst.msk [vmem:[%s17245_s3 + $0xf8] sm:$0xff] %vm9361_vm1, %v9312_v63  ;;  %v9331_v63 = vadd.f32 %v9251_v5, %v16056_v7  ;;  %v9333_v7 = vadd.f32 %v9253_v14, %v16070_v19  ;;  %v9335_v19 = vadd.f32 %v9255_v60, %v16084_v37  ;;  %v17687_v37 = vld [vmem:[#allocation30_spill] sm:$0xff]  ;;  %v9277_v47 = vld [vmem:[%s17245_s3 + $0x260] sm:$0xff]  ;;  %v9280_v14 = vld [vmem:[%s17245_s3 + $0x278] sm:$0xff] }
 0xb76   : > { %9394 = vst.msk [vmem:[%s17245_s3 + $0x100] sm:$0xff] %vm9361_vm1, %v9313_v42  ;;  %v9332_v42 = vadd.f32 %v9252_v15, %v16063_v27  ;;  %v9334_v27 = vadd.f32 %v9254_v41, %v16077_v8  ;;  %v17686_v8 = vld [vmem:[#allocation64_spill] sm:$0xff]  ;;  %v9337_v16 = vadd.f32 %v9257_v49, %v17687_v37  ;;  %v17691_v15 = vld [vmem:[#allocation5_spill] sm:$0xff] }
 0xb77   : > { %9395 = vst.msk [vmem:[%s17245_s3 + $0x108] sm:$0xff] %vm9361_vm1, %v9314_v45  ;;  %v9256_v45 = vld [vmem:[%s17245_s3 + $0x1b8] sm:$0xff]  ;;  %v9356_v40 = vadd.f32 %v9276_v31, %v17691_v15 }
 0xb78   : > { %9396 = vst.msk [vmem:[%s17245_s3 + $0x110] sm:$0xff] %vm9361_vm1, %v9315_v62  ;;  %v9258_v62 = vld [vmem:[%s17245_s3 + $0x1c8] sm:$0xff]  ;;  %v9336_v50 = vadd.f32 %v9256_v45, %v17686_v8 }
 0xb79   : > { %9397 = vst.msk [vmem:[%s17245_s3 + $0x118] sm:$0xff] %vm9361_vm1, %v9316_v59  ;;  %v9259_v59 = vld [vmem:[%s17245_s3 + $0x1d0] sm:$0xff] }
 0xb7a   : > { %9398 = vst.msk [vmem:[%s17245_s3 + $0x120] sm:$0xff] %vm9361_vm1, %v9317_v58  ;;  %v9260_v58 = vld [vmem:[%s17245_s3 + $0x1d8] sm:$0xff] }
 0xb7b   : > { %9399 = vst.msk [vmem:[%s17245_s3 + $0x128] sm:$0xff] %vm9361_vm1, %v9318_v20  ;;  %v9338_v20 = vadd.f32 %v9258_v62, %v17688_v33 }
 0xb7c   : > { %9400 = vst.msk [vmem:[%s17245_s3 + $0x130] sm:$0xff] %vm9361_vm1, %v9319_v43  ;;  %v9339_v43 = vadd.f32 %v9259_v59, %v16112_v2  ;;  %v9341_v2 = vadd.f32 %v9261_v3, %v16122_v35  ;;  %v9343_v35 = vadd.f32 %v9263_v56, %v16132_v11  ;;  %v9345_v11 = vadd.f32 %v9265_v61, %v16138_v9 }
 0xb7d   : > { %9401 = vst.msk [vmem:[%s17245_s3 + $0x138] sm:$0xff] %vm9361_vm1, %v9320_v24  ;;  %v9340_v24 = vadd.f32 %v9260_v58, %v16119_v34  ;;  %v9342_v34 = vadd.f32 %v9262_v38, %v16129_v55  ;;  %v9347_v9 = vadd.f32 %v9267_v28, %v16144_v57  ;;  %v9349_v57 = vadd.f32 %v9269_v10, %v16150_v23 }
 0xb7e   : > { %9402 = vst.msk [vmem:[%s17245_s3 + $0x140] sm:$0xff] %vm9361_vm1, %v9321_v4  ;;  %v9264_v4 = vld [vmem:[%s17245_s3 + $0x1f8] sm:$0xff]  ;;  %v9351_v23 = vadd.f32 %v9271_v29, %v16154_v22  ;;  %v9353_v22 = vadd.f32 %v9273_v54, %v16160_v30 }
 0xb7f   : > { %9403 = vst.msk [vmem:[%s17245_s3 + $0x148] sm:$0xff] %vm9361_vm1, %v9322_v25  ;;  %v9266_v25 = vld [vmem:[%s17245_s3 + $0x208] sm:$0xff]  ;;  %v9344_v55 = vadd.f32 %v9264_v4, %v16135_v21 }
 0xb80   : > { %9404 = vst.msk [vmem:[%s17245_s3 + $0x150] sm:$0xff] %vm9361_vm1, %v9323_v53  ;;  %v9268_v53 = vld [vmem:[%s17245_s3 + $0x218] sm:$0xff]  ;;  %v9346_v21 = vadd.f32 %v9266_v25, %v16141_v26 }
 0xb81   : > { %9405 = vst.msk [vmem:[%s17245_s3 + $0x158] sm:$0xff] %vm9361_vm1, %v9324_v0  ;;  %v9270_v0 = vld [vmem:[%s17245_s3 + $0x228] sm:$0xff]  ;;  %v9348_v26 = vadd.f32 %v9268_v53, %v16147_v32 }
 0xb82   : > { %9406 = vst.msk [vmem:[%s17245_s3 + $0x160] sm:$0xff] %vm9361_vm1, %v9325_v13  ;;  %v9272_v13 = vld [vmem:[%s17245_s3 + $0x238] sm:$0xff]  ;;  %v9350_v32 = vadd.f32 %v9270_v0, %v16152_v46 }
 0xb83   : > { %9407 = vst.msk [vmem:[%s17245_s3 + $0x168] sm:$0xff] %vm9361_vm1, %v9326_v51  ;;  %v9274_v51 = vld [vmem:[%s17245_s3 + $0x248] sm:$0xff]  ;;  %v17689_v46 = vld [vmem:[#allocation32_spill] sm:$0xff] }
 0xb84   : > { %9408 = vst.msk [vmem:[%s17245_s3 + $0x170] sm:$0xff] %vm9361_vm1, %v9327_v39  ;;  %v9352_v48 = vadd.f32 %v9272_v13, %v17689_v46  ;;  %v9275_v39 = vld [vmem:[%s17245_s3 + $0x250] sm:$0xff] }
 0xb85   : > { %9409 = vst.msk [vmem:[%s17245_s3 + $0x178] sm:$0xff] %vm9361_vm1, %v9328_v12  ;;  %v17690_v12 = vld [vmem:[#allocation73_spill] sm:$0xff]  ;;  %v9355_v30 = vadd.f32 %v9275_v39, %v16166_v6  ;;  %v9357_v6 = vadd.f32 %v9277_v47, %v16172_v17  ;;  %v9360_v17 = vadd.f32 %v9280_v14, %v16180_v1 }
 0xb86   : > { %9410 = vst.msk [vmem:[%s17245_s3 + $0x180] sm:$0xff] %vm9361_vm1, %v9329_v36  ;;  %v9354_v5 = vadd.f32 %v9274_v51, %v17690_v12  ;;  %v9278_v36 = vld [vmem:[%s17245_s3 + $0x268] sm:$0xff] }
 0xb87   : > { %9411 = vst.msk [vmem:[%s17245_s3 + $0x188] sm:$0xff] %vm9361_vm1, %v9330_v18  ;;  %v9279_v18 = vld [vmem:[%s17245_s3 + $0x270] sm:$0xff] }
 0xb88   : > { %9412 = vst.msk [vmem:[%s17245_s3 + $0x190] sm:$0xff] %vm9361_vm1, %v9331_v63  ;;  %v9358_v63 = vadd.f32 %v9278_v36, %v16175_v44  ;;  %v9359_v41 = vadd.f32 %v9279_v18, %v16178_v52 }
 0xb89   : > { %9413 = vst.msk [vmem:[%s17245_s3 + $0x198] sm:$0xff] %vm9361_vm1, %v9332_v42 }
 0xb8a   : > { %9414 = vst.msk [vmem:[%s17245_s3 + $0x1a0] sm:$0xff] %vm9361_vm1, %v9333_v7 }
 0xb8b   : > { %9415 = vst.msk [vmem:[%s17245_s3 + $0x1a8] sm:$0xff] %vm9361_vm1, %v9334_v27 }
 0xb8c   : > { %9416 = vst.msk [vmem:[%s17245_s3 + $0x1b0] sm:$0xff] %vm9361_vm1, %v9335_v19 }
 0xb8d   : > { %9417 = vst.msk [vmem:[%s17245_s3 + $0x1b8] sm:$0xff] %vm9361_vm1, %v9336_v50 }
 0xb8e   : > { %9418 = vst.msk [vmem:[%s17245_s3 + $0x1c0] sm:$0xff] %vm9361_vm1, %v9337_v16 }
 0xb8f   : > { %9419 = vst.msk [vmem:[%s17245_s3 + $0x1c8] sm:$0xff] %vm9361_vm1, %v9338_v20 }
 0xb90   : > { %9420 = vst.msk [vmem:[%s17245_s3 + $0x1d0] sm:$0xff] %vm9361_vm1, %v9339_v43 }
 0xb91   : > { %9421 = vst.msk [vmem:[%s17245_s3 + $0x1d8] sm:$0xff] %vm9361_vm1, %v9340_v24 }
 0xb92   : > { %9422 = vst.msk [vmem:[%s17245_s3 + $0x1e0] sm:$0xff] %vm9361_vm1, %v9341_v2 }
 0xb93   : > { %9423 = vst.msk [vmem:[%s17245_s3 + $0x1e8] sm:$0xff] %vm9361_vm1, %v9342_v34 }
 0xb94   : > { %9424 = vst.msk [vmem:[%s17245_s3 + $0x1f0] sm:$0xff] %vm9361_vm1, %v9343_v35 }
 0xb95   : > { %9425 = vst.msk [vmem:[%s17245_s3 + $0x1f8] sm:$0xff] %vm9361_vm1, %v9344_v55 }
 0xb96   : > { %9426 = vst.msk [vmem:[%s17245_s3 + $0x200] sm:$0xff] %vm9361_vm1, %v9345_v11 }
 0xb97   : > { %9427 = vst.msk [vmem:[%s17245_s3 + $0x208] sm:$0xff] %vm9361_vm1, %v9346_v21 }
 0xb98   : > { %9428 = vst.msk [vmem:[%s17245_s3 + $0x210] sm:$0xff] %vm9361_vm1, %v9347_v9 }
 0xb99   : > { %9429 = vst.msk [vmem:[%s17245_s3 + $0x218] sm:$0xff] %vm9361_vm1, %v9348_v26 }
 0xb9a   : > { %9430 = vst.msk [vmem:[%s17245_s3 + $0x220] sm:$0xff] %vm9361_vm1, %v9349_v57 }
 0xb9b   : > { %9431 = vst.msk [vmem:[%s17245_s3 + $0x228] sm:$0xff] %vm9361_vm1, %v9350_v32 }
 0xb9c   : > { %9432 = vst.msk [vmem:[%s17245_s3 + $0x230] sm:$0xff] %vm9361_vm1, %v9351_v23 }
 0xb9d   : > { %9433 = vst.msk [vmem:[%s17245_s3 + $0x238] sm:$0xff] %vm9361_vm1, %v9352_v48 }
 0xb9e   : > { %9434 = vst.msk [vmem:[%s17245_s3 + $0x240] sm:$0xff] %vm9361_vm1, %v9353_v22 }
 0xb9f   : > { %9435 = vst.msk [vmem:[%s17245_s3 + $0x248] sm:$0xff] %vm9361_vm1, %v9354_v5 }
 0xba0   : > { %9436 = vst.msk [vmem:[%s17245_s3 + $0x250] sm:$0xff] %vm9361_vm1, %v9355_v30 }
 0xba1   : > { %9437 = vst.msk [vmem:[%s17245_s3 + $0x258] sm:$0xff] %vm9361_vm1, %v9356_v40 }
 0xba2   : > { %9438 = vst.msk [vmem:[%s17245_s3 + $0x260] sm:$0xff] %vm9361_vm1, %v9357_v6 }
 0xba3   : > { %9439 = vst.msk [vmem:[%s17245_s3 + $0x268] sm:$0xff] %vm9361_vm1, %v9358_v63 }
 0xba4   : > { %9440 = vst.msk [vmem:[%s17245_s3 + $0x270] sm:$0xff] %vm9361_vm1, %v9359_v41 }
 0xba5   : > { %9441 = vst.msk [vmem:[%s17245_s3 + $0x278] sm:$0xff] %vm9361_vm1, %v9360_v17 }
 0xba6 PF: > { %s16_s17 = sadd.s32 1, %s12724_s17   ;;  %s17692_s12 = smov %s12708_s13 }
 0xba7   : > { %p13_p2 = scmp.ge.s32.totalorder %s16_s17, 4   ;;  %s17693_s13 = smov %s12712_s14 }
 0xba8   : > { %s17694_s14 = smov %s12795_s23  ;;  %s17695_s15 = smov %s12720_s16 }
 0xba9   : > { %s17696_s16 = smov %s17698_s19  ;;  %15 = sbr.rel (!%p13_p2) target bundleno = 4 (0x4), region = 86 }
 0xbae   :  { %9464 = vsyncpa [#allocation3], 1 }
 0xbaf   :  { %9466 = vsyncpa [#allocation3 + $0x1], 1 }

</bundles_post_ra>
